<compile_context>
chip_gen: v7x
topology: tpu7x:2x2x1
jax: 0.10.0
libtpu: 0.0.40
codegen_flags: <defaults>
</compile_context>

<pallas_src>
import jax
import jax.numpy as jnp
from jax.experimental import pallas as pl
from jax.experimental.pallas import tpu as pltpu

BN_EPS = 1e-5
HIDDEN = 800
HIDDEN_PAD = 896  # 7 * 128: lane-aligned so Mosaic needs no masked vregs.


def _bn_relu_train(h, gamma, beta):
    """Training-mode BatchNorm1d (biased variance) fused with ReLU.

    Two-pass (centered) variance: post-ReLU inputs are non-negative, so the
    one-pass E[h^2]-mu^2 form is cancellation-prone; the extra traversal of h is
    free (the kernel is DMA/overhead bound, not VPU bound).  gamma/beta are
    folded into a single scale/add on the centered tensor.
    """
    mu = jnp.mean(h, axis=0, keepdims=True)
    c = h - mu
    var = jnp.mean(c * c, axis=0, keepdims=True)
    scale = gamma * jax.lax.rsqrt(var + BN_EPS)
    return jnp.maximum(c * scale + beta, 0.0)


def pendulum_decoder_kernel(
    z_ref,
    w1_ref, g1_ref, be1_ref,
    w2_ref, g2_ref, be2_ref,
    w3_ref, b3_ref,
    out_ref,
):
    # Layer 1: Linear -> BN -> ReLU.  K = dim_in is tiny (3), so the dot stays in
    # f32 (no bf16 cast of z; the MXU is nearly idle here anyway).  Bias b1 is
    # omitted: a per-feature constant before batch-statistics BN is exactly
    # cancelled by the mean subtraction.
    h = jnp.dot(z_ref[...], w1_ref[...], preferred_element_type=jnp.float32)
    h = _bn_relu_train(h, g1_ref[...], be1_ref[...])

    # Layer 2: Linear -> BN -> ReLU (bias b2 omitted, same argument).
    # TODO(synk): w2/w3 could be compressed further (int8 on v5e/v6e, fp8 on v7x)
    # with per-output-column scales folded into the BN affine / applied before
    # b3; the dtype choice is chip-generation specific so this portable kernel
    # keeps bf16.
    h = jnp.dot(h.astype(jnp.bfloat16), w2_ref[...],
                preferred_element_type=jnp.float32)
    h = _bn_relu_train(h, g2_ref[...], be2_ref[...])

    # Layer 3: Linear -> Sigmoid (bias b3 is NOT cancelled, keep it).
    logits = jnp.dot(h.astype(jnp.bfloat16), w3_ref[...],
                     preferred_element_type=jnp.float32)
    out_ref[...] = jax.nn.sigmoid(logits + b3_ref[...])


def pendulum_decoder(z, params):
    """z: (G, B, dim_in) — G independent BN-batches of B samples each.

    grid=(G,): weight / BN-param BlockSpecs use constant index_maps so Pallas
    keeps them VMEM-resident across grid steps (one weight DMA amortized over all
    G batches); z/out blocks index on the grid step.  The grid axis is marked
    "parallel" so v7x shards the groups across its 2 TensorCores.  BatchNorm
    statistics are computed per group, matching G independent forward() calls of
    the PyTorch module.
    """
    G, B, dim_in = z.shape
    dim_out = params["w3"].shape[1]

    def const_spec(shape):
        nd = len(shape)
        return pl.BlockSpec(shape, lambda g, _nd=nd: (0,) * _nd)

    in_specs = [
        pl.BlockSpec((None, B, dim_in), lambda g: (g, 0, 0)),  # z: per-group block
        const_spec(params["w1"].shape),
        const_spec(params["g1"].shape),
        const_spec(params["be1"].shape),
        const_spec(params["w2"].shape),
        const_spec(params["g2"].shape),
        const_spec(params["be2"].shape),
        const_spec(params["w3"].shape),
        const_spec(params["b3"].shape),
    ]
    out_spec = pl.BlockSpec((None, B, dim_out), lambda g: (g, 0, 0))

    return pl.pallas_call(
        pendulum_decoder_kernel,
        out_shape=jax.ShapeDtypeStruct((G, B, dim_out), jnp.float32),
        grid=(G,),
        in_specs=in_specs,
        out_specs=out_spec,
        compiler_params=pltpu.CompilerParams(
            dimension_semantics=("parallel",),
            vmem_limit_bytes=32 << 20,
        ),
    )(
        z,
        params["w1"], params["g1"], params["be1"],
        params["w2"], params["g2"], params["be2"],
        params["w3"], params["b3"],
    )


def init_params(key, dim_in, dim_out, hidden=HIDDEN, hidden_pad=HIDDEN_PAD):
    """Deterministic init mimicking PyTorch defaults (U(-1/sqrt(fan_in), +)).

    Returns (kernel_params, reference_params).  Kernel params are zero-padded to
    hidden_pad features and carry bf16 weights for the two big matmuls; the
    reference uses the same (bf16-dequantized) unpadded values plus the b1/b2
    biases the kernel legitimately drops.
    """
    ks = jax.random.split(key, 10)

    def linear(kw, kb, fan_in, fan_out):
        bound = 1.0 / jnp.sqrt(fan_in)
        w = jax.random.uniform(kw, (fan_in, fan_out), jnp.float32, -bound, bound)
        b = jax.random.uniform(kb, (1, fan_out), jnp.float32, -bound, bound)
        return w, b

    w1, b1 = linear(ks[0], ks[1], dim_in, hidden)
    w2, b2 = linear(ks[2], ks[3], hidden, hidden)
    w3, b3 = linear(ks[4], ks[5], hidden, dim_out)

    # BatchNorm affine params (PyTorch default gamma=1, beta=0); perturbed so the
    # affine path is exercised, still deterministic.
    g1 = 1.0 + 0.01 * jax.random.normal(ks[6], (1, hidden), jnp.float32)
    be1 = 0.01 * jax.random.normal(ks[7], (1, hidden), jnp.float32)
    g2 = 1.0 + 0.01 * jax.random.normal(ks[8], (1, hidden), jnp.float32)
    be2 = 0.01 * jax.random.normal(ks[9], (1, hidden), jnp.float32)

    # bf16 weights for the two HBM-dominant matmuls (halves their DMA bytes);
    # w1 is tiny (dim_in x hidden_pad) and stays f32 for the f32 layer-1 dot.
    w2_bf = w2.astype(jnp.bfloat16)
    w3_bf = w3.astype(jnp.bfloat16)

    pad = hidden_pad - hidden

    # Zero-pad hidden 800 -> 896.  Padded features stay exactly zero end-to-end:
    # zero w1 columns -> h = 0; BN with gamma=1 / beta=0 keeps them 0; ReLU(0)=0;
    # zero w2/w3 rows -> no downstream contribution.
    kernel_params = dict(
        w1=jnp.pad(w1, ((0, 0), (0, pad))),
        g1=jnp.pad(g1, ((0, 0), (0, pad)), constant_values=1.0),
        be1=jnp.pad(be1, ((0, 0), (0, pad))),
        w2=jnp.pad(w2_bf, ((0, pad), (0, pad))),
        g2=jnp.pad(g2, ((0, 0), (0, pad)), constant_values=1.0),
        be2=jnp.pad(be2, ((0, 0), (0, pad))),
        w3=jnp.pad(w3_bf, ((0, pad), (0, 0))),
        b3=b3,
    )
    ref_params = dict(
        w1=w1, b1=b1, g1=g1, be1=be1,
        w2=w2_bf.astype(jnp.float32), b2=b2, g2=g2, be2=be2,
        w3=w3_bf.astype(jnp.float32), b3=b3,
    )
    return kernel_params, ref_params


def _bn_ref(h, gamma, beta):
    mu = jnp.mean(h, axis=0, keepdims=True)
    var = jnp.mean((h - mu) ** 2, axis=0, keepdims=True)
    return (h - mu) * jax.lax.rsqrt(var + BN_EPS) * gamma + beta


def reference(z, p):
    """PyTorch-faithful f32 forward (with b1/b2, two-pass BN) applied per group,
    on the same weight values the kernel sees (bf16 dequantized)."""

    def one_group(zg):
        h = zg @ p["w1"] + p["b1"]
        h = jnp.maximum(_bn_ref(h, p["g1"], p["be1"]), 0.0)
        h = h @ p["w2"] + p["b2"]
        h = jnp.maximum(_bn_ref(h, p["g2"], p["be2"]), 0.0)
        return jax.nn.sigmoid(h @ p["w3"] + p["b3"])

    return jax.vmap(one_group)(z)


if __name__ == "__main__":
    # hidden=800 is fixed by the module (padded to 896 internally); dim_in /
    # dim_out kept small.  G independent BN-batches of B samples each go through
    # one pallas_call so the weight DMA / launch overhead is amortized and v7x
    # can split the groups across both TensorCores.  B=128 fills the MXU row
    # dimension (BN needs a full group in one grid step, so the batch axis of a
    # group is never split).
    G, B, DIM_IN, DIM_OUT = 4, 128, 3, 256

    key = jax.random.PRNGKey(0)
    kz, kp = jax.random.split(key)
    z = jax.random.normal(kz, (G, B, DIM_IN), jnp.float32)
    kparams, rparams = init_params(kp, DIM_IN, DIM_OUT)

    out = jax.block_until_ready(pendulum_decoder(z, kparams))
    ref = jax.block_until_ready(reference(z, rparams))

    assert out.shape == (G, B, DIM_OUT)
    err = float(jnp.max(jnp.abs(out - ref)))
    # Activations are cast to bf16 before the two big MXU dots; post-sigmoid
    # error stays well below 2e-2.
    assert err < 2e-2, f"mismatch vs JAX reference: {err}"

    print("KERNEL_OK")
</pallas_src>

<mosaic_0001>
module attributes {stable_mosaic.version = 11 : i64} {
  func.func @pendulum_decoder_kernel(%arg0: i32, %arg1: memref<1x128x3xf32, #tpu.memory_space<vmem>>, %arg2: memref<3x896xf32, #tpu.memory_space<vmem>>, %arg3: memref<1x896xf32, #tpu.memory_space<vmem>>, %arg4: memref<1x896xf32, #tpu.memory_space<vmem>>, %arg5: memref<896x896xbf16, #tpu.memory_space<vmem>>, %arg6: memref<1x896xf32, #tpu.memory_space<vmem>>, %arg7: memref<1x896xf32, #tpu.memory_space<vmem>>, %arg8: memref<896x256xbf16, #tpu.memory_space<vmem>>, %arg9: memref<1x256xf32, #tpu.memory_space<vmem>>, %arg10: memref<1x128x256xf32, #tpu.memory_space<vmem>>) attributes {dimension_semantics = [#tpu.dimension_semantics<parallel>], iteration_bounds = array<i64: 4>, scalar_prefetch = 0 : i64, scratch_operands = 0 : i64, tpu.core_type = #tpu.core_type<tc>, window_params = [{transform_indices = @transform_0, window_bounds = array<i64: 1, 128, 3>}, {pipeline_mode = #tpu.pipeline_mode<synchronous>, transform_indices = @transform_1, window_bounds = array<i64: 3, 896>}, {pipeline_mode = #tpu.pipeline_mode<synchronous>, transform_indices = @transform_2, window_bounds = array<i64: 1, 896>}, {pipeline_mode = #tpu.pipeline_mode<synchronous>, transform_indices = @transform_3, window_bounds = array<i64: 1, 896>}, {pipeline_mode = #tpu.pipeline_mode<synchronous>, transform_indices = @transform_4, window_bounds = array<i64: 896, 896>}, {pipeline_mode = #tpu.pipeline_mode<synchronous>, transform_indices = @transform_5, window_bounds = array<i64: 1, 896>}, {pipeline_mode = #tpu.pipeline_mode<synchronous>, transform_indices = @transform_6, window_bounds = array<i64: 1, 896>}, {pipeline_mode = #tpu.pipeline_mode<synchronous>, transform_indices = @transform_7, window_bounds = array<i64: 896, 256>}, {pipeline_mode = #tpu.pipeline_mode<synchronous>, transform_indices = @transform_8, window_bounds = array<i64: 1, 256>}, {transform_indices = @transform_9, window_bounds = array<i64: 1, 128, 256>}]} {
    %c0 = arith.constant 0 : index
    %c0_0 = arith.constant 0 : index
    %c0_1 = arith.constant 0 : index
    %0 = vector.load %arg1[%c0, %c0_0, %c0_1] : memref<1x128x3xf32, #tpu.memory_space<vmem>>, vector<1x128x3xf32>
    %1 = vector.shape_cast %0 : vector<1x128x3xf32> to vector<128x3xf32>
    %c0_2 = arith.constant 0 : index
    %c0_3 = arith.constant 0 : index
    %2 = vector.load %arg2[%c0_2, %c0_3] : memref<3x896xf32, #tpu.memory_space<vmem>>, vector<3x896xf32>
    %cst = arith.constant dense<0.000000e+00> : vector<128x896xf32>
    %3 = tpu.matmul %1, %2, %cst {dimension_numbers = #tpu.dot_dimension_numbers<[1], [0], [0], [1], [0, 0, 1, 1], [], []>} : vector<128x3xf32>, vector<3x896xf32>, vector<128x896xf32> -> vector<128x896xf32>
    %c0_4 = arith.constant 0 : index
    %c0_5 = arith.constant 0 : index
    %4 = vector.load %arg3[%c0_4, %c0_5] : memref<1x896xf32, #tpu.memory_space<vmem>>, vector<1x896xf32>
    %c0_6 = arith.constant 0 : index
    %c0_7 = arith.constant 0 : index
    %5 = vector.load %arg4[%c0_6, %c0_7] : memref<1x896xf32, #tpu.memory_space<vmem>>, vector<1x896xf32>
    %cst_8 = arith.constant dense<0.000000e+00> : vector<896xf32>
    %6 = vector.multi_reduction <add>, %3, %cst_8 [0] : vector<128x896xf32> to vector<896xf32>
    %7 = vector.shape_cast %6 : vector<896xf32> to vector<1x896xf32>
    %cst_9 = arith.constant 1.280000e+02 : f32
    %8 = vector.broadcast %cst_9 : f32 to vector<1x896xf32>
    %9 = arith.divf %7, %8 : vector<1x896xf32>
    %10 = vector.broadcast %9 : vector<1x896xf32> to vector<128x896xf32>
    %11 = arith.subf %3, %10 : vector<128x896xf32>
    %12 = arith.mulf %11, %11 : vector<128x896xf32>
    %cst_10 = arith.constant dense<0.000000e+00> : vector<896xf32>
    %13 = vector.multi_reduction <add>, %12, %cst_10 [0] : vector<128x896xf32> to vector<896xf32>
    %14 = vector.shape_cast %13 : vector<896xf32> to vector<1x896xf32>
    %cst_11 = arith.constant 1.280000e+02 : f32
    %15 = vector.broadcast %cst_11 : f32 to vector<1x896xf32>
    %16 = arith.divf %14, %15 : vector<1x896xf32>
    %cst_12 = arith.constant 9.99999974E-6 : f32
    %17 = vector.broadcast %cst_12 : f32 to vector<1x896xf32>
    %18 = arith.addf %16, %17 : vector<1x896xf32>
    %19 = math.rsqrt %18 : vector<1x896xf32>
    %20 = arith.mulf %4, %19 : vector<1x896xf32>
    %21 = vector.broadcast %20 : vector<1x896xf32> to vector<128x896xf32>
    %22 = arith.mulf %11, %21 : vector<128x896xf32>
    %23 = vector.broadcast %5 : vector<1x896xf32> to vector<128x896xf32>
    %24 = arith.addf %22, %23 : vector<128x896xf32>
    %cst_13 = arith.constant 0.000000e+00 : f32
    %25 = vector.broadcast %cst_13 : f32 to vector<128x896xf32>
    %26 = arith.maximumf %24, %25 : vector<128x896xf32>
    %27 = arith.truncf %26 : vector<128x896xf32> to vector<128x896xbf16>
    %c0_14 = arith.constant 0 : index
    %c0_15 = arith.constant 0 : index
    %28 = vector.load %arg5[%c0_14, %c0_15] : memref<896x896xbf16, #tpu.memory_space<vmem>>, vector<896x896xbf16>
    %cst_16 = arith.constant dense<0.000000e+00> : vector<128x896xf32>
    %29 = tpu.matmul %27, %28, %cst_16 {dimension_numbers = #tpu.dot_dimension_numbers<[1], [0], [0], [1], [0, 0, 1, 1], [], []>} : vector<128x896xbf16>, vector<896x896xbf16>, vector<128x896xf32> -> vector<128x896xf32>
    %c0_17 = arith.constant 0 : index
    %c0_18 = arith.constant 0 : index
    %30 = vector.load %arg6[%c0_17, %c0_18] : memref<1x896xf32, #tpu.memory_space<vmem>>, vector<1x896xf32>
    %c0_19 = arith.constant 0 : index
    %c0_20 = arith.constant 0 : index
    %31 = vector.load %arg7[%c0_19, %c0_20] : memref<1x896xf32, #tpu.memory_space<vmem>>, vector<1x896xf32>
    %cst_21 = arith.constant dense<0.000000e+00> : vector<896xf32>
    %32 = vector.multi_reduction <add>, %29, %cst_21 [0] : vector<128x896xf32> to vector<896xf32>
    %33 = vector.shape_cast %32 : vector<896xf32> to vector<1x896xf32>
    %cst_22 = arith.constant 1.280000e+02 : f32
    %34 = vector.broadcast %cst_22 : f32 to vector<1x896xf32>
    %35 = arith.divf %33, %34 : vector<1x896xf32>
    %36 = vector.broadcast %35 : vector<1x896xf32> to vector<128x896xf32>
    %37 = arith.subf %29, %36 : vector<128x896xf32>
    %38 = arith.mulf %37, %37 : vector<128x896xf32>
    %cst_23 = arith.constant dense<0.000000e+00> : vector<896xf32>
    %39 = vector.multi_reduction <add>, %38, %cst_23 [0] : vector<128x896xf32> to vector<896xf32>
    %40 = vector.shape_cast %39 : vector<896xf32> to vector<1x896xf32>
    %cst_24 = arith.constant 1.280000e+02 : f32
    %41 = vector.broadcast %cst_24 : f32 to vector<1x896xf32>
    %42 = arith.divf %40, %41 : vector<1x896xf32>
    %cst_25 = arith.constant 9.99999974E-6 : f32
    %43 = vector.broadcast %cst_25 : f32 to vector<1x896xf32>
    %44 = arith.addf %42, %43 : vector<1x896xf32>
    %45 = math.rsqrt %44 : vector<1x896xf32>
    %46 = arith.mulf %30, %45 : vector<1x896xf32>
    %47 = vector.broadcast %46 : vector<1x896xf32> to vector<128x896xf32>
    %48 = arith.mulf %37, %47 : vector<128x896xf32>
    %49 = vector.broadcast %31 : vector<1x896xf32> to vector<128x896xf32>
    %50 = arith.addf %48, %49 : vector<128x896xf32>
    %cst_26 = arith.constant 0.000000e+00 : f32
    %51 = vector.broadcast %cst_26 : f32 to vector<128x896xf32>
    %52 = arith.maximumf %50, %51 : vector<128x896xf32>
    %53 = arith.truncf %52 : vector<128x896xf32> to vector<128x896xbf16>
    %c0_27 = arith.constant 0 : index
    %c0_28 = arith.constant 0 : index
    %54 = vector.load %arg8[%c0_27, %c0_28] : memref<896x256xbf16, #tpu.memory_space<vmem>>, vector<896x256xbf16>
    %cst_29 = arith.constant dense<0.000000e+00> : vector<128x256xf32>
    %55 = tpu.matmul %53, %54, %cst_29 {dimension_numbers = #tpu.dot_dimension_numbers<[1], [0], [0], [1], [0, 0, 1, 1], [], []>} : vector<128x896xbf16>, vector<896x256xbf16>, vector<128x256xf32> -> vector<128x256xf32>
    %c0_30 = arith.constant 0 : index
    %c0_31 = arith.constant 0 : index
    %56 = vector.load %arg9[%c0_30, %c0_31] : memref<1x256xf32, #tpu.memory_space<vmem>>, vector<1x256xf32>
    %57 = vector.broadcast %56 : vector<1x256xf32> to vector<128x256xf32>
    %58 = arith.addf %55, %57 : vector<128x256xf32>
    %59 = arith.negf %58 : vector<128x256xf32>
    %60 = math.exp %59 : vector<128x256xf32>
    %cst_32 = arith.constant 1.000000e+00 : f32
    %61 = vector.broadcast %cst_32 : f32 to vector<128x256xf32>
    %62 = arith.addf %61, %60 : vector<128x256xf32>
    %63 = arith.divf %61, %62 : vector<128x256xf32>
    %c0_33 = arith.constant 0 : index
    %c0_34 = arith.constant 0 : index
    %c0_35 = arith.constant 0 : index
    %64 = vector.load %arg10[%c0_33, %c0_34, %c0_35] : memref<1x128x256xf32, #tpu.memory_space<vmem>>, vector<1x128x256xf32>
    %65 = vector.shape_cast %64 : vector<1x128x256xf32> to vector<128x256xf32>
    %66 = vector.shape_cast %63 : vector<128x256xf32> to vector<1x128x256xf32>
    tpu.vector_store %arg10[%c0_33, %c0_34, %c0_35], %66 {strides = array<i32>} : memref<1x128x256xf32, #tpu.memory_space<vmem>>, vector<1x128x256xf32>,
    return
  }
  func.func @transform_0(%arg0: i32) -> (i32, i32, i32) {
    %c0_i32 = arith.constant 0 : i32
    %c0_i32_0 = arith.constant 0 : i32
    %c0_i32_1 = arith.constant 0 : i32
    return %arg0, %c0_i32, %c0_i32_0 : i32, i32, i32
  }
  func.func @transform_1(%arg0: i32) -> (i32, i32) {
    %c0_i32 = arith.constant 0 : i32
    %c0_i32_0 = arith.constant 0 : i32
    %c0_i32_1 = arith.constant 0 : i32
    return %c0_i32, %c0_i32_0 : i32, i32
  }
  func.func @transform_2(%arg0: i32) -> (i32, i32) {
    %c0_i32 = arith.constant 0 : i32
    %c0_i32_0 = arith.constant 0 : i32
    %c0_i32_1 = arith.constant 0 : i32
    return %c0_i32, %c0_i32_0 : i32, i32
  }
  func.func @transform_3(%arg0: i32) -> (i32, i32) {
    %c0_i32 = arith.constant 0 : i32
    %c0_i32_0 = arith.constant 0 : i32
    %c0_i32_1 = arith.constant 0 : i32
    return %c0_i32, %c0_i32_0 : i32, i32
  }
  func.func @transform_4(%arg0: i32) -> (i32, i32) {
    %c0_i32 = arith.constant 0 : i32
    %c0_i32_0 = arith.constant 0 : i32
    %c0_i32_1 = arith.constant 0 : i32
    return %c0_i32, %c0_i32_0 : i32, i32
  }
  func.func @transform_5(%arg0: i32) -> (i32, i32) {
    %c0_i32 = arith.constant 0 : i32
    %c0_i32_0 = arith.constant 0 : i32
    %c0_i32_1 = arith.constant 0 : i32
    return %c0_i32, %c0_i32_0 : i32, i32
  }
  func.func @transform_6(%arg0: i32) -> (i32, i32) {
    %c0_i32 = arith.constant 0 : i32
    %c0_i32_0 = arith.constant 0 : i32
    %c0_i32_1 = arith.constant 0 : i32
    return %c0_i32, %c0_i32_0 : i32, i32
  }
  func.func @transform_7(%arg0: i32) -> (i32, i32) {
    %c0_i32 = arith.constant 0 : i32
    %c0_i32_0 = arith.constant 0 : i32
    %c0_i32_1 = arith.constant 0 : i32
    return %c0_i32, %c0_i32_0 : i32, i32
  }
  func.func @transform_8(%arg0: i32) -> (i32, i32) {
    %c0_i32 = arith.constant 0 : i32
    %c0_i32_0 = arith.constant 0 : i32
    %c0_i32_1 = arith.constant 0 : i32
    return %c0_i32, %c0_i32_0 : i32, i32
  }
  func.func @transform_9(%arg0: i32) -> (i32, i32, i32) {
    %c0_i32 = arith.constant 0 : i32
    %c0_i32_0 = arith.constant 0 : i32
    %c0_i32_1 = arith.constant 0 : i32
    return %arg0, %c0_i32, %c0_i32_0 : i32, i32, i32
  }
}

</mosaic_0001>

<bundles_post_ra>
// kernel: tpu_custom_call.1
= control target key start
LH: loop header
LB: loop body
LE: loop exit
PB: predicated region body
PF: predicated region fallthrough
CT: control target
= control target key end

     0   :  { %s15740_s0 = inlined_call_operand.vmem [shape: f32[4,128,3], index: 0, kind: input, shape index: {}]   ;;  %s15741_s1 = inlined_call_operand.hbm [shape: f32[3,896], index: 1, kind: input, shape index: {}]   ;;  %s15742_s2 = inlined_call_operand.hbm [shape: f32[1,896], index: 2, kind: input, shape index: {}]   ;;  %s15743_s3 = inlined_call_operand.hbm [shape: f32[1,896], index: 3, kind: input, shape index: {}]   ;;  %s15744_s4 = inlined_call_operand.hbm [shape: bf16[896,896], index: 4, kind: input, shape index: {}]   ;;  %s15745_s5 = inlined_call_operand.hbm [shape: f32[1,896], index: 5, kind: input, shape index: {}]   ;;  %s15746_s6 = inlined_call_operand.hbm [shape: f32[1,896], index: 6, kind: input, shape index: {}]   ;;  %s15747_s7 = inlined_call_operand.hbm [shape: bf16[896,256], index: 7, kind: input, shape index: {}]   ;;  %s15748_s8 = inlined_call_operand.hbm [shape: f32[1,256], index: 8, kind: input, shape index: {}]   ;;  %s15749_s9 = inlined_call_operand.hbm [shape: f32[4,128,256], index: 9, kind: output, shape index: {}]  }
   0x1   :  { %16074 = sst [smem:[#allocation137_spill]] %s15741_s1 }
   0x2   :  { %16075 = sst [smem:[#allocation138_spill]] %s15742_s2 }
   0x3   :  { %14 = vsyncpa [#allocation3], 0 }
   0x4   :  { %15 = vsyncpa [#allocation6], 0 }
   0x5   :  { %16 = vsyncpa [#allocation9], 0 }
   0x6   :  { %17 = vsyncpa [#allocation12], 0 }
   0x7   :  { %18 = vsyncpa [#allocation15], 0 }
   0x8   :  { %19 = vsyncpa [#allocation4], 0 }
   0x9   :  { %21 = vsyncpa [#allocation4 + $0x1], 0  ;;  %s11778_s30 = smov 0   ;;  %s11780_s10 = smov 0  }
   0xa   :  { %s11782_s11 = smov 0   ;;  %s11784_s12 = smov 0  }
   0xb LB: > { %16076 = sst [smem:[#allocation23_spill]] %s11704_s11  ;;  %s11799_s13 = sadd.s32 4294967295, %s11708_s12   ;;  %s11708_s12 = sphi %s11784_s12, %s16809_s12   ;;  %s11704_s11 = sphi %s11782_s11, %s16811_s11   ;;  %s11700_s10 = sphi %s11780_s10, %s16813_s10   ;;  %s11696_s30 = sphi %s11778_s30, %s16812_s30  }
   0xc   : > { %s9018_s14 = sadd.s32 4294967294, %s11708_s12   ;;  %s11803_s15 = sadd.s32 1, %s11708_s12  }
   0xd   : > { %16077 = sst [smem:[#allocation24_spill]] %s11803_s15  ;;  %s228_s16 = sadd.s32 1, %s11704_s11 }
   0xe   : > { %s225_s17 = ssub.s32 %s11708_s12, %s11803_s15  ;;  %p238_p0 = scmp.ne.s32.totalorder %s11704_s11, %s11700_s10 }
   0xf   : > { %p226_p1 = scmp.eq.s32.totalorder %s225_s17, 0  ;;  %p239_p2 = scmp.eq.s32.totalorder %s11799_s13, 3 }
  0x10   : > { %p244_p3 = scmp.ne.s32.totalorder %s11700_s10, %s11696_s30  ;;  %p245_p4 = scmp.eq.s32.totalorder %s9018_s14, 3 }
  0x11   : > { %s11814_s18 = scalar_select %p226_p1, %s11704_s11, %s228_s16  }
  0x12   : > { %p11816_p5 = por %p239_p2, %p238_p0  ;;  %p11820_p6 = por %p245_p4, %p244_p3 }
  0x13   : > { %16078 = sst [smem:[#allocation25_spill]] %s11814_s18  ;;  %p9019_p7 = scmp.ge.s32.totalorder %s11708_s12, 1 }
  0x14   : > { %s16079_s19 = scalar_select %p11816_p5, 1, 0 }
  0x15   : > { %s16080_s20 = scalar_select %p11820_p6, 1, 0 }
  0x16   : > { %p252_p8 = scmp.lt.s32.totalorder %s11708_s12, 5  ;;  %p15750_p9 = scmp.eq.s32.totalorder %s11799_s13, 0 }
  0x17   : > { %s11710_s22 = smov [#allocation5]   ;;  %s11711_s24 = smov [#allocation8]  }
  0x18   : > { %p11827_p10 = pnand %p9019_p7, %p252_p8  ;;  %s276_s23 = sshll.u32 %s11710_s22, 4  ;;  %s277_s23 = int_to_ptr.vmem [resolvable:$true] %s276_s23 }
  0x19   : > { %s297_s25 = sshll.u32 %s11711_s24, 4  ;;  %s11712_s27 = smov [#allocation11]   ;;  %s11839_s25 = int_to_ptr.vmem [resolvable:$true] %s297_s25 }
  0x1a   : > { %s16081_s21 = scalar_select %p11827_p10, 1, 0 }
  0x1b   : > { %p10404_p11 = pneg %p11827_p10  ;;  %s11841_s28 = sshll.u32 %s11712_s27, 4  ;;  %s323_s28 = int_to_ptr.vmem [resolvable:$true] %s11841_s28 }
  0x1c   : > { %s16083_s2 = sld [smem:[#allocation138_spill]] }
  0x1d   : > { %p11835_p12 = pnand %p15750_p9, %p10404_p11 }
  0x1f   : > { %p11851_p0 = pneg %p11835_p12 }
  0x22   : > { %s11402_s16 = scalar_lea.hbm %s16083_s2, 112 }
  0x23   : > { %p11403_p13 = scmp.ne.s32.totalorder %s16083_s2, %s11402_s16  ;;  %p11409_p3 = scmp.lt.u32.totalorder %s11402_s16, %s16083_s2 }
  0x25   : > { %p11405_p1 = pnand %p11851_p0, %p11403_p13 }
  0x27   : > { %p11406_p2 = pneg %p11405_p1 }
  0x29   : > { %p11411_p4 = pnand %p11409_p3, %p11406_p2 }
  0x2b   : > { %11414 = shalt.err (!%p11411_p4)
}
  0x2c   : > { %s11415_s29 = scalar_lea.vmem %s277_s23, 112  ;;  %s11422_s14 = scalar_lea.vmem %s277_s23, 128 }
  0x2d   : > { %p11416_p7 = scmp.ne.s32.totalorder %s277_s23, %s11415_s29  ;;  %p11423_p9 = scmp.lt.s32.totalorder %s277_s23, %s277_s23 }
  0x2e   : > { %p11424_p6 = scmp.lt.s32.totalorder %s11422_s14, %s11415_s29 }
  0x2f   : > { %p11418_p8 = pnand %p11416_p7, %p11851_p0 }
  0x30   : > { %p11425_p5 = por %p11424_p6, %p11423_p9 }
  0x31   : > { %p11419_p11 = pneg %p11418_p8 }
  0x33   : > { %p11426_p10 = pnand %p11425_p5, %p11419_p11 }
  0x35   : > { %11429 = shalt.err (!%p11426_p10)
}
  0x36   : > { %10410 = dma.hbm_to_vmem [thread:$0]  (!%p11835_p12), %s16083_s2, 112, %s277_s23, [#allocation6]  }
  0x37   : > { %s11430_s27 = scalar_lea.hbm %s15744_s4, 50176 }
  0x38   : > { %p11431_p13 = scmp.ne.s32.totalorder %s15744_s4, %s11430_s27  ;;  %p11437_p5 = scmp.lt.u32.totalorder %s11430_s27, %s15744_s4 }
  0x3a   : > { %p11433_p1 = pnand %p11431_p13, %p11851_p0 }
  0x3c   : > { %p11434_p6 = pneg %p11433_p1 }
  0x3e   : > { %p11439_p9 = pnand %p11437_p5, %p11434_p6 }
  0x40   : > { %11442 = shalt.err (!%p11439_p9)
}
  0x41   : > { %s11443_s23 = scalar_lea.vmem %s11839_s25, 50176  ;;  %p11451_p4 = scmp.lt.s32.totalorder %s11839_s25, %s11839_s25 }
  0x42   : > { %p11444_p10 = scmp.ne.s32.totalorder %s11839_s25, %s11443_s23  ;;  %p11452_p7 = scmp.lt.s32.totalorder %s11443_s23, %s11443_s23 }
  0x44   : > { %p11446_p2 = pnand %p11444_p10, %p11851_p0  ;;  %p11453_p8 = por %p11452_p7, %p11451_p4 }
  0x46   : > { %p11447_p3 = pneg %p11446_p2 }
  0x48   : > { %p11454_p11 = pnand %p11453_p8, %p11447_p3 }
  0x4a   : > { %11457 = shalt.err (!%p11454_p11)
}
  0x4b   : > { %s11713_s11 = smov 448   ;;  %s11714_s15 = smov 28  }
  0x4c   : > { %10416 = dma.hbm_to_vmem [thread:$0]  (!%p11835_p12), %s15744_s4, 50176, %s11839_s25, [#allocation9], %s11713_s11, %s11713_s11, %s11714_s15  }
  0x4d   : > { %s11458_s27 = scalar_lea.hbm %s15746_s6, 112 }
  0x4e   : > { %p11459_p13 = scmp.ne.s32.totalorder %s15746_s6, %s11458_s27  ;;  %p11465_p5 = scmp.lt.u32.totalorder %s11458_s27, %s15746_s6 }
  0x50   : > { %p11461_p1 = pnand %p11459_p13, %p11851_p0 }
  0x52   : > { %p11462_p6 = pneg %p11461_p1 }
  0x54   : > { %p11467_p9 = pnand %p11465_p5, %p11462_p6 }
  0x56   : > { %11470 = shalt.err (!%p11467_p9)
}
  0x57   : > { %s11471_s17 = scalar_lea.vmem %s323_s28, 112  ;;  %s11478_s25 = scalar_lea.vmem %s323_s28, 128 }
  0x58   : > { %p11472_p10 = scmp.ne.s32.totalorder %s323_s28, %s11471_s17  ;;  %p11479_p4 = scmp.lt.s32.totalorder %s323_s28, %s323_s28 }
  0x59   : > { %p11480_p7 = scmp.lt.s32.totalorder %s11478_s25, %s11471_s17 }
  0x5a   : > { %p11474_p2 = pnand %p11472_p10, %p11851_p0 }
  0x5b   : > { %p11481_p8 = por %p11480_p7, %p11479_p4 }
  0x5c   : > { %p11475_p3 = pneg %p11474_p2 }
  0x5e   : > { %p11482_p11 = pnand %p11481_p8, %p11475_p3 }
  0x60   : > { %11485 = shalt.err (!%p11482_p11)
}
  0x61   : > { %10422 = dma.hbm_to_vmem [thread:$0]  (!%p11835_p12), %s15746_s6, 112, %s323_s28, [#allocation12]  }
  0x62   : > { %s11715_s2 = smov [#allocation2]   ;;  %s11716_s18 = smov [#allocation7]  }
  0x63   : > { %s265_s22 = sshll.u32 %s11715_s2, 4  ;;  %s287_s16 = sshll.u32 %s11716_s18, 4  ;;  %s266_s22 = int_to_ptr.vmem [resolvable:$true] %s265_s22  ;;  %s288_s16 = int_to_ptr.vmem [resolvable:$true] %s287_s16 }
  0x64   : > { %s16085_s1 = sld [smem:[#allocation137_spill]] }
  0x6a   : > { %s11486_s14 = scalar_lea.hbm %s16085_s1, 448 }
  0x6b   : > { %p11487_p13 = scmp.ne.s32.totalorder %s16085_s1, %s11486_s14  ;;  %p11493_p5 = scmp.lt.u32.totalorder %s11486_s14, %s16085_s1 }
  0x6d   : > { %p11489_p1 = pnand %p11487_p13, %p11851_p0 }
  0x6f   : > { %p11490_p6 = pneg %p11489_p1 }
  0x71   : > { %p11495_p9 = pnand %p11493_p5, %p11490_p6 }
  0x73   : > { %11498 = shalt.err (!%p11495_p9)
}
  0x74   : > { %s11499_s28 = scalar_lea.vmem %s266_s22, 448  ;;  %p11507_p4 = scmp.lt.s32.totalorder %s266_s22, %s266_s22 }
  0x75   : > { %p11500_p10 = scmp.ne.s32.totalorder %s266_s22, %s11499_s28  ;;  %p11508_p7 = scmp.lt.s32.totalorder %s11499_s28, %s11499_s28 }
  0x77   : > { %p11502_p2 = pnand %p11500_p10, %p11851_p0  ;;  %p11509_p8 = por %p11508_p7, %p11507_p4 }
  0x79   : > { %p11503_p3 = pneg %p11502_p2 }
  0x7b   : > { %p11510_p11 = pnand %p11509_p8, %p11503_p3 }
  0x7d   : > { %11513 = shalt.err (!%p11510_p11)
}
  0x7e   : > { %10407 = dma.hbm_to_vmem [thread:$0]  (!%p11835_p12), %s16085_s1, 448, %s266_s22, [#allocation3]  }
  0x7f   : > { %s11514_s29 = scalar_lea.hbm %s15743_s3, 112 }
  0x80   : > { %p11515_p13 = scmp.ne.s32.totalorder %s15743_s3, %s11514_s29  ;;  %p11521_p5 = scmp.lt.u32.totalorder %s11514_s29, %s15743_s3 }
  0x82   : > { %p11517_p1 = pnand %p11515_p13, %p11851_p0 }
  0x84   : > { %p11518_p6 = pneg %p11517_p1 }
  0x86   : > { %p11523_p9 = pnand %p11521_p5, %p11518_p6 }
  0x88   : > { %11526 = shalt.err (!%p11523_p9)
}
  0x89   : > { %s11527_s11 = scalar_lea.vmem %s288_s16, 112  ;;  %s11534_s22 = scalar_lea.vmem %s288_s16, 128 }
  0x8a   : > { %p11528_p10 = scmp.ne.s32.totalorder %s288_s16, %s11527_s11  ;;  %p11535_p4 = scmp.lt.s32.totalorder %s288_s16, %s288_s16 }
  0x8b   : > { %p11536_p7 = scmp.lt.s32.totalorder %s11534_s22, %s11527_s11 }
  0x8c   : > { %p11530_p2 = pnand %p11528_p10, %p11851_p0 }
  0x8d   : > { %p11537_p8 = por %p11536_p7, %p11535_p4 }
  0x8e   : > { %p11531_p3 = pneg %p11530_p2 }
  0x90   : > { %p11538_p11 = pnand %p11537_p8, %p11531_p3 }
  0x92   : > { %11541 = shalt.err (!%p11538_p11)
}
  0x93   : > { %10413 = dma.hbm_to_vmem [thread:$0]  (!%p11835_p12), %s15743_s3, 112, %s288_s16, [#allocation6]  }
  0x94   : > { %s11717_s2 = smov [#allocation10]   ;;  %s11718_s27 = smov [#allocation13]  }
  0x95   : > { %s311_s18 = sshll.u32 %s11717_s2, 4  ;;  %s332_s29 = sshll.u32 %s11718_s27, 4  ;;  %s312_s18 = int_to_ptr.vmem [resolvable:$true] %s311_s18  ;;  %s333_s29 = int_to_ptr.vmem [resolvable:$true] %s332_s29 }
  0x96   : > { %s11542_s17 = scalar_lea.hbm %s15745_s5, 112 }
  0x97   : > { %p11543_p13 = scmp.ne.s32.totalorder %s15745_s5, %s11542_s17  ;;  %p11549_p5 = scmp.lt.u32.totalorder %s11542_s17, %s15745_s5 }
  0x99   : > { %p11545_p1 = pnand %p11543_p13, %p11851_p0 }
  0x9b   : > { %p11546_p6 = pneg %p11545_p1 }
  0x9d   : > { %p11551_p9 = pnand %p11549_p5, %p11546_p6 }
  0x9f   : > { %11554 = shalt.err (!%p11551_p9)
}
  0xa0   : > { %s11555_s16 = scalar_lea.vmem %s312_s18, 112  ;;  %s11562_s15 = scalar_lea.vmem %s312_s18, 128 }
  0xa1   : > { %p11556_p10 = scmp.ne.s32.totalorder %s312_s18, %s11555_s16  ;;  %p11563_p4 = scmp.lt.s32.totalorder %s312_s18, %s312_s18 }
  0xa2   : > { %p11564_p7 = scmp.lt.s32.totalorder %s11562_s15, %s11555_s16 }
  0xa3   : > { %p11558_p2 = pnand %p11556_p10, %p11851_p0 }
  0xa4   : > { %p11565_p8 = por %p11564_p7, %p11563_p4 }
  0xa5   : > { %p11559_p3 = pneg %p11558_p2 }
  0xa7   : > { %p11566_p11 = pnand %p11565_p8, %p11559_p3 }
  0xa9   : > { %11569 = shalt.err (!%p11566_p11)
}
  0xaa   : > { %10419 = dma.hbm_to_vmem [thread:$0]  (!%p11835_p12), %s15745_s5, 112, %s312_s18, [#allocation9]  }
  0xab   : > { %s11570_s17 = scalar_lea.hbm %s15747_s7, 14336 }
  0xac   : > { %p11571_p13 = scmp.ne.s32.totalorder %s15747_s7, %s11570_s17  ;;  %p11577_p5 = scmp.lt.u32.totalorder %s11570_s17, %s15747_s7 }
  0xae   : > { %p11573_p1 = pnand %p11571_p13, %p11851_p0 }
  0xb0   : > { %p11574_p6 = pneg %p11573_p1 }
  0xb2   : > { %p11579_p9 = pnand %p11577_p5, %p11574_p6 }
  0xb4   : > { %11582 = shalt.err (!%p11579_p9)
}
  0xb5   : > { %s11583_s16 = scalar_lea.vmem %s333_s29, 14336  ;;  %p11591_p4 = scmp.lt.s32.totalorder %s333_s29, %s333_s29 }
  0xb6   : > { %p11584_p10 = scmp.ne.s32.totalorder %s333_s29, %s11583_s16  ;;  %p11592_p7 = scmp.lt.s32.totalorder %s11583_s16, %s11583_s16 }
  0xb8   : > { %p11586_p2 = pnand %p11584_p10, %p11851_p0  ;;  %p11593_p8 = por %p11592_p7, %p11591_p4 }
  0xba   : > { %p11587_p3 = pneg %p11586_p2 }
  0xbc   : > { %p11594_p11 = pnand %p11593_p8, %p11587_p3 }
  0xbe   : > { %11597 = shalt.err (!%p11594_p11)
}
  0xbf   : > { %s11719_s18 = smov 128   ;;  %s11720_s15 = smov 8  }
  0xc0   : > { %10425 = dma.hbm_to_vmem [thread:$0]  (!%p11835_p12), %s15747_s7, 14336, %s333_s29, [#allocation12], %s11719_s18, %s11719_s18, %s11720_s15  }
  0xc1   : > { %s11721_s14 = smov [#allocation14]   ;;  %s11598_s11 = scalar_lea.hbm %s15748_s8, 32 }
  0xc2   : > { %s346_s23 = sshll.u32 %s11721_s14, 4  ;;  %p11599_p13 = scmp.ne.s32.totalorder %s15748_s8, %s11598_s11  ;;  %s347_s23 = int_to_ptr.vmem [resolvable:$true] %s346_s23 }
  0xc3   : > { %p11605_p5 = scmp.lt.u32.totalorder %s11598_s11, %s15748_s8 }
  0xc4   : > { %p11601_p1 = pnand %p11599_p13, %p11851_p0 }
  0xc6   : > { %p11602_p6 = pneg %p11601_p1 }
  0xc8   : > { %p11607_p9 = pnand %p11605_p5, %p11602_p6 }
  0xca   : > { %11610 = shalt.err (!%p11607_p9)
}
  0xcb   : > { %s11611_s29 = scalar_lea.vmem %s347_s23, 32  ;;  %p11619_p4 = scmp.lt.s32.totalorder %s347_s23, %s347_s23 }
  0xcc   : > { %p11612_p10 = scmp.ne.s32.totalorder %s347_s23, %s11611_s29  ;;  %p11620_p7 = scmp.lt.s32.totalorder %s11611_s29, %s11611_s29 }
  0xce   : > { %p11614_p2 = pnand %p11612_p10, %p11851_p0  ;;  %p11621_p8 = por %p11620_p7, %p11619_p4 }
  0xd0   : > { %p11615_p3 = pneg %p11614_p2 }
  0xd2   : > { %p11622_p11 = pnand %p11621_p8, %p11615_p3 }
  0xd4   : > { %11625 = shalt.err (!%p11622_p11)
}
  0xd5   : > { %10428 = dma.hbm_to_vmem [thread:$0]  (!%p11835_p12), %s15748_s8, 32, %s347_s23, [#allocation15]  }
  0xd6   : > { %p16086_p13 = scmp.ne.s32.totalorder %s16081_s21, 0 }
  0xd8   : > { %367 = sbr.rel (%p16086_p13) target bundleno = 2095 (0x82f), region = 56 }
  0xdf   : > { %p16087_p1 = scmp.eq.s32.totalorder %s11799_s13, 0 }
  0xe1   : > { %11671 = dma.done.wait (%p16087_p1), [#allocation3], 448   ;;  %p16088_p0 = pmov %p16087_p1 }
  0xe3   : > { %11673 = vsyncadd (%p16088_p0), [#allocation3], 4294966848  ;;  %p16089_p6 = pmov %p16088_p0 }
  0xe4   : > { %p16090_p5 = pmov %p16088_p0 }
  0xe5   : > { %11675 = dma.done.wait (%p16089_p6), [#allocation6], 224  }
  0xe6   : > { %11677 = vsyncadd (%p16090_p5), [#allocation6], 4294967072  ;;  %p16091_p9 = pmov %p16088_p0 }
  0xe7   : > { %p16092_p12 = pmov %p16088_p0 }
  0xe8   : > { %11679 = dma.done.wait (%p16091_p9), [#allocation9], 50288  }
  0xe9   : > { %11681 = vsyncadd (%p16092_p12), [#allocation9], 4294917008  ;;  %p16093_p10 = pmov %p16088_p0 }
  0xea   : > { %p16094_p2 = pmov %p16088_p0 }
  0xeb   : > { %11683 = dma.done.wait (%p16093_p10), [#allocation12], 14448  }
  0xec   : > { %11685 = vsyncadd (%p16094_p2), [#allocation12], 4294952848  ;;  %p16095_p3 = pmov %p16088_p0 }
  0xed   : > { %p16096_p4 = pmov %p16088_p0 }
  0xee   : > { %11687 = dma.done.wait (%p16095_p3), [#allocation15], 32  }
  0xef   : > { %11689 = vsyncadd (%p16096_p4), [#allocation15], 4294967264  ;;  %p431_p7 = scmp.lt.s32.totalorder %s11799_s13, 3  ;;  %v11722_v0 = vmov 0.0   ;;  %v453_v1 = vld [vmem:[#allocation2] sm:$0x77] }
  0xf0   : > { %592 = vmatprep.mubr.f32.mxu1 %v11722_v0  ;;  %914 = vmatprep.mubr.f32.mxu0 %v11722_v0  ;;  %vm513_vm0 = vcmask 1042432   ;;  %v454_v2 = vld [vmem:[#allocation2 + $0x8] sm:$0x77]  ;;  %v461_v3 = vcombine.high %v453_v1, %v453_v1  ;;  %vm464_vm1 = vcmask 23552   ;;  %v455_v6 = vld [vmem:[#allocation2 + $0x10] sm:$0x77] }
  0xf1   : > { %s432_s1 = scalar_select %p431_p7, %s11799_s13, 3  ;;  %v462_v4 = vcombine.high %v454_v2, %v454_v2  ;;  %v463_v7 = vcombine.high %v455_v6, %v455_v6  ;;  %v12043_v9 = vld [vmem:[#allocation2 + $0x18] sm:$0x7] }
  0xf2   : > { %9041 = vmatprep.subr.msk.mxu1 %vm513_vm0, %v461_v3  ;;  %s428_s27 = sand.u32 1, %s11700_s10   ;;  %s9654_s17 = sshll.u32 %s11799_s13, 12 }
  0xf3   : > { %s9653_s21 = sshll.u32 %s432_s1, 7  ;;  %9042 = vmatpush1.msk.msra.mxu1 %vm513_vm0, %v453_v1  ;;  %9077 = vmatprep.subr.msk.mxu0 %vm513_vm0, %v463_v7  ;;  %s9038_s14 = sshll.u32 %s428_s27, 8 }
  0xf4   : > { %s12028_s2 = scalar_lea.vmem %s15740_s0, %s9653_s21  ;;  %9059 = vmatprep.subr.msk.mxu1 %vm513_vm0, %v462_v4  ;;  %9078 = vmatpush1.msk.msra.mxu0 %vm513_vm0, %v455_v6  ;;  %s15638_s23 = scalar_lea.vmem [#allocation16], %s9038_s14 }
  0xf5   : > { %v12031_v5 = vld [vmem:[%s12028_s2] sm:$0xff]  ;;  %v12041_v8 = vld [vmem:[%s12028_s2 + $0x8] sm:$0xff]  ;;  %v12049_v10 = vld [vmem:[%s12028_s2 + $0x10] sm:$0xff]  ;;  %s8877_s25 = sshll.u32 %s15638_s23, 4  ;;  %s15690_s28 = scalar_lea.hbm %s15749_s9, %s9654_s17  ;;  %s15692_s25 = int_to_ptr.vmem [resolvable:$true] %s8877_s25 }
  0xf6   : > { %9043 = vmatmul.mubr.msk.f32.vlgmr.msra.gmra.mrb[0].mxu1 %vm464_vm1, %v12031_v5  ;;  %9079 = vmatmul.mubr.msk.f32.vlgmr.msra.gmra.mrb[0].mxu0 %vm464_vm1, %v12031_v5  ;;  %v12059_v11 = vld [vmem:[%s12028_s2 + $0x18] sm:$0xff]  ;;  %v12068_v12 = vld [vmem:[%s12028_s2 + $0x20] sm:$0xff]  ;;  %v12077_v13 = vld [vmem:[%s12028_s2 + $0x28] sm:$0xff]  ;;  %s15699_s16 = scalar_lea.sflag [#allocation4], %s428_s27  ;;  %s11626_s13 = scalar_lea.vmem %s15692_s25, 4096 }
  0xf7   : > { %9060 = vmatpush1.msk.msra.mxu1 %vm513_vm0, %v454_v2  ;;  %598 = vmatprep.mubr.f32.mxu1 %v11722_v0  ;;  %v12086_v14 = vld [vmem:[%s12028_s2 + $0x30] sm:$0xff]  ;;  %v12095_v15 = vld [vmem:[%s12028_s2 + $0x38] sm:$0xff]  ;;  %v12104_v16 = vld [vmem:[%s12028_s2 + $0x40] sm:$0xff]  ;;  %p11627_p8 = scmp.ne.s32.totalorder %s15692_s25, %s11626_s13  ;;  %p16807_p11 = scmp.ne.s32.totalorder %s16079_s19, 0 }
  0xf8   : > { %9880 = vmatprep.subr.msk.mxu1 %vm513_vm0, %v12043_v9  ;;  %920 = vmatprep.mubr.f32.mxu0 %v11722_v0  ;;  %v12113_v17 = vld [vmem:[%s12028_s2 + $0x48] sm:$0xff]  ;;  %v12122_v18 = vld [vmem:[%s12028_s2 + $0x50] sm:$0xff]  ;;  %v12131_v19 = vld [vmem:[%s12028_s2 + $0x58] sm:$0xff]  ;;  %s11725_s29 = smov [#allocation16]  }
  0xf9   : > { %v12140_v20 = vld [vmem:[%s12028_s2 + $0x60] sm:$0xff]  ;;  %v12149_v21 = vld [vmem:[%s12028_s2 + $0x68] sm:$0xff]  ;;  %v451_v22 = vld [vmem:[%s12028_s2 + $0x70] sm:$0xff]  ;;  %p11628_p13 = pnand %p11627_p8, %p16807_p11  ;;  %s11630_s18 = sshll.u32 %s11725_s29, 4  ;;  %s11631_s18 = int_to_ptr.vmem [resolvable:$false] %s11630_s18 }
  0xfa   : > { %9044 = vmatmul.mubr.msk.f32.gmra.mrb[2].mxu1 %vm464_vm1, %v12041_v8  ;;  %9080 = vmatmul.mubr.msk.f32.gmra.mrb[2].mxu0 %vm464_vm1, %v12041_v8  ;;  %v452_v23 = vld [vmem:[%s12028_s2 + $0x78] sm:$0xff]  ;;  %s11632_s15 = scalar_lea.vmem %s11631_s18, 8192  ;;  %p11633_p0 = scmp.lt.s32.totalorder %s15692_s25, %s11631_s18 }
  0xfb   : > { %604 = vmatprep.mubr.f32.mxu1 %v11722_v0  ;;  %926 = vmatprep.mubr.f32.mxu0 %v11722_v0  ;;  %p11629_p1 = pneg %p11628_p13  ;;  %p11634_p6 = scmp.lt.s32.totalorder %s11632_s15, %s11626_s13 }
  0xfd   : > { %p11635_p5 = por %p11634_p6, %p11633_p0 }
  0xfe   : > { %9045 = vmatmul.mubr.msk.f32.gmra.mrb[4].mxu1 %vm464_vm1, %v12049_v10  ;;  %9081 = vmatmul.mubr.msk.f32.gmra.mrb[4].mxu0 %vm464_vm1, %v12049_v10 }
  0xff   : > { %610 = vmatprep.mubr.f32.mxu1 %v11722_v0  ;;  %932 = vmatprep.mubr.f32.mxu0 %v11722_v0  ;;  %p11636_p9 = pnand %p11635_p5, %p11629_p1 }
 0x102   : > { %9046 = vmatmul.mubr.msk.f32.gmra.mrb[6].mxu1 %vm464_vm1, %v12059_v11  ;;  %9082 = vmatmul.mubr.msk.f32.gmra.mrb[6].mxu0 %vm464_vm1, %v12059_v11 }
 0x103   : > { %616 = vmatprep.mubr.f32.mxu1 %v11722_v0  ;;  %938 = vmatprep.mubr.f32.mxu0 %v11722_v0 }
 0x106   : > { %9047 = vmatmul.mubr.msk.f32.gmra.mrb[8].mxu1 %vm464_vm1, %v12068_v12  ;;  %9083 = vmatmul.mubr.msk.f32.gmra.mrb[8].mxu0 %vm464_vm1, %v12068_v12 }
 0x107   : > { %622 = vmatprep.mubr.f32.mxu1 %v11722_v0  ;;  %944 = vmatprep.mubr.f32.mxu0 %v11722_v0 }
 0x10a   : > { %9048 = vmatmul.mubr.msk.f32.gmra.mrb[10].mxu1 %vm464_vm1, %v12077_v13  ;;  %9084 = vmatmul.mubr.msk.f32.gmra.mrb[10].mxu0 %vm464_vm1, %v12077_v13 }
 0x10b   : > { %628 = vmatprep.mubr.f32.mxu1 %v11722_v0  ;;  %950 = vmatprep.mubr.f32.mxu0 %v11722_v0 }
 0x10e   : > { %9049 = vmatmul.mubr.msk.f32.gmra.mrb[12].mxu1 %vm464_vm1, %v12086_v14  ;;  %9085 = vmatmul.mubr.msk.f32.gmra.mrb[12].mxu0 %vm464_vm1, %v12086_v14 }
 0x10f   : > { %634 = vmatprep.mubr.f32.mxu1 %v11722_v0  ;;  %956 = vmatprep.mubr.f32.mxu0 %v11722_v0 }
 0x112   : > { %9050 = vmatmul.mubr.msk.f32.gmra.mrb[14].mxu1 %vm464_vm1, %v12095_v15  ;;  %9086 = vmatmul.mubr.msk.f32.gmra.mrb[14].mxu0 %vm464_vm1, %v12095_v15 }
 0x113   : > { %640 = vmatprep.mubr.f32.mxu1 %v11722_v0  ;;  %962 = vmatprep.mubr.f32.mxu0 %v11722_v0 }
 0x116   : > { %9051 = vmatmul.mubr.msk.f32.gmra.mrb[16].mxu1 %vm464_vm1, %v12104_v16  ;;  %9087 = vmatmul.mubr.msk.f32.gmra.mrb[16].mxu0 %vm464_vm1, %v12104_v16 }
 0x117   : > { %646 = vmatprep.mubr.f32.mxu1 %v11722_v0  ;;  %968 = vmatprep.mubr.f32.mxu0 %v11722_v0 }
 0x11a   : > { %9052 = vmatmul.mubr.msk.f32.gmra.mrb[18].mxu1 %vm464_vm1, %v12113_v17  ;;  %9088 = vmatmul.mubr.msk.f32.gmra.mrb[18].mxu0 %vm464_vm1, %v12113_v17 }
 0x11b   : > { %652 = vmatprep.mubr.f32.mxu1 %v11722_v0  ;;  %974 = vmatprep.mubr.f32.mxu0 %v11722_v0 }
 0x11e   : > { %9053 = vmatmul.mubr.msk.f32.gmra.mrb[20].mxu1 %vm464_vm1, %v12122_v18  ;;  %9089 = vmatmul.mubr.msk.f32.gmra.mrb[20].mxu0 %vm464_vm1, %v12122_v18 }
 0x11f   : > { %658 = vmatprep.mubr.f32.mxu1 %v11722_v0  ;;  %980 = vmatprep.mubr.f32.mxu0 %v11722_v0 }
 0x122   : > { %9054 = vmatmul.mubr.msk.f32.gmra.mrb[22].mxu1 %vm464_vm1, %v12131_v19  ;;  %9090 = vmatmul.mubr.msk.f32.gmra.mrb[22].mxu0 %vm464_vm1, %v12131_v19 }
 0x123   : > { %664 = vmatprep.mubr.f32.mxu1 %v11722_v0  ;;  %986 = vmatprep.mubr.f32.mxu0 %v11722_v0 }
 0x126   : > { %9055 = vmatmul.mubr.msk.f32.gmra.mrb[24].mxu1 %vm464_vm1, %v12140_v20  ;;  %9091 = vmatmul.mubr.msk.f32.gmra.mrb[24].mxu0 %vm464_vm1, %v12140_v20 }
 0x127   : > { %670 = vmatprep.mubr.f32.mxu1 %v11722_v0  ;;  %992 = vmatprep.mubr.f32.mxu0 %v11722_v0 }
 0x12a   : > { %9056 = vmatmul.mubr.msk.f32.gmra.mrb[26].mxu1 %vm464_vm1, %v12149_v21  ;;  %9092 = vmatmul.mubr.msk.f32.gmra.mrb[26].mxu0 %vm464_vm1, %v12149_v21 }
 0x12b   : > { %676 = vmatprep.mubr.f32.mxu1 %v11722_v0  ;;  %998 = vmatprep.mubr.f32.mxu0 %v11722_v0 }
 0x12e   : > { %9057 = vmatmul.mubr.msk.f32.gmra.mrb[28].mxu1 %vm464_vm1, %v451_v22  ;;  %9093 = vmatmul.mubr.msk.f32.gmra.mrb[28].mxu0 %vm464_vm1, %v451_v22 }
 0x12f   : > { %682 = vmatprep.mubr.f32.mxu1 %v11722_v0  ;;  %1004 = vmatprep.mubr.f32.mxu0 %v11722_v0 }
 0x132   : > { %9058 = vmatmul.mubr.msk.f32.gmra.mrb[30].mxu1 %vm464_vm1, %v452_v23  ;;  %9094 = vmatmul.mubr.msk.f32.gmra.mrb[30].mxu0 %vm464_vm1, %v452_v23 }
 0x133   : > { %753 = vmatprep.mubr.f32.mxu1 %v11722_v0 }
 0x136   : > { %9061 = vmatmul.mubr.msk.f32.vlgmr.msra.gmra.mrb[32].mxu1 %vm464_vm1, %v12031_v5 }
 0x137   : > { %9881 = vmatpush3.msk.msra.mxu1 %vm513_vm0, %v12043_v9  ;;  %759 = vmatprep.mubr.f32.mxu1 %v11722_v0 }
 0x13a   : > { %9062 = vmatmul.mubr.msk.f32.gmra.mrb[34].mxu1 %vm464_vm1, %v12041_v8 }
 0x13b   : > { %765 = vmatprep.mubr.f32.mxu1 %v11722_v0 }
 0x13e   : > { %9063 = vmatmul.mubr.msk.f32.gmra.mrb[36].mxu1 %vm464_vm1, %v12049_v10 }
 0x13f   : > { %771 = vmatprep.mubr.f32.mxu1 %v11722_v0 }
 0x142   : > { %9064 = vmatmul.mubr.msk.f32.gmra.mrb[38].mxu1 %vm464_vm1, %v12059_v11 }
 0x143   : > { %777 = vmatprep.mubr.f32.mxu1 %v11722_v0 }
 0x146   : > { %9065 = vmatmul.mubr.msk.f32.gmra.mrb[40].mxu1 %vm464_vm1, %v12068_v12 }
 0x147   : > { %783 = vmatprep.mubr.f32.mxu1 %v11722_v0 }
 0x14a   : > { %9066 = vmatmul.mubr.msk.f32.gmra.mrb[42].mxu1 %vm464_vm1, %v12077_v13 }
 0x14b   : > { %789 = vmatprep.mubr.f32.mxu1 %v11722_v0 }
 0x14e   : > { %9067 = vmatmul.mubr.msk.f32.gmra.mrb[44].mxu1 %vm464_vm1, %v12086_v14 }
 0x14f   : > { %795 = vmatprep.mubr.f32.mxu1 %v11722_v0 }
 0x152   : > { %9068 = vmatmul.mubr.msk.f32.gmra.mrb[46].mxu1 %vm464_vm1, %v12095_v15 }
 0x153   : > { %801 = vmatprep.mubr.f32.mxu1 %v11722_v0 }
 0x156   : > { %9069 = vmatmul.mubr.msk.f32.gmra.mrb[48].mxu1 %vm464_vm1, %v12104_v16 }
 0x157   : > { %807 = vmatprep.mubr.f32.mxu1 %v11722_v0 }
 0x15a   : > { %9070 = vmatmul.mubr.msk.f32.gmra.mrb[50].mxu1 %vm464_vm1, %v12113_v17 }
 0x15b   : > { %813 = vmatprep.mubr.f32.mxu1 %v11722_v0 }
 0x15e   : > { %9071 = vmatmul.mubr.msk.f32.gmra.mrb[52].mxu1 %vm464_vm1, %v12122_v18 }
 0x15f   : > { %819 = vmatprep.mubr.f32.mxu1 %v11722_v0 }
 0x162   : > { %9072 = vmatmul.mubr.msk.f32.gmra.mrb[54].mxu1 %vm464_vm1, %v12131_v19 }
 0x163   : > { %825 = vmatprep.mubr.f32.mxu1 %v11722_v0 }
 0x166   : > { %9073 = vmatmul.mubr.msk.f32.gmra.mrb[56].mxu1 %vm464_vm1, %v12140_v20 }
 0x167   : > { %831 = vmatprep.mubr.f32.mxu1 %v11722_v0 }
 0x16a   : > { %9074 = vmatmul.mubr.msk.f32.gmra.mrb[58].mxu1 %vm464_vm1, %v12149_v21 }
 0x16b   : > { %837 = vmatprep.mubr.f32.mxu1 %v11722_v0 }
 0x16e   : > { %9075 = vmatmul.mubr.msk.f32.gmra.mrb[60].mxu1 %vm464_vm1, %v451_v22 }
 0x16f   : > { %843 = vmatprep.mubr.f32.mxu1 %v11722_v0 }
 0x172   : > { %9076 = vmatmul.mubr.msk.f32.gmra.mrb[62].mxu1 %vm464_vm1, %v452_v23 }
 0x173   : > { %9882 = vmatprep.mubr.msk.f32.mxu1 %vm464_vm1, %v12031_v5 }
 0x176   : > { %9883 = vmatmul.mubr.msk.f32.vlgmr.msra.gmra.mrb[64].mxu1 %vm464_vm1, %v12041_v8 }
 0x177   : > { %9885 = vmatprep.mubr.msk.f32.mxu1 %vm464_vm1, %v12049_v10 }
 0x17a   : > { %9886 = vmatmul.mubr.msk.f32.gmra.mrb[66].mxu1 %vm464_vm1, %v12059_v11 }
 0x17b   : > { %9888 = vmatprep.mubr.msk.f32.mxu1 %vm464_vm1, %v12068_v12 }
 0x17e   : > { %9889 = vmatmul.mubr.msk.f32.gmra.mrb[68].mxu1 %vm464_vm1, %v12077_v13 }
 0x17f   : > { %9891 = vmatprep.mubr.msk.f32.mxu1 %vm464_vm1, %v12086_v14 }
 0x182   : > { %9892 = vmatmul.mubr.msk.f32.gmra.mrb[70].mxu1 %vm464_vm1, %v12095_v15 }
 0x183   : > { %9894 = vmatprep.mubr.msk.f32.mxu1 %vm464_vm1, %v12104_v16 }
 0x186   : > { %9895 = vmatmul.mubr.msk.f32.gmra.mrb[72].mxu1 %vm464_vm1, %v12113_v17 }
 0x187   : > { %9897 = vmatprep.mubr.msk.f32.mxu1 %vm464_vm1, %v12122_v18 }
 0x18a   : > { %9898 = vmatmul.mubr.msk.f32.gmra.mrb[74].mxu1 %vm464_vm1, %v12131_v19 }
 0x18b   : > { %9900 = vmatprep.mubr.msk.f32.mxu1 %vm464_vm1, %v12140_v20 }
 0x18e   : > { %9901 = vmatmul.mubr.msk.f32.gmra.mrb[76].mxu1 %vm464_vm1, %v12149_v21 }
 0x18f   : > { %9903 = vmatprep.mubr.msk.f32.mxu1 %vm464_vm1, %v451_v22 }
 0x192   : > { %9904 = vmatmul.mubr.msk.f32.gmra.mrb[78].mxu1 %vm464_vm1, %v452_v23 }
 0x1c9   : > { %v12252_v24 = vpop.f32.mrb[0].mxu1  ;;  %v12258_v27 = vpop.f32.mrb[0].mxu0 }
 0x1ca   : > { %v12254_v25 = vpop.f32.mrb[1].mxu1  ;;  %v12264_v30 = vpop.f32.mrb[1].mxu0 }
 0x1cb   : > { %16097 = vst [vmem:[#allocation26_spill] sm:$0xff] %v12264_v30 }
 0x1cd   : > { %v12256_v26 = vpop.f32.mrb[2].mxu1  ;;  %v12270_v33 = vpop.f32.mrb[2].mxu0 }
 0x1ce   : > { %v1158_v28 = vadd.f32 %v12256_v26, %v12252_v24  ;;  %v12262_v29 = vpop.f32.mrb[3].mxu1  ;;  %v1242_v36 = vadd.f32 %v12270_v33, %v12258_v27  ;;  %v12277_v37 = vpop.f32.mrb[3].mxu0 }
 0x1cf   : > { %v1179_v31 = vadd.f32 %v12262_v29, %v12254_v25  ;;  %16098 = vst [vmem:[#allocation27_spill] sm:$0xff] %v12277_v37  ;;  %v1263_v39 = vadd.f32 %v12277_v37, %v12264_v30 }
 0x1d1   : > { %v12268_v32 = vpop.f32.mrb[4].mxu1  ;;  %v12284_v41 = vpop.f32.mrb[4].mxu0 }
 0x1d2   : > { %v12272_v34 = vpop.f32.mrb[5].mxu1  ;;  %v1159_v35 = vadd.f32 %v1158_v28, %v12268_v32  ;;  %v1243_v44 = vadd.f32 %v1242_v36, %v12284_v41  ;;  %v12290_v45 = vpop.f32.mrb[5].mxu0 }
 0x1d3   : > { %v1180_v38 = vadd.f32 %v1179_v31, %v12272_v34  ;;  %16099 = vst [vmem:[#allocation28_spill] sm:$0xff] %v12290_v45  ;;  %v1264_v47 = vadd.f32 %v1263_v39, %v12290_v45 }
 0x1d5   : > { %v12282_v40 = vpop.f32.mrb[6].mxu1  ;;  %v12296_v49 = vpop.f32.mrb[6].mxu0 }
 0x1d6   : > { %v12286_v42 = vpop.f32.mrb[7].mxu1  ;;  %v1160_v43 = vadd.f32 %v1159_v35, %v12282_v40  ;;  %v1244_v52 = vadd.f32 %v1243_v44, %v12296_v49  ;;  %v12302_v53 = vpop.f32.mrb[7].mxu0 }
 0x1d7   : > { %v1181_v46 = vadd.f32 %v1180_v38, %v12286_v42  ;;  %16100 = vst [vmem:[#allocation29_spill] sm:$0xff] %v12302_v53  ;;  %v1265_v55 = vadd.f32 %v1264_v47, %v12302_v53 }
 0x1d9   : > { %v12294_v48 = vpop.f32.mrb[8].mxu1  ;;  %v12308_v57 = vpop.f32.mrb[8].mxu0 }
 0x1da   : > { %v1161_v50 = vadd.f32 %v1160_v43, %v12294_v48  ;;  %v12299_v51 = vpop.f32.mrb[9].mxu1  ;;  %v1245_v60 = vadd.f32 %v1244_v52, %v12308_v57  ;;  %v12314_v61 = vpop.f32.mrb[9].mxu0 }
 0x1db   : > { %v1182_v54 = vadd.f32 %v1181_v46, %v12299_v51  ;;  %16101 = vst [vmem:[#allocation30_spill] sm:$0xff] %v12314_v61  ;;  %v1266_v63 = vadd.f32 %v1265_v55, %v12314_v61 }
 0x1dd   : > { %v12306_v56 = vpop.f32.mrb[10].mxu1  ;;  %v12320_v1 = vpop.f32.mrb[10].mxu0 }
 0x1de   : > { %v1162_v58 = vadd.f32 %v1161_v50, %v12306_v56  ;;  %v12311_v59 = vpop.f32.mrb[11].mxu1  ;;  %v1246_v4 = vadd.f32 %v1245_v60, %v12320_v1  ;;  %v12326_v5 = vpop.f32.mrb[11].mxu0 }
 0x1df   : > { %v1183_v62 = vadd.f32 %v1182_v54, %v12311_v59  ;;  %16102 = vst [vmem:[#allocation31_spill] sm:$0xff] %v12326_v5  ;;  %v1267_v7 = vadd.f32 %v1266_v63, %v12326_v5 }
 0x1e1   : > { %v12318_v0 = vpop.f32.mrb[12].mxu1  ;;  %v12332_v9 = vpop.f32.mrb[12].mxu0 }
 0x1e2   : > { %v1163_v2 = vadd.f32 %v1162_v58, %v12318_v0  ;;  %v12323_v3 = vpop.f32.mrb[13].mxu1  ;;  %v1247_v12 = vadd.f32 %v1246_v4, %v12332_v9  ;;  %v12338_v13 = vpop.f32.mrb[13].mxu0 }
 0x1e3   : > { %v1184_v6 = vadd.f32 %v1183_v62, %v12323_v3  ;;  %16103 = vst [vmem:[#allocation32_spill] sm:$0xff] %v12338_v13  ;;  %v1268_v15 = vadd.f32 %v1267_v7, %v12338_v13 }
 0x1e5   : > { %v12330_v8 = vpop.f32.mrb[14].mxu1  ;;  %v12344_v17 = vpop.f32.mrb[14].mxu0 }
 0x1e6   : > { %v1164_v10 = vadd.f32 %v1163_v2, %v12330_v8  ;;  %v12335_v11 = vpop.f32.mrb[15].mxu1  ;;  %v1248_v20 = vadd.f32 %v1247_v12, %v12344_v17  ;;  %v12350_v21 = vpop.f32.mrb[15].mxu0 }
 0x1e7   : > { %v1185_v14 = vadd.f32 %v1184_v6, %v12335_v11  ;;  %16104 = vst [vmem:[#allocation33_spill] sm:$0xff] %v12350_v21  ;;  %v1269_v23 = vadd.f32 %v1268_v15, %v12350_v21 }
 0x1e9   : > { %v12342_v16 = vpop.f32.mrb[16].mxu1  ;;  %v12356_v31 = vpop.f32.mrb[16].mxu0 }
 0x1ea   : > { %v1165_v18 = vadd.f32 %v1164_v10, %v12342_v16  ;;  %v12347_v19 = vpop.f32.mrb[17].mxu1  ;;  %v1249_v38 = vadd.f32 %v1248_v20, %v12356_v31  ;;  %v12362_v39 = vpop.f32.mrb[17].mxu0 }
 0x1eb   : > { %v1186_v22 = vadd.f32 %v1185_v14, %v12347_v19  ;;  %16105 = vst [vmem:[#allocation34_spill] sm:$0xff] %v12362_v39  ;;  %v1270_v44 = vadd.f32 %v1269_v23, %v12362_v39 }
 0x1ed   : > { %v12354_v28 = vpop.f32.mrb[18].mxu1  ;;  %v12368_v47 = vpop.f32.mrb[18].mxu0 }
 0x1ee   : > { %v1166_v35 = vadd.f32 %v1165_v18, %v12354_v28  ;;  %v12359_v36 = vpop.f32.mrb[19].mxu1  ;;  %v1250_v54 = vadd.f32 %v1249_v38, %v12368_v47  ;;  %v12374_v55 = vpop.f32.mrb[19].mxu0 }
 0x1ef   : > { %v1187_v43 = vadd.f32 %v1186_v22, %v12359_v36  ;;  %16106 = vst [vmem:[#allocation35_spill] sm:$0xff] %v12374_v55  ;;  %v1271_v60 = vadd.f32 %v1270_v44, %v12374_v55 }
 0x1f1   : > { %v12366_v46 = vpop.f32.mrb[20].mxu1  ;;  %v12380_v63 = vpop.f32.mrb[20].mxu0 }
 0x1f2   : > { %v1167_v50 = vadd.f32 %v1166_v35, %v12366_v46  ;;  %v12371_v52 = vpop.f32.mrb[21].mxu1  ;;  %16107 = vst [vmem:[#allocation36_spill] sm:$0xff] %v12380_v63  ;;  %v1251_v6 = vadd.f32 %v1250_v54, %v12380_v63  ;;  %v12386_v7 = vpop.f32.mrb[21].mxu0 }
 0x1f3   : > { %v1188_v58 = vadd.f32 %v1187_v43, %v12371_v52  ;;  %16108 = vst [vmem:[#allocation37_spill] sm:$0xff] %v12386_v7  ;;  %v1272_v12 = vadd.f32 %v1271_v60, %v12386_v7 }
 0x1f5   : > { %v12378_v62 = vpop.f32.mrb[22].mxu1  ;;  %v12392_v15 = vpop.f32.mrb[22].mxu0 }
 0x1f6   : > { %v1168_v2 = vadd.f32 %v1167_v50, %v12378_v62  ;;  %v12383_v4 = vpop.f32.mrb[23].mxu1  ;;  %16109 = vst [vmem:[#allocation38_spill] sm:$0xff] %v12392_v15  ;;  %v1252_v22 = vadd.f32 %v1251_v6, %v12392_v15  ;;  %v12398_v23 = vpop.f32.mrb[23].mxu0 }
 0x1f7   : > { %v1189_v10 = vadd.f32 %v1188_v58, %v12383_v4  ;;  %16110 = vst [vmem:[#allocation39_spill] sm:$0xff] %v12398_v23  ;;  %v1273_v38 = vadd.f32 %v1272_v12, %v12398_v23 }
 0x1f9   : > { %v12390_v14 = vpop.f32.mrb[24].mxu1  ;;  %v12404_v44 = vpop.f32.mrb[24].mxu0 }
 0x1fa   : > { %v1169_v18 = vadd.f32 %v1168_v2, %v12390_v14  ;;  %v12395_v20 = vpop.f32.mrb[25].mxu1  ;;  %16111 = vst [vmem:[#allocation40_spill] sm:$0xff] %v12404_v44  ;;  %v1253_v58 = vadd.f32 %v1252_v22, %v12404_v44  ;;  %v12410_v60 = vpop.f32.mrb[25].mxu0 }
 0x1fb   : > { %v1190_v35 = vadd.f32 %v1189_v10, %v12395_v20  ;;  %16112 = vst [vmem:[#allocation41_spill] sm:$0xff] %v12410_v60  ;;  %v1274_v6 = vadd.f32 %v1273_v38, %v12410_v60 }
 0x1fd   : > { %v12402_v43 = vpop.f32.mrb[26].mxu1  ;;  %v12414_v10 = vpop.f32.mrb[26].mxu0 }
 0x1fe   : > { %v1170_v50 = vadd.f32 %v1169_v18, %v12402_v43  ;;  %v12407_v54 = vpop.f32.mrb[27].mxu1  ;;  %16113 = vst [vmem:[#allocation42_spill] sm:$0xff] %v12414_v10  ;;  %v1254_v55 = vadd.f32 %v1253_v58, %v12414_v10  ;;  %v12419_v39 = vpop.f32.mrb[27].mxu0 }
 0x1ff   : > { %v1191_v2 = vadd.f32 %v1190_v35, %v12407_v54  ;;  %16114 = vst [vmem:[#allocation43_spill] sm:$0xff] %v12419_v39  ;;  %v1275_v22 = vadd.f32 %v1274_v6, %v12419_v39 }
 0x201   : > { %v678_v7 = vpop.f32.mrb[28].mxu1  ;;  %v12423_v13 = vpop.f32.mrb[28].mxu0 }
 0x202   : > { %v1171_v12 = vadd.f32 %v1170_v50, %v678_v7  ;;  %v12416_v23 = vpop.f32.mrb[29].mxu1  ;;  %16115 = vst [vmem:[#allocation44_spill] sm:$0xff] %v12423_v13  ;;  %v1255_v38 = vadd.f32 %v1254_v55, %v12423_v13  ;;  %v12428_v60 = vpop.f32.mrb[29].mxu0 }
 0x203   : > { %v1192_v18 = vadd.f32 %v1191_v2, %v12416_v23  ;;  %16116 = vst [vmem:[#allocation45_spill] sm:$0xff] %v12428_v60  ;;  %v1276_v58 = vadd.f32 %v1275_v22, %v12428_v60 }
 0x205   : > { %v684_v21 = vpop.f32.mrb[30].mxu1  ;;  %v12434_v2 = vpop.f32.mrb[30].mxu0 }
 0x206   : > { %v1172_v35 = vadd.f32 %v1171_v12, %v684_v21  ;;  %v12425_v5 = vpop.f32.mrb[31].mxu1  ;;  %16118 = vst [vmem:[#allocation47_spill] sm:$0xff] %v12434_v2  ;;  %v1256_v12 = vadd.f32 %v1255_v38, %v12434_v2  ;;  %v12439_v37 = vpop.f32.mrb[31].mxu0 }
 0x207   : > { %v1193_v50 = vadd.f32 %v1192_v18, %v12425_v5  ;;  %16120 = vst [vmem:[#allocation49_spill] sm:$0xff] %v12439_v37  ;;  %v1277_v30 = vadd.f32 %v1276_v58, %v12439_v37 }
 0x208   : > { %v1173_v61 = vrot.slane %v1172_v35, 4 }
 0x209   : > { %v1194_v53 = vrot.slane %v1193_v50, 4  ;;  %v12432_v45 = vpop.f32.mrb[32].mxu1  ;;  %v1278_v63 = vrot.slane %v1277_v30, 4 }
 0x20a   : > { %16117 = vst [vmem:[#allocation46_spill] sm:$0xff] %v12432_v45  ;;  %v1174_v6 = vadd.f32 %v1173_v61, %v1172_v35  ;;  %v12436_v39 = vpop.f32.mrb[33].mxu1 }
 0x20b   : > { %16119 = vst [vmem:[#allocation48_spill] sm:$0xff] %v12436_v39  ;;  %v1195_v55 = vadd.f32 %v1194_v53, %v1193_v50  ;;  %v1257_v53 = vrot.slane %v1256_v12, 4 }
 0x20c   : > { %v1175_v13 = vrot.slane %v1174_v6, 2 }
 0x20d   : > { %v1196_v18 = vrot.slane %v1195_v55, 2  ;;  %v12442_v10 = vpop.f32.mrb[34].mxu1 }
 0x20e   : > { %16121 = vst [vmem:[#allocation50_spill] sm:$0xff] %v12442_v10  ;;  %v1176_v22 = vadd.f32 %v1175_v13, %v1174_v6  ;;  %v1200_v60 = vadd.f32 %v12442_v10, %v12432_v45  ;;  %v12446_v44 = vpop.f32.mrb[35].mxu1  ;;  %v1258_v45 = vadd.f32 %v1257_v53, %v1256_v12 }
 0x20f   : > { %16122 = vst [vmem:[#allocation51_spill] sm:$0xff] %v12446_v44  ;;  %v1197_v61 = vadd.f32 %v1196_v18, %v1195_v55  ;;  %v1221_v35 = vadd.f32 %v12446_v44, %v12436_v39  ;;  %v16179_v39 = vld [vmem:[#allocation40_spill] sm:$0xff] }
 0x210   : > { %v1177_v38 = vrot.slane %v1176_v22, 1  ;;  %v1259_v53 = vrot.slane %v1258_v45, 2 }
 0x211   : > { %v1198_v2 = vrot.slane %v1197_v61, 1  ;;  %v12450_v15 = vpop.f32.mrb[36].mxu1 }
 0x212   : > { %16123 = vst [vmem:[#allocation52_spill] sm:$0xff] %v12450_v15  ;;  %v1178_v50 = vadd.f32 %v1177_v38, %v1176_v22  ;;  %v1201_v58 = vadd.f32 %v1200_v60, %v12450_v15  ;;  %v12453_v37 = vpop.f32.mrb[37].mxu1  ;;  %v16199_v15 = vld [vmem:[#allocation32_spill] sm:$0xff] }
 0x213   : > { %16124 = vst [vmem:[#allocation53_spill] sm:$0xff] %v12453_v37  ;;  %v1222_v13 = vadd.f32 %v1221_v35, %v12453_v37  ;;  %v1199_v10 = vadd.f32 %v1198_v2, %v1197_v61 }
 0x214   : > { %v1306_v6 = vmul.f32 0.0078125, %v1178_v50 }
 0x215   : > { %v12456_v55 = vpop.f32.mrb[38].mxu1 }
 0x216   : > { %16125 = vst [vmem:[#allocation54_spill] sm:$0xff] %v12456_v55  ;;  %v12459_v18 = vsub.f32 %v12252_v24, %v1306_v6  ;;  %v12462_v44 = vsub.f32 %v12256_v26, %v1306_v6  ;;  %v12465_v22 = vsub.f32 %v12268_v32, %v1306_v6  ;;  %v12468_v60 = vsub.f32 %v12282_v40, %v1306_v6  ;;  %v12470_v38 = vpop.f32.mrb[39].mxu1 }
 0x217   : > { %16130 = vst [vmem:[#allocation59_spill] sm:$0xff] %v12470_v38  ;;  %v12473_v2 = vsub.f32 %v12294_v48, %v1306_v6  ;;  %v12476_v12 = vsub.f32 %v12306_v56, %v1306_v6  ;;  %v12479_v24 = vsub.f32 %v12318_v0, %v1306_v6  ;;  %v12482_v26 = vsub.f32 %v12330_v8, %v1306_v6 }
 0x218   : > { %16126 = vst [vmem:[#allocation55_spill] sm:$0xff] %v12459_v18  ;;  %16127 = vst [vmem:[#allocation56_spill] sm:$0xff] %v12462_v44  ;;  %v12485_v32 = vsub.f32 %v12342_v16, %v1306_v6  ;;  %v12488_v40 = vsub.f32 %v12354_v28, %v1306_v6  ;;  %v12491_v61 = vsub.f32 %v12366_v46, %v1306_v6  ;;  %v1307_v28 = vmul.f32 0.0078125, %v1199_v10 }
 0x219   : > { %16128 = vst [vmem:[#allocation57_spill] sm:$0xff] %v12465_v22  ;;  %16129 = vst [vmem:[#allocation58_spill] sm:$0xff] %v12468_v60  ;;  %v12494_v48 = vsub.f32 %v12378_v62, %v1306_v6  ;;  %v12497_v56 = vsub.f32 %v12390_v14, %v1306_v6  ;;  %v12500_v0 = vsub.f32 %v12402_v43, %v1306_v6  ;;  %v12506_v16 = vpop.f32.mrb[40].mxu1 }
 0x21a   : > { %16131 = vst [vmem:[#allocation60_spill] sm:$0xff] %v12473_v2  ;;  %16132 = vst [vmem:[#allocation61_spill] sm:$0xff] %v12476_v12  ;;  %v12502_v8 = vsub.f32 %v678_v7, %v1306_v6  ;;  %v12504_v35 = vsub.f32 %v684_v21, %v1306_v6  ;;  %v12508_v50 = vpop.f32.mrb[41].mxu1  ;;  %v1279_v46 = vadd.f32 %v1278_v63, %v1277_v30 }
 0x21b   : > { %16133 = vst [vmem:[#allocation62_spill] sm:$0xff] %v12479_v24  ;;  %16134 = vst [vmem:[#allocation63_spill] sm:$0xff] %v12482_v26  ;;  %v12513_v62 = vsub.f32 %v12254_v25, %v1307_v28  ;;  %v12516_v14 = vsub.f32 %v12262_v29, %v1307_v28  ;;  %v12519_v7 = vsub.f32 %v12272_v34, %v1307_v28 }
 0x21c   : > { %16135 = vst [vmem:[#allocation64_spill] sm:$0xff] %v12485_v32  ;;  %16136 = vst [vmem:[#allocation65_spill] sm:$0xff] %v12488_v40  ;;  %v1260_v21 = vadd.f32 %v1259_v53, %v1258_v45  ;;  %v12524_v10 = vsub.f32 %v12286_v42, %v1307_v28  ;;  %v12527_v6 = vsub.f32 %v12299_v51, %v1307_v28  ;;  %v1280_v63 = vrot.slane %v1279_v46, 2 }
 0x21d   : > { %16137 = vst [vmem:[#allocation66_spill] sm:$0xff] %v12491_v61  ;;  %16138 = vst [vmem:[#allocation67_spill] sm:$0xff] %v12494_v48  ;;  %v12510_v37 = vpop.f32.mrb[42].mxu1  ;;  %v12530_v30 = vsub.f32 %v12311_v59, %v1307_v28  ;;  %v12533_v25 = vsub.f32 %v12323_v3, %v1307_v28  ;;  %v12536_v29 = vsub.f32 %v12335_v11, %v1307_v28 }
 0x21e   : > { %16139 = vst [vmem:[#allocation68_spill] sm:$0xff] %v12497_v56  ;;  %16140 = vst [vmem:[#allocation69_spill] sm:$0xff] %v12500_v0  ;;  %v12521_v43 = vpop.f32.mrb[43].mxu1  ;;  %v12539_v34 = vsub.f32 %v12347_v19, %v1307_v28  ;;  %v12542_v45 = vsub.f32 %v12359_v36, %v1307_v28  ;;  %v12545_v42 = vsub.f32 %v12371_v52, %v1307_v28  ;;  %v1261_v53 = vrot.slane %v1260_v21, 1 }
 0x21f   : > { %16141 = vst [vmem:[#allocation70_spill] sm:$0xff] %v12502_v8  ;;  %16142 = vst [vmem:[#allocation71_spill] sm:$0xff] %v12504_v35  ;;  %v12548_v51 = vsub.f32 %v12383_v4, %v1307_v28  ;;  %v12551_v59 = vsub.f32 %v12395_v20, %v1307_v28  ;;  %v12554_v3 = vsub.f32 %v12407_v54, %v1307_v28 }
 0x220   : > { %16143 = vst [vmem:[#allocation72_spill] sm:$0xff] %v12506_v16  ;;  %16144 = vst [vmem:[#allocation73_spill] sm:$0xff] %v12508_v50  ;;  %v12559_v19 = vsub.f32 %v12416_v23, %v1307_v28  ;;  %v12562_v36 = vsub.f32 %v12425_v5, %v1307_v28  ;;  %v1281_v35 = vadd.f32 %v1280_v63, %v1279_v46 }
 0x221   : > { %16145 = vst [vmem:[#allocation74_spill] sm:$0xff] %v12513_v62  ;;  %16146 = vst [vmem:[#allocation75_spill] sm:$0xff] %v12516_v14  ;;  %v12556_v11 = vpop.f32.mrb[44].mxu1  ;;  %v1202_v54 = vadd.f32 %v1201_v58, %v12456_v55  ;;  %v16197_v55 = vld [vmem:[#allocation31_spill] sm:$0xff] }
 0x222   : > { %16147 = vst [vmem:[#allocation76_spill] sm:$0xff] %v12519_v7  ;;  %16148 = vst [vmem:[#allocation77_spill] sm:$0xff] %v12521_v43  ;;  %v12564_v52 = vpop.f32.mrb[45].mxu1 }
 0x223   : > { %16149 = vst [vmem:[#allocation78_spill] sm:$0xff] %v12524_v10  ;;  %16150 = vst [vmem:[#allocation79_spill] sm:$0xff] %v12527_v6  ;;  %v12575_v5 = vadd.f32 %v1202_v54, %v12506_v16  ;;  %v16177_v54 = vld [vmem:[#allocation38_spill] sm:$0xff] }
 0x224   : > { %16151 = vst [vmem:[#allocation80_spill] sm:$0xff] %v12530_v30  ;;  %16152 = vst [vmem:[#allocation81_spill] sm:$0xff] %v12533_v25 }
 0x225   : > { %16153 = vst [vmem:[#allocation82_spill] sm:$0xff] %v12536_v29  ;;  %16154 = vst [vmem:[#allocation83_spill] sm:$0xff] %v12539_v34  ;;  %v12566_v4 = vpop.f32.mrb[46].mxu1 }
 0x226   : > { %16155 = vst [vmem:[#allocation84_spill] sm:$0xff] %v12542_v45  ;;  %16156 = vst [vmem:[#allocation85_spill] sm:$0xff] %v12545_v42  ;;  %v12568_v20 = vpop.f32.mrb[47].mxu1  ;;  %v16183_v45 = vld [vmem:[#allocation44_spill] sm:$0xff] }
 0x227   : > { %16157 = vst [vmem:[#allocation86_spill] sm:$0xff] %v12548_v51  ;;  %16158 = vst [vmem:[#allocation87_spill] sm:$0xff] %v12551_v59  ;;  %v1262_v59 = vadd.f32 %v1261_v53, %v1260_v21  ;;  %v16175_v53 = vld [vmem:[#allocation36_spill] sm:$0xff] }
 0x228   : > { %16159 = vst [vmem:[#allocation88_spill] sm:$0xff] %v12554_v3  ;;  %16160 = vst [vmem:[#allocation89_spill] sm:$0xff] %v12559_v19  ;;  %v1223_v3 = vadd.f32 %v1222_v13, %v12470_v38  ;;  %v1282_v19 = vrot.slane %v1281_v35, 1  ;;  %v10504_v38 = vld [vmem:[#allocation8 + $0x4] ss:$28 sps:$4 sm:$0xff]  }
 0x229   : > { %16161 = vst [vmem:[#allocation90_spill] sm:$0xff] %v12562_v36  ;;  %16162 = vst [vmem:[#allocation91_spill] sm:$0xff] %v12564_v52  ;;  %v1310_v51 = vmul.f32 0.0078125, %v1262_v59  ;;  %v12572_v23 = vpop.f32.mrb[48].mxu1  ;;  %4690 = vmatprep.subr.bf16.mxu1 %v10504_v38  ;;  %v16189_v38 = vld [vmem:[#allocation27_spill] sm:$0xff] }
 0x22a   : > { %16163 = vst [vmem:[#allocation92_spill] sm:$0xff] %v12568_v20  ;;  %v12578_v28 = vadd.f32 %v1223_v3, %v12508_v50  ;;  %v12580_v36 = vpop.f32.mrb[49].mxu1  ;;  %v1283_v50 = vadd.f32 %v1282_v19, %v1281_v35 }
 0x22b   : > { %16164 = vst [vmem:[#allocation93_spill] sm:$0xff] %v12580_v36  ;;  %v12583_v46 = vsub.f32 %v12258_v27, %v1310_v51  ;;  %v12586_v21 = vsub.f32 %v12270_v33, %v1310_v51  ;;  %v12589_v58 = vsub.f32 %v12284_v41, %v1310_v51  ;;  %v12592_v13 = vsub.f32 %v12296_v49, %v1310_v51 }
 0x22c   : > { %v12595_v59 = vsub.f32 %v12308_v57, %v1310_v51  ;;  %v12598_v3 = vsub.f32 %v12320_v1, %v1310_v51  ;;  %v12601_v63 = vsub.f32 %v12332_v9, %v1310_v51  ;;  %v12604_v27 = vsub.f32 %v12344_v17, %v1310_v51  ;;  %v10507_v17 = vld [vmem:[#allocation8 + $0x384] ss:$28 sps:$4 sm:$0xff]  }
 0x22d   : > { %16165 = vst [vmem:[#allocation94_spill] sm:$0xff] %v12583_v46  ;;  %16166 = vst [vmem:[#allocation95_spill] sm:$0xff] %v12586_v21  ;;  %v12607_v33 = vsub.f32 %v12356_v31, %v1310_v51  ;;  %v12609_v41 = vpop.f32.mrb[50].mxu1  ;;  %v12612_v49 = vsub.f32 %v12368_v47, %v1310_v51  ;;  %v12615_v57 = vsub.f32 %v16175_v53, %v1310_v51  ;;  %v16181_v31 = vld [vmem:[#allocation42_spill] sm:$0xff]  ;;  %v10505_v53 = vld [vmem:[#allocation8 + $0x380] ss:$28 sps:$4 sm:$0xff]   ;;  %4803 = vmatprep.subr.bf16.mxu0 %v10507_v17 }
 0x22e   : > { %16167 = vst [vmem:[#allocation96_spill] sm:$0xff] %v12589_v58  ;;  %16168 = vst [vmem:[#allocation97_spill] sm:$0xff] %v12592_v13  ;;  %v12618_v1 = vsub.f32 %v16177_v54, %v1310_v51  ;;  %v12620_v9 = vpop.f32.mrb[51].mxu1  ;;  %v12623_v42 = vsub.f32 %v16179_v39, %v1310_v51  ;;  %v12629_v47 = vsub.f32 %v16183_v45, %v1310_v51  ;;  %v1311_v19 = vmul.f32 0.0078125, %v1283_v50  ;;  %v10510_v39 = vld [vmem:[#allocation8 + $0x3c] ss:$28 sps:$4 sm:$0xff]  }
 0x22f   : > { %16169 = vst [vmem:[#allocation98_spill] sm:$0xff] %v12595_v59  ;;  %16170 = vst [vmem:[#allocation99_spill] sm:$0xff] %v12598_v3  ;;  %4804 = vmatpush1.bf16.msra.mxu0 %v10505_v53  ;;  %v16191_v17 = vld [vmem:[#allocation28_spill] sm:$0xff]  ;;  %v10519_v53 = vld [vmem:[#allocation8 + $0x3f4] ss:$28 sps:$4 sm:$0xff]  }
 0x230   : > { %16171 = vst [vmem:[#allocation100_spill] sm:$0xff] %v12601_v63  ;;  %16172 = vst [vmem:[#allocation101_spill] sm:$0xff] %v12604_v27  ;;  %v12647_v50 = vsub.f32 %v16191_v17, %v1311_v19  ;;  %v12661_v17 = vsub.f32 %v16199_v15, %v1311_v19  ;;  %v16201_v27 = vld [vmem:[#allocation33_spill] sm:$0xff] }
 0x231   : > { %16173 = vst [vmem:[#allocation102_spill] sm:$0xff] %v12607_v33  ;;  %16174 = vst [vmem:[#allocation103_spill] sm:$0xff] %v12612_v49  ;;  %v12626_v33 = vsub.f32 %v16181_v31, %v1310_v51  ;;  %v10502_v49 = vld [vmem:[#allocation8] ss:$28 sps:$4 sm:$0xff]   ;;  %v12634_v35 = vpop.f32.mrb[52].mxu1  ;;  %v12664_v63 = vsub.f32 %v16201_v27, %v1311_v19  ;;  %v16211_v15 = vld [vmem:[#allocation41_spill] sm:$0xff] }
 0x232   : > { %16176 = vst [vmem:[#allocation36_spill] sm:$0xff] %v12615_v57  ;;  %16178 = vst [vmem:[#allocation38_spill] sm:$0xff] %v12618_v1  ;;  %v16185_v57 = vld [vmem:[#allocation47_spill] sm:$0xff]  ;;  %v12636_v54 = vpop.f32.mrb[53].mxu1  ;;  %4691 = vmatpush1.bf16.msra.mxu1 %v10502_v49  ;;  %v10516_v49 = vld [vmem:[#allocation8 + $0x74] ss:$28 sps:$4 sm:$0xff]  }
 0x233   : > { %16180 = vst [vmem:[#allocation40_spill] sm:$0xff] %v12623_v42  ;;  %16182 = vst [vmem:[#allocation42_spill] sm:$0xff] %v12626_v33  ;;  %v12632_v8 = vsub.f32 %v16185_v57, %v1310_v51  ;;  %v10513_v42 = vld [vmem:[#allocation8 + $0x3bc] ss:$28 sps:$4 sm:$0xff]   ;;  %4692 = vmatprep.subr.bf16.mxu1 %v10510_v39  ;;  %v12644_v57 = vsub.f32 %v16189_v38, %v1311_v19  ;;  %v16193_v1 = vld [vmem:[#allocation29_spill] sm:$0xff]  ;;  %v12658_v38 = vsub.f32 %v16197_v55, %v1311_v19 }
 0x234   : > { %16184 = vst [vmem:[#allocation44_spill] sm:$0xff] %v12629_v47  ;;  %v10508_v31 = vld [vmem:[#allocation8 + $0x38] ss:$28 sps:$4 sm:$0xff]   ;;  %4805 = vmatprep.subr.bf16.mxu0 %v10513_v42  ;;  %16192 = vst [vmem:[#allocation28_spill] sm:$0xff] %v12647_v50  ;;  %v12652_v34 = vsub.f32 %v16193_v1, %v1311_v19  ;;  %v10514_v42 = vld [vmem:[#allocation8 + $0x70] ss:$28 sps:$4 sm:$0xff]  }
 0x235   : > { %16186 = vst [vmem:[#allocation47_spill] sm:$0xff] %v12632_v8  ;;  %v10511_v33 = vld [vmem:[#allocation8 + $0x3b8] ss:$28 sps:$4 sm:$0xff]   ;;  %v12638_v45 = vpop.f32.mrb[54].mxu1  ;;  %16190 = vst [vmem:[#allocation27_spill] sm:$0xff] %v12644_v57 }
 0x236   : > { %v16187_v47 = vld [vmem:[#allocation26_spill] sm:$0xff]  ;;  %v12649_v8 = vpop.f32.mrb[55].mxu1  ;;  %4693 = vmatpush1.bf16.msra.mxu1 %v10508_v31  ;;  %16194 = vst [vmem:[#allocation29_spill] sm:$0xff] %v12652_v34  ;;  %4806 = vmatpush1.bf16.msra.mxu0 %v10511_v33  ;;  %16198 = vst [vmem:[#allocation31_spill] sm:$0xff] %v12658_v38  ;;  %v16205_v1 = vld [vmem:[#allocation35_spill] sm:$0xff] }
 0x237   : > { %v12641_v51 = vsub.f32 %v16187_v47, %v1311_v19  ;;  %v16195_v39 = vld [vmem:[#allocation30_spill] sm:$0xff]  ;;  %16200 = vst [vmem:[#allocation32_spill] sm:$0xff] %v12661_v17  ;;  %16202 = vst [vmem:[#allocation33_spill] sm:$0xff] %v12664_v63  ;;  %4694 = vmatprep.subr.bf16.mxu1 %v10516_v49  ;;  %v12670_v29 = vsub.f32 %v16205_v1, %v1311_v19  ;;  %4807 = vmatprep.subr.bf16.mxu0 %v10519_v53  ;;  %v16207_v33 = vld [vmem:[#allocation37_spill] sm:$0xff] }
 0x238   : > { %v12655_v16 = vsub.f32 %v16195_v39, %v1311_v19  ;;  %v10517_v47 = vld [vmem:[#allocation8 + $0x3f0] ss:$28 sps:$4 sm:$0xff]   ;;  %v12675_v56 = vsub.f32 %v16207_v33, %v1311_v19  ;;  %v16209_v55 = vld [vmem:[#allocation39_spill] sm:$0xff]  ;;  %v12681_v17 = vsub.f32 %v16211_v15, %v1311_v19  ;;  %v10520_v53 = vld [vmem:[#allocation8 + $0xa8] ss:$28 sps:$4 sm:$0xff]  }
 0x239   : > { %16188 = vst [vmem:[#allocation26_spill] sm:$0xff] %v12641_v51  ;;  %v16203_v31 = vld [vmem:[#allocation34_spill] sm:$0xff]  ;;  %16206 = vst [vmem:[#allocation35_spill] sm:$0xff] %v12670_v29  ;;  %v12672_v39 = vpop.f32.mrb[56].mxu1  ;;  %v12678_v38 = vsub.f32 %v16209_v55, %v1311_v19  ;;  %v10522_v49 = vld [vmem:[#allocation8 + $0xac] ss:$28 sps:$4 sm:$0xff]  }
 0x23a   : > { %16196 = vst [vmem:[#allocation30_spill] sm:$0xff] %v12655_v16  ;;  %v12667_v0 = vsub.f32 %v16203_v31, %v1311_v19  ;;  %16208 = vst [vmem:[#allocation37_spill] sm:$0xff] %v12675_v56  ;;  %v12683_v27 = vpop.f32.mrb[57].mxu1  ;;  %4695 = vmatpush1.bf16.msra.mxu1 %v10514_v42  ;;  %v10525_v31 = vld [vmem:[#allocation8 + $0x42c] ss:$28 sps:$4 sm:$0xff]   ;;  %4808 = vmatpush1.bf16.msra.mxu0 %v10517_v47 }
 0x23b   : > { %16210 = vst [vmem:[#allocation39_spill] sm:$0xff] %v12678_v38  ;;  %16212 = vst [vmem:[#allocation41_spill] sm:$0xff] %v12681_v17  ;;  %v16215_v29 = vld [vmem:[#allocation45_spill] sm:$0xff]  ;;  %4696 = vmatprep.subr.bf16.mxu1 %v10522_v49  ;;  %4809 = vmatprep.subr.bf16.mxu0 %v10525_v31  ;;  %v10528_v42 = vld [vmem:[#allocation8 + $0xe4] ss:$28 sps:$4 sm:$0xff]   ;;  %v1204_v49 = vadd.f32 %v12575_v5, %v12510_v37  ;;  %v1225_v31 = vadd.f32 %v12578_v28, %v12521_v43 }
 0x23c   : > { %16204 = vst [vmem:[#allocation34_spill] sm:$0xff] %v12667_v0  ;;  %v16213_v0 = vld [vmem:[#allocation43_spill] sm:$0xff]  ;;  %v12689_v63 = vsub.f32 %v16215_v29, %v1311_v19  ;;  %v10523_v33 = vld [vmem:[#allocation8 + $0x428] ss:$28 sps:$4 sm:$0xff]   ;;  %v10543_v16 = vld [vmem:[#allocation8 + $0x4d4] ss:$28 sps:$4 sm:$0xff]   ;;  %v1425_v5 = vmul.f32 %v12459_v18, %v12459_v18 }
 0x23d   : > { %v12686_v1 = vsub.f32 %v16213_v0, %v1311_v19  ;;  %v16217_v56 = vld [vmem:[#allocation49_spill] sm:$0xff]  ;;  %v12694_v15 = vpop.f32.mrb[58].mxu1  ;;  %v10531_v38 = vld [vmem:[#allocation8 + $0x464] ss:$28 sps:$4 sm:$0xff]  }
 0x23e   : > { %16216 = vst [vmem:[#allocation45_spill] sm:$0xff] %v12689_v63  ;;  %v12692_v55 = vsub.f32 %v16217_v56, %v1311_v19  ;;  %v12696_v17 = vpop.f32.mrb[59].mxu1  ;;  %4697 = vmatpush1.bf16.msra.mxu1 %v10520_v53  ;;  %4810 = vmatpush1.bf16.msra.mxu0 %v10523_v33  ;;  %v10526_v0 = vld [vmem:[#allocation8 + $0xe0] ss:$28 sps:$4 sm:$0xff]   ;;  %v10532_v53 = vld [vmem:[#allocation8 + $0x118] ss:$28 sps:$4 sm:$0xff]  }
 0x23f   : > { %16214 = vst [vmem:[#allocation43_spill] sm:$0xff] %v12686_v1  ;;  %v10529_v1 = vld [vmem:[#allocation8 + $0x460] ss:$28 sps:$4 sm:$0xff]   ;;  %4698 = vmatprep.subr.bf16.mxu1 %v10528_v42  ;;  %4811 = vmatprep.subr.bf16.mxu0 %v10531_v38  ;;  %v10535_v33 = vld [vmem:[#allocation8 + $0x498] ss:$28 sps:$4 sm:$0xff]   ;;  %v1205_v38 = vadd.f32 %v1204_v49, %v12556_v11  ;;  %v1226_v42 = vadd.f32 %v1225_v31, %v12564_v52 }
 0x240   : > { %16218 = vst [vmem:[#allocation49_spill] sm:$0xff] %v12692_v55  ;;  %v10534_v56 = vld [vmem:[#allocation8 + $0x11c] ss:$28 sps:$4 sm:$0xff]   ;;  %v10540_v63 = vld [vmem:[#allocation8 + $0x154] ss:$28 sps:$4 sm:$0xff]   ;;  %v1432_v49 = vmul.f32 %v12462_v44, %v12462_v44  ;;  %v1426_v31 = vmul.f32 %v12513_v62, %v12513_v62 }
 0x241   : > { %v12698_v29 = vpop.f32.mrb[60].mxu1  ;;  %v10537_v19 = vld [vmem:[#allocation8 + $0x49c] ss:$28 sps:$4 sm:$0xff]   ;;  %v1206_v28 = vadd.f32 %v1205_v38, %v12566_v4  ;;  %v10544_v62 = vld [vmem:[#allocation8 + $0x188] ss:$28 sps:$4 sm:$0xff]  }
 0x242   : > { %v12700_v47 = vpop.f32.mrb[61].mxu1  ;;  %4699 = vmatpush1.bf16.msra.mxu1 %v10526_v0  ;;  %4812 = vmatpush1.bf16.msra.mxu0 %v10529_v1  ;;  %v1227_v1 = vadd.f32 %v1226_v42, %v12568_v20  ;;  %v10546_v42 = vld [vmem:[#allocation8 + $0x18c] ss:$28 sps:$4 sm:$0xff]  }
 0x243   : > { %4700 = vmatprep.subr.bf16.mxu1 %v10534_v56  ;;  %4813 = vmatprep.subr.bf16.mxu0 %v10537_v19  ;;  %v10538_v56 = vld [vmem:[#allocation8 + $0x150] ss:$28 sps:$4 sm:$0xff]   ;;  %v1207_v18 = vadd.f32 %v1206_v28, %v12572_v23  ;;  %v10547_v43 = vld [vmem:[#allocation8 + $0x508] ss:$28 sps:$4 sm:$0xff]  }
 0x244   : > { %v10541_v19 = vld [vmem:[#allocation8 + $0x4d0] ss:$28 sps:$4 sm:$0xff]   ;;  %v1228_v38 = vadd.f32 %v1227_v1, %v12580_v36 }
 0x245   : > { %v12708_v55 = vpop.f32.mrb[62].mxu1  ;;  %v1208_v44 = vadd.f32 %v1207_v18, %v12609_v41  ;;  %v1439_v18 = vmul.f32 %v12465_v22, %v12465_v22  ;;  %v1429_v22 = vmul.f32 %v12583_v46, %v12583_v46 }
 0x246   : > { %v12710_v0 = vpop.f32.mrb[63].mxu1  ;;  %4701 = vmatpush1.bf16.msra.mxu1 %v10532_v53  ;;  %4814 = vmatpush1.bf16.msra.mxu0 %v10535_v33  ;;  %v1433_v53 = vmul.f32 %v12516_v14, %v12516_v14  ;;  %v1229_v20 = vadd.f32 %v1228_v38, %v12620_v9  ;;  %v10549_v14 = vld [vmem:[#allocation8 + $0x50c] ss:$28 sps:$4 sm:$0xff]  }
 0x247   : > { %4702 = vmatprep.subr.bf16.mxu1 %v10540_v63  ;;  %4815 = vmatprep.subr.bf16.mxu0 %v10543_v16  ;;  %v1537_v63 = vadd.f32 %v1432_v49, %v1425_v5  ;;  %v1209_v1 = vadd.f32 %v1208_v44, %v12634_v35  ;;  %v10552_v5 = vld [vmem:[#allocation8 + $0x1c4] ss:$28 sps:$4 sm:$0xff]  }
 0x248   : > { %v1558_v16 = vadd.f32 %v1433_v53, %v1426_v31  ;;  %v1230_v36 = vadd.f32 %v1229_v20, %v12636_v54  ;;  %v10555_v49 = vld [vmem:[#allocation8 + $0x544] ss:$28 sps:$4 sm:$0xff]  }
 0x249   : > { %v12724_v52 = vpop.f32.mrb[64].mxu1  ;;  %v1210_v31 = vadd.f32 %v1209_v1, %v12638_v45  ;;  %v10550_v20 = vld [vmem:[#allocation8 + $0x1c0] ss:$28 sps:$4 sm:$0xff]  }
 0x24a   : > { %16219 = vst [vmem:[#allocation104_spill] sm:$0xff] %v12724_v52  ;;  %v12726_v33 = vpop.f32.mrb[65].mxu1  ;;  %4703 = vmatpush1.bf16.msra.mxu1 %v10538_v56  ;;  %4816 = vmatpush1.bf16.msra.mxu0 %v10541_v19  ;;  %v1440_v19 = vmul.f32 %v12519_v7, %v12519_v7  ;;  %v1231_v44 = vadd.f32 %v1230_v36, %v12649_v8  ;;  %v10553_v53 = vld [vmem:[#allocation8 + $0x540] ss:$28 sps:$4 sm:$0xff]  }
 0x24b   : > { %v1284_v28 = vadd.f32 %v12724_v52, %v12726_v33  ;;  %4704 = vmatprep.subr.bf16.mxu1 %v10546_v42  ;;  %4817 = vmatprep.subr.bf16.mxu0 %v10549_v14  ;;  %v1538_v42 = vadd.f32 %v1537_v63, %v1439_v18  ;;  %v1211_v7 = vadd.f32 %v1210_v31, %v12672_v39  ;;  %v10558_v18 = vld [vmem:[#allocation8 + $0x1fc] ss:$28 sps:$4 sm:$0xff]  }
 0x24c   : > { %v1559_v14 = vadd.f32 %v1558_v16, %v1440_v19  ;;  %v1232_v1 = vadd.f32 %v1231_v44, %v12683_v27  ;;  %v1447_v63 = vmul.f32 %v12524_v10, %v12524_v10  ;;  %v10561_v19 = vld [vmem:[#allocation8 + $0x57c] ss:$28 sps:$4 sm:$0xff]  }
 0x24d   : > { %v12734_v56 = vpop.f32.mrb[66].mxu1  ;;  %v10556_v44 = vld [vmem:[#allocation8 + $0x1f8] ss:$28 sps:$4 sm:$0xff]  }
 0x24e   : > { %16220 = vst [vmem:[#allocation105_spill] sm:$0xff] %v12734_v56  ;;  %v12740_v38 = vpop.f32.mrb[67].mxu1  ;;  %4705 = vmatpush1.bf16.msra.mxu1 %v10544_v62  ;;  %4818 = vmatpush1.bf16.msra.mxu0 %v10547_v43  ;;  %v1436_v62 = vmul.f32 %v12586_v21, %v12586_v21  ;;  %v1446_v43 = vmul.f32 %v12468_v60, %v12468_v60  ;;  %v10559_v10 = vld [vmem:[#allocation8 + $0x578] ss:$28 sps:$4 sm:$0xff]  }
 0x24f   : > { %v1285_v52 = vadd.f32 %v1284_v28, %v12740_v38  ;;  %4706 = vmatprep.subr.bf16.mxu1 %v10552_v5  ;;  %4819 = vmatprep.subr.bf16.mxu0 %v10555_v49  ;;  %v1453_v5 = vmul.f32 %v12473_v2, %v12473_v2  ;;  %v1212_v49 = vadd.f32 %v1211_v7, %v12694_v15 }
 0x250   : > { %v1233_v31 = vadd.f32 %v1232_v1, %v12696_v17  ;;  %v1539_v21 = vadd.f32 %v1538_v42, %v1446_v43  ;;  %v1560_v46 = vadd.f32 %v1559_v14, %v1447_v63  ;;  %v1430_v42 = vmul.f32 %v12641_v51, %v12641_v51 }
 0x251   : > { %v12751_v36 = vpop.f32.mrb[68].mxu1  ;;  %v1286_v28 = vadd.f32 %v12734_v56, %v1285_v52  ;;  %v1443_v52 = vmul.f32 %v12589_v58, %v12589_v58  ;;  %v1213_v56 = vadd.f32 %v1212_v49, %v12698_v29  ;;  %v1437_v14 = vmul.f32 %v12644_v57, %v12644_v57  ;;  %v10562_v49 = vld [vmem:[#allocation8 + $0x230] ss:$28 sps:$4 sm:$0xff]  }
 0x252   : > { %v12757_v16 = vpop.f32.mrb[69].mxu1  ;;  %4707 = vmatpush1.bf16.msra.mxu1 %v10550_v20  ;;  %4820 = vmatpush1.bf16.msra.mxu0 %v10553_v53  ;;  %v1621_v20 = vadd.f32 %v1436_v62, %v1429_v22  ;;  %v1234_v2 = vadd.f32 %v1233_v31, %v12700_v47  ;;  %v1454_v53 = vmul.f32 %v12527_v6, %v12527_v6  ;;  %v10564_v22 = vld [vmem:[#allocation8 + $0x234] ss:$28 sps:$4 sm:$0xff]  }
 0x253   : > { %v1287_v60 = vadd.f32 %v1286_v28, %v12757_v16  ;;  %4708 = vmatprep.subr.bf16.mxu1 %v10558_v18  ;;  %4821 = vmatprep.subr.bf16.mxu0 %v10561_v19  ;;  %v10567_v62 = vld [vmem:[#allocation8 + $0x5b4] ss:$28 sps:$4 sm:$0xff]   ;;  %v1460_v63 = vmul.f32 %v12476_v12, %v12476_v12  ;;  %v1467_v28 = vmul.f32 %v12479_v24, %v12479_v24 }
 0x254   : > { %v1214_v18 = vadd.f32 %v1213_v56, %v12708_v55  ;;  %v1235_v19 = vadd.f32 %v1234_v2, %v12710_v0  ;;  %v10565_v31 = vld [vmem:[#allocation8 + $0x5b0] ss:$28 sps:$4 sm:$0xff]   ;;  %v1540_v58 = vadd.f32 %v1539_v21, %v1453_v5  ;;  %v1561_v57 = vadd.f32 %v1560_v46, %v1454_v53 }
 0x255   : > { %v12769_v7 = vpop.f32.mrb[70].mxu1  ;;  %v1288_v43 = vadd.f32 %v12751_v36, %v1287_v60  ;;  %v1622_v51 = vadd.f32 %v1621_v20, %v1443_v52  ;;  %v1461_v2 = vmul.f32 %v12530_v30, %v12530_v30  ;;  %v1642_v21 = vadd.f32 %v1437_v14, %v1430_v42  ;;  %v10570_v5 = vld [vmem:[#allocation8 + $0x26c] ss:$28 sps:$4 sm:$0xff]  }
 0x256   : > { %v12777_v1 = vpop.f32.mrb[71].mxu1  ;;  %4709 = vmatpush1.bf16.msra.mxu1 %v10556_v44  ;;  %4822 = vmatpush1.bf16.msra.mxu0 %v10559_v10  ;;  %v1450_v44 = vmul.f32 %v12592_v13, %v12592_v13  ;;  %v1215_v12 = vrot.slane %v1214_v18, 4  ;;  %v1236_v6 = vrot.slane %v1235_v19, 4  ;;  %v1444_v10 = vmul.f32 %v12647_v50, %v12647_v50  ;;  %v10573_v50 = vld [vmem:[#allocation8 + $0x5ec] ss:$28 sps:$4 sm:$0xff]  }
 0x257   : > { %v1289_v60 = vadd.f32 %v1288_v43, %v12777_v1  ;;  %4710 = vmatprep.subr.bf16.mxu1 %v10564_v22  ;;  %4823 = vmatprep.subr.bf16.mxu0 %v10567_v62  ;;  %v1474_v52 = vmul.f32 %v12482_v26, %v12482_v26  ;;  %v12802_v20 = vmul.f32 %v12485_v32, %v12485_v32  ;;  %v10568_v22 = vld [vmem:[#allocation8 + $0x268] ss:$28 sps:$4 sm:$0xff]  }
 0x258   : > { %v1216_v53 = vadd.f32 %v1215_v12, %v1214_v18  ;;  %v1237_v43 = vadd.f32 %v1236_v6, %v1235_v19  ;;  %v10571_v62 = vld [vmem:[#allocation8 + $0x5e8] ss:$28 sps:$4 sm:$0xff]   ;;  %v12806_v42 = vmul.f32 %v12488_v40, %v12488_v40  ;;  %v1541_v14 = vadd.f32 %v1540_v58, %v1460_v63 }
 0x259   : > { %v12789_v24 = vpop.f32.mrb[72].mxu1  ;;  %v1290_v56 = vadd.f32 %v12769_v7, %v1289_v60  ;;  %v1562_v60 = vadd.f32 %v1561_v57, %v1461_v2  ;;  %v1457_v13 = vmul.f32 %v12595_v59, %v12595_v59  ;;  %v1623_v32 = vadd.f32 %v1622_v51, %v1450_v44  ;;  %v10579_v2 = vld [vmem:[#allocation8 + $0x624] ss:$28 sps:$4 sm:$0xff]  }
 0x25a   : > { %16221 = vst [vmem:[#allocation106_spill] sm:$0xff] %v12789_v24  ;;  %v12795_v46 = vpop.f32.mrb[73].mxu1  ;;  %4711 = vmatpush1.bf16.msra.mxu1 %v10562_v49  ;;  %4824 = vmatpush1.bf16.msra.mxu0 %v10565_v31  ;;  %v1217_v26 = vrot.slane %v1216_v53, 2  ;;  %v1238_v12 = vrot.slane %v1237_v43, 2  ;;  %v12815_v18 = vmul.f32 %v12491_v61, %v12491_v61  ;;  %v1451_v58 = vmul.f32 %v12652_v34, %v12652_v34  ;;  %v10576_v31 = vld [vmem:[#allocation8 + $0x2a4] ss:$28 sps:$4 sm:$0xff]  }
 0x25b   : > { %v1291_v49 = vadd.f32 %v1290_v56, %v12795_v46  ;;  %4712 = vmatprep.subr.bf16.mxu1 %v10570_v5  ;;  %v1643_v57 = vadd.f32 %v1642_v21, %v1444_v10  ;;  %4825 = vmatprep.subr.bf16.mxu0 %v10573_v50  ;;  %v1468_v51 = vmul.f32 %v12533_v25, %v12533_v25  ;;  %v10574_v5 = vld [vmem:[#allocation8 + $0x2a0] ss:$28 sps:$4 sm:$0xff]   ;;  %v10588_v25 = vld [vmem:[#allocation8 + $0x314] ss:$28 sps:$4 sm:$0xff]  }
 0x25c   : > { %v1218_v44 = vadd.f32 %v1217_v26, %v1216_v53  ;;  %v1239_v56 = vadd.f32 %v1238_v12, %v1237_v43  ;;  %v12826_v59 = vmul.f32 %v12494_v48, %v12494_v48  ;;  %v1542_v10 = vadd.f32 %v1541_v14, %v1467_v28  ;;  %v16225_v43 = vld [vmem:[#allocation30_spill] sm:$0xff] }
 0x25d   : > { %v12811_v6 = vpop.f32.mrb[74].mxu1  ;;  %v1292_v19 = vadd.f32 %v12789_v24, %v1291_v49  ;;  %v10577_v49 = vld [vmem:[#allocation8 + $0x620] ss:$28 sps:$4 sm:$0xff]   ;;  %v1563_v50 = vadd.f32 %v1562_v60, %v1468_v51  ;;  %v1464_v34 = vmul.f32 %v12598_v3, %v12598_v3  ;;  %v1624_v61 = vadd.f32 %v1623_v32, %v1457_v13 }
 0x25e   : > { %16222 = vst [vmem:[#allocation107_spill] sm:$0xff] %v12811_v6  ;;  %v12819_v63 = vpop.f32.mrb[75].mxu1  ;;  %4713 = vmatpush1.bf16.msra.mxu1 %v10568_v22  ;;  %4826 = vmatpush1.bf16.msra.mxu0 %v10571_v62  ;;  %v1219_v26 = vrot.slane %v1218_v44, 1  ;;  %v1458_v22 = vmul.f32 %v16225_v43, %v16225_v43  ;;  %v1644_v62 = vadd.f32 %v1643_v57, %v1451_v58  ;;  %v1240_v12 = vrot.slane %v1239_v56, 1  ;;  %v10582_v14 = vld [vmem:[#allocation8 + $0x2dc] ss:$28 sps:$4 sm:$0xff]  }
 0x25f   : > { %16223 = vst [vmem:[#allocation108_spill] sm:$0xff] %v12819_v63  ;;  %v1293_v21 = vadd.f32 %v1292_v19, %v12819_v63  ;;  %4714 = vmatprep.subr.bf16.mxu1 %v10576_v31  ;;  %4827 = vmatprep.subr.bf16.mxu0 %v10579_v2  ;;  %v16227_v19 = vld [vmem:[#allocation68_spill] sm:$0xff]  ;;  %v16228_v31 = vld [vmem:[#allocation82_spill] sm:$0xff]  ;;  %v16229_v43 = vld [vmem:[#allocation69_spill] sm:$0xff]  ;;  %v1543_v57 = vadd.f32 %v1542_v10, %v1474_v52 }
 0x260   : > { %v12840_v60 = vmul.f32 %v16227_v19, %v16227_v19  ;;  %v1475_v32 = vmul.f32 %v16228_v31, %v16228_v31  ;;  %v1220_v13 = vadd.f32 %v1219_v26, %v1218_v44  ;;  %v10580_v2 = vld [vmem:[#allocation8 + $0x2d8] ss:$28 sps:$4 sm:$0xff]   ;;  %v12846_v58 = vmul.f32 %v16229_v43, %v16229_v43  ;;  %v16230_v3 = vld [vmem:[#allocation100_spill] sm:$0xff]  ;;  %v16231_v31 = vld [vmem:[#allocation101_spill] sm:$0xff] }
 0x261   : > { %v12831_v53 = vpop.f32.mrb[76].mxu1  ;;  %v1294_v28 = vadd.f32 %v12811_v6, %v1293_v21  ;;  %v10585_v51 = vld [vmem:[#allocation8 + $0x65c] ss:$28 sps:$4 sm:$0xff]   ;;  %v1471_v21 = vmul.f32 %v16230_v3, %v16230_v3  ;;  %v1478_v44 = vmul.f32 %v16231_v31, %v16231_v31  ;;  %v10591_v43 = vld [vmem:[#allocation8 + $0x694] ss:$28 sps:$4 sm:$0xff]   ;;  %v1645_v10 = vadd.f32 %v1644_v62, %v1458_v22 }
 0x262   : > { %16224 = vst [vmem:[#allocation109_spill] sm:$0xff] %v12831_v53  ;;  %v12835_v48 = vpop.f32.mrb[77].mxu1  ;;  %4715 = vmatpush1.bf16.msra.mxu1 %v10574_v5  ;;  %4828 = vmatpush1.bf16.msra.mxu0 %v10577_v49  ;;  %v10583_v19 = vld [vmem:[#allocation8 + $0x658] ss:$28 sps:$4 sm:$0xff]   ;;  %v1564_v30 = vadd.f32 %v1563_v50, %v1475_v32  ;;  %v1625_v5 = vadd.f32 %v1624_v61, %v1464_v34  ;;  %v1308_v49 = vmul.f32 0.0078125, %v1220_v13  ;;  %v16237_v34 = vld [vmem:[#allocation52_spill] sm:$0xff] }
 0x263   : > { %16226 = vst [vmem:[#allocation110_spill] sm:$0xff] %v12835_v48  ;;  %v1295_v40 = vadd.f32 %v1294_v28, %v12835_v48  ;;  %4716 = vmatprep.subr.bf16.mxu1 %v10582_v14  ;;  %4829 = vmatprep.subr.bf16.mxu0 %v10585_v51  ;;  %v16232_v6 = vld [vmem:[#allocation31_spill] sm:$0xff]  ;;  %v1241_v3 = vadd.f32 %v1240_v12, %v1239_v56  ;;  %v16233_v50 = vld [vmem:[#allocation46_spill] sm:$0xff]  ;;  %v16241_v56 = vld [vmem:[#allocation72_spill] sm:$0xff] }
 0x264   : > { %v1465_v52 = vmul.f32 %v16232_v6, %v16232_v6  ;;  %v12863_v14 = vsub.f32 %v16233_v50, %v1308_v49  ;;  %v16235_v32 = vld [vmem:[#allocation50_spill] sm:$0xff]  ;;  %v12869_v13 = vsub.f32 %v16237_v34, %v1308_v49  ;;  %v12875_v62 = vsub.f32 %v16241_v56, %v1308_v49  ;;  %v16252_v48 = vld [vmem:[#allocation33_spill] sm:$0xff] }
 0x265   : > { %v12853_v26 = vpop.f32.mrb[78].mxu1  ;;  %v12860_v28 = vadd.f32 %v12831_v53, %v1295_v40  ;;  %v12866_v61 = vsub.f32 %v16235_v32, %v1308_v49  ;;  %v16239_v51 = vld [vmem:[#allocation54_spill] sm:$0xff]  ;;  %v12878_v40 = vsub.f32 %v12510_v37, %v1308_v49  ;;  %v12881_v12 = vsub.f32 %v12556_v11, %v1308_v49  ;;  %v10594_v32 = vld [vmem:[#allocation8 + $0x34c] ss:$28 sps:$4 sm:$0xff]  }
 0x266   : > { %v12857_v63 = vpop.f32.mrb[79].mxu1  ;;  %16234 = vst [vmem:[#allocation46_spill] sm:$0xff] %v12863_v14  ;;  %16238 = vst [vmem:[#allocation52_spill] sm:$0xff] %v12869_v13  ;;  %v12872_v31 = vsub.f32 %v16239_v51, %v1308_v49  ;;  %4717 = vmatpush1.bf16.msra.mxu1 %v10580_v2  ;;  %v10586_v22 = vld [vmem:[#allocation8 + $0x310] ss:$28 sps:$4 sm:$0xff]   ;;  %4830 = vmatpush1.bf16.msra.mxu0 %v10583_v19  ;;  %v12884_v34 = vsub.f32 %v12566_v4, %v1308_v49 }
 0x267   : > { %16236 = vst [vmem:[#allocation50_spill] sm:$0xff] %v12866_v61  ;;  %16242 = vst [vmem:[#allocation72_spill] sm:$0xff] %v12875_v62  ;;  %4718 = vmatprep.subr.bf16.mxu1 %v10588_v25  ;;  %v10589_v50 = vld [vmem:[#allocation8 + $0x690] ss:$28 sps:$4 sm:$0xff]   ;;  %v12887_v51 = vsub.f32 %v12572_v23, %v1308_v49  ;;  %v12890_v2 = vsub.f32 %v12609_v41, %v1308_v49  ;;  %v12893_v56 = vsub.f32 %v12634_v35, %v1308_v49  ;;  %v16244_v23 = vld [vmem:[#allocation32_spill] sm:$0xff] }
 0x268   : > { %16240 = vst [vmem:[#allocation54_spill] sm:$0xff] %v12872_v31  ;;  %16243 = vst [vmem:[#allocation111_spill] sm:$0xff] %v12878_v40  ;;  %4831 = vmatprep.subr.bf16.mxu0 %v10591_v43  ;;  %v10597_v37 = vld [vmem:[#allocation8 + $0x6cc] ss:$28 sps:$4 sm:$0xff]   ;;  %v1626_v11 = vadd.f32 %v1625_v5, %v1471_v21  ;;  %v12896_v19 = vsub.f32 %v12638_v45, %v1308_v49  ;;  %v12899_v25 = vsub.f32 %v12672_v39, %v1308_v49  ;;  %v16247_v45 = vld [vmem:[#allocation83_spill] sm:$0xff] }
 0x269   : > { %v12902_v4 = vsub.f32 %v12694_v15, %v1308_v49  ;;  %v1472_v6 = vmul.f32 %v16244_v23, %v16244_v23  ;;  %v1646_v41 = vadd.f32 %v1645_v10, %v1465_v52  ;;  %v12907_v53 = vsub.f32 %v12698_v29, %v1308_v49  ;;  %v10592_v43 = vld [vmem:[#allocation8 + $0x348] ss:$28 sps:$4 sm:$0xff]   ;;  %v16248_v10 = vld [vmem:[#allocation70_spill] sm:$0xff] }
 0x26a   : > { %v12910_v35 = vsub.f32 %v12708_v55, %v1308_v49  ;;  %4719 = vmatpush1.bf16.msra.mxu1 %v10586_v22  ;;  %v1482_v21 = vmul.f32 %v16247_v45, %v16247_v45  ;;  %v1427_v39 = vmul.f32 %v12863_v14, %v12863_v14  ;;  %v1434_v15 = vmul.f32 %v12866_v61, %v12866_v61  ;;  %v10595_v52 = vld [vmem:[#allocation8 + $0x6c8] ss:$28 sps:$4 sm:$0xff]  }
 0x26b   : > { %16245 = vst [vmem:[#allocation112_spill] sm:$0xff] %v12907_v53  ;;  %v1309_v5 = vmul.f32 0.0078125, %v1241_v3  ;;  %4832 = vmatpush1.bf16.msra.mxu0 %v10589_v50  ;;  %4720 = vmatprep.subr.bf16.mxu1 %v10594_v32  ;;  %v10603_v29 = vld [vmem:[#allocation8 + $0xc] ss:$28 sps:$4 sm:$0xff]   ;;  %v12920_v55 = vmul.f32 %v16248_v10, %v16248_v10  ;;  %v1544_v49 = vadd.f32 %v1543_v57, %v12802_v20  ;;  %v16251_v3 = vld [vmem:[#allocation102_spill] sm:$0xff] }
 0x26c   : > { %16246 = vst [vmem:[#allocation113_spill] sm:$0xff] %v12910_v35  ;;  %v16249_v22 = vld [vmem:[#allocation84_spill] sm:$0xff]  ;;  %v16250_v45 = vld [vmem:[#allocation85_spill] sm:$0xff]  ;;  %4833 = vmatprep.subr.bf16.mxu0 %v10597_v37  ;;  %v1565_v61 = vadd.f32 %v1564_v30, %v1482_v21  ;;  %v1485_v50 = vmul.f32 %v16251_v3, %v16251_v3  ;;  %v1627_v32 = vadd.f32 %v1626_v11, %v1478_v44  ;;  %v16255_v3 = vld [vmem:[#allocation51_spill] sm:$0xff] }
 0x26d   : > { %v1489_v23 = vmul.f32 %v16249_v22, %v16249_v22  ;;  %v1496_v14 = vmul.f32 %v16250_v45, %v16250_v45  ;;  %v10600_v35 = vld [vmem:[#allocation8 + $0x704] ss:$28 sps:$4 sm:$0xff]   ;;  %v1479_v24 = vmul.f32 %v16252_v48, %v16252_v48  ;;  %v1647_v10 = vadd.f32 %v1646_v41, %v1472_v6  ;;  %v16257_v6 = vld [vmem:[#allocation53_spill] sm:$0xff] }
 0x26e   : > { %v1441_v20 = vmul.f32 %v12869_v13, %v12869_v13  ;;  %v1448_v57 = vmul.f32 %v12872_v31, %v12872_v31  ;;  %v1455_v45 = vmul.f32 %v12875_v62, %v12875_v62  ;;  %4721 = vmatpush1.bf16.msra.mxu1 %v10592_v43  ;;  %v1579_v37 = vadd.f32 %v1434_v15, %v1427_v39  ;;  %v16253_v30 = vld [vmem:[#allocation48_spill] sm:$0xff]  ;;  %v16258_v41 = vld [vmem:[#allocation59_spill] sm:$0xff]  ;;  %v16259_v22 = vld [vmem:[#allocation73_spill] sm:$0xff] }
 0x26f   : > { %v12938_v21 = vsub.f32 %v16253_v30, %v1309_v5  ;;  %v12941_v44 = vsub.f32 %v16255_v3, %v1309_v5  ;;  %4834 = vmatpush1.bf16.msra.mxu0 %v10595_v52  ;;  %5142 = vmatprep.subr.bf16.mxu1 %v10603_v29  ;;  %v12944_v11 = vsub.f32 %v16257_v6, %v1309_v5  ;;  %v16260_v62 = vld [vmem:[#allocation77_spill] sm:$0xff]  ;;  %v16261_v15 = vld [vmem:[#allocation91_spill] sm:$0xff]  ;;  %v16262_v3 = vld [vmem:[#allocation92_spill] sm:$0xff] }
 0x270   : > { %v12947_v48 = vsub.f32 %v16258_v41, %v1309_v5  ;;  %v12950_v31 = vsub.f32 %v16259_v22, %v1309_v5  ;;  %v12953_v43 = vsub.f32 %v16260_v62, %v1309_v5  ;;  %4916 = vmatprep.subr.bf16.mxu0 %v10600_v35  ;;  %v1580_v39 = vadd.f32 %v1579_v37, %v1441_v20  ;;  %v16263_v29 = vld [vmem:[#allocation93_spill] sm:$0xff] }
 0x271   : > { %16254 = vst [vmem:[#allocation48_spill] sm:$0xff] %v12938_v21  ;;  %16256 = vst [vmem:[#allocation51_spill] sm:$0xff] %v12941_v44  ;;  %v12956_v30 = vsub.f32 %v16261_v15, %v1309_v5  ;;  %v12959_v52 = vsub.f32 %v16262_v3, %v1309_v5  ;;  %v12962_v6 = vsub.f32 %v16263_v29, %v1309_v5 }
 0x272   : > { %v12965_v41 = vsub.f32 %v12620_v9, %v1309_v5  ;;  %v12968_v22 = vsub.f32 %v12636_v54, %v1309_v5  ;;  %v12971_v62 = vsub.f32 %v12649_v8, %v1309_v5  ;;  %v12974_v35 = vsub.f32 %v12683_v27, %v1309_v5  ;;  %v16266_v9 = vld [vmem:[#allocation34_spill] sm:$0xff] }
 0x273   : > { %v1581_v20 = vadd.f32 %v1580_v39, %v1448_v57  ;;  %v12977_v37 = vsub.f32 %v12696_v17, %v1309_v5  ;;  %v12980_v15 = vsub.f32 %v12700_v47, %v1309_v5  ;;  %v12983_v3 = vsub.f32 %v12710_v0, %v1309_v5  ;;  %v16267_v17 = vld [vmem:[#allocation86_spill] sm:$0xff]  ;;  %v16268_v5 = vld [vmem:[#allocation87_spill] sm:$0xff] }
 0x274   : > { %v1486_v54 = vmul.f32 %v16266_v9, %v16266_v9  ;;  %v1648_v29 = vadd.f32 %v1647_v10, %v1479_v24  ;;  %v1428_v8 = vmul.f32 %v12938_v21, %v12938_v21  ;;  %v1435_v27 = vmul.f32 %v12941_v44, %v12941_v44  ;;  %v16269_v9 = vld [vmem:[#allocation88_spill] sm:$0xff]  ;;  %v16270_v21 = vld [vmem:[#allocation103_spill] sm:$0xff] }
 0x275   : > { %16264 = vst [vmem:[#allocation53_spill] sm:$0xff] %v12980_v15  ;;  %16265 = vst [vmem:[#allocation59_spill] sm:$0xff] %v12983_v3  ;;  %v1545_v57 = vadd.f32 %v1544_v49, %v12806_v42  ;;  %v1503_v39 = vmul.f32 %v16267_v17, %v16267_v17  ;;  %v1462_v47 = vmul.f32 %v12878_v40, %v12878_v40  ;;  %v16271_v42 = vld [vmem:[#allocation35_spill] sm:$0xff] }
 0x276   : > { %v1582_v0 = vadd.f32 %v1581_v20, %v1455_v45  ;;  %v1510_v13 = vmul.f32 %v16268_v5, %v16268_v5  ;;  %v13000_v24 = vmul.f32 %v16269_v9, %v16269_v9  ;;  %v1566_v10 = vadd.f32 %v1565_v61, %v1489_v23  ;;  %v16272_v23 = vld [vmem:[#allocation36_spill] sm:$0xff] }
 0x277   : > { %v1492_v44 = vmul.f32 %v16270_v21, %v16270_v21  ;;  %v1628_v3 = vadd.f32 %v1627_v32, %v1485_v50  ;;  %v1493_v49 = vmul.f32 %v16271_v42, %v16271_v42  ;;  %v1469_v17 = vmul.f32 %v12881_v12, %v12881_v12 }
 0x278   : > { %v1583_v40 = vadd.f32 %v1582_v0, %v1462_v47  ;;  %v1649_v45 = vadd.f32 %v1648_v29, %v1486_v54  ;;  %v1442_v20 = vmul.f32 %v12944_v11, %v12944_v11  ;;  %v1600_v5 = vadd.f32 %v1435_v27, %v1428_v8  ;;  %v16273_v27 = vld [vmem:[#allocation37_spill] sm:$0xff] }
 0x279   : > { %v1297_v9 = vadd.f32 %v12860_v28, %v12857_v63  ;;  %v1546_v61 = vadd.f32 %v1545_v57, %v12815_v18  ;;  %v1499_v50 = vmul.f32 %v16272_v23, %v16272_v23  ;;  %v1476_v32 = vmul.f32 %v12884_v34, %v12884_v34 }
 0x27a   : > { %v1584_v42 = vadd.f32 %v1583_v40, %v1469_v17  ;;  %v1567_v21 = vadd.f32 %v1566_v10, %v1496_v14  ;;  %v1449_v54 = vmul.f32 %v12947_v48, %v12947_v48  ;;  %v1601_v29 = vadd.f32 %v1600_v5, %v1442_v20  ;;  %v16274_v10 = vld [vmem:[#allocation38_spill] sm:$0xff] }
 0x27b   : > { %v1298_v47 = vadd.f32 %v12853_v26, %v1297_v9  ;;  %v1629_v8 = vadd.f32 %v1628_v3, %v1492_v44  ;;  %v1500_v28 = vmul.f32 %v16273_v27, %v16273_v27  ;;  %v1483_v18 = vmul.f32 %v12887_v51, %v12887_v51 }
 0x27c   : > { %v1585_v57 = vadd.f32 %v1584_v42, %v1476_v32  ;;  %v1650_v0 = vadd.f32 %v1649_v45, %v1493_v49  ;;  %v1456_v23 = vmul.f32 %v12950_v31, %v12950_v31  ;;  %v1602_v40 = vadd.f32 %v1601_v29, %v1449_v54  ;;  %v16275_v32 = vld [vmem:[#allocation39_spill] sm:$0xff] }
 0x27d   : > { %v1299_v14 = vrot.slane %v1298_v47, 4  ;;  %v1547_v17 = vadd.f32 %v1546_v61, %v12826_v59  ;;  %v1506_v5 = vmul.f32 %v16274_v10, %v16274_v10  ;;  %v1490_v44 = vmul.f32 %v12890_v2, %v12890_v2 }
 0x27e   : > { %v1586_v3 = vadd.f32 %v1585_v57, %v1483_v18  ;;  %v1568_v9 = vadd.f32 %v1567_v21, %v1503_v39  ;;  %v1463_v20 = vmul.f32 %v12953_v43, %v12953_v43  ;;  %v1603_v42 = vadd.f32 %v1602_v40, %v1456_v23  ;;  %v16276_v39 = vld [vmem:[#allocation89_spill] sm:$0xff]  ;;  %v16277_v40 = vld [vmem:[#allocation40_spill] sm:$0xff] }
 0x27f   : > { %v1300_v49 = vadd.f32 %v1299_v14, %v1298_v47  ;;  %v1630_v45 = vadd.f32 %v1629_v8, %v1499_v50  ;;  %v1507_v54 = vmul.f32 %v16275_v32, %v16275_v32  ;;  %v1497_v59 = vmul.f32 %v12893_v56, %v12893_v56 }
 0x280   : > { %v1587_v61 = vadd.f32 %v1586_v3, %v1490_v44  ;;  %v1651_v29 = vadd.f32 %v1650_v0, %v1500_v28  ;;  %v1470_v27 = vmul.f32 %v12956_v30, %v12956_v30  ;;  %v1604_v10 = vadd.f32 %v1603_v42, %v1463_v20  ;;  %v16278_v3 = vld [vmem:[#allocation41_spill] sm:$0xff] }
 0x281   : > { %v1301_v18 = vrot.slane %v1300_v49, 2  ;;  %v1548_v21 = vadd.f32 %v1547_v17, %v12840_v60  ;;  %v13042_v23 = vmul.f32 %v16276_v39, %v16276_v39  ;;  %v1504_v50 = vmul.f32 %v12896_v19, %v12896_v19 }
 0x282   : > { %v1588_v47 = vadd.f32 %v1587_v61, %v1497_v59  ;;  %v1569_v8 = vadd.f32 %v1568_v9, %v1510_v13  ;;  %v1477_v57 = vmul.f32 %v12959_v52, %v12959_v52  ;;  %v1605_v28 = vadd.f32 %v1604_v10, %v1470_v27  ;;  %v16279_v9 = vld [vmem:[#allocation42_spill] sm:$0xff]  ;;  %v16280_v10 = vld [vmem:[#allocation44_spill] sm:$0xff] }
 0x283   : > { %v1302_v0 = vadd.f32 %v1301_v18, %v1300_v49  ;;  %v1513_v14 = vmul.f32 %v16277_v40, %v16277_v40  ;;  %v1631_v44 = vadd.f32 %v1630_v45, %v1506_v5  ;;  %v1514_v60 = vmul.f32 %v16278_v3, %v16278_v3 }
 0x284   : > { %v1589_v17 = vadd.f32 %v1588_v47, %v1504_v50  ;;  %v1652_v20 = vadd.f32 %v1651_v29, %v1507_v54  ;;  %v1484_v42 = vmul.f32 %v12962_v6, %v12962_v6  ;;  %v1606_v32 = vadd.f32 %v1605_v28, %v1477_v57  ;;  %v16281_v50 = vld [vmem:[#allocation43_spill] sm:$0xff] }
 0x285   : > { %v1303_v59 = vrot.slane %v1302_v0, 1  ;;  %v1549_v13 = vadd.f32 %v1548_v21, %v12846_v58  ;;  %v1520_v27 = vmul.f32 %v16279_v9, %v16279_v9  ;;  %v1527_v49 = vmul.f32 %v16280_v10, %v16280_v10  ;;  %v16282_v21 = vld [vmem:[#allocation45_spill] sm:$0xff] }
 0x286   : > { %v1511_v5 = vmul.f32 %v12899_v25, %v12899_v25  ;;  %v1570_v45 = vadd.f32 %v1569_v8, %v13000_v24  ;;  %v1491_v54 = vmul.f32 %v12965_v41, %v12965_v41  ;;  %v1607_v61 = vadd.f32 %v1606_v32, %v1484_v42 }
 0x287   : > { %v1304_v29 = vadd.f32 %v1303_v59, %v1302_v0  ;;  %v1632_v18 = vadd.f32 %v1631_v44, %v1513_v14  ;;  %v1521_v58 = vmul.f32 %v16281_v50, %v16281_v50  ;;  %v1528_v47 = vmul.f32 %v16282_v21, %v16282_v21  ;;  %v16286_v59 = vld [vmem:[#allocation105_spill] sm:$0xff] }
 0x288   : > { %v1590_v57 = vadd.f32 %v1589_v17, %v1511_v5  ;;  %v1653_v28 = vadd.f32 %v1652_v20, %v1514_v60  ;;  %v1498_v3 = vmul.f32 %v12968_v22, %v12968_v22  ;;  %v1608_v10 = vadd.f32 %v1607_v61, %v1491_v54  ;;  %v16284_v60 = vld [vmem:[#allocation104_spill] sm:$0xff] }
 0x289   : > { %v1312_v9 = vmul.f32 0.0078125, %v1304_v29  ;;  %v1518_v24 = vmul.f32 %v12902_v4, %v12902_v4  ;;  %v1525_v32 = vmul.f32 %v12907_v53, %v12907_v53  ;;  %v1505_v8 = vmul.f32 %v12971_v62, %v12971_v62 }
 0x28a   : > { %v1512_v0 = vmul.f32 %v12974_v35, %v12974_v35  ;;  %v1609_v14 = vadd.f32 %v1608_v10, %v1498_v3  ;;  %v1519_v29 = vmul.f32 %v12977_v37, %v12977_v37  ;;  %v1633_v50 = vadd.f32 %v1632_v18, %v1520_v27  ;;  %v16302_v18 = vld [vmem:[#allocation113_spill] sm:$0xff] }
 0x28b   : > { %v13079_v44 = vsub.f32 %v12726_v33, %v1312_v9  ;;  %v13082_v17 = vsub.f32 %v16284_v60, %v1312_v9  ;;  %v13085_v20 = vsub.f32 %v12740_v38, %v1312_v9  ;;  %v1591_v42 = vadd.f32 %v1590_v57, %v1518_v24  ;;  %v16290_v57 = vld [vmem:[#allocation106_spill] sm:$0xff] }
 0x28c   : > { %v13088_v5 = vsub.f32 %v16286_v59, %v1312_v9  ;;  %v13091_v54 = vsub.f32 %v12757_v16, %v1312_v9  ;;  %v13094_v61 = vsub.f32 %v12751_v36, %v1312_v9  ;;  %v1610_v3 = vadd.f32 %v1609_v14, %v1505_v8  ;;  %v16292_v16 = vld [vmem:[#allocation108_spill] sm:$0xff]  ;;  %v16294_v36 = vld [vmem:[#allocation107_spill] sm:$0xff]  ;;  %v16296_v14 = vld [vmem:[#allocation110_spill] sm:$0xff] }
 0x28d   : > { %16283 = vst [vmem:[#allocation73_spill] sm:$0xff] %v13079_v44  ;;  %16285 = vst [vmem:[#allocation77_spill] sm:$0xff] %v13082_v17  ;;  %v13097_v33 = vsub.f32 %v12777_v1, %v1312_v9  ;;  %v13100_v10 = vsub.f32 %v12769_v7, %v1312_v9  ;;  %v13103_v38 = vsub.f32 %v12795_v46, %v1312_v9  ;;  %v16298_v7 = vld [vmem:[#allocation109_spill] sm:$0xff] }
 0x28e   : > { %v13108_v24 = vsub.f32 %v16290_v57, %v1312_v9  ;;  %v13111_v60 = vsub.f32 %v16292_v16, %v1312_v9  ;;  %v13114_v8 = vsub.f32 %v16294_v36, %v1312_v9  ;;  %v1611_v1 = vadd.f32 %v1610_v3, %v1512_v0 }
 0x28f   : > { %16287 = vst [vmem:[#allocation91_spill] sm:$0xff] %v13097_v33  ;;  %16288 = vst [vmem:[#allocation92_spill] sm:$0xff] %v13100_v10  ;;  %v13117_v59 = vsub.f32 %v16296_v14, %v1312_v9  ;;  %v13120_v21 = vsub.f32 %v16298_v7, %v1312_v9  ;;  %v13123_v46 = vsub.f32 %v12857_v63, %v1312_v9  ;;  %v16301_v14 = vld [vmem:[#allocation71_spill] sm:$0xff] }
 0x290   : > { %16289 = vst [vmem:[#allocation93_spill] sm:$0xff] %v13103_v38  ;;  %16291 = vst [vmem:[#allocation104_spill] sm:$0xff] %v13108_v24  ;;  %v1654_v40 = vadd.f32 %v1653_v28, %v1521_v58  ;;  %v1592_v57 = vadd.f32 %v1591_v42, %v1525_v32  ;;  %v13126_v53 = vsub.f32 %v12853_v26, %v1312_v9  ;;  %v16303_v26 = vld [vmem:[#allocation90_spill] sm:$0xff]  ;;  %v16304_v32 = vld [vmem:[#allocation59_spill] sm:$0xff] }
 0x291   : > { %16293 = vst [vmem:[#allocation105_spill] sm:$0xff] %v13111_v60  ;;  %16295 = vst [vmem:[#allocation106_spill] sm:$0xff] %v13114_v8  ;;  %v1526_v16 = vmul.f32 %v12980_v15, %v12980_v15  ;;  %v1612_v36 = vadd.f32 %v1611_v1, %v1519_v29  ;;  %v1431_v0 = vmul.f32 %v13079_v44, %v13079_v44  ;;  %v16305_v1 = vld [vmem:[#allocation47_spill] sm:$0xff]  ;;  %v16306_v44 = vld [vmem:[#allocation49_spill] sm:$0xff] }
 0x292   : > { %16297 = vst [vmem:[#allocation108_spill] sm:$0xff] %v13117_v59  ;;  %16299 = vst [vmem:[#allocation107_spill] sm:$0xff] %v13120_v21  ;;  %v1438_v3 = vmul.f32 %v13082_v17, %v13082_v17  ;;  %v1530_v63 = vmul.f32 %v16301_v14, %v16301_v14  ;;  %v1550_v27 = vadd.f32 %v1549_v13, %v12920_v55 }
 0x293   : > { %16300 = vst [vmem:[#allocation110_spill] sm:$0xff] %v13126_v53  ;;  %v1532_v58 = vmul.f32 %v16302_v18, %v16302_v18  ;;  %v1531_v9 = vmul.f32 %v16303_v26, %v16303_v26  ;;  %v1571_v28 = vadd.f32 %v1570_v45, %v13042_v23  ;;  %v1533_v42 = vmul.f32 %v16304_v32, %v16304_v32 }
 0x294   : > { %v1613_v29 = vadd.f32 %v1612_v36, %v1526_v16  ;;  %v1534_v7 = vmul.f32 %v16305_v1, %v16305_v1  ;;  %v1634_v17 = vadd.f32 %v1633_v50, %v1527_v49  ;;  %v1535_v14 = vmul.f32 %v16306_v44, %v16306_v44 }
 0x295   : > { %v1593_v55 = vadd.f32 %v1592_v57, %v1532_v58  ;;  %v1655_v13 = vadd.f32 %v1654_v40, %v1528_v47  ;;  %v1445_v18 = vmul.f32 %v13085_v20, %v13085_v20  ;;  %v1663_v26 = vadd.f32 %v1438_v3, %v1431_v0 }
 0x296   : > { %v1614_v15 = vadd.f32 %v1613_v29, %v1533_v42  ;;  %v1551_v39 = vadd.f32 %v1550_v27, %v1530_v63  ;;  %v1572_v23 = vadd.f32 %v1571_v28, %v1531_v9  ;;  %v1452_v45 = vmul.f32 %v13088_v5, %v13088_v5 }
 0x297   : > { %v1664_v16 = vadd.f32 %v1663_v26, %v1445_v18  ;;  %v1635_v36 = vadd.f32 %v1634_v17, %v1534_v7  ;;  %v1594_v32 = vrot.slane %v1593_v55, 4  ;;  %v1656_v1 = vadd.f32 %v1655_v13, %v1535_v14 }
 0x298   : > { %v1615_v49 = vrot.slane %v1614_v15, 4  ;;  %v1459_v50 = vmul.f32 %v13091_v54, %v13091_v54  ;;  %v1552_v40 = vrot.slane %v1551_v39, 4  ;;  %v1573_v47 = vrot.slane %v1572_v23, 4 }
 0x299   : > { %v1665_v57 = vadd.f32 %v1664_v16, %v1452_v45  ;;  %v1466_v58 = vmul.f32 %v13094_v61, %v13094_v61  ;;  %v1636_v3 = vrot.slane %v1635_v36, 4  ;;  %v1595_v63 = vadd.f32 %v1594_v32, %v1593_v55 }
 0x29a   : > { %v1657_v27 = vrot.slane %v1656_v1, 4  ;;  %v1616_v9 = vadd.f32 %v1615_v49, %v1614_v15  ;;  %v1473_v17 = vmul.f32 %v13097_v33, %v13097_v33  ;;  %v1553_v14 = vadd.f32 %v1552_v40, %v1551_v39  ;;  %v10615_v33 = vld [vmem:[#allocation8 + $0x7c] ss:$28 sps:$4 sm:$0xff]  }
 0x29b   : > { %v1666_v0 = vadd.f32 %v1665_v57, %v1459_v50  ;;  %v1574_v26 = vadd.f32 %v1573_v47, %v1572_v23  ;;  %v1480_v28 = vmul.f32 %v13100_v10, %v13100_v10  ;;  %v1637_v29 = vadd.f32 %v1636_v3, %v1635_v36  ;;  %v16331_v10 = vld [vmem:[#allocation54_spill] sm:$0xff] }
 0x29c   : > { %v1596_v7 = vrot.slane %v1595_v63, 2  ;;  %v1658_v13 = vadd.f32 %v1657_v27, %v1656_v1  ;;  %v1617_v45 = vrot.slane %v1616_v9, 2  ;;  %v1487_v16 = vmul.f32 %v13103_v38, %v13103_v38 }
 0x29d   : > { %v1667_v18 = vadd.f32 %v1666_v0, %v1466_v58  ;;  %v1554_v55 = vrot.slane %v1553_v14, 2  ;;  %v1575_v15 = vrot.slane %v1574_v26, 2  ;;  %v1494_v49 = vmul.f32 %v13108_v24, %v13108_v24 }
 0x29e   : > { %v1638_v39 = vrot.slane %v1637_v29, 2  ;;  %v1597_v23 = vadd.f32 %v1596_v7, %v1595_v63  ;;  %v1659_v57 = vrot.slane %v1658_v13, 2  ;;  %v1618_v40 = vadd.f32 %v1617_v45, %v1616_v9 }
 0x29f   : > { %v1668_v42 = vadd.f32 %v1667_v18, %v1473_v17  ;;  %v1501_v36 = vmul.f32 %v13111_v60, %v13111_v60  ;;  %v1555_v1 = vadd.f32 %v1554_v55, %v1553_v14  ;;  %v1576_v58 = vadd.f32 %v1575_v15, %v1574_v26  ;;  %v16324_v60 = vld [vmem:[#allocation76_spill] sm:$0xff] }
 0x2a0   : > { %v1508_v0 = vmul.f32 %v13114_v8, %v13114_v8  ;;  %v1639_v27 = vadd.f32 %v1638_v39, %v1637_v29  ;;  %v1598_v17 = vrot.slane %v1597_v23, 1  ;;  %v1660_v18 = vadd.f32 %v1659_v57, %v1658_v13 }
 0x2a1   : > { %v1669_v32 = vadd.f32 %v1668_v42, %v1480_v28  ;;  %v1619_v28 = vrot.slane %v1618_v40, 1  ;;  %v1515_v42 = vmul.f32 %v13117_v59, %v13117_v59  ;;  %v1556_v7 = vrot.slane %v1555_v1, 1 }
 0x2a2   : > { %v1577_v9 = vrot.slane %v1576_v58, 1  ;;  %v1522_v45 = vmul.f32 %v13120_v21, %v13120_v21  ;;  %v1640_v14 = vrot.slane %v1639_v27, 1  ;;  %v1599_v26 = vadd.f32 %v1598_v17, %v1597_v23 }
 0x2a3   : > { %v1670_v50 = vadd.f32 %v1669_v32, %v1487_v16  ;;  %v1661_v32 = vrot.slane %v1660_v18, 1  ;;  %v1620_v55 = vadd.f32 %v1619_v28, %v1618_v40  ;;  %v1529_v29 = vmul.f32 %v13123_v46, %v13123_v46 }
 0x2a4   : > { %v1557_v13 = vadd.f32 %v1556_v7, %v1555_v1  ;;  %v1641_v57 = vadd.f32 %v1640_v14, %v1639_v27 }
 0x2a5   : > { %v1671_v47 = vadd.f32 %v1670_v50, %v1494_v49  ;;  %v1578_v49 = vadd.f32 %v1577_v9, %v1576_v58  ;;  %v1536_v50 = vmul.f32 %v13126_v53, %v13126_v53 }
 0x2a6   : > { %v1688_v17 = vmul.f32 0.0078125, %v1641_v57 }
 0x2a7   : > { %v1672_v3 = vadd.f32 %v1671_v47, %v1501_v36  ;;  %v1686_v36 = vmul.f32 0.0078125, %v1599_v26  ;;  %v1662_v47 = vadd.f32 %v1661_v32, %v1660_v18  ;;  %v11723_v26 = vmov 1966171168  }
 0x2a8   : > { %v1695_v7 = vadd.f32 1e-05, %v1688_v17  ;;  %v1716_v32 = vunpack.c.l.s4 %v11723_v26 }
 0x2a9   : > { %v1673_v63 = vadd.f32 %v1672_v3, %v1508_v0  ;;  %v1687_v0 = vmul.f32 0.0078125, %v1620_v55  ;;  %v1693_v40 = vadd.f32 1e-05, %v1686_v36  ;;  %v1689_v28 = vmul.f32 0.0078125, %v1662_v47 }
 0x2aa   : > { %v1718_v55 = vlaneseq }
 0x2ab   : > { %v1674_v16 = vadd.f32 %v1673_v63, %v1515_v42  ;;  %v1684_v42 = vmul.f32 0.0078125, %v1557_v13  ;;  %v1685_v63 = vmul.f32 0.0078125, %v1578_v49  ;;  %v1694_v44 = vadd.f32 1e-05, %v1687_v0 }
 0x2ac   : > { %11230 = vrsqrt.f32 %v1693_v40  ;;  %v1696_v9 = vadd.f32 1e-05, %v1689_v28 }
 0x2ad   : > { %v1675_v15 = vadd.f32 %v1674_v16, %v1522_v45  ;;  %v1691_v45 = vadd.f32 1e-05, %v1684_v42  ;;  %v1692_v1 = vadd.f32 1e-05, %v1685_v63  ;;  %11232 = vrsqrt.f32 %v1694_v44 }
 0x2af   : > { %v1676_v39 = vadd.f32 %v1675_v15, %v1529_v29  ;;  %11234 = vrsqrt.f32 %v1691_v45 }
 0x2b0   : > { %11236 = vrsqrt.f32 %v1692_v1 }
 0x2b1   : > { %v1677_v3 = vadd.f32 %v1676_v39, %v1536_v50  ;;  %11238 = vrsqrt.f32 %v1695_v7  ;;  %v1717_v50 = vunpack.c.0.s8 %v1716_v32  ;;  %v13176_v39 = vshrl.u32 %v1718_v55, 7  ;;  %v1156_v7 = vld [vmem:[#allocation5] sm:$0xff] }
 0x2b2   : > { %11240 = vrsqrt.f32 %v1696_v9 }
 0x2b3   : > { %v1678_v23 = vrot.slane %v1677_v3, 4  ;;  %v13179_v0 = vsub.s32 %v1717_v50, %v13176_v39  ;;  %v13188_v9 = vsub.s32 0, %v13176_v39  ;;  %v13199_v26 = vsub.s32 3, %v13176_v39 }
 0x2b4   : > { %v13202_v32 = vsub.s32 6, %v13176_v39 }
 0x2b5   : > { %v1679_v21 = vadd.f32 %v1678_v23, %v1677_v3  ;;  %16307 = vst [vmem:[#allocation109_spill] sm:$0xff] %v13179_v0  ;;  %16308 = vst [vmem:[#allocation114_spill] sm:$0xff] %v13188_v9 }
 0x2b6   : > { %v11231_v15 = vpop.eup %11230  ;;  %16311 = vst [vmem:[#allocation117_spill] sm:$0xff] %v13199_v26  ;;  %16312 = vst [vmem:[#allocation118_spill] sm:$0xff] %v13202_v32 }
 0x2b7   : > { %v1680_v58 = vrot.slane %v1679_v21, 2  ;;  %v11233_v13 = vpop.eup %11232 }
 0x2b8   : > { %v1713_v57 = vcombine.low %v11231_v15, %v11233_v13 }
 0x2b9   : > { %v1681_v27 = vadd.f32 %v1680_v58, %v1679_v21  ;;  %v11235_v49 = vpop.eup %11234 }
 0x2ba   : > { %v11237_v44 = vpop.eup %11236  ;;  %v1728_v42 = vrot.slane %v1713_v57, %v13179_v0 }
 0x2bb   : > { %v1682_v18 = vrot.slane %v1681_v27, 1  ;;  %v11239_v21 = vpop.eup %11238  ;;  %v1712_v47 = vcombine.low %v11235_v49, %v11237_v44 }
 0x2bc   : > { %v11241_v36 = vpop.eup %11240 }
 0x2bd   : > { %v1683_v16 = vadd.f32 %v1682_v18, %v1681_v27  ;;  %v1714_v3 = vcombine.low %v11239_v21, %v11241_v36  ;;  %v1721_v63 = vrot.slane %v1712_v47, %v13179_v0  ;;  %v13190_v27 = vld [vmem:[#allocation7] sm:$0xff] }
 0x2be   : > { %v13212_v15 = vrot.slane %v13190_v27, %v13199_v26  ;;  %v13236_v57 = vrot.slane %v13190_v27, %v13188_v9  ;;  %v13244_v47 = vrot.slane %v13190_v27, %v13202_v32 }
 0x2bf   : > { %v1690_v14 = vmul.f32 0.0078125, %v1683_v16  ;;  %v1735_v17 = vrot.slane %v1714_v3, %v13179_v0  ;;  %v1743_v40 = vcombine.low %v1721_v63, %v1728_v42  ;;  %v13193_v16 = vsub.s32 1, %v13176_v39  ;;  %v16313_v3 = vld [vmem:[#allocation74_spill] sm:$0xff]  ;;  %v16314_v63 = vld [vmem:[#allocation75_spill] sm:$0xff] }
 0x2c1   : > { %v1697_v29 = vadd.f32 1e-05, %v1690_v14  ;;  %v1751_v1 = vrot.slane %v1743_v40, %v13179_v0  ;;  %16309 = vst [vmem:[#allocation115_spill] sm:$0xff] %v13193_v16  ;;  %v13196_v14 = vsub.s32 2, %v13176_v39 }
 0x2c3   : > { %11242 = vrsqrt.f32 %v1697_v29  ;;  %16310 = vst [vmem:[#allocation116_spill] sm:$0xff] %v13196_v14  ;;  %v13208_v29 = vrot.slane %v13190_v27, %v13193_v16  ;;  %v13240_v36 = vrot.slane %v13190_v27, %v13196_v14 }
 0x2cd   : > { %v11243_v23 = vpop.eup %11242 }
 0x2ce   : > { %v1742_v28 = vrot.slane %v11243_v23, %v13179_v0 }
 0x2d0   : > { %v1744_v45 = vcombine.low %v1735_v17, %v1742_v28  ;;  %v16315_v17 = vld [vmem:[#allocation48_spill] sm:$0xff]  ;;  %v16316_v28 = vld [vmem:[#allocation51_spill] sm:$0xff] }
 0x2d2   : > { %v1758_v58 = vrot.slane %v1744_v45, %v13179_v0 }
 0x2d4   : > { %v1759_v18 = vcombine.low %v1751_v1, %v1758_v58  ;;  %v16317_v58 = vld [vmem:[#allocation55_spill] sm:$0xff] }
 0x2d6   : > { %v13204_v55 = vmul.f32 %v1759_v18, %v1156_v7  ;;  %v16318_v18 = vld [vmem:[#allocation56_spill] sm:$0xff] }
 0x2d8   : > { %v13216_v13 = vrot.slane %v13204_v55, %v13188_v9  ;;  %v13220_v49 = vrot.slane %v13204_v55, %v13193_v16  ;;  %v13224_v50 = vrot.slane %v13204_v55, %v13196_v14  ;;  %v13228_v44 = vrot.slane %v13204_v55, %v13199_v26  ;;  %v16319_v14 = vld [vmem:[#allocation46_spill] sm:$0xff] }
 0x2d9   : > { %v13232_v21 = vrot.slane %v13204_v55, %v13202_v32  ;;  %v16320_v9 = vld [vmem:[#allocation50_spill] sm:$0xff] }
 0x2da   : > { %v1799_v42 = vmul.f32 %v13220_v49, %v16313_v3  ;;  %v1806_v23 = vmul.f32 %v13220_v49, %v16314_v63  ;;  %v1801_v40 = vmul.f32 %v13228_v44, %v16315_v17  ;;  %v1808_v45 = vmul.f32 %v13228_v44, %v16316_v28 }
 0x2db   : > { %v1902_v1 = vmul.f32 %v13232_v21, %v13123_v46  ;;  %v1798_v7 = vmul.f32 %v13216_v13, %v16317_v58  ;;  %v1805_v26 = vmul.f32 %v13216_v13, %v16318_v18  ;;  %v1800_v3 = vmul.f32 %v13224_v50, %v16319_v14 }
 0x2dc   : > { %v1947_v63 = vadd.f32 %v13208_v29, %v1799_v42  ;;  %v1954_v32 = vadd.f32 %v13208_v29, %v1806_v23  ;;  %v1949_v17 = vadd.f32 %v13212_v15, %v1801_v40  ;;  %v1956_v28 = vadd.f32 %v13212_v15, %v1808_v45 }
 0x2dd   : > { %v13267_v16 = vadd.f32 %v13244_v47, %v1902_v1  ;;  %v1946_v46 = vadd.f32 %v13236_v57, %v1798_v7  ;;  %v1953_v58 = vadd.f32 %v13236_v57, %v1805_v26  ;;  %v1807_v18 = vmul.f32 %v13224_v50, %v16320_v9  ;;  %v10601_v7 = vld [vmem:[#allocation8 + $0x8] ss:$28 sps:$4 sm:$0xff]  }
 0x2de   : > { %v2059_v0 = vmax.f32 %v1947_v63, 0.0  ;;  %v2066_v14 = vmax.f32 %v1954_v32, 0.0  ;;  %v2061_v53 = vmax.f32 %v1949_v17, 0.0  ;;  %v2068_v42 = vmax.f32 %v1956_v28, 0.0  ;;  %v16326_v17 = vld [vmem:[#allocation78_spill] sm:$0xff] }
 0x2df   : > { %v13274_v23 = vsub.s32 4, %v13176_v39  ;;  %v2058_v40 = vmax.f32 %v1946_v46, 0.0  ;;  %v2065_v59 = vmax.f32 %v1953_v58, 0.0  ;;  %v1948_v45 = vadd.f32 %v13240_v36, %v1800_v3  ;;  %v10609_v3 = vld [vmem:[#allocation8 + $0x44] ss:$28 sps:$4 sm:$0xff]  }
 0x2e0   : > { %v13277_v1 = vpack.c.bf16 %v2066_v14, %v2059_v0  ;;  %v13279_v8 = vpack.c.bf16 %v2068_v42, %v2061_v53  ;;  %v1955_v26 = vadd.f32 %v13240_v36, %v1807_v18  ;;  %v1813_v9 = vmul.f32 %v13220_v49, %v16324_v60  ;;  %v10598_v18 = vld [vmem:[#allocation8 + $0x700] ss:$28 sps:$4 sm:$0xff]   ;;  %v16328_v42 = vld [vmem:[#allocation58_spill] sm:$0xff] }
 0x2e1   : > { %16321 = vst [vmem:[#allocation74_spill] sm:$0xff] %v13274_v23  ;;  %v13284_v32 = vpack.c.bf16 %v2065_v59, %v2058_v40  ;;  %v2060_v63 = vmax.f32 %v1948_v45, 0.0  ;;  %v1820_v28 = vmul.f32 %v13220_v49, %v16326_v17  ;;  %v1815_v46 = vmul.f32 %v13228_v44, %v12944_v11  ;;  %v16327_v59 = vld [vmem:[#allocation57_spill] sm:$0xff]  ;;  %v16329_v45 = vld [vmem:[#allocation52_spill] sm:$0xff] }
 0x2e2   : > { %16322 = vst [vmem:[#allocation75_spill] sm:$0xff] %v13277_v1  ;;  %16323 = vst [vmem:[#allocation48_spill] sm:$0xff] %v13279_v8  ;;  %4722 = vmatprep.mubr.bf16.mxu1 %v13277_v1  ;;  %4835 = vmatprep.mubr.bf16.mxu0 %v13279_v8  ;;  %v2067_v53 = vmax.f32 %v1955_v26, 0.0  ;;  %v1961_v0 = vadd.f32 %v13208_v29, %v1813_v9  ;;  %v1822_v60 = vmul.f32 %v13228_v44, %v12947_v48  ;;  %v10607_v8 = vld [vmem:[#allocation8 + $0x40] ss:$28 sps:$4 sm:$0xff]  }
 0x2e3   : > { %16325 = vst [vmem:[#allocation51_spill] sm:$0xff] %v13284_v32  ;;  %v1812_v58 = vmul.f32 %v13216_v13, %v16327_v59  ;;  %4723 = vmatmul.mubr.bf16.vlgmr.msra.gmra.mrb[80].mxu1 %v13284_v32  ;;  %v1968_v14 = vadd.f32 %v13208_v29, %v1820_v28  ;;  %v1963_v11 = vadd.f32 %v13212_v15, %v1815_v46  ;;  %v10606_v59 = vld [vmem:[#allocation8 + $0x73c] ss:$28 sps:$4 sm:$0xff]  }
 0x2e4   : > { %v1819_v40 = vmul.f32 %v13216_v13, %v16328_v42  ;;  %v1814_v26 = vmul.f32 %v13224_v50, %v16329_v45  ;;  %v13304_v9 = vpack.c.bf16 %v2067_v53, %v2060_v63  ;;  %v2073_v17 = vmax.f32 %v1961_v0, 0.0  ;;  %5143 = vmatpush1.bf16.msra.mxu1 %v10601_v7  ;;  %v16332_v7 = vld [vmem:[#allocation79_spill] sm:$0xff] }
 0x2e5   : > { %v1970_v48 = vadd.f32 %v13212_v15, %v1822_v60  ;;  %v1960_v24 = vadd.f32 %v13236_v57, %v1812_v58  ;;  %v2080_v38 = vmax.f32 %v1968_v14, 0.0  ;;  %v2075_v28 = vmax.f32 %v1963_v11, 0.0  ;;  %5144 = vmatprep.subr.bf16.mxu1 %v10609_v3  ;;  %v10604_v58 = vld [vmem:[#allocation8 + $0x738] ss:$28 sps:$4 sm:$0xff]   ;;  %v16334_v11 = vld [vmem:[#allocation80_spill] sm:$0xff] }
 0x2e6   : > { %16330 = vst [vmem:[#allocation55_spill] sm:$0xff] %v13304_v9  ;;  %v1967_v46 = vadd.f32 %v13236_v57, %v1819_v40  ;;  %v1821_v42 = vmul.f32 %v13224_v50, %v16331_v10  ;;  %4836 = vmatmul.mubr.bf16.vlgmr.msra.gmra.mrb[32].mxu0 %v13304_v9  ;;  %v1962_v0 = vadd.f32 %v13240_v36, %v1814_v26  ;;  %v10613_v26 = vld [vmem:[#allocation8 + $0x78] ss:$28 sps:$4 sm:$0xff]  }
 0x2e7   : > { %v2082_v63 = vmax.f32 %v1970_v48, 0.0  ;;  %v2072_v53 = vmax.f32 %v1960_v24, 0.0  ;;  %v1827_v60 = vmul.f32 %v13220_v49, %v16332_v7  ;;  %v13315_v45 = vpack.c.bf16 %v2080_v38, %v2073_v17  ;;  %4917 = vmatpush1.bf16.msra.mxu0 %v10598_v18  ;;  %v10612_v48 = vld [vmem:[#allocation8 + $0x774] ss:$28 sps:$4 sm:$0xff]  }
 0x2e8   : > { %v2079_v3 = vmax.f32 %v1967_v46, 0.0  ;;  %v1969_v14 = vadd.f32 %v13240_v36, %v1821_v42  ;;  %v1834_v10 = vmul.f32 %v13220_v49, %v16334_v11  ;;  %4918 = vmatprep.subr.bf16.mxu0 %v10606_v59  ;;  %5145 = vmatpush1.bf16.msra.mxu1 %v10607_v8  ;;  %v2074_v24 = vmax.f32 %v1962_v0, 0.0  ;;  %v10621_v8 = vld [vmem:[#allocation8 + $0xb4] ss:$28 sps:$4 sm:$0xff]   ;;  %v10618_v11 = vld [vmem:[#allocation8 + $0x7ac] ss:$28 sps:$4 sm:$0xff]  }
 0x2e9   : > { %16333 = vst [vmem:[#allocation56_spill] sm:$0xff] %v13315_v45  ;;  %v13320_v40 = vpack.c.bf16 %v2082_v63, %v2075_v28  ;;  %v1975_v9 = vadd.f32 %v13208_v29, %v1827_v60  ;;  %v1829_v38 = vmul.f32 %v13228_v44, %v12950_v31  ;;  %4732 = vmatprep.mubr.bf16.mxu1 %v13315_v45  ;;  %v16337_v63 = vld [vmem:[#allocation60_spill] sm:$0xff]  ;;  %v16338_v0 = vld [vmem:[#allocation61_spill] sm:$0xff] }
 0x2ea   : > { %v13326_v18 = vpack.c.bf16 %v2079_v3, %v2072_v53  ;;  %v2081_v17 = vmax.f32 %v1969_v14, 0.0  ;;  %5146 = vmatprep.subr.bf16.mxu1 %v10615_v33  ;;  %v1982_v46 = vadd.f32 %v13208_v29, %v1834_v10  ;;  %v1836_v59 = vmul.f32 %v13228_v44, %v12953_v43  ;;  %v10610_v7 = vld [vmem:[#allocation8 + $0x770] ss:$28 sps:$4 sm:$0xff]   ;;  %v16340_v3 = vld [vmem:[#allocation72_spill] sm:$0xff] }
 0x2eb   : > { %16335 = vst [vmem:[#allocation46_spill] sm:$0xff] %v13320_v40  ;;  %4845 = vmatprep.mubr.bf16.mxu0 %v13320_v40  ;;  %v2087_v28 = vmax.f32 %v1975_v9, 0.0  ;;  %v1977_v42 = vadd.f32 %v13212_v15, %v1829_v38  ;;  %v1826_v31 = vmul.f32 %v13216_v13, %v16337_v63  ;;  %v1833_v53 = vmul.f32 %v13216_v13, %v16338_v0  ;;  %v10619_v10 = vld [vmem:[#allocation8 + $0xb0] ss:$28 sps:$4 sm:$0xff]   ;;  %v16341_v63 = vld [vmem:[#allocation111_spill] sm:$0xff] }
 0x2ec   : > { %16336 = vst [vmem:[#allocation50_spill] sm:$0xff] %v13326_v18  ;;  %4919 = vmatpush1.bf16.msra.mxu0 %v10604_v58  ;;  %4733 = vmatmul.mubr.bf16.gmra.mrb[84].mxu1 %v13326_v18  ;;  %v13338_v33 = vpack.c.bf16 %v2081_v17, %v2074_v24  ;;  %v2094_v60 = vmax.f32 %v1982_v46, 0.0  ;;  %v1984_v43 = vadd.f32 %v13212_v15, %v1836_v59  ;;  %v10627_v0 = vld [vmem:[#allocation8 + $0xec] ss:$28 sps:$4 sm:$0xff]  }
 0x2ed   : > { %v1828_v9 = vmul.f32 %v13224_v50, %v16340_v3  ;;  %4920 = vmatprep.subr.bf16.mxu0 %v10612_v48  ;;  %v2089_v14 = vmax.f32 %v1977_v42, 0.0  ;;  %5147 = vmatpush1.bf16.msra.mxu1 %v10613_v26  ;;  %v1974_v38 = vadd.f32 %v13236_v57, %v1826_v31  ;;  %v1981_v58 = vadd.f32 %v13236_v57, %v1833_v53  ;;  %v16343_v3 = vld [vmem:[#allocation81_spill] sm:$0xff]  ;;  %v16344_v53 = vld [vmem:[#allocation82_spill] sm:$0xff] }
 0x2ee   : > { %16339 = vst [vmem:[#allocation76_spill] sm:$0xff] %v13338_v33  ;;  %v1835_v24 = vmul.f32 %v13224_v50, %v16341_v63  ;;  %v13347_v17 = vpack.c.bf16 %v2094_v60, %v2087_v28  ;;  %v2096_v46 = vmax.f32 %v1984_v43, 0.0  ;;  %5148 = vmatprep.subr.bf16.mxu1 %v10621_v8  ;;  %v1841_v48 = vmul.f32 %v13220_v49, %v16343_v3  ;;  %v10616_v8 = vld [vmem:[#allocation8 + $0x7a8] ss:$28 sps:$4 sm:$0xff]  }
 0x2ef   : > { %v1976_v59 = vadd.f32 %v13240_v36, %v1828_v9  ;;  %4846 = vmatmul.mubr.bf16.gmra.mrb[36].mxu0 %v13338_v33  ;;  %v2086_v26 = vmax.f32 %v1974_v38, 0.0  ;;  %v2093_v42 = vmax.f32 %v1981_v58, 0.0  ;;  %v1848_v40 = vmul.f32 %v13220_v49, %v16344_v53  ;;  %v10624_v63 = vld [vmem:[#allocation8 + $0x7e4] ss:$28 sps:$4 sm:$0xff]  }
 0x2f0   : > { %16342 = vst [vmem:[#allocation78_spill] sm:$0xff] %v13347_v17  ;;  %v1983_v31 = vadd.f32 %v13240_v36, %v1835_v24  ;;  %4742 = vmatprep.mubr.bf16.mxu1 %v13347_v17  ;;  %v13357_v28 = vpack.c.bf16 %v2096_v46, %v2089_v14  ;;  %4921 = vmatpush1.bf16.msra.mxu0 %v10610_v7  ;;  %v10625_v24 = vld [vmem:[#allocation8 + $0xe8] ss:$28 sps:$4 sm:$0xff]  }
 0x2f1   : > { %v2088_v60 = vmax.f32 %v1976_v59, 0.0  ;;  %v1989_v43 = vadd.f32 %v13208_v29, %v1841_v48  ;;  %v1843_v9 = vmul.f32 %v13228_v44, %v12956_v30  ;;  %4922 = vmatprep.subr.bf16.mxu0 %v10618_v11  ;;  %5149 = vmatpush1.bf16.msra.mxu1 %v10619_v10  ;;  %v13362_v38 = vpack.c.bf16 %v2093_v42, %v2086_v26  ;;  %v10633_v59 = vld [vmem:[#allocation8 + $0x124] ss:$28 sps:$4 sm:$0xff]   ;;  %v16346_v30 = vld [vmem:[#allocation62_spill] sm:$0xff] }
 0x2f2   : > { %v2095_v58 = vmax.f32 %v1983_v31, 0.0  ;;  %v1996_v3 = vadd.f32 %v13208_v29, %v1848_v40  ;;  %v1850_v14 = vmul.f32 %v13228_v44, %v12959_v52  ;;  %4855 = vmatprep.mubr.bf16.mxu0 %v13357_v28  ;;  %5150 = vmatprep.subr.bf16.mxu1 %v10627_v0  ;;  %v1840_v11 = vmul.f32 %v13216_v13, %v16346_v30  ;;  %v16347_v10 = vld [vmem:[#allocation63_spill] sm:$0xff] }
 0x2f3   : > { %16345 = vst [vmem:[#allocation57_spill] sm:$0xff] %v13362_v38  ;;  %v2101_v7 = vmax.f32 %v1989_v43, 0.0  ;;  %v1991_v46 = vadd.f32 %v13212_v15, %v1843_v9  ;;  %v1847_v48 = vmul.f32 %v13216_v13, %v16347_v10  ;;  %v1842_v52 = vmul.f32 %v13224_v50, %v12881_v12  ;;  %v10622_v0 = vld [vmem:[#allocation8 + $0x7e0] ss:$28 sps:$4 sm:$0xff]  }
 0x2f4   : > { %v13373_v26 = vpack.c.bf16 %v2095_v58, %v2088_v60  ;;  %v2108_v42 = vmax.f32 %v1996_v3, 0.0  ;;  %v1998_v40 = vadd.f32 %v13212_v15, %v1850_v14  ;;  %4923 = vmatpush1.bf16.msra.mxu0 %v10616_v8  ;;  %4743 = vmatmul.mubr.bf16.gmra.mrb[88].mxu1 %v13362_v38  ;;  %v1988_v53 = vadd.f32 %v13236_v57, %v1840_v11  ;;  %v10630_v3 = vld [vmem:[#allocation8 + $0x81c] ss:$28 sps:$4 sm:$0xff]  }
 0x2f5   : > { %v2103_v31 = vmax.f32 %v1991_v46, 0.0  ;;  %v1995_v43 = vadd.f32 %v13236_v57, %v1847_v48  ;;  %v1849_v9 = vmul.f32 %v13224_v50, %v12884_v34  ;;  %4924 = vmatprep.subr.bf16.mxu0 %v10624_v63  ;;  %5151 = vmatpush1.bf16.msra.mxu1 %v10625_v24  ;;  %v1990_v12 = vadd.f32 %v13240_v36, %v1842_v52  ;;  %v16349_v8 = vld [vmem:[#allocation83_spill] sm:$0xff]  ;;  %v16350_v48 = vld [vmem:[#allocation84_spill] sm:$0xff] }
 0x2f6   : > { %v13383_v60 = vpack.c.bf16 %v2108_v42, %v2101_v7  ;;  %v2110_v58 = vmax.f32 %v1998_v40, 0.0  ;;  %v1855_v14 = vmul.f32 %v13220_v49, %v16349_v8  ;;  %v10631_v30 = vld [vmem:[#allocation8 + $0x120] ss:$28 sps:$4 sm:$0xff]   ;;  %5152 = vmatprep.subr.bf16.mxu1 %v10633_v59  ;;  %v2100_v46 = vmax.f32 %v1988_v53, 0.0  ;;  %v10628_v40 = vld [vmem:[#allocation8 + $0x818] ss:$28 sps:$4 sm:$0xff]  }
 0x2f7   : > { %v2107_v11 = vmax.f32 %v1995_v43, 0.0  ;;  %v1997_v10 = vadd.f32 %v13240_v36, %v1849_v9  ;;  %v1862_v34 = vmul.f32 %v13220_v49, %v16350_v48  ;;  %4856 = vmatmul.mubr.bf16.gmra.mrb[40].mxu0 %v13373_v26  ;;  %v2102_v24 = vmax.f32 %v1990_v12, 0.0  ;;  %v10639_v7 = vld [vmem:[#allocation8 + $0x15c] ss:$28 sps:$4 sm:$0xff]   ;;  %v16351_v8 = vld [vmem:[#allocation64_spill] sm:$0xff] }
 0x2f8   : > { %16348 = vst [vmem:[#allocation58_spill] sm:$0xff] %v13383_v60  ;;  %4752 = vmatprep.mubr.bf16.mxu1 %v13383_v60  ;;  %v13393_v63 = vpack.c.bf16 %v2110_v58, %v2103_v31  ;;  %v2003_v42 = vadd.f32 %v13208_v29, %v1855_v14  ;;  %v1857_v59 = vmul.f32 %v13228_v44, %v12962_v6  ;;  %v10636_v31 = vld [vmem:[#allocation8 + $0x854] ss:$28 sps:$4 sm:$0xff]  }
 0x2f9   : > { %4925 = vmatpush1.bf16.msra.mxu0 %v10622_v0  ;;  %v13398_v52 = vpack.c.bf16 %v2107_v11, %v2100_v46  ;;  %v2109_v53 = vmax.f32 %v1997_v10, 0.0  ;;  %v2010_v43 = vadd.f32 %v13208_v29, %v1862_v34  ;;  %v1864_v9 = vmul.f32 %v13228_v44, %v12965_v41  ;;  %v16352_v0 = vld [vmem:[#allocation65_spill] sm:$0xff]  ;;  %5153 = vmatpush1.bf16.msra.mxu1 %v10631_v30  ;;  %v10637_v11 = vld [vmem:[#allocation8 + $0x158] ss:$28 sps:$4 sm:$0xff]  }
 0x2fa   : > { %4865 = vmatprep.mubr.bf16.mxu0 %v13393_v63  ;;  %4926 = vmatprep.subr.bf16.mxu0 %v10630_v3  ;;  %v2115_v58 = vmax.f32 %v2003_v42, 0.0  ;;  %v2005_v12 = vadd.f32 %v13212_v15, %v1857_v59  ;;  %v1854_v6 = vmul.f32 %v13216_v13, %v16351_v8  ;;  %v1861_v14 = vmul.f32 %v13216_v13, %v16352_v0  ;;  %v10645_v34 = vld [vmem:[#allocation8 + $0x194] ss:$28 sps:$4 sm:$0xff]  }
 0x2fb   : > { %v13409_v46 = vpack.c.bf16 %v2109_v53, %v2102_v24  ;;  %v2122_v10 = vmax.f32 %v2010_v43, 0.0  ;;  %v2012_v41 = vadd.f32 %v13212_v15, %v1864_v9  ;;  %v1856_v3 = vmul.f32 %v13224_v50, %v12887_v51  ;;  %5154 = vmatprep.subr.bf16.mxu1 %v10639_v7  ;;  %v10634_v30 = vld [vmem:[#allocation8 + $0x850] ss:$28 sps:$4 sm:$0xff]  }
 0x2fc   : > { %v2117_v48 = vmax.f32 %v2005_v12, 0.0  ;;  %v2002_v42 = vadd.f32 %v13236_v57, %v1854_v6  ;;  %v2009_v59 = vadd.f32 %v13236_v57, %v1861_v14  ;;  %v1863_v8 = vmul.f32 %v13224_v50, %v12890_v2  ;;  %4753 = vmatmul.mubr.bf16.gmra.mrb[92].mxu1 %v13398_v52  ;;  %v16353_v51 = vld [vmem:[#allocation85_spill] sm:$0xff]  ;;  %v16354_v14 = vld [vmem:[#allocation86_spill] sm:$0xff] }
 0x2fd   : > { %4927 = vmatpush1.bf16.msra.mxu0 %v10628_v40  ;;  %v13419_v24 = vpack.c.bf16 %v2122_v10, %v2115_v58  ;;  %v2124_v53 = vmax.f32 %v2012_v41, 0.0  ;;  %v2004_v43 = vadd.f32 %v13240_v36, %v1856_v3  ;;  %v1869_v7 = vmul.f32 %v13220_v49, %v16353_v51  ;;  %v10642_v9 = vld [vmem:[#allocation8 + $0x88c] ss:$28 sps:$4 sm:$0xff]   ;;  %5155 = vmatpush1.bf16.msra.mxu1 %v10637_v11  ;;  %v16357_v51 = vld [vmem:[#allocation66_spill] sm:$0xff] }
 0x2fe   : > { %4928 = vmatprep.subr.bf16.mxu0 %v10636_v31  ;;  %v2114_v12 = vmax.f32 %v2002_v42, 0.0  ;;  %v2121_v6 = vmax.f32 %v2009_v59, 0.0  ;;  %v2011_v0 = vadd.f32 %v13240_v36, %v1863_v8  ;;  %v1876_v2 = vmul.f32 %v13220_v49, %v16354_v14  ;;  %v10643_v10 = vld [vmem:[#allocation8 + $0x190] ss:$28 sps:$4 sm:$0xff]   ;;  %5156 = vmatprep.subr.bf16.mxu1 %v10645_v34  ;;  %v10640_v11 = vld [vmem:[#allocation8 + $0x888] ss:$28 sps:$4 sm:$0xff]  }
 0x2ff   : > { %v13428_v40 = vsub.s32 5, %v13176_v39  ;;  %4762 = vmatprep.mubr.bf16.mxu1 %v13419_v24  ;;  %v13431_v58 = vpack.c.bf16 %v2124_v53, %v2117_v48  ;;  %v2017_v41 = vadd.f32 %v13208_v29, %v1869_v7  ;;  %v1871_v31 = vmul.f32 %v13228_v44, %v12968_v22  ;;  %4866 = vmatmul.mubr.bf16.gmra.mrb[44].mxu0 %v13409_v46  ;;  %v10651_v59 = vld [vmem:[#allocation8 + $0x1cc] ss:$28 sps:$4 sm:$0xff]   ;;  %v16358_v7 = vld [vmem:[#allocation67_spill] sm:$0xff] }
 0x300   : > { %v2116_v3 = vmax.f32 %v2004_v43, 0.0  ;;  %v2123_v42 = vmax.f32 %v2011_v0, 0.0  ;;  %v2024_v39 = vadd.f32 %v13208_v29, %v1876_v2  ;;  %v1878_v8 = vmul.f32 %v13228_v44, %v12971_v62  ;;  %v10648_v0 = vld [vmem:[#allocation8 + $0x8c4] ss:$28 sps:$4 sm:$0xff]  }
 0x301   : > { %16355 = vst [vmem:[#allocation52_spill] sm:$0xff] %v13428_v40  ;;  %16356 = vst [vmem:[#allocation54_spill] sm:$0xff] %v13431_v58  ;;  %4875 = vmatprep.mubr.bf16.mxu0 %v13431_v58  ;;  %4929 = vmatpush1.bf16.msra.mxu0 %v10634_v30  ;;  %v2129_v48 = vmax.f32 %v2017_v41, 0.0  ;;  %v2019_v53 = vadd.f32 %v13212_v15, %v1871_v31  ;;  %v1868_v22 = vmul.f32 %v13216_v13, %v16357_v51  ;;  %v10649_v2 = vld [vmem:[#allocation8 + $0x1c8] ss:$28 sps:$4 sm:$0xff]   ;;  %v16366_v58 = vld [vmem:[#allocation90_spill] sm:$0xff] }
 0x302   : > { %v1875_v34 = vmul.f32 %v13216_v13, %v16358_v7  ;;  %4930 = vmatprep.subr.bf16.mxu0 %v10642_v9  ;;  %v13446_v43 = vpack.c.bf16 %v2121_v6, %v2114_v12  ;;  %v2136_v14 = vmax.f32 %v2024_v39, 0.0  ;;  %v2026_v62 = vadd.f32 %v13212_v15, %v1878_v8  ;;  %5157 = vmatpush1.bf16.msra.mxu1 %v10643_v10  ;;  %v10657_v6 = vld [vmem:[#allocation8 + $0x204] ss:$28 sps:$4 sm:$0xff]  }
 0x303   : > { %v1870_v30 = vmul.f32 %v13224_v50, %v12893_v56  ;;  %v2131_v41 = vmax.f32 %v2019_v53, 0.0  ;;  %v2016_v31 = vadd.f32 %v13236_v57, %v1868_v22  ;;  %v1877_v7 = vmul.f32 %v13224_v50, %v12896_v19  ;;  %5158 = vmatprep.subr.bf16.mxu1 %v10651_v59  ;;  %v16359_v8 = vld [vmem:[#allocation87_spill] sm:$0xff]  ;;  %v16361_v19 = vld [vmem:[#allocation88_spill] sm:$0xff] }
 0x304   : > { %v2023_v51 = vadd.f32 %v13236_v57, %v1875_v34  ;;  %v13455_v9 = vpack.c.bf16 %v2136_v14, %v2129_v48  ;;  %v2138_v12 = vmax.f32 %v2026_v62, 0.0  ;;  %v1883_v56 = vmul.f32 %v13220_v49, %v16359_v8  ;;  %4763 = vmatmul.mubr.bf16.gmra.mrb[96].mxu1 %v13446_v43  ;;  %v10646_v53 = vld [vmem:[#allocation8 + $0x8c0] ss:$28 sps:$4 sm:$0xff]  }
 0x305   : > { %v2018_v39 = vadd.f32 %v13240_v36, %v1870_v30  ;;  %4931 = vmatpush1.bf16.msra.mxu0 %v10640_v11  ;;  %v13461_v10 = vpack.c.bf16 %v2123_v42, %v2116_v3  ;;  %v2128_v22 = vmax.f32 %v2016_v31, 0.0  ;;  %v2025_v34 = vadd.f32 %v13240_v36, %v1877_v7  ;;  %v10654_v14 = vld [vmem:[#allocation8 + $0x8fc] ss:$28 sps:$4 sm:$0xff]   ;;  %v16363_v8 = vld [vmem:[#allocation68_spill] sm:$0xff] }
 0x306   : > { %v1890_v59 = vmul.f32 %v13220_v49, %v16361_v19  ;;  %4932 = vmatprep.subr.bf16.mxu0 %v10648_v0  ;;  %4772 = vmatprep.mubr.bf16.mxu1 %v13455_v9  ;;  %v13467_v48 = vpack.c.bf16 %v2138_v12, %v2131_v41  ;;  %v2135_v62 = vmax.f32 %v2023_v51, 0.0  ;;  %v2031_v11 = vadd.f32 %v13208_v29, %v1883_v56  ;;  %v10655_v42 = vld [vmem:[#allocation8 + $0x200] ss:$28 sps:$4 sm:$0xff]  }
 0x307   : > { %16360 = vst [vmem:[#allocation79_spill] sm:$0xff] %v13461_v10  ;;  %v1885_v3 = vmul.f32 %v13228_v44, %v12974_v35  ;;  %5159 = vmatpush1.bf16.msra.mxu1 %v10649_v2  ;;  %v2130_v30 = vmax.f32 %v2018_v39, 0.0  ;;  %v2137_v31 = vmax.f32 %v2025_v34, 0.0  ;;  %v1892_v0 = vmul.f32 %v13228_v44, %v12977_v37  ;;  %4876 = vmatmul.mubr.bf16.gmra.mrb[48].mxu0 %v13461_v10  ;;  %v10663_v41 = vld [vmem:[#allocation8 + $0x23c] ss:$28 sps:$4 sm:$0xff]   ;;  %v16364_v35 = vld [vmem:[#allocation69_spill] sm:$0xff] }
 0x308   : > { %16362 = vst [vmem:[#allocation80_spill] sm:$0xff] %v13467_v48  ;;  %v2038_v7 = vadd.f32 %v13208_v29, %v1890_v59  ;;  %5160 = vmatprep.subr.bf16.mxu1 %v10657_v6  ;;  %v2143_v12 = vmax.f32 %v2031_v11, 0.0  ;;  %v1882_v56 = vmul.f32 %v13216_v13, %v16363_v8  ;;  %v1889_v2 = vmul.f32 %v13216_v13, %v16364_v35  ;;  %v10652_v37 = vld [vmem:[#allocation8 + $0x8f8] ss:$28 sps:$4 sm:$0xff]  }
 0x309   : > { %v2033_v51 = vadd.f32 %v13212_v15, %v1885_v3  ;;  %v13483_v39 = vrot.slane %v13204_v55, %v13274_v23  ;;  %4885 = vmatprep.mubr.bf16.mxu0 %v13467_v48  ;;  %4933 = vmatpush1.bf16.msra.mxu0 %v10646_v53  ;;  %v2040_v6 = vadd.f32 %v13212_v15, %v1892_v0  ;;  %v10660_v11 = vld [vmem:[#allocation8 + $0x934] ss:$28 sps:$4 sm:$0xff]  }
 0x30a   : > { %v2150_v34 = vmax.f32 %v2038_v7, 0.0  ;;  %v1884_v19 = vmul.f32 %v13224_v50, %v12899_v25  ;;  %v13491_v59 = vrot.slane %v13204_v55, %v13428_v40  ;;  %4934 = vmatprep.subr.bf16.mxu0 %v10654_v14  ;;  %v2030_v3 = vadd.f32 %v13236_v57, %v1882_v56  ;;  %v10661_v0 = vld [vmem:[#allocation8 + $0x238] ss:$28 sps:$4 sm:$0xff]   ;;  %v16365_v25 = vld [vmem:[#allocation89_spill] sm:$0xff] }
 0x30b   : > { %v2037_v8 = vadd.f32 %v13236_v57, %v1889_v2  ;;  %v1891_v53 = vmul.f32 %v13224_v50, %v12902_v4  ;;  %5161 = vmatpush1.bf16.msra.mxu1 %v10655_v42  ;;  %v13497_v7 = vpack.c.bf16 %v2135_v62, %v2128_v22  ;;  %v2145_v35 = vmax.f32 %v2033_v51, 0.0  ;;  %v10669_v56 = vld [vmem:[#allocation8 + $0x274] ss:$28 sps:$4 sm:$0xff]  }
 0x30c   : > { %v2152_v48 = vmax.f32 %v2040_v6, 0.0  ;;  %v1897_v10 = vmul.f32 %v13220_v49, %v16365_v25  ;;  %v13501_v55 = vpack.c.bf16 %v2137_v31, %v2130_v30  ;;  %5162 = vmatprep.subr.bf16.mxu1 %v10663_v41  ;;  %v13503_v14 = vpack.c.bf16 %v2150_v34, %v2143_v12  ;;  %v10658_v22 = vld [vmem:[#allocation8 + $0x930] ss:$28 sps:$4 sm:$0xff]  }
 0x30d   : > { %v2032_v2 = vadd.f32 %v13240_v36, %v1884_v19  ;;  %v1904_v4 = vmul.f32 %v13220_v49, %v16366_v58  ;;  %4935 = vmatpush1.bf16.msra.mxu0 %v10652_v37  ;;  %4773 = vmatmul.mubr.bf16.gmra.mrb[100].mxu1 %v13497_v7  ;;  %v2039_v62 = vadd.f32 %v13240_v36, %v1891_v53  ;;  %v16367_v51 = vld [vmem:[#allocation53_spill] sm:$0xff]  ;;  %v2142_v41 = vmax.f32 %v2030_v3, 0.0  ;;  %v16368_v49 = vld [vmem:[#allocation59_spill] sm:$0xff]  ;;  %v16369_v19 = vld [vmem:[#allocation70_spill] sm:$0xff] }
 0x30e   : > { %v2045_v42 = vadd.f32 %v13208_v29, %v1897_v10  ;;  %v1899_v30 = vmul.f32 %v13228_v44, %v16367_v51  ;;  %4936 = vmatprep.subr.bf16.mxu0 %v10660_v11  ;;  %4782 = vmatprep.mubr.bf16.mxu1 %v13503_v14  ;;  %v10666_v31 = vld [vmem:[#allocation8 + $0x96c] ss:$28 sps:$4 sm:$0xff]   ;;  %v2149_v12 = vmax.f32 %v2037_v8, 0.0  ;;  %v1906_v58 = vmul.f32 %v13228_v44, %v16368_v49  ;;  %v16370_v11 = vld [vmem:[#allocation71_spill] sm:$0xff] }
 0x30f   : > { %v2052_v34 = vadd.f32 %v13208_v29, %v1904_v4  ;;  %v13517_v37 = vpack.c.bf16 %v2152_v48, %v2145_v35  ;;  %5163 = vmatpush1.bf16.msra.mxu1 %v10661_v0  ;;  %v10667_v6 = vld [vmem:[#allocation8 + $0x270] ss:$28 sps:$4 sm:$0xff]   ;;  %v1896_v53 = vmul.f32 %v13216_v13, %v16369_v19  ;;  %v1903_v25 = vmul.f32 %v13216_v13, %v16370_v11  ;;  %v16371_v48 = vld [vmem:[#allocation112_spill] sm:$0xff] }
 0x310   : > { %v2047_v10 = vadd.f32 %v13212_v15, %v1899_v30  ;;  %4886 = vmatmul.mubr.bf16.gmra.mrb[52].mxu0 %v13501_v55  ;;  %5164 = vmatprep.subr.bf16.mxu1 %v10669_v56  ;;  %v10675_v3 = vld [vmem:[#allocation8 + $0x2ac] ss:$28 sps:$4 sm:$0xff]   ;;  %v2157_v29 = vmax.f32 %v2045_v42, 0.0  ;;  %v2054_v44 = vadd.f32 %v13212_v15, %v1906_v58  ;;  %v1898_v0 = vmul.f32 %v13224_v50, %v16371_v48  ;;  %v10672_v15 = vld [vmem:[#allocation8 + $0x9a4] ss:$28 sps:$4 sm:$0xff]   ;;  %v16373_v58 = vld [vmem:[#allocation26_spill] sm:$0xff] }
 0x311   : > { %v2164_v8 = vmax.f32 %v2052_v34, 0.0  ;;  %v13530_v35 = vrot.slane %v13190_v27, %v13274_v23  ;;  %4895 = vmatprep.mubr.bf16.mxu0 %v13517_v37  ;;  %4937 = vmatpush1.bf16.msra.mxu0 %v10658_v22  ;;  %v10664_v4 = vld [vmem:[#allocation8 + $0x968] ss:$28 sps:$4 sm:$0xff]   ;;  %v2144_v13 = vmax.f32 %v2032_v2, 0.0  ;;  %v2151_v51 = vmax.f32 %v2039_v62, 0.0 }
 0x312   : > { %v16372_v30 = vld [vmem:[#allocation113_spill] sm:$0xff]  ;;  %v13537_v42 = vrot.slane %v13190_v27, %v13428_v40  ;;  %4938 = vmatprep.subr.bf16.mxu0 %v10666_v31  ;;  %v2044_v34 = vadd.f32 %v13236_v57, %v1896_v53  ;;  %v2051_v49 = vadd.f32 %v13236_v57, %v1903_v25  ;;  %v1803_v19 = vmul.f32 %v13491_v59, %v16373_v58  ;;  %v10681_v31 = vld [vmem:[#allocation8 + $0x2e4] ss:$28 sps:$4 sm:$0xff]   ;;  %v16382_v40 = vld [vmem:[#allocation98_spill] sm:$0xff] }
 0x313   : > { %v1905_v56 = vmul.f32 %v13224_v50, %v16372_v30  ;;  %5165 = vmatpush1.bf16.msra.mxu1 %v10667_v6  ;;  %v13543_v22 = vpack.c.bf16 %v2149_v12, %v2142_v41  ;;  %v10673_v2 = vld [vmem:[#allocation8 + $0x2a8] ss:$28 sps:$4 sm:$0xff]   ;;  %v2159_v62 = vmax.f32 %v2047_v10, 0.0  ;;  %v2166_v11 = vmax.f32 %v2054_v44, 0.0  ;;  %v16374_v50 = vld [vmem:[#allocation27_spill] sm:$0xff]  ;;  %v16375_v30 = vld [vmem:[#allocation94_spill] sm:$0xff] }
 0x314   : > { %v1810_v48 = vmul.f32 %v13491_v59, %v16374_v50  ;;  %5166 = vmatprep.subr.bf16.mxu1 %v10675_v3  ;;  %v13547_v27 = vpack.c.bf16 %v2164_v8, %v2157_v29  ;;  %v2046_v53 = vadd.f32 %v13240_v36, %v1898_v0  ;;  %v1802_v57 = vmul.f32 %v13483_v39, %v16375_v30  ;;  %v10670_v12 = vld [vmem:[#allocation8 + $0x9a0] ss:$28 sps:$4 sm:$0xff]  }
 0x315   : > { %4939 = vmatpush1.bf16.msra.mxu0 %v10664_v4  ;;  %4783 = vmatmul.mubr.bf16.gmra.mrb[104].mxu1 %v13543_v22  ;;  %v13553_v41 = vpack.c.bf16 %v2151_v51, %v2144_v13  ;;  %v2053_v6 = vadd.f32 %v13240_v36, %v1905_v56  ;;  %v16376_v10 = vld [vmem:[#allocation95_spill] sm:$0xff]  ;;  %v2156_v29 = vmax.f32 %v2044_v34, 0.0  ;;  %v2163_v8 = vmax.f32 %v2051_v49, 0.0  ;;  %v16377_v56 = vld [vmem:[#allocation96_spill] sm:$0xff] }
 0x316   : > { %v1809_v25 = vmul.f32 %v13483_v39, %v16376_v10  ;;  %4940 = vmatprep.subr.bf16.mxu0 %v10672_v15  ;;  %4792 = vmatprep.mubr.bf16.mxu1 %v13547_v27  ;;  %v10678_v3 = vld [vmem:[#allocation8 + $0x9dc] ss:$28 sps:$4 sm:$0xff]   ;;  %v1951_v44 = vadd.f32 %v13537_v42, %v1803_v19  ;;  %v1950_v0 = vadd.f32 %v13530_v35, %v1802_v57  ;;  %v2158_v34 = vmax.f32 %v2046_v53, 0.0  ;;  %v16378_v19 = vld [vmem:[#allocation97_spill] sm:$0xff] }
 0x317   : > { %v13561_v4 = vpack.c.bf16 %v2166_v11, %v2159_v62  ;;  %5167 = vmatpush1.bf16.msra.mxu1 %v10673_v2  ;;  %v10679_v13 = vld [vmem:[#allocation8 + $0x2e0] ss:$28 sps:$4 sm:$0xff]   ;;  %v1958_v51 = vadd.f32 %v13537_v42, %v1810_v48  ;;  %v1816_v15 = vmul.f32 %v13483_v39, %v16377_v56  ;;  %v1823_v50 = vmul.f32 %v13483_v39, %v16378_v19  ;;  %v10676_v2 = vld [vmem:[#allocation8 + $0x9d8] ss:$28 sps:$4 sm:$0xff]  }
 0x318   : > { %v1957_v36 = vadd.f32 %v13530_v35, %v1809_v25  ;;  %4896 = vmatmul.mubr.bf16.gmra.mrb[56].mxu0 %v13553_v41  ;;  %5168 = vmatprep.subr.bf16.mxu1 %v10681_v31  ;;  %v10687_v49 = vld [vmem:[#allocation8 + $0x31c] ss:$28 sps:$4 sm:$0xff]   ;;  %v2062_v58 = vmax.f32 %v1950_v0, 0.0  ;;  %v2165_v62 = vmax.f32 %v2053_v6, 0.0  ;;  %v16379_v48 = vld [vmem:[#allocation28_spill] sm:$0xff]  ;;  %v13574_v10 = vpack.c.bf16 %v2163_v8, %v2156_v29  ;;  %v16380_v25 = vld [vmem:[#allocation29_spill] sm:$0xff] }
 0x319   : > { %4905 = vmatprep.mubr.bf16.mxu0 %v13561_v4  ;;  %4941 = vmatpush1.bf16.msra.mxu0 %v10670_v12  ;;  %v1817_v30 = vmul.f32 %v13491_v59, %v16379_v48  ;;  %v1964_v57 = vadd.f32 %v13530_v35, %v1816_v15  ;;  %v10684_v31 = vld [vmem:[#allocation8 + $0xa14] ss:$28 sps:$4 sm:$0xff]   ;;  %v2063_v53 = vmax.f32 %v1951_v44, 0.0  ;;  %v1824_v0 = vmul.f32 %v13491_v59, %v16380_v25  ;;  %v16383_v8 = vld [vmem:[#allocation99_spill] sm:$0xff] }
 0x31a   : > { %v2069_v11 = vmax.f32 %v1957_v36, 0.0  ;;  %4942 = vmatprep.subr.bf16.mxu0 %v10678_v3  ;;  %v1971_v56 = vadd.f32 %v13530_v35, %v1823_v50  ;;  %v10685_v12 = vld [vmem:[#allocation8 + $0x318] ss:$28 sps:$4 sm:$0xff]   ;;  %v2070_v19 = vmax.f32 %v1958_v51, 0.0  ;;  %v1830_v48 = vmul.f32 %v13483_v39, %v16382_v40  ;;  %v10690_v40 = vld [vmem:[#allocation8 + $0xa4c] ss:$28 sps:$4 sm:$0xff]  }
 0x31b   : > { %5169 = vmatpush1.bf16.msra.mxu1 %v10679_v13  ;;  %v2076_v36 = vmax.f32 %v1964_v57, 0.0  ;;  %v10693_v3 = vld [vmem:[#allocation8 + $0x354] ss:$28 sps:$4 sm:$0xff]   ;;  %v1837_v44 = vmul.f32 %v13483_v39, %v16383_v8  ;;  %v13586_v15 = vpack.c.bf16 %v2165_v62, %v2158_v34  ;;  %v1965_v51 = vadd.f32 %v13537_v42, %v1817_v30 }
 0x31c   : > { %v13579_v6 = vpack.c.bf16 %v2069_v11, %v2062_v58  ;;  %5170 = vmatprep.subr.bf16.mxu1 %v10687_v49  ;;  %v2083_v29 = vmax.f32 %v1971_v56, 0.0  ;;  %v10682_v13 = vld [vmem:[#allocation8 + $0xa10] ss:$28 sps:$4 sm:$0xff]   ;;  %v1978_v58 = vadd.f32 %v13530_v35, %v1830_v48  ;;  %v16386_v11 = vld [vmem:[#allocation100_spill] sm:$0xff]  ;;  %v13596_v57 = vpack.c.bf16 %v2070_v19, %v2063_v53 }
 0x31d   : > { %4943 = vmatpush1.bf16.msra.mxu0 %v10676_v2  ;;  %4793 = vmatmul.mubr.bf16.gmra.mrb[108].mxu1 %v13574_v10  ;;  %16384 = vst [vmem:[#allocation61_spill] sm:$0xff] %v13586_v15  ;;  %v1985_v50 = vadd.f32 %v13530_v35, %v1837_v44  ;;  %v1844_v2 = vmul.f32 %v13483_v39, %v16386_v11  ;;  %v10691_v34 = vld [vmem:[#allocation8 + $0x350] ss:$28 sps:$4 sm:$0xff]   ;;  %v16391_v19 = vld [vmem:[#allocation32_spill] sm:$0xff]  ;;  %v2077_v23 = vmax.f32 %v1965_v51, 0.0 }
 0x31e   : > { %16381 = vst [vmem:[#allocation60_spill] sm:$0xff] %v13579_v6  ;;  %4944 = vmatprep.subr.bf16.mxu0 %v10684_v31  ;;  %5174 = vmatprep.mubr.bf16.mxu1 %v13277_v1  ;;  %v13591_v49 = vpack.c.bf16 %v2083_v29, %v2076_v36  ;;  %16387 = vst [vmem:[#allocation111_spill] sm:$0xff] %v13596_v57  ;;  %v1972_v62 = vadd.f32 %v13537_v42, %v1824_v0  ;;  %v2090_v30 = vmax.f32 %v1978_v58, 0.0  ;;  %v16388_v25 = vld [vmem:[#allocation101_spill] sm:$0xff]  ;;  %v16389_v36 = vld [vmem:[#allocation30_spill] sm:$0xff] }
 0x31f   : > { %5171 = vmatpush1.bf16.msra.mxu1 %v10685_v12  ;;  %v1851_v31 = vmul.f32 %v13483_v39, %v16388_v25  ;;  %v10696_v56 = vld [vmem:[#allocation8 + $0x38c] ss:$28 sps:$4 sm:$0xff]   ;;  %v1831_v48 = vmul.f32 %v13491_v59, %v16389_v36  ;;  %v16390_v29 = vld [vmem:[#allocation31_spill] sm:$0xff]  ;;  %v2097_v53 = vmax.f32 %v1985_v50, 0.0  ;;  %v1992_v12 = vadd.f32 %v13530_v35, %v1844_v2 }
 0x320   : > { %16385 = vst [vmem:[#allocation72_spill] sm:$0xff] %v13591_v49  ;;  %4906 = vmatmul.mubr.bf16.gmra.mrb[60].mxu0 %v13586_v15  ;;  %5172 = vmatprep.subr.bf16.mxu1 %v10693_v3  ;;  %v1838_v8 = vmul.f32 %v13491_v59, %v16390_v29  ;;  %v10688_v0 = vld [vmem:[#allocation8 + $0xa48] ss:$28 sps:$4 sm:$0xff]   ;;  %v1845_v44 = vmul.f32 %v13491_v59, %v16391_v19  ;;  %v16394_v29 = vld [vmem:[#allocation102_spill] sm:$0xff]  ;;  %v2084_v1 = vmax.f32 %v1972_v62, 0.0  ;;  %v16395_v15 = vld [vmem:[#allocation103_spill] sm:$0xff] }
 0x321   : > { %4945 = vmatpush1.bf16.msra.mxu0 %v10682_v13  ;;  %4948 = vmatprep.mubr.bf16.mxu0 %v13596_v57  ;;  %v1999_v58 = vadd.f32 %v13530_v35, %v1851_v31  ;;  %v13611_v3 = vpack.c.bf16 %v2097_v53, %v2090_v30  ;;  %v16393_v11 = vld [vmem:[#allocation33_spill] sm:$0xff]  ;;  %v2104_v36 = vmax.f32 %v1992_v12, 0.0  ;;  %v1858_v50 = vmul.f32 %v13483_v39, %v16394_v29  ;;  %v10720_v2 = vld [vmem:[#allocation8 + $0xa84] ss:$28 sps:$4 sm:$0xff]  }
 0x322   : > { %4946 = vmatprep.subr.bf16.mxu0 %v10690_v40  ;;  %v1852_v25 = vmul.f32 %v13491_v59, %v16393_v11  ;;  %v10694_v13 = vld [vmem:[#allocation8 + $0x388] ss:$28 sps:$4 sm:$0xff]   ;;  %v1865_v19 = vmul.f32 %v13483_v39, %v16395_v15  ;;  %v1979_v30 = vadd.f32 %v13537_v42, %v1831_v48  ;;  %v1986_v31 = vadd.f32 %v13537_v42, %v1838_v8  ;;  %v10726_v48 = vld [vmem:[#allocation8 + $0xabc] ss:$28 sps:$4 sm:$0xff]  }
 0x323   : > { %16392 = vst [vmem:[#allocation81_spill] sm:$0xff] %v13611_v3  ;;  %5173 = vmatpush1.bf16.msra.mxu1 %v10691_v34  ;;  %v2111_v57 = vmax.f32 %v1999_v58, 0.0  ;;  %v10699_v40 = vld [vmem:[#allocation8 + $0x3c4] ss:$28 sps:$4 sm:$0xff]   ;;  %v2006_v53 = vadd.f32 %v13530_v35, %v1858_v50  ;;  %v1993_v12 = vadd.f32 %v13537_v42, %v1845_v44  ;;  %v16398_v8 = vld [vmem:[#allocation38_spill] sm:$0xff]  ;;  %v13632_v29 = vpack.c.bf16 %v2084_v1, %v2077_v23 }
 0x324   : > { %5255 = vmatprep.subr.bf16.mxu1 %v10696_v56  ;;  %v2013_v51 = vadd.f32 %v13530_v35, %v1865_v19  ;;  %v10718_v34 = vld [vmem:[#allocation8 + $0xa80] ss:$28 sps:$4 sm:$0xff]   ;;  %v2000_v15 = vadd.f32 %v13537_v42, %v1852_v25  ;;  %v2091_v25 = vmax.f32 %v1979_v30, 0.0  ;;  %v2098_v19 = vmax.f32 %v1986_v31, 0.0 }
 0x325   : > { %4947 = vmatpush1.bf16.msra.mxu0 %v10688_v0  ;;  %v13623_v11 = vpack.c.bf16 %v2111_v57, %v2104_v36  ;;  %v16397_v62 = vld [vmem:[#allocation36_spill] sm:$0xff]  ;;  %v2118_v56 = vmax.f32 %v2006_v53, 0.0  ;;  %v1879_v0 = vmul.f32 %v13483_v39, %v16398_v8  ;;  %16399 = vst [vmem:[#allocation62_spill] sm:$0xff] %v13632_v29  ;;  %v10702_v50 = vld [vmem:[#allocation8 + $0x3fc] ss:$28 sps:$4 sm:$0xff]   ;;  %v2105_v23 = vmax.f32 %v1993_v12, 0.0 }
 0x326   : > { %v1872_v58 = vmul.f32 %v13483_v39, %v16397_v62  ;;  %5175 = vmatmul.mubr.bf16.vlgmr.msra.gmra.mrb[112].mxu1 %v13284_v32  ;;  %5029 = vmatprep.subr.bf16.mxu0 %v10720_v2  ;;  %v10697_v57 = vld [vmem:[#allocation8 + $0x3c0] ss:$28 sps:$4 sm:$0xff]   ;;  %v2125_v44 = vmax.f32 %v2013_v51, 0.0  ;;  %v16400_v2 = vld [vmem:[#allocation34_spill] sm:$0xff] }
 0x327   : > { %16396 = vst [vmem:[#allocation82_spill] sm:$0xff] %v13623_v11  ;;  %5184 = vmatprep.mubr.bf16.mxu1 %v13315_v45  ;;  %5256 = vmatpush1.bf16.msra.mxu1 %v10694_v13  ;;  %v1859_v53 = vmul.f32 %v13491_v59, %v16400_v2  ;;  %v2027_v62 = vadd.f32 %v13530_v35, %v1879_v0  ;;  %v10724_v13 = vld [vmem:[#allocation8 + $0xab8] ss:$28 sps:$4 sm:$0xff]  }
 0x328   : > { %v2020_v36 = vadd.f32 %v13530_v35, %v1872_v58  ;;  %4949 = vmatmul.mubr.bf16.vlgmr.msra.gmra.mrb[32].mxu0 %v13579_v6  ;;  %5257 = vmatprep.subr.bf16.mxu1 %v10699_v40  ;;  %v13641_v1 = vpack.c.bf16 %v2125_v44, %v2118_v56  ;;  %v16402_v58 = vld [vmem:[#allocation40_spill] sm:$0xff]  ;;  %v2112_v40 = vmax.f32 %v2000_v15, 0.0  ;;  %v16403_v45 = vld [vmem:[#allocation35_spill] sm:$0xff]  ;;  %v10732_v2 = vld [vmem:[#allocation8 + $0xaf4] ss:$28 sps:$4 sm:$0xff]  }
 0x329   : > { %4958 = vmatprep.mubr.bf16.mxu0 %v13632_v29  ;;  %5030 = vmatpush1.bf16.msra.mxu0 %v10718_v34  ;;  %v1886_v8 = vmul.f32 %v13483_v39, %v16402_v58  ;;  %v1866_v30 = vmul.f32 %v13491_v59, %v16403_v45  ;;  %v2139_v31 = vmax.f32 %v2027_v62, 0.0  ;;  %v16404_v32 = vld [vmem:[#allocation42_spill] sm:$0xff]  ;;  %v16406_v15 = vld [vmem:[#allocation44_spill] sm:$0xff]  ;;  %v13655_v45 = vpack.c.bf16 %v2098_v19, %v2091_v25  ;;  %v16408_v62 = vld [vmem:[#allocation47_spill] sm:$0xff] }
 0x32a   : > { %16401 = vst [vmem:[#allocation63_spill] sm:$0xff] %v13641_v1  ;;  %v2132_v51 = vmax.f32 %v2020_v36, 0.0  ;;  %5031 = vmatprep.subr.bf16.mxu0 %v10726_v48  ;;  %v1893_v0 = vmul.f32 %v13483_v39, %v16404_v32  ;;  %v10700_v12 = vld [vmem:[#allocation8 + $0x3f8] ss:$28 sps:$4 sm:$0xff]   ;;  %v1900_v58 = vmul.f32 %v13483_v39, %v16406_v15  ;;  %v13658_v48 = vadd.f32 %v13537_v42, %v1859_v53  ;;  %v10730_v32 = vld [vmem:[#allocation8 + $0xaf0] ss:$28 sps:$4 sm:$0xff]  }
 0x32b   : > { %5258 = vmatpush1.bf16.msra.mxu1 %v10697_v57  ;;  %v2034_v56 = vadd.f32 %v13530_v35, %v1886_v8  ;;  %v10705_v34 = vld [vmem:[#allocation8 + $0x434] ss:$28 sps:$4 sm:$0xff]   ;;  %16407 = vst [vmem:[#allocation84_spill] sm:$0xff] %v13655_v45  ;;  %v1907_v8 = vmul.f32 %v13483_v39, %v16408_v62  ;;  %v16414_v62 = vld [vmem:[#allocation39_spill] sm:$0xff] }
 0x32c   : > { %5259 = vmatprep.subr.bf16.mxu1 %v10702_v50  ;;  %v13650_v44 = vpack.c.bf16 %v2139_v31, %v2132_v51  ;;  %v2041_v36 = vadd.f32 %v13530_v35, %v1893_v0  ;;  %v13663_v50 = vpack.c.bf16 %v2112_v40, %v2105_v23  ;;  %v13666_v51 = vadd.f32 %v13537_v42, %v1866_v30  ;;  %v10738_v31 = vld [vmem:[#allocation8 + $0xb2c] ss:$28 sps:$4 sm:$0xff]  }
 0x32d   : > { %5032 = vmatpush1.bf16.msra.mxu0 %v10724_v13  ;;  %v2146_v57 = vmax.f32 %v2034_v56, 0.0  ;;  %v2048_v19 = vadd.f32 %v13530_v35, %v1900_v58  ;;  %v10703_v13 = vld [vmem:[#allocation8 + $0x430] ss:$28 sps:$4 sm:$0xff]   ;;  %v2055_v23 = vadd.f32 %v13530_v35, %v1907_v8  ;;  %v1818_v58 = vmul.f32 %v13232_v21, %v13085_v20  ;;  %v10736_v8 = vld [vmem:[#allocation8 + $0xb28] ss:$28 sps:$4 sm:$0xff]  }
 0x32e   : > { %16405 = vst [vmem:[#allocation83_spill] sm:$0xff] %v13650_v44  ;;  %5185 = vmatmul.mubr.bf16.gmra.mrb[116].mxu1 %v13326_v18  ;;  %16409 = vst [vmem:[#allocation64_spill] sm:$0xff] %v13663_v50  ;;  %5033 = vmatprep.subr.bf16.mxu0 %v10732_v2  ;;  %v2153_v25 = vmax.f32 %v2041_v36, 0.0  ;;  %v16410_v0 = vld [vmem:[#allocation37_spill] sm:$0xff]  ;;  %v13688_v35 = vmul.f32 %v13491_v59, %v16414_v62  ;;  %v16417_v18 = vld [vmem:[#allocation92_spill] sm:$0xff] }
 0x32f   : > { %5194 = vmatprep.mubr.bf16.mxu1 %v13347_v17  ;;  %5260 = vmatpush1.bf16.msra.mxu1 %v10700_v12  ;;  %v13673_v39 = vmul.f32 %v13491_v59, %v16410_v0  ;;  %v16411_v40 = vld [vmem:[#allocation73_spill] sm:$0xff]  ;;  %v2160_v36 = vmax.f32 %v2048_v19, 0.0  ;;  %v2167_v0 = vmax.f32 %v2055_v23, 0.0  ;;  %v1966_v20 = vadd.f32 %v13244_v47, %v1818_v58 }
 0x330   : > { %v1804_v30 = vmul.f32 %v13232_v21, %v16411_v40  ;;  %4959 = vmatmul.mubr.bf16.gmra.mrb[36].mxu0 %v13591_v49  ;;  %5261 = vmatprep.subr.bf16.mxu1 %v10705_v34  ;;  %v10708_v2 = vld [vmem:[#allocation8 + $0x46c] ss:$28 sps:$4 sm:$0xff]   ;;  %v13679_v56 = vpack.c.bf16 %v2153_v25, %v2146_v57  ;;  %v1825_v57 = vmul.f32 %v13232_v21, %v13088_v5  ;;  %v10744_v25 = vld [vmem:[#allocation8 + $0xb64] ss:$28 sps:$4 sm:$0xff]  }
 0x331   : > { %v16413_v15 = vld [vmem:[#allocation77_spill] sm:$0xff]  ;;  %4968 = vmatprep.mubr.bf16.mxu0 %v13655_v45  ;;  %5034 = vmatpush1.bf16.msra.mxu0 %v10730_v32  ;;  %v1832_v40 = vmul.f32 %v13232_v21, %v13091_v54  ;;  %v13699_v23 = vpack.c.bf16 %v2167_v0, %v2160_v36  ;;  %v16416_v5 = vld [vmem:[#allocation91_spill] sm:$0xff]  ;;  %v2078_v58 = vmax.f32 %v1966_v20, 0.0  ;;  %v1853_v36 = vmul.f32 %v13232_v21, %v16417_v18 }
 0x332   : > { %16412 = vst [vmem:[#allocation65_spill] sm:$0xff] %v13679_v56  ;;  %v1811_v12 = vmul.f32 %v13232_v21, %v16413_v15  ;;  %v1952_v34 = vadd.f32 %v13244_v47, %v1804_v30  ;;  %5035 = vmatprep.subr.bf16.mxu0 %v10738_v31  ;;  %v1839_v15 = vmul.f32 %v13232_v21, %v13094_v61  ;;  %v10706_v32 = vld [vmem:[#allocation8 + $0x468] ss:$28 sps:$4 sm:$0xff]   ;;  %v10742_v61 = vld [vmem:[#allocation8 + $0xb60] ss:$28 sps:$4 sm:$0xff]  }
 0x333   : > { %5262 = vmatpush1.bf16.msra.mxu1 %v10703_v13  ;;  %16415 = vst [vmem:[#allocation85_spill] sm:$0xff] %v13699_v23  ;;  %v1973_v62 = vadd.f32 %v13244_v47, %v1825_v57  ;;  %v1846_v31 = vmul.f32 %v13232_v21, %v16416_v5  ;;  %v1980_v17 = vadd.f32 %v13244_v47, %v1832_v40  ;;  %v10709_v18 = vld [vmem:[#allocation8 + $0x4a0] ss:$28 sps:$4 sm:$0xff]  }
 0x334   : > { %v1959_v19 = vadd.f32 %v13244_v47, %v1811_v12  ;;  %v2064_v30 = vmax.f32 %v1952_v34, 0.0  ;;  %5263 = vmatprep.subr.bf16.mxu1 %v10708_v2  ;;  %v10711_v12 = vld [vmem:[#allocation8 + $0x4a4] ss:$28 sps:$4 sm:$0xff]   ;;  %v1987_v54 = vadd.f32 %v13244_v47, %v1839_v15  ;;  %v16418_v34 = vld [vmem:[#allocation93_spill] sm:$0xff]  ;;  %v10750_v2 = vld [vmem:[#allocation8 + $0xb9c] ss:$28 sps:$4 sm:$0xff]   ;;  %v2001_v5 = vadd.f32 %v13244_v47, %v1853_v36 }
 0x335   : > { %5036 = vmatpush1.bf16.msra.mxu0 %v10736_v8  ;;  %v2085_v13 = vmax.f32 %v1973_v62, 0.0  ;;  %v1994_v0 = vadd.f32 %v13244_v47, %v1846_v31  ;;  %v1860_v57 = vmul.f32 %v13232_v21, %v16418_v34  ;;  %v2092_v20 = vmax.f32 %v1980_v17, 0.0  ;;  %v16420_v15 = vld [vmem:[#allocation104_spill] sm:$0xff] }
 0x336   : > { %v2071_v53 = vmax.f32 %v1959_v19, 0.0  ;;  %5195 = vmatmul.mubr.bf16.gmra.mrb[120].mxu1 %v13362_v38  ;;  %5037 = vmatprep.subr.bf16.mxu0 %v10744_v25  ;;  %v2099_v40 = vmax.f32 %v1987_v54, 0.0  ;;  %v1867_v8 = vmul.f32 %v13232_v21, %v16420_v15  ;;  %v2119_v17 = vmax.f32 %v13658_v48, 0.0  ;;  %v16423_v54 = vld [vmem:[#allocation105_spill] sm:$0xff] }
 0x337   : > { %5204 = vmatprep.mubr.bf16.mxu1 %v13383_v60  ;;  %5264 = vmatpush1.bf16.msra.mxu1 %v10706_v32  ;;  %v13717_v62 = vpack.c.bf16 %v2085_v13, %v2078_v58  ;;  %v2106_v31 = vmax.f32 %v1994_v0, 0.0  ;;  %v2008_v34 = vadd.f32 %v13244_v47, %v1860_v57  ;;  %v1874_v32 = vmul.f32 %v13232_v21, %v16423_v54  ;;  %v10748_v58 = vld [vmem:[#allocation8 + $0xb98] ss:$28 sps:$4 sm:$0xff]  }
 0x338   : > { %v13712_v19 = vpack.c.bf16 %v2071_v53, %v2064_v30  ;;  %4969 = vmatmul.mubr.bf16.gmra.mrb[40].mxu0 %v13611_v3  ;;  %5265 = vmatprep.subr.bf16.mxu1 %v10711_v12  ;;  %v10714_v53 = vld [vmem:[#allocation8 + $0x4dc] ss:$28 sps:$4 sm:$0xff]   ;;  %v13723_v25 = vpack.c.bf16 %v2099_v40, %v2092_v20  ;;  %v2015_v30 = vadd.f32 %v13244_v47, %v1867_v8  ;;  %v2113_v13 = vmax.f32 %v2001_v5, 0.0  ;;  %v16425_v12 = vld [vmem:[#allocation108_spill] sm:$0xff]  ;;  %v10756_v48 = vld [vmem:[#allocation8 + $0xbd4] ss:$28 sps:$4 sm:$0xff]  }
 0x339   : > { %16421 = vst [vmem:[#allocation66_spill] sm:$0xff] %v13717_v62  ;;  %4978 = vmatprep.mubr.bf16.mxu0 %v13663_v50  ;;  %5038 = vmatpush1.bf16.msra.mxu0 %v10742_v61  ;;  %v2120_v36 = vmax.f32 %v2008_v34, 0.0  ;;  %v16424_v0 = vld [vmem:[#allocation106_spill] sm:$0xff]  ;;  %v1888_v15 = vmul.f32 %v13232_v21, %v16425_v12  ;;  %v2022_v40 = vadd.f32 %v13244_v47, %v1874_v32  ;;  %v16426_v8 = vld [vmem:[#allocation107_spill] sm:$0xff]  ;;  %v2126_v34 = vmax.f32 %v13666_v51, 0.0 }
 0x33a   : > { %16419 = vst [vmem:[#allocation86_spill] sm:$0xff] %v13712_v19  ;;  %16422 = vst [vmem:[#allocation67_spill] sm:$0xff] %v13723_v25  ;;  %v1881_v57 = vmul.f32 %v13232_v21, %v16424_v0  ;;  %5039 = vmatprep.subr.bf16.mxu0 %v10750_v2  ;;  %v2127_v20 = vmax.f32 %v2015_v30, 0.0  ;;  %v1895_v54 = vmul.f32 %v13232_v21, %v16426_v8  ;;  %v16427_v60 = vld [vmem:[#allocation110_spill] sm:$0xff] }
 0x33b   : > { %v1909_v61 = vmul.f32 %v13232_v21, %v16427_v60  ;;  %5266 = vmatpush1.bf16.msra.mxu1 %v10709_v18  ;;  %v10712_v5 = vld [vmem:[#allocation8 + $0x4d8] ss:$28 sps:$4 sm:$0xff]   ;;  %v13739_v38 = vpack.c.bf16 %v2113_v13, %v2106_v31  ;;  %v2036_v2 = vadd.f32 %v13244_v47, %v1888_v15  ;;  %v2134_v32 = vmax.f32 %v2022_v40, 0.0  ;;  %v10754_v21 = vld [vmem:[#allocation8 + $0xbd0] ss:$28 sps:$4 sm:$0xff]  }
 0x33c   : > { %v2029_v0 = vadd.f32 %v13244_v47, %v1881_v57  ;;  %5267 = vmatprep.subr.bf16.mxu1 %v10714_v53  ;;  %v10717_v30 = vld [vmem:[#allocation8 + $0x514] ss:$28 sps:$4 sm:$0xff]   ;;  %v13743_v12 = vpack.c.bf16 %v2127_v20, %v2120_v36  ;;  %v2043_v8 = vadd.f32 %v13244_v47, %v1895_v54  ;;  %v2021_v51 = vadd.f32 %v13537_v42, %v13673_v39  ;;  %v10762_v31 = vld [vmem:[#allocation8 + $0xc0c] ss:$28 sps:$4 sm:$0xff]  }
 0x33d   : > { %v2057_v50 = vadd.f32 %v13244_v47, %v1909_v61  ;;  %5040 = vmatpush1.bf16.msra.mxu0 %v10748_v58  ;;  %v2148_v18 = vmax.f32 %v2036_v2, 0.0  ;;  %v13750_v36 = vpack.c.bf16 %v2126_v34, %v2119_v17  ;;  %v10715_v57 = vld [vmem:[#allocation8 + $0x510] ss:$28 sps:$4 sm:$0xff]   ;;  %v2028_v47 = vadd.f32 %v13537_v42, %v13688_v35  ;;  %v10760_v17 = vld [vmem:[#allocation8 + $0xc08] ss:$28 sps:$4 sm:$0xff]   ;;  %v16432_v34 = vld [vmem:[#allocation43_spill] sm:$0xff] }
 0x33e   : > { %v2141_v60 = vmax.f32 %v2029_v0, 0.0  ;;  %5205 = vmatmul.mubr.bf16.gmra.mrb[124].mxu1 %v13398_v52  ;;  %5041 = vmatprep.subr.bf16.mxu0 %v10756_v48  ;;  %v2155_v53 = vmax.f32 %v2043_v8, 0.0  ;;  %v10723_v15 = vld [vmem:[#allocation8 + $0x54c] ss:$28 sps:$4 sm:$0xff]   ;;  %v16429_v48 = vmax.f32 %v13267_v16, 0.0  ;;  %v2133_v40 = vmax.f32 %v2021_v51, 0.0 }
 0x33f   : > { %v2169_v13 = vmax.f32 %v2057_v50, 0.0  ;;  %16428 = vst [vmem:[#allocation87_spill] sm:$0xff] %v13750_v36  ;;  %5214 = vmatprep.mubr.bf16.mxu1 %v13419_v24  ;;  %5268 = vmatpush1.bf16.msra.mxu1 %v10712_v5  ;;  %v10771_v20 = vld [vmem:[#allocation8 + $0x14] ss:$28 sps:$4 sm:$0xff]   ;;  %v10721_v35 = vld [vmem:[#allocation8 + $0x548] ss:$28 sps:$4 sm:$0xff]   ;;  %v1894_v0 = vmul.f32 %v13491_v59, %v16432_v34 }
 0x340   : > { %v13755_v58 = vpack.c.bf16 %v2141_v60, %v2134_v32  ;;  %4979 = vmatmul.mubr.bf16.gmra.mrb[44].mxu0 %v13623_v11  ;;  %5269 = vmatprep.subr.bf16.mxu1 %v10717_v30  ;;  %v13758_v39 = vpack.c.bf16 %v2155_v53, %v2148_v18  ;;  %v2140_v54 = vmax.f32 %v2028_v47, 0.0  ;;  %v16431_v61 = vld [vmem:[#allocation41_spill] sm:$0xff]  ;;  %v10729_v16 = vld [vmem:[#allocation8 + $0x584] ss:$28 sps:$4 sm:$0xff]   ;;  %v10733_v60 = vld [vmem:[#allocation8 + $0x5b8] ss:$28 sps:$4 sm:$0xff]  }
 0x341   : > { %v13762_v50 = vpack.c.bf16 %v2169_v13, %v16429_v48  ;;  %4988 = vmatprep.mubr.bf16.mxu0 %v13750_v36  ;;  %5042 = vmatpush1.bf16.msra.mxu0 %v10754_v21  ;;  %v1887_v5 = vmul.f32 %v13491_v59, %v16431_v61  ;;  %v10727_v30 = vld [vmem:[#allocation8 + $0x580] ss:$28 sps:$4 sm:$0xff]   ;;  %v2042_v8 = vadd.f32 %v13537_v42, %v1894_v0  ;;  %v16435_v13 = vld [vmem:[#allocation49_spill] sm:$0xff]  ;;  %v10757_v0 = vld [vmem:[#allocation8 + $0x698] ss:$28 sps:$4 sm:$0xff]  }
 0x342   : > { %5043 = vmatprep.subr.bf16.mxu0 %v10762_v31  ;;  %v13770_v2 = vpack.c.bf16 %v2140_v54, %v2133_v40  ;;  %v10735_v21 = vld [vmem:[#allocation8 + $0x5bc] ss:$28 sps:$4 sm:$0xff]   ;;  %v16434_v31 = vld [vmem:[#allocation45_spill] sm:$0xff]  ;;  %v10753_v61 = vld [vmem:[#allocation8 + $0x664] ss:$28 sps:$4 sm:$0xff]  }
 0x343   : > { %16430 = vst [vmem:[#allocation88_spill] sm:$0xff] %v13762_v50  ;;  %5270 = vmatpush1.bf16.msra.mxu1 %v10715_v57  ;;  %v2035_v32 = vadd.f32 %v13537_v42, %v1887_v5  ;;  %v2154_v51 = vmax.f32 %v2042_v8, 0.0  ;;  %v1901_v53 = vmul.f32 %v13491_v59, %v16434_v31  ;;  %v1908_v57 = vmul.f32 %v13491_v59, %v16435_v13  ;;  %v10741_v47 = vld [vmem:[#allocation8 + $0x5f4] ss:$28 sps:$4 sm:$0xff]   ;;  %v10745_v59 = vld [vmem:[#allocation8 + $0x628] ss:$28 sps:$4 sm:$0xff]  }
 0x344   : > { %5271 = vmatprep.subr.bf16.mxu1 %v10723_v15  ;;  %16433 = vst [vmem:[#allocation68_spill] sm:$0xff] %v13770_v2  ;;  %v10739_v48 = vld [vmem:[#allocation8 + $0x5f0] ss:$28 sps:$4 sm:$0xff]   ;;  %v10759_v34 = vld [vmem:[#allocation8 + $0x69c] ss:$28 sps:$4 sm:$0xff]  }
 0x345   : > { %5044 = vmatpush1.bf16.msra.mxu0 %v10760_v17  ;;  %v2147_v18 = vmax.f32 %v2035_v32, 0.0  ;;  %v2049_v17 = vadd.f32 %v13537_v42, %v1901_v53  ;;  %v10763_v32 = vld [vmem:[#allocation8 + $0x6d0] ss:$28 sps:$4 sm:$0xff]   ;;  %v16439_v31 = vld [vmem:[#allocation55_spill] sm:$0xff] }
 0x346   : > { %5215 = vmatmul.mubr.bf16.gmra.mrb[128].mxu1 %v13446_v43  ;;  %5594 = vmatprep.subr.bf16.mxu0 %v10771_v20  ;;  %v2056_v20 = vadd.f32 %v13537_v42, %v1908_v57  ;;  %v10751_v42 = vld [vmem:[#allocation8 + $0x660] ss:$28 sps:$4 sm:$0xff]   ;;  %v10768_v8 = vld [vmem:[#allocation8 + $0x70c] ss:$28 sps:$4 sm:$0xff]   ;;  %v16440_v13 = vld [vmem:[#allocation46_spill] sm:$0xff] }
 0x347   : > { %5224 = vmatprep.mubr.bf16.mxu1 %v13455_v9  ;;  %5272 = vmatpush1.bf16.msra.mxu1 %v10721_v35  ;;  %v13782_v15 = vpack.c.bf16 %v2154_v51, %v2147_v18  ;;  %v10747_v35 = vld [vmem:[#allocation8 + $0x62c] ss:$28 sps:$4 sm:$0xff]   ;;  %v2161_v40 = vmax.f32 %v2049_v17, 0.0  ;;  %v10774_v18 = vld [vmem:[#allocation8 + $0x744] ss:$28 sps:$4 sm:$0xff]  }
 0x348   : > { %4989 = vmatmul.mubr.bf16.gmra.mrb[48].mxu0 %v13641_v1  ;;  %5273 = vmatprep.subr.bf16.mxu1 %v10729_v16  ;;  %v2168_v54 = vmax.f32 %v2056_v20, 0.0  ;;  %v10765_v16 = vld [vmem:[#allocation8 + $0x6d4] ss:$28 sps:$4 sm:$0xff]   ;;  %v10777_v53 = vld [vmem:[#allocation8 + $0x4c] ss:$28 sps:$4 sm:$0xff]  }
 0x349   : > { %4998 = vmatprep.mubr.bf16.mxu0 %v13770_v2  ;;  %16436 = vst [vmem:[#allocation69_spill] sm:$0xff] %v13782_v15  ;;  %v10769_v51 = vld [vmem:[#allocation8 + $0x10] ss:$28 sps:$4 sm:$0xff]   ;;  %v10772_v57 = vld [vmem:[#allocation8 + $0x740] ss:$28 sps:$4 sm:$0xff]  }
 0x34a   : > { %v13790_v5 = vpack.c.bf16 %v2168_v54, %v2161_v40  ;;  %v10783_v17 = vld [vmem:[#allocation8 + $0x84] ss:$28 sps:$4 sm:$0xff]   ;;  %v10778_v20 = vld [vmem:[#allocation8 + $0x778] ss:$28 sps:$4 sm:$0xff]   ;;  %v10784_v54 = vld [vmem:[#allocation8 + $0x7b0] ss:$28 sps:$4 sm:$0xff]  }
 0x34b   : > { %5274 = vmatpush1.bf16.msra.mxu1 %v10727_v30  ;;  %v16438_v30 = vld [vmem:[#allocation48_spill] sm:$0xff]  ;;  %v10789_v40 = vld [vmem:[#allocation8 + $0xbc] ss:$28 sps:$4 sm:$0xff]  }
 0x34c   : > { %5275 = vmatprep.subr.bf16.mxu1 %v10735_v21  ;;  %16437 = vst [vmem:[#allocation89_spill] sm:$0xff] %v13790_v5  ;;  %v15934_v21 = vmov 0  }
 0x34e   : > { %5225 = vmatmul.mubr.bf16.gmra.mrb[132].mxu1 %v13497_v7 }
 0x34f   : > { %5234 = vmatprep.mubr.bf16.mxu1 %v13503_v14  ;;  %5276 = vmatpush1.bf16.msra.mxu1 %v10733_v60  ;;  %v10766_v60 = vld [vmem:[#allocation8 + $0x708] ss:$28 sps:$4 sm:$0xff]  }
 0x350   : > { %4999 = vmatmul.mubr.bf16.gmra.mrb[52].mxu0 %v13650_v44  ;;  %5277 = vmatprep.subr.bf16.mxu1 %v10741_v47  ;;  %v10780_v47 = vld [vmem:[#allocation8 + $0x77c] ss:$28 sps:$4 sm:$0xff]  }
 0x351   : > { %5008 = vmatprep.mubr.bf16.mxu0 %v13782_v15 }
 0x353   : > { %5278 = vmatpush1.bf16.msra.mxu1 %v10739_v48  ;;  %v10775_v48 = vld [vmem:[#allocation8 + $0x48] ss:$28 sps:$4 sm:$0xff]  }
 0x354   : > { %5279 = vmatprep.subr.bf16.mxu1 %v10747_v35  ;;  %v10786_v35 = vld [vmem:[#allocation8 + $0x7b4] ss:$28 sps:$4 sm:$0xff]  }
 0x356   : > { %5235 = vmatmul.mubr.bf16.gmra.mrb[136].mxu1 %v13543_v22 }
 0x357   : > { %5244 = vmatprep.mubr.bf16.mxu1 %v13547_v27  ;;  %5280 = vmatpush1.bf16.msra.mxu1 %v10745_v59  ;;  %v10781_v59 = vld [vmem:[#allocation8 + $0x80] ss:$28 sps:$4 sm:$0xff]  }
 0x358   : > { %5009 = vmatmul.mubr.bf16.gmra.mrb[56].mxu0 %v13679_v56  ;;  %5281 = vmatprep.subr.bf16.mxu1 %v10753_v61  ;;  %v10792_v61 = vld [vmem:[#allocation8 + $0x7ec] ss:$28 sps:$4 sm:$0xff]  }
 0x359   : > { %5018 = vmatprep.mubr.bf16.mxu0 %v13790_v5 }
 0x35b   : > { %5282 = vmatpush1.bf16.msra.mxu1 %v10751_v42  ;;  %v10787_v42 = vld [vmem:[#allocation8 + $0xb8] ss:$28 sps:$4 sm:$0xff]  }
 0x35c   : > { %5283 = vmatprep.subr.bf16.mxu1 %v10759_v34  ;;  %v10795_v34 = vld [vmem:[#allocation8 + $0xf4] ss:$28 sps:$4 sm:$0xff]  }
 0x35e   : > { %5245 = vmatmul.mubr.bf16.gmra.mrb[140].mxu1 %v13574_v10 }
 0x35f   : > { %5284 = vmatpush1.bf16.msra.mxu1 %v10757_v0  ;;  %5287 = vmatprep.mubr.bf16.mxu1 %v16438_v30  ;;  %v10790_v0 = vld [vmem:[#allocation8 + $0x7e8] ss:$28 sps:$4 sm:$0xff]  }
 0x360   : > { %5019 = vmatmul.mubr.bf16.gmra.mrb[60].mxu0 %v13699_v23  ;;  %5285 = vmatprep.subr.bf16.mxu1 %v10765_v16  ;;  %v10798_v16 = vld [vmem:[#allocation8 + $0x824] ss:$28 sps:$4 sm:$0xff]  }
 0x361   : > { %5061 = vmatprep.mubr.bf16.mxu0 %v15934_v21 }
 0x363   : > { %5286 = vmatpush1.bf16.msra.mxu1 %v10763_v32  ;;  %v10793_v32 = vld [vmem:[#allocation8 + $0xf0] ss:$28 sps:$4 sm:$0xff]  }
 0x364   : > { %5368 = vmatprep.subr.bf16.mxu1 %v10768_v8  ;;  %v10801_v8 = vld [vmem:[#allocation8 + $0x12c] ss:$28 sps:$4 sm:$0xff]  }
 0x366   : > { %5288 = vmatmul.mubr.bf16.vlgmr.msra.gmra.mrb[112].mxu1 %v16439_v31 }
 0x367   : > { %5297 = vmatprep.mubr.bf16.mxu1 %v16440_v13  ;;  %5369 = vmatpush1.bf16.msra.mxu1 %v10766_v60  ;;  %v10796_v60 = vld [vmem:[#allocation8 + $0x820] ss:$28 sps:$4 sm:$0xff]  }
 0x368   : > { %5062 = vmatmul.mubr.bf16.vlgmr.msra.gmra.mrb[32].mxu0 %v13712_v19  ;;  %5370 = vmatprep.subr.bf16.mxu1 %v10774_v18  ;;  %v10804_v18 = vld [vmem:[#allocation8 + $0x85c] ss:$28 sps:$4 sm:$0xff]  }
 0x369   : > { %5595 = vmatpush1.bf16.msra.mxu0 %v10769_v51  ;;  %5071 = vmatprep.mubr.bf16.mxu0 %v15934_v21  ;;  %v10799_v51 = vld [vmem:[#allocation8 + $0x128] ss:$28 sps:$4 sm:$0xff]  }
 0x36a   : > { %5596 = vmatprep.subr.bf16.mxu0 %v10777_v53  ;;  %v10807_v53 = vld [vmem:[#allocation8 + $0x164] ss:$28 sps:$4 sm:$0xff]  }
 0x36b   : > { %5371 = vmatpush1.bf16.msra.mxu1 %v10772_v57  ;;  %v10802_v57 = vld [vmem:[#allocation8 + $0x858] ss:$28 sps:$4 sm:$0xff]  }
 0x36c   : > { %5372 = vmatprep.subr.bf16.mxu1 %v10780_v47  ;;  %v10810_v47 = vld [vmem:[#allocation8 + $0x894] ss:$28 sps:$4 sm:$0xff]  }
 0x36d   : > { %5597 = vmatpush1.bf16.msra.mxu0 %v10775_v48  ;;  %v10805_v48 = vld [vmem:[#allocation8 + $0x160] ss:$28 sps:$4 sm:$0xff]  }
 0x36e   : > { %5298 = vmatmul.mubr.bf16.gmra.mrb[116].mxu1 %v13338_v33  ;;  %5598 = vmatprep.subr.bf16.mxu0 %v10783_v17  ;;  %v10813_v17 = vld [vmem:[#allocation8 + $0x19c] ss:$28 sps:$4 sm:$0xff]  }
 0x36f   : > { %5307 = vmatprep.mubr.bf16.mxu1 %v13357_v28  ;;  %5373 = vmatpush1.bf16.msra.mxu1 %v10778_v20  ;;  %v16441_v20 = vld [vmem:[#allocation54_spill] sm:$0xff] }
 0x370   : > { %5072 = vmatmul.mubr.bf16.gmra.mrb[36].mxu0 %v13717_v62  ;;  %5374 = vmatprep.subr.bf16.mxu1 %v10786_v35  ;;  %v10808_v35 = vld [vmem:[#allocation8 + $0x890] ss:$28 sps:$4 sm:$0xff]  }
 0x371   : > { %5599 = vmatpush1.bf16.msra.mxu0 %v10781_v59  ;;  %5081 = vmatprep.mubr.bf16.mxu0 %v15934_v21  ;;  %v10816_v59 = vld [vmem:[#allocation8 + $0x8cc] ss:$28 sps:$4 sm:$0xff]  }
 0x372   : > { %5600 = vmatprep.subr.bf16.mxu0 %v10789_v40  ;;  %v10811_v40 = vld [vmem:[#allocation8 + $0x198] ss:$28 sps:$4 sm:$0xff]  }
 0x373   : > { %5375 = vmatpush1.bf16.msra.mxu1 %v10784_v54  ;;  %v10819_v54 = vld [vmem:[#allocation8 + $0x1d4] ss:$28 sps:$4 sm:$0xff]  }
 0x374   : > { %5376 = vmatprep.subr.bf16.mxu1 %v10792_v61  ;;  %v10814_v61 = vld [vmem:[#allocation8 + $0x8c8] ss:$28 sps:$4 sm:$0xff]  }
 0x375   : > { %5601 = vmatpush1.bf16.msra.mxu0 %v10787_v42  ;;  %v10822_v42 = vld [vmem:[#allocation8 + $0x904] ss:$28 sps:$4 sm:$0xff]  }
 0x376   : > { %5308 = vmatmul.mubr.bf16.gmra.mrb[120].mxu1 %v13373_v26  ;;  %5602 = vmatprep.subr.bf16.mxu0 %v10795_v34  ;;  %v10817_v34 = vld [vmem:[#allocation8 + $0x1d0] ss:$28 sps:$4 sm:$0xff]  }
 0x377   : > { %5317 = vmatprep.mubr.bf16.mxu1 %v13393_v63  ;;  %5377 = vmatpush1.bf16.msra.mxu1 %v10790_v0  ;;  %v16442_v0 = vld [vmem:[#allocation79_spill] sm:$0xff] }
 0x378   : > { %5082 = vmatmul.mubr.bf16.gmra.mrb[40].mxu0 %v13723_v25  ;;  %5378 = vmatprep.subr.bf16.mxu1 %v10798_v16  ;;  %v10825_v16 = vld [vmem:[#allocation8 + $0x20c] ss:$28 sps:$4 sm:$0xff]  }
 0x379   : > { %5603 = vmatpush1.bf16.msra.mxu0 %v10793_v32  ;;  %5091 = vmatprep.mubr.bf16.mxu0 %v15934_v21  ;;  %v16443_v32 = vld [vmem:[#allocation80_spill] sm:$0xff] }
 0x37a   : > { %5604 = vmatprep.subr.bf16.mxu0 %v10801_v8  ;;  %v10820_v8 = vld [vmem:[#allocation8 + $0x900] ss:$28 sps:$4 sm:$0xff]  }
 0x37b   : > { %5379 = vmatpush1.bf16.msra.mxu1 %v10796_v60  ;;  %v10828_v60 = vld [vmem:[#allocation8 + $0x93c] ss:$28 sps:$4 sm:$0xff]  }
 0x37c   : > { %5380 = vmatprep.subr.bf16.mxu1 %v10804_v18  ;;  %v10823_v18 = vld [vmem:[#allocation8 + $0x208] ss:$28 sps:$4 sm:$0xff]  }
 0x37d   : > { %5605 = vmatpush1.bf16.msra.mxu0 %v10799_v51  ;;  %v10831_v51 = vld [vmem:[#allocation8 + $0x244] ss:$28 sps:$4 sm:$0xff]  }
 0x37e   : > { %5318 = vmatmul.mubr.bf16.gmra.mrb[124].mxu1 %v13409_v46  ;;  %5606 = vmatprep.subr.bf16.mxu0 %v10807_v53  ;;  %v10826_v53 = vld [vmem:[#allocation8 + $0x938] ss:$28 sps:$4 sm:$0xff]  }
 0x37f   : > { %5327 = vmatprep.mubr.bf16.mxu1 %v16441_v20  ;;  %5381 = vmatpush1.bf16.msra.mxu1 %v10802_v57  ;;  %v10834_v57 = vld [vmem:[#allocation8 + $0x974] ss:$28 sps:$4 sm:$0xff]  }
 0x380   : > { %5092 = vmatmul.mubr.bf16.gmra.mrb[44].mxu0 %v13739_v38  ;;  %5382 = vmatprep.subr.bf16.mxu1 %v10810_v47  ;;  %v10829_v47 = vld [vmem:[#allocation8 + $0x240] ss:$28 sps:$4 sm:$0xff]  }
 0x381   : > { %5607 = vmatpush1.bf16.msra.mxu0 %v10805_v48  ;;  %5101 = vmatprep.mubr.bf16.mxu0 %v15934_v21  ;;  %v10837_v48 = vld [vmem:[#allocation8 + $0x27c] ss:$28 sps:$4 sm:$0xff]  }
 0x382   : > { %5608 = vmatprep.subr.bf16.mxu0 %v10813_v17  ;;  %v10832_v17 = vld [vmem:[#allocation8 + $0x970] ss:$28 sps:$4 sm:$0xff]  }
 0x383   : > { %5383 = vmatpush1.bf16.msra.mxu1 %v10808_v35  ;;  %v10840_v35 = vld [vmem:[#allocation8 + $0x9ac] ss:$28 sps:$4 sm:$0xff]  }
 0x384   : > { %5384 = vmatprep.subr.bf16.mxu1 %v10816_v59  ;;  %v10835_v59 = vld [vmem:[#allocation8 + $0x278] ss:$28 sps:$4 sm:$0xff]  }
 0x385   : > { %5609 = vmatpush1.bf16.msra.mxu0 %v10811_v40  ;;  %v10843_v40 = vld [vmem:[#allocation8 + $0x2b4] ss:$28 sps:$4 sm:$0xff]  }
 0x386   : > { %5328 = vmatmul.mubr.bf16.gmra.mrb[128].mxu1 %v16442_v0  ;;  %5610 = vmatprep.subr.bf16.mxu0 %v10819_v54  ;;  %v10838_v54 = vld [vmem:[#allocation8 + $0x9a8] ss:$28 sps:$4 sm:$0xff]  }
 0x387   : > { %5337 = vmatprep.mubr.bf16.mxu1 %v16443_v32  ;;  %5385 = vmatpush1.bf16.msra.mxu1 %v10814_v61  ;;  %v10846_v61 = vld [vmem:[#allocation8 + $0x9e4] ss:$28 sps:$4 sm:$0xff]  }
 0x388   : > { %5102 = vmatmul.mubr.bf16.gmra.mrb[48].mxu0 %v13743_v12  ;;  %5386 = vmatprep.subr.bf16.mxu1 %v10822_v42  ;;  %v10841_v42 = vld [vmem:[#allocation8 + $0x2b0] ss:$28 sps:$4 sm:$0xff]  }
 0x389   : > { %5611 = vmatpush1.bf16.msra.mxu0 %v10817_v34  ;;  %5111 = vmatprep.mubr.bf16.mxu0 %v15934_v21  ;;  %v10849_v34 = vld [vmem:[#allocation8 + $0x2ec] ss:$28 sps:$4 sm:$0xff]  }
 0x38a   : > { %5612 = vmatprep.subr.bf16.mxu0 %v10825_v16  ;;  %v10844_v16 = vld [vmem:[#allocation8 + $0x9e0] ss:$28 sps:$4 sm:$0xff]  }
 0x38b   : > { %5387 = vmatpush1.bf16.msra.mxu1 %v10820_v8  ;;  %v10852_v8 = vld [vmem:[#allocation8 + $0xa1c] ss:$28 sps:$4 sm:$0xff]  }
 0x38c   : > { %5388 = vmatprep.subr.bf16.mxu1 %v10828_v60  ;;  %v10847_v60 = vld [vmem:[#allocation8 + $0x2e8] ss:$28 sps:$4 sm:$0xff]  }
 0x38d   : > { %5613 = vmatpush1.bf16.msra.mxu0 %v10823_v18  ;;  %v10855_v18 = vld [vmem:[#allocation8 + $0x324] ss:$28 sps:$4 sm:$0xff]  }
 0x38e   : > { %5338 = vmatmul.mubr.bf16.gmra.mrb[132].mxu1 %v13501_v55  ;;  %5614 = vmatprep.subr.bf16.mxu0 %v10831_v51  ;;  %v10850_v51 = vld [vmem:[#allocation8 + $0xa18] ss:$28 sps:$4 sm:$0xff]  }
 0x38f   : > { %5347 = vmatprep.mubr.bf16.mxu1 %v13517_v37  ;;  %5389 = vmatpush1.bf16.msra.mxu1 %v10826_v53  ;;  %v10858_v53 = vld [vmem:[#allocation8 + $0xa54] ss:$28 sps:$4 sm:$0xff]  }
 0x390   : > { %5112 = vmatmul.mubr.bf16.gmra.mrb[52].mxu0 %v13755_v58  ;;  %5390 = vmatprep.subr.bf16.mxu1 %v10834_v57  ;;  %v10853_v57 = vld [vmem:[#allocation8 + $0x320] ss:$28 sps:$4 sm:$0xff]  }
 0x391   : > { %5615 = vmatpush1.bf16.msra.mxu0 %v10829_v47  ;;  %5121 = vmatprep.mubr.bf16.mxu0 %v15934_v21  ;;  %v16444_v47 = vld [vmem:[#allocation61_spill] sm:$0xff] }
 0x392   : > { %5616 = vmatprep.subr.bf16.mxu0 %v10837_v48  ;;  %v10861_v48 = vld [vmem:[#allocation8 + $0x35c] ss:$28 sps:$4 sm:$0xff]  }
 0x393   : > { %5391 = vmatpush1.bf16.msra.mxu1 %v10832_v17  ;;  %v16445_v17 = vld [vmem:[#allocation111_spill] sm:$0xff] }
 0x394   : > { %5392 = vmatprep.subr.bf16.mxu1 %v10840_v35  ;;  %v10856_v35 = vld [vmem:[#allocation8 + $0xa50] ss:$28 sps:$4 sm:$0xff]  }
 0x395   : > { %5617 = vmatpush1.bf16.msra.mxu0 %v10835_v59  ;;  %v10864_v59 = vld [vmem:[#allocation8 + $0xa8c] ss:$28 sps:$4 sm:$0xff]  }
 0x396   : > { %5348 = vmatmul.mubr.bf16.gmra.mrb[136].mxu1 %v13553_v41  ;;  %5618 = vmatprep.subr.bf16.mxu0 %v10843_v40  ;;  %v16446_v40 = vld [vmem:[#allocation75_spill] sm:$0xff] }
 0x397   : > { %5357 = vmatprep.mubr.bf16.mxu1 %v13561_v4  ;;  %5393 = vmatpush1.bf16.msra.mxu1 %v10838_v54  ;;  %v10859_v54 = vld [vmem:[#allocation8 + $0x358] ss:$28 sps:$4 sm:$0xff]  }
 0x398   : > { %5122 = vmatmul.mubr.bf16.gmra.mrb[56].mxu0 %v13758_v39  ;;  %5394 = vmatprep.subr.bf16.mxu1 %v10846_v61  ;;  %v10867_v61 = vld [vmem:[#allocation8 + $0x394] ss:$28 sps:$4 sm:$0xff]  }
 0x399   : > { %5619 = vmatpush1.bf16.msra.mxu0 %v10841_v42  ;;  %5131 = vmatprep.mubr.bf16.mxu0 %v15934_v21  ;;  %v10862_v42 = vld [vmem:[#allocation8 + $0xa88] ss:$28 sps:$4 sm:$0xff]  }
 0x39a   : > { %5620 = vmatprep.subr.bf16.mxu0 %v10849_v34  ;;  %v10873_v34 = vld [vmem:[#allocation8 + $0xac4] ss:$28 sps:$4 sm:$0xff]  }
 0x39b   : > { %5395 = vmatpush1.bf16.msra.mxu1 %v10844_v16  ;;  %v10865_v16 = vld [vmem:[#allocation8 + $0x390] ss:$28 sps:$4 sm:$0xff]   ;;  %v10909_v21 = vld [vmem:[#allocation8 + $0xba4] ss:$28 sps:$4 sm:$0xff]  }
 0x39c   : > { %5396 = vmatprep.subr.bf16.mxu1 %v10852_v8  ;;  %v10870_v8 = vld [vmem:[#allocation8 + $0x3cc] ss:$28 sps:$4 sm:$0xff]  }
 0x39d   : > { %5621 = vmatpush1.bf16.msra.mxu0 %v10847_v60  ;;  %v10871_v60 = vld [vmem:[#allocation8 + $0xac0] ss:$28 sps:$4 sm:$0xff]  }
 0x39e   : > { %5358 = vmatmul.mubr.bf16.gmra.mrb[140].mxu1 %v16444_v47  ;;  %5622 = vmatprep.subr.bf16.mxu0 %v10855_v18  ;;  %v16447_v18 = vld [vmem:[#allocation51_spill] sm:$0xff] }
 0x39f   : > { %5397 = vmatpush1.bf16.msra.mxu1 %v10850_v51  ;;  %5400 = vmatprep.mubr.bf16.mxu1 %v16445_v17  ;;  %v10882_v51 = vld [vmem:[#allocation8 + $0xafc] ss:$28 sps:$4 sm:$0xff]  }
 0x3a0   : > { %5132 = vmatmul.mubr.bf16.gmra.mrb[60].mxu0 %v13762_v50  ;;  %5398 = vmatprep.subr.bf16.mxu1 %v10858_v53  ;;  %v16448_v53 = vld [vmem:[#allocation56_spill] sm:$0xff] }
 0x3a1   : > { %5623 = vmatpush1.bf16.msra.mxu0 %v10853_v57  ;;  %5626 = vmatprep.mubr.bf16.mxu0 %v16446_v40  ;;  %v10868_v57 = vld [vmem:[#allocation8 + $0x3c8] ss:$28 sps:$4 sm:$0xff]  }
 0x3a2   : > { %5624 = vmatprep.subr.bf16.mxu0 %v10861_v48  ;;  %v10876_v48 = vld [vmem:[#allocation8 + $0x404] ss:$28 sps:$4 sm:$0xff]  }
 0x3a3   : > { %5399 = vmatpush1.bf16.msra.mxu1 %v10856_v35  ;;  %v10880_v35 = vld [vmem:[#allocation8 + $0xaf8] ss:$28 sps:$4 sm:$0xff]  }
 0x3a4   : > { %5481 = vmatprep.subr.bf16.mxu1 %v10864_v59  ;;  %v10891_v59 = vld [vmem:[#allocation8 + $0xb34] ss:$28 sps:$4 sm:$0xff]  }
 0x3a5   : > { %5625 = vmatpush1.bf16.msra.mxu0 %v10859_v54  ;;  %v10874_v54 = vld [vmem:[#allocation8 + $0x400] ss:$28 sps:$4 sm:$0xff]  }
 0x3a6   : > { %5401 = vmatmul.mubr.bf16.vlgmr.msra.gmra.mrb[112].mxu1 %v13579_v6  ;;  %5707 = vmatprep.subr.bf16.mxu0 %v10867_v61  ;;  %v10879_v61 = vld [vmem:[#allocation8 + $0x43c] ss:$28 sps:$4 sm:$0xff]  }
 0x3a7   : > { %5410 = vmatprep.mubr.bf16.mxu1 %v13632_v29  ;;  %5482 = vmatpush1.bf16.msra.mxu1 %v10862_v42  ;;  %v10889_v42 = vld [vmem:[#allocation8 + $0xb30] ss:$28 sps:$4 sm:$0xff]  }
 0x3a8   : > { %5627 = vmatmul.mubr.bf16.vlgmr.msra.gmra.mrb[64].mxu0 %v16447_v18  ;;  %5483 = vmatprep.subr.bf16.mxu1 %v10873_v34  ;;  %v16449_v34 = vld [vmem:[#allocation50_spill] sm:$0xff] }
 0x3a9   : > { %5636 = vmatprep.mubr.bf16.mxu0 %v16448_v53  ;;  %5708 = vmatpush1.bf16.msra.mxu0 %v10865_v16  ;;  %v10900_v16 = vld [vmem:[#allocation8 + $0xb6c] ss:$28 sps:$4 sm:$0xff]  }
 0x3aa   : > { %5709 = vmatprep.subr.bf16.mxu0 %v10870_v8  ;;  %v16450_v8 = vld [vmem:[#allocation78_spill] sm:$0xff] }
 0x3ab   : > { %5484 = vmatpush1.bf16.msra.mxu1 %v10871_v60  ;;  %v10877_v60 = vld [vmem:[#allocation8 + $0x438] ss:$28 sps:$4 sm:$0xff]  }
 0x3ac   : > { %5485 = vmatprep.subr.bf16.mxu1 %v10882_v51  ;;  %v10885_v51 = vld [vmem:[#allocation8 + $0x474] ss:$28 sps:$4 sm:$0xff]  }
 0x3ad   : > { %5710 = vmatpush1.bf16.msra.mxu0 %v10868_v57  ;;  %v10898_v57 = vld [vmem:[#allocation8 + $0xb68] ss:$28 sps:$4 sm:$0xff]  }
 0x3ae   : > { %5411 = vmatmul.mubr.bf16.gmra.mrb[116].mxu1 %v13591_v49  ;;  %5711 = vmatprep.subr.bf16.mxu0 %v10876_v48  ;;  %v10883_v48 = vld [vmem:[#allocation8 + $0x470] ss:$28 sps:$4 sm:$0xff]  }
 0x3af   : > { %5420 = vmatprep.mubr.bf16.mxu1 %v13655_v45  ;;  %5486 = vmatpush1.bf16.msra.mxu1 %v10880_v35  ;;  %v10888_v35 = vld [vmem:[#allocation8 + $0x4ac] ss:$28 sps:$4 sm:$0xff]  }
 0x3b0   : > { %5637 = vmatmul.mubr.bf16.gmra.mrb[68].mxu0 %v16449_v34  ;;  %5487 = vmatprep.subr.bf16.mxu1 %v10891_v59  ;;  %v16451_v45 = vld [vmem:[#allocation64_spill] sm:$0xff]  ;;  %v16452_v49 = vld [vmem:[#allocation57_spill] sm:$0xff] }
 0x3b1   : > { %5646 = vmatprep.mubr.bf16.mxu0 %v16450_v8  ;;  %5712 = vmatpush1.bf16.msra.mxu0 %v10874_v54  ;;  %v10907_v59 = vld [vmem:[#allocation8 + $0xba0] ss:$28 sps:$4 sm:$0xff]  }
 0x3b2   : > { %5713 = vmatprep.subr.bf16.mxu0 %v10879_v61  ;;  %v10918_v61 = vld [vmem:[#allocation8 + $0xbdc] ss:$28 sps:$4 sm:$0xff]  }
 0x3b3   : > { %5488 = vmatpush1.bf16.msra.mxu1 %v10889_v42  ;;  %v16454_v42 = vld [vmem:[#allocation58_spill] sm:$0xff] }
 0x3b4   : > { %5489 = vmatprep.subr.bf16.mxu1 %v10900_v16 }
 0x3b5   : > { %5714 = vmatpush1.bf16.msra.mxu0 %v10877_v60  ;;  %v10886_v60 = vld [vmem:[#allocation8 + $0x4a8] ss:$28 sps:$4 sm:$0xff]  }
 0x3b6   : > { %5421 = vmatmul.mubr.bf16.gmra.mrb[120].mxu1 %v13611_v3  ;;  %5715 = vmatprep.subr.bf16.mxu0 %v10885_v51  ;;  %v13842_v54 = vpop.f32.mrb[80].mxu1  ;;  %v10894_v51 = vld [vmem:[#allocation8 + $0x4e4] ss:$28 sps:$4 sm:$0xff]  }
 0x3b7   : > { %5430 = vmatprep.mubr.bf16.mxu1 %v16451_v45  ;;  %5490 = vmatpush1.bf16.msra.mxu1 %v10898_v57  ;;  %16453 = vst [vmem:[#allocation90_spill] sm:$0xff] %v13842_v54  ;;  %v13845_v16 = vpop.f32.mrb[81].mxu1  ;;  %v10916_v57 = vld [vmem:[#allocation8 + $0xbd8] ss:$28 sps:$4 sm:$0xff]   ;;  %v10892_v54 = vld [vmem:[#allocation8 + $0x4e0] ss:$28 sps:$4 sm:$0xff]  }
 0x3b8   : > { %5647 = vmatmul.mubr.bf16.gmra.mrb[72].mxu0 %v16452_v49  ;;  %5491 = vmatprep.subr.bf16.mxu1 %v10909_v21  ;;  %v13847_v3 = vpop.f32.mrb[82].mxu1  ;;  %v10927_v45 = vld [vmem:[#allocation8 + $0xc14] ss:$28 sps:$4 sm:$0xff]   ;;  %v10897_v21 = vld [vmem:[#allocation8 + $0x51c] ss:$28 sps:$4 sm:$0xff]  }
 0x3b9   : > { %5656 = vmatprep.mubr.bf16.mxu0 %v16454_v42  ;;  %5716 = vmatpush1.bf16.msra.mxu0 %v10883_v48  ;;  %v13849_v8 = vpop.f32.mrb[83].mxu1  ;;  %v10925_v48 = vld [vmem:[#allocation8 + $0xc10] ss:$28 sps:$4 sm:$0xff]  }
 0x3ba   : > { %5717 = vmatprep.subr.bf16.mxu0 %v10888_v35  ;;  %16455 = vst [vmem:[#allocation53_spill] sm:$0xff] %v13849_v8  ;;  %v10937_v8 = vld [vmem:[#allocation8 + $0x1d8] ss:$28 sps:$4 sm:$0xff]  }
 0x3bb   : > { %5492 = vmatpush1.bf16.msra.mxu1 %v10907_v59 }
 0x3bc   : > { %5493 = vmatprep.subr.bf16.mxu1 %v10918_v61  ;;  %v10895_v61 = vld [vmem:[#allocation8 + $0x518] ss:$28 sps:$4 sm:$0xff]  }
 0x3bd   : > { %5718 = vmatpush1.bf16.msra.mxu0 %v10886_v60 }
 0x3be   : > { %5431 = vmatmul.mubr.bf16.gmra.mrb[124].mxu1 %v13623_v11  ;;  %5719 = vmatprep.subr.bf16.mxu0 %v10894_v51  ;;  %v10903_v51 = vld [vmem:[#allocation8 + $0x554] ss:$28 sps:$4 sm:$0xff]  }
 0x3bf   : > { %5440 = vmatprep.mubr.bf16.mxu1 %v13750_v36  ;;  %5494 = vmatpush1.bf16.msra.mxu1 %v10916_v57  ;;  %v13854_v35 = vpop.f32.mrb[84].mxu1  ;;  %v10901_v57 = vld [vmem:[#allocation8 + $0x550] ss:$28 sps:$4 sm:$0xff]  }
 0x3c0   : > { %5657 = vmatmul.mubr.bf16.gmra.mrb[76].mxu0 %v13398_v52  ;;  %5495 = vmatprep.subr.bf16.mxu1 %v10927_v45  ;;  %v13857_v59 = vpop.f32.mrb[85].mxu1  ;;  %v10906_v45 = vld [vmem:[#allocation8 + $0x58c] ss:$28 sps:$4 sm:$0xff]  }
 0x3c1   : > { %5666 = vmatprep.mubr.bf16.mxu0 %v13419_v24  ;;  %5720 = vmatpush1.bf16.msra.mxu0 %v10892_v54  ;;  %v13859_v60 = vpop.f32.mrb[86].mxu1 }
 0x3c2   : > { %5721 = vmatprep.subr.bf16.mxu0 %v10897_v21  ;;  %v13861_v11 = vpop.f32.mrb[87].mxu1 }
 0x3c3   : > { %16456 = vst [vmem:[#allocation59_spill] sm:$0xff] %v13861_v11  ;;  %5496 = vmatpush1.bf16.msra.mxu1 %v10925_v48  ;;  %v10904_v11 = vld [vmem:[#allocation8 + $0x588] ss:$28 sps:$4 sm:$0xff]  }
 0x3c4   : > { %9672 = vmatprep.subr.bf16.mxu1 %v10937_v8  ;;  %v10912_v48 = vld [vmem:[#allocation8 + $0x5c4] ss:$28 sps:$4 sm:$0xff]  }
 0x3c5   : > { %5722 = vmatpush1.bf16.msra.mxu0 %v10895_v61 }
 0x3c6   : > { %5441 = vmatmul.mubr.bf16.gmra.mrb[128].mxu1 %v13641_v1  ;;  %5723 = vmatprep.subr.bf16.mxu0 %v10903_v51  ;;  %v10910_v51 = vld [vmem:[#allocation8 + $0x5c0] ss:$28 sps:$4 sm:$0xff]  }
 0x3c7   : > { %5450 = vmatprep.mubr.bf16.mxu1 %v13770_v2  ;;  %v13866_v54 = vpop.f32.mrb[88].mxu1  ;;  %v10915_v2 = vld [vmem:[#allocation8 + $0x5fc] ss:$28 sps:$4 sm:$0xff]  }
 0x3c8   : > { %5667 = vmatmul.mubr.bf16.gmra.mrb[80].mxu0 %v13446_v43  ;;  %v13869_v21 = vpop.f32.mrb[89].mxu1 }
 0x3c9   : > { %5676 = vmatprep.mubr.bf16.mxu0 %v13455_v9  ;;  %5724 = vmatpush1.bf16.msra.mxu0 %v10901_v57  ;;  %16457 = vst [vmem:[#allocation70_spill] sm:$0xff] %v13869_v21  ;;  %v13871_v8 = vpop.f32.mrb[90].mxu1 }
 0x3ca   : > { %5725 = vmatprep.subr.bf16.mxu0 %v10906_v45  ;;  %16458 = vst [vmem:[#allocation71_spill] sm:$0xff] %v13871_v8  ;;  %v13873_v61 = vpop.f32.mrb[91].mxu1  ;;  %v10913_v8 = vld [vmem:[#allocation8 + $0x5f8] ss:$28 sps:$4 sm:$0xff]  }
 0x3cb   : > { %16459 = vst [vmem:[#allocation112_spill] sm:$0xff] %v13873_v61 }
 0x3cd   : > { %5726 = vmatpush1.bf16.msra.mxu0 %v10904_v11  ;;  %v10921_v11 = vld [vmem:[#allocation8 + $0x634] ss:$28 sps:$4 sm:$0xff]  }
 0x3ce   : > { %5451 = vmatmul.mubr.bf16.gmra.mrb[132].mxu1 %v13650_v44  ;;  %5727 = vmatprep.subr.bf16.mxu0 %v10912_v48  ;;  %v10919_v48 = vld [vmem:[#allocation8 + $0x630] ss:$28 sps:$4 sm:$0xff]  }
 0x3cf   : > { %5460 = vmatprep.mubr.bf16.mxu1 %v13782_v15  ;;  %v13878_v57 = vpop.f32.mrb[92].mxu1  ;;  %v10924_v15 = vld [vmem:[#allocation8 + $0x66c] ss:$28 sps:$4 sm:$0xff]  }
 0x3d0   : > { %5677 = vmatmul.mubr.bf16.gmra.mrb[84].mxu0 %v13497_v7  ;;  %v13881_v45 = vpop.f32.mrb[93].mxu1 }
 0x3d1   : > { %5686 = vmatprep.mubr.bf16.mxu0 %v13503_v14  ;;  %5728 = vmatpush1.bf16.msra.mxu0 %v10910_v51  ;;  %16460 = vst [vmem:[#allocation113_spill] sm:$0xff] %v13881_v45  ;;  %v13883_v61 = vpop.f32.mrb[94].mxu1 }
 0x3d2   : > { %5729 = vmatprep.subr.bf16.mxu0 %v10915_v2  ;;  %16461 = vst [vmem:[#allocation26_spill] sm:$0xff] %v13883_v61  ;;  %v13885_v21 = vpop.f32.mrb[95].mxu1  ;;  %v10922_v61 = vld [vmem:[#allocation8 + $0x668] ss:$28 sps:$4 sm:$0xff]  }
 0x3d3   : > { %16462 = vst [vmem:[#allocation27_spill] sm:$0xff] %v13885_v21 }
 0x3d5   : > { %5730 = vmatpush1.bf16.msra.mxu0 %v10913_v8  ;;  %v10930_v8 = vld [vmem:[#allocation8 + $0x6a4] ss:$28 sps:$4 sm:$0xff]  }
 0x3d6   : > { %5461 = vmatmul.mubr.bf16.gmra.mrb[136].mxu1 %v13679_v56  ;;  %5731 = vmatprep.subr.bf16.mxu0 %v10921_v11  ;;  %v10928_v11 = vld [vmem:[#allocation8 + $0x6a0] ss:$28 sps:$4 sm:$0xff]   ;;  %v16467_v56 = vmov 0  }
 0x3d7   : > { %5470 = vmatprep.mubr.bf16.mxu1 %v13790_v5  ;;  %v13890_v51 = vpop.f32.mrb[96].mxu1  ;;  %v10933_v5 = vld [vmem:[#allocation8 + $0x6dc] ss:$28 sps:$4 sm:$0xff]  }
 0x3d8   : > { %5687 = vmatmul.mubr.bf16.gmra.mrb[88].mxu0 %v13543_v22  ;;  %16463 = vst [vmem:[#allocation94_spill] sm:$0xff] %v13890_v51  ;;  %v13893_v2 = vpop.f32.mrb[97].mxu1  ;;  %v10934_v51 = vld [vmem:[#allocation8 + $0x710] ss:$28 sps:$4 sm:$0xff]  }
 0x3d9   : > { %5696 = vmatprep.mubr.bf16.mxu0 %v13547_v27  ;;  %5732 = vmatpush1.bf16.msra.mxu0 %v10919_v48  ;;  %16464 = vst [vmem:[#allocation95_spill] sm:$0xff] %v13893_v2  ;;  %v13895_v21 = vpop.f32.mrb[98].mxu1 }
 0x3da   : > { %5733 = vmatprep.subr.bf16.mxu0 %v10924_v15  ;;  %16465 = vst [vmem:[#allocation96_spill] sm:$0xff] %v13895_v21  ;;  %v13897_v45 = vpop.f32.mrb[99].mxu1  ;;  %v10931_v21 = vld [vmem:[#allocation8 + $0x6d8] ss:$28 sps:$4 sm:$0xff]  }
 0x3db   : > { %16466 = vst [vmem:[#allocation97_spill] sm:$0xff] %v13897_v45 }
 0x3dd   : > { %5734 = vmatpush1.bf16.msra.mxu0 %v10922_v61  ;;  %v10936_v61 = vld [vmem:[#allocation8 + $0x714] ss:$28 sps:$4 sm:$0xff]  }
 0x3de   : > { %5471 = vmatmul.mubr.bf16.gmra.mrb[140].mxu1 %v13699_v23  ;;  %5735 = vmatprep.subr.bf16.mxu0 %v10930_v8  ;;  %v10938_v8 = vld [vmem:[#allocation8 + $0x18] ss:$28 sps:$4 sm:$0xff]   ;;  %v10945_v23 = vld [vmem:[#allocation8 + $0x210] ss:$28 sps:$4 sm:$0xff]  }
 0x3df   : > { %5513 = vmatprep.mubr.bf16.mxu1 %v16467_v56 }
 0x3e0   : > { %5697 = vmatmul.mubr.bf16.gmra.mrb[92].mxu0 %v13574_v10  ;;  %v13902_v48 = vpop.f32.mrb[100].mxu1 }
 0x3e1   : > { %16468 = vst [vmem:[#allocation28_spill] sm:$0xff] %v13902_v48  ;;  %5736 = vmatpush1.bf16.msra.mxu0 %v10928_v11  ;;  %5739 = vmatprep.mubr.bf16.mxu0 %v16438_v30  ;;  %v13905_v15 = vpop.f32.mrb[101].mxu1  ;;  %v10941_v48 = vld [vmem:[#allocation8 + $0x74c] ss:$28 sps:$4 sm:$0xff]  }
 0x3e2   : > { %16469 = vst [vmem:[#allocation29_spill] sm:$0xff] %v13905_v15  ;;  %5737 = vmatprep.subr.bf16.mxu0 %v10933_v5  ;;  %v13907_v45 = vpop.f32.mrb[102].mxu1  ;;  %v10946_v11 = vld [vmem:[#allocation8 + $0x50] ss:$28 sps:$4 sm:$0xff]   ;;  %v10954_v15 = vld [vmem:[#allocation8 + $0x88] ss:$28 sps:$4 sm:$0xff]  }
 0x3e3   : > { %16470 = vst [vmem:[#allocation98_spill] sm:$0xff] %v13907_v45  ;;  %v13909_v2 = vpop.f32.mrb[103].mxu1  ;;  %v10953_v45 = vld [vmem:[#allocation8 + $0x248] ss:$28 sps:$4 sm:$0xff]  }
 0x3e4   : > { %16471 = vst [vmem:[#allocation99_spill] sm:$0xff] %v13909_v2 }
 0x3e5   : > { %5738 = vmatpush1.bf16.msra.mxu0 %v10931_v21  ;;  %v10939_v21 = vld [vmem:[#allocation8 + $0x748] ss:$28 sps:$4 sm:$0xff]  }
 0x3e6   : > { %5514 = vmatmul.mubr.bf16.vlgmr.msra.gmra.mrb[112].mxu1 %v13712_v19  ;;  %5820 = vmatprep.subr.bf16.mxu0 %v10936_v61  ;;  %v10944_v61 = vld [vmem:[#allocation8 + $0x784] ss:$28 sps:$4 sm:$0xff]  }
 0x3e7   : > { %9673 = vmatpush3.bf16.msra.mxu1 %v10938_v8  ;;  %5523 = vmatprep.mubr.bf16.mxu1 %v16467_v56 }
 0x3e8   : > { %5740 = vmatmul.mubr.bf16.vlgmr.msra.gmra.mrb[64].mxu0 %v16439_v31  ;;  %v13914_v5 = vpop.f32.mrb[104].mxu1  ;;  %9674 = vmatprep.subr.bf16.mxu1 %v10945_v23  ;;  %v10961_v31 = vld [vmem:[#allocation8 + $0x280] ss:$28 sps:$4 sm:$0xff]  }
 0x3e9   : > { %16472 = vst [vmem:[#allocation100_spill] sm:$0xff] %v13914_v5  ;;  %5749 = vmatprep.mubr.bf16.mxu0 %v16440_v13  ;;  %5821 = vmatpush1.bf16.msra.mxu0 %v10934_v51  ;;  %v13917_v2 = vpop.f32.mrb[105].mxu1  ;;  %v10942_v5 = vld [vmem:[#allocation8 + $0x780] ss:$28 sps:$4 sm:$0xff]  }
 0x3ea   : > { %5822 = vmatprep.subr.bf16.mxu0 %v10941_v48  ;;  %v13919_v19 = vpop.f32.mrb[106].mxu1  ;;  %v10949_v23 = vld [vmem:[#allocation8 + $0x7bc] ss:$28 sps:$4 sm:$0xff]  }
 0x3eb   : > { %v13921_v8 = vpop.f32.mrb[107].mxu1  ;;  %9675 = vmatpush3.bf16.msra.mxu1 %v10946_v11  ;;  %v10962_v51 = vld [vmem:[#allocation8 + $0xc0] ss:$28 sps:$4 sm:$0xff]   ;;  %v10947_v11 = vld [vmem:[#allocation8 + $0x7b8] ss:$28 sps:$4 sm:$0xff]  }
 0x3ec   : > { %16473 = vst [vmem:[#allocation101_spill] sm:$0xff] %v13921_v8  ;;  %9676 = vmatprep.subr.bf16.mxu1 %v10953_v45  ;;  %v10969_v8 = vld [vmem:[#allocation8 + $0x2b8] ss:$28 sps:$4 sm:$0xff]  }
 0x3ed   : > { %5823 = vmatpush1.bf16.msra.mxu0 %v10939_v21 }
 0x3ee   : > { %5524 = vmatmul.mubr.bf16.gmra.mrb[116].mxu1 %v13717_v62  ;;  %5824 = vmatprep.subr.bf16.mxu0 %v10944_v61  ;;  %v10952_v61 = vld [vmem:[#allocation8 + $0x7f4] ss:$28 sps:$4 sm:$0xff]  }
 0x3ef   : > { %5533 = vmatprep.mubr.bf16.mxu1 %v16467_v56  ;;  %9677 = vmatpush3.bf16.msra.mxu1 %v10954_v15  ;;  %v10970_v15 = vld [vmem:[#allocation8 + $0xf8] ss:$28 sps:$4 sm:$0xff]  }
 0x3f0   : > { %5750 = vmatmul.mubr.bf16.gmra.mrb[68].mxu0 %v13338_v33  ;;  %v13926_v48 = vpop.f32.mrb[108].mxu1  ;;  %9678 = vmatprep.subr.bf16.mxu1 %v10961_v31  ;;  %v10977_v33 = vld [vmem:[#allocation8 + $0x2f0] ss:$28 sps:$4 sm:$0xff]  }
 0x3f1   : > { %16474 = vst [vmem:[#allocation30_spill] sm:$0xff] %v13926_v48  ;;  %5759 = vmatprep.mubr.bf16.mxu0 %v13357_v28  ;;  %5825 = vmatpush1.bf16.msra.mxu0 %v10942_v5  ;;  %v13929_v45 = vpop.f32.mrb[109].mxu1  ;;  %v10950_v48 = vld [vmem:[#allocation8 + $0x7f0] ss:$28 sps:$4 sm:$0xff]  }
 0x3f2   : > { %5826 = vmatprep.subr.bf16.mxu0 %v10949_v23  ;;  %v13931_v21 = vpop.f32.mrb[110].mxu1  ;;  %v10957_v31 = vld [vmem:[#allocation8 + $0x82c] ss:$28 sps:$4 sm:$0xff]  }
 0x3f3   : > { %v13933_v62 = vpop.f32.mrb[111].mxu1  ;;  %9679 = vmatpush3.bf16.msra.mxu1 %v10962_v51  ;;  %v10978_v5 = vld [vmem:[#allocation8 + $0x130] ss:$28 sps:$4 sm:$0xff]   ;;  %v10985_v23 = vld [vmem:[#allocation8 + $0x328] ss:$28 sps:$4 sm:$0xff]  }
 0x3f4   : > { %9680 = vmatprep.subr.bf16.mxu1 %v10969_v8  ;;  %v10955_v51 = vld [vmem:[#allocation8 + $0x828] ss:$28 sps:$4 sm:$0xff]  }
 0x3f5   : > { %5827 = vmatpush1.bf16.msra.mxu0 %v10947_v11  ;;  %v10960_v8 = vld [vmem:[#allocation8 + $0x864] ss:$28 sps:$4 sm:$0xff]  }
 0x3f6   : > { %5534 = vmatmul.mubr.bf16.gmra.mrb[120].mxu1 %v13723_v25  ;;  %5828 = vmatprep.subr.bf16.mxu0 %v10952_v61  ;;  %v10986_v11 = vld [vmem:[#allocation8 + $0x168] ss:$28 sps:$4 sm:$0xff]   ;;  %v10993_v25 = vld [vmem:[#allocation8 + $0x360] ss:$28 sps:$4 sm:$0xff]  }
 0x3f7   : > { %5543 = vmatprep.mubr.bf16.mxu1 %v16467_v56  ;;  %9681 = vmatpush3.bf16.msra.mxu1 %v10970_v15  ;;  %v10958_v61 = vld [vmem:[#allocation8 + $0x860] ss:$28 sps:$4 sm:$0xff]  }
 0x3f8   : > { %5760 = vmatmul.mubr.bf16.gmra.mrb[72].mxu0 %v13373_v26  ;;  %9682 = vmatprep.subr.bf16.mxu1 %v10977_v33  ;;  %v10965_v15 = vld [vmem:[#allocation8 + $0x89c] ss:$28 sps:$4 sm:$0xff]  }
 0x3f9   : > { %5769 = vmatprep.mubr.bf16.mxu0 %v13393_v63  ;;  %5829 = vmatpush1.bf16.msra.mxu0 %v10950_v48  ;;  %v10994_v33 = vld [vmem:[#allocation8 + $0x1a0] ss:$28 sps:$4 sm:$0xff]   ;;  %v10998_v48 = vld [vmem:[#allocation8 + $0x558] ss:$28 sps:$4 sm:$0xff]  }
 0x3fa   : > { %5830 = vmatprep.subr.bf16.mxu0 %v10957_v31  ;;  %v10963_v31 = vld [vmem:[#allocation8 + $0x898] ss:$28 sps:$4 sm:$0xff]  }
 0x3fb   : > { %9683 = vmatpush3.bf16.msra.mxu1 %v10978_v5  ;;  %v10968_v5 = vld [vmem:[#allocation8 + $0x8d4] ss:$28 sps:$4 sm:$0xff]  }
 0x3fc   : > { %9684 = vmatprep.subr.bf16.mxu1 %v10985_v23  ;;  %v10966_v23 = vld [vmem:[#allocation8 + $0x8d0] ss:$28 sps:$4 sm:$0xff]  }
 0x3fd   : > { %5831 = vmatpush1.bf16.msra.mxu0 %v10955_v51  ;;  %v10973_v51 = vld [vmem:[#allocation8 + $0x90c] ss:$28 sps:$4 sm:$0xff]  }
 0x3fe   : > { %5544 = vmatmul.mubr.bf16.gmra.mrb[124].mxu1 %v13739_v38  ;;  %5832 = vmatprep.subr.bf16.mxu0 %v10960_v8  ;;  %v10976_v8 = vld [vmem:[#allocation8 + $0x944] ss:$28 sps:$4 sm:$0xff]  }
 0x3ff   : > { %5553 = vmatprep.mubr.bf16.mxu1 %v16467_v56  ;;  %9685 = vmatpush3.bf16.msra.mxu1 %v10986_v11  ;;  %v10974_v11 = vld [vmem:[#allocation8 + $0x940] ss:$28 sps:$4 sm:$0xff]  }
 0x400   : > { %5770 = vmatmul.mubr.bf16.gmra.mrb[76].mxu0 %v13409_v46  ;;  %9686 = vmatprep.subr.bf16.mxu1 %v10993_v25  ;;  %v10971_v25 = vld [vmem:[#allocation8 + $0x908] ss:$28 sps:$4 sm:$0xff]  }
 0x401   : > { %5779 = vmatprep.mubr.bf16.mxu0 %v16441_v20  ;;  %5833 = vmatpush1.bf16.msra.mxu0 %v10958_v61  ;;  %v10981_v61 = vld [vmem:[#allocation8 + $0x97c] ss:$28 sps:$4 sm:$0xff]  }
 0x402   : > { %5834 = vmatprep.subr.bf16.mxu0 %v10965_v15  ;;  %v10979_v15 = vld [vmem:[#allocation8 + $0x978] ss:$28 sps:$4 sm:$0xff]  }
 0x403   : > { %9687 = vmatpush3.bf16.msra.mxu1 %v10994_v33  ;;  %v10984_v33 = vld [vmem:[#allocation8 + $0x9b4] ss:$28 sps:$4 sm:$0xff]  }
 0x404   : > { %9736 = vmatprep.subr.bf16.mxu1 %v10998_v48  ;;  %v10982_v48 = vld [vmem:[#allocation8 + $0x9b0] ss:$28 sps:$4 sm:$0xff]  }
 0x405   : > { %5835 = vmatpush1.bf16.msra.mxu0 %v10963_v31  ;;  %v10989_v31 = vld [vmem:[#allocation8 + $0x9ec] ss:$28 sps:$4 sm:$0xff]  }
 0x406   : > { %5554 = vmatmul.mubr.bf16.gmra.mrb[128].mxu1 %v13743_v12  ;;  %5836 = vmatprep.subr.bf16.mxu0 %v10968_v5  ;;  %v10987_v5 = vld [vmem:[#allocation8 + $0x9e8] ss:$28 sps:$4 sm:$0xff]  }
 0x407   : > { %5563 = vmatprep.mubr.bf16.mxu1 %v16467_v56 }
 0x408   : > { %5780 = vmatmul.mubr.bf16.gmra.mrb[80].mxu0 %v16442_v0 }
 0x409   : > { %5789 = vmatprep.mubr.bf16.mxu0 %v16443_v32  ;;  %5837 = vmatpush1.bf16.msra.mxu0 %v10966_v23  ;;  %v10992_v23 = vld [vmem:[#allocation8 + $0xa24] ss:$28 sps:$4 sm:$0xff]  }
 0x40a   : > { %5838 = vmatprep.subr.bf16.mxu0 %v10973_v51  ;;  %v10990_v51 = vld [vmem:[#allocation8 + $0xa20] ss:$28 sps:$4 sm:$0xff]  }
 0x40d   : > { %5839 = vmatpush1.bf16.msra.mxu0 %v10971_v25  ;;  %v10997_v25 = vld [vmem:[#allocation8 + $0xa5c] ss:$28 sps:$4 sm:$0xff]  }
 0x40e   : > { %5564 = vmatmul.mubr.bf16.gmra.mrb[132].mxu1 %v13755_v58  ;;  %5840 = vmatprep.subr.bf16.mxu0 %v10976_v8  ;;  %v10995_v8 = vld [vmem:[#allocation8 + $0xa58] ss:$28 sps:$4 sm:$0xff]  }
 0x40f   : > { %5573 = vmatprep.mubr.bf16.mxu1 %v16467_v56 }
 0x410   : > { %5790 = vmatmul.mubr.bf16.gmra.mrb[84].mxu0 %v13501_v55 }
 0x411   : > { %5799 = vmatprep.mubr.bf16.mxu0 %v13517_v37  ;;  %5841 = vmatpush1.bf16.msra.mxu0 %v10974_v11  ;;  %v11008_v11 = vld [vmem:[#allocation8 + $0xa94] ss:$28 sps:$4 sm:$0xff]  }
 0x412   : > { %5842 = vmatprep.subr.bf16.mxu0 %v10981_v61  ;;  %v10999_v61 = vld [vmem:[#allocation8 + $0x398] ss:$28 sps:$4 sm:$0xff]  }
 0x415   : > { %5843 = vmatpush1.bf16.msra.mxu0 %v10979_v15  ;;  %v11000_v15 = vld [vmem:[#allocation8 + $0x590] ss:$28 sps:$4 sm:$0xff]  }
 0x416   : > { %5574 = vmatmul.mubr.bf16.gmra.mrb[136].mxu1 %v13758_v39  ;;  %5844 = vmatprep.subr.bf16.mxu0 %v10984_v33  ;;  %v11006_v33 = vld [vmem:[#allocation8 + $0xa90] ss:$28 sps:$4 sm:$0xff]  }
 0x417   : > { %5583 = vmatprep.mubr.bf16.mxu1 %v16467_v56 }
 0x418   : > { %5800 = vmatmul.mubr.bf16.gmra.mrb[88].mxu0 %v13553_v41 }
 0x419   : > { %5809 = vmatprep.mubr.bf16.mxu0 %v13561_v4  ;;  %5845 = vmatpush1.bf16.msra.mxu0 %v10982_v48  ;;  %v11013_v48 = vld [vmem:[#allocation8 + $0xacc] ss:$28 sps:$4 sm:$0xff]  }
 0x41a   : > { %5846 = vmatprep.subr.bf16.mxu0 %v10989_v31  ;;  %v11002_v31 = vld [vmem:[#allocation8 + $0x5c8] ss:$28 sps:$4 sm:$0xff]  }
 0x41d   : > { %5847 = vmatpush1.bf16.msra.mxu0 %v10987_v5  ;;  %v11011_v5 = vld [vmem:[#allocation8 + $0xac8] ss:$28 sps:$4 sm:$0xff]  }
 0x41e   : > { %5584 = vmatmul.mubr.bf16.gmra.mrb[140].mxu1 %v13762_v50  ;;  %5848 = vmatprep.subr.bf16.mxu0 %v10992_v23  ;;  %v11016_v23 = vld [vmem:[#allocation8 + $0xb04] ss:$28 sps:$4 sm:$0xff]   ;;  %v16507_v50 = vld [vmem:[#allocation101_spill] sm:$0xff] }
 0x41f   : > { %6078 = vmatprep.mubr.bf16.mxu1 %v16446_v40  ;;  %v11001_v40 = vld [vmem:[#allocation8 + $0x3d0] ss:$28 sps:$4 sm:$0xff]  }
 0x420   : > { %5810 = vmatmul.mubr.bf16.gmra.mrb[92].mxu0 %v16444_v47 }
 0x421   : > { %5849 = vmatpush1.bf16.msra.mxu0 %v10990_v51  ;;  %5852 = vmatprep.mubr.bf16.mxu0 %v16445_v17  ;;  %v11003_v51 = vld [vmem:[#allocation8 + $0x408] ss:$28 sps:$4 sm:$0xff]  }
 0x422   : > { %5850 = vmatprep.subr.bf16.mxu0 %v10997_v25  ;;  %v11014_v25 = vld [vmem:[#allocation8 + $0xb00] ss:$28 sps:$4 sm:$0xff]  }
 0x425   : > { %5851 = vmatpush1.bf16.msra.mxu0 %v10995_v8  ;;  %v16475_v8 = vld [vmem:[#allocation78_spill] sm:$0xff] }
 0x426   : > { %6079 = vmatmul.mubr.bf16.vlgmr.msra.gmra.mrb[144].mxu1 %v16447_v18  ;;  %5933 = vmatprep.subr.bf16.mxu0 %v11008_v11  ;;  %v11004_v18 = vld [vmem:[#allocation8 + $0x600] ss:$28 sps:$4 sm:$0xff]  }
 0x427   : > { %6086 = vmatprep.mubr.bf16.mxu1 %v16448_v53  ;;  %9737 = vmatpush3.bf16.msra.mxu1 %v10999_v61  ;;  %v11021_v53 = vld [vmem:[#allocation8 + $0xb3c] ss:$28 sps:$4 sm:$0xff]   ;;  %v16476_v61 = vld [vmem:[#allocation72_spill] sm:$0xff] }
 0x428   : > { %5853 = vmatmul.mubr.bf16.vlgmr.msra.gmra.mrb[64].mxu0 %v13579_v6  ;;  %9738 = vmatprep.subr.bf16.mxu1 %v11000_v15  ;;  %v11005_v11 = vld [vmem:[#allocation8 + $0x440] ss:$28 sps:$4 sm:$0xff]   ;;  %v11009_v15 = vld [vmem:[#allocation8 + $0x638] ss:$28 sps:$4 sm:$0xff]  }
 0x429   : > { %5862 = vmatprep.mubr.bf16.mxu0 %v13632_v29  ;;  %5934 = vmatpush1.bf16.msra.mxu0 %v11006_v33  ;;  %v16477_v33 = vld [vmem:[#allocation84_spill] sm:$0xff]  ;;  %v16503_v29 = vld [vmem:[#allocation99_spill] sm:$0xff] }
 0x42a   : > { %5935 = vmatprep.subr.bf16.mxu0 %v11013_v48  ;;  %v11019_v48 = vld [vmem:[#allocation8 + $0xb38] ss:$28 sps:$4 sm:$0xff]  }
 0x42b   : > { %9739 = vmatpush3.bf16.msra.mxu1 %v11001_v40  ;;  %v11024_v40 = vld [vmem:[#allocation8 + $0xb74] ss:$28 sps:$4 sm:$0xff]  }
 0x42c   : > { %9740 = vmatprep.subr.bf16.mxu1 %v11002_v31  ;;  %v11010_v31 = vld [vmem:[#allocation8 + $0x478] ss:$28 sps:$4 sm:$0xff]  }
 0x42d   : > { %5936 = vmatpush1.bf16.msra.mxu0 %v11011_v5  ;;  %v11022_v5 = vld [vmem:[#allocation8 + $0xb70] ss:$28 sps:$4 sm:$0xff]  }
 0x42e   : > { %6087 = vmatmul.mubr.bf16.gmra.mrb[148].mxu1 %v16449_v34  ;;  %5937 = vmatprep.subr.bf16.mxu0 %v11016_v23  ;;  %v11017_v34 = vld [vmem:[#allocation8 + $0x670] ss:$28 sps:$4 sm:$0xff]  }
 0x42f   : > { %6094 = vmatprep.mubr.bf16.mxu1 %v16475_v8  ;;  %9741 = vmatpush3.bf16.msra.mxu1 %v11003_v51  ;;  %v11029_v23 = vld [vmem:[#allocation8 + $0xbac] ss:$28 sps:$4 sm:$0xff]  }
 0x430   : > { %5863 = vmatmul.mubr.bf16.gmra.mrb[68].mxu0 %v16476_v61  ;;  %9742 = vmatprep.subr.bf16.mxu1 %v11004_v18  ;;  %v11018_v51 = vld [vmem:[#allocation8 + $0x4b0] ss:$28 sps:$4 sm:$0xff]   ;;  %v11027_v8 = vld [vmem:[#allocation8 + $0xba8] ss:$28 sps:$4 sm:$0xff]  }
 0x431   : > { %5872 = vmatprep.mubr.bf16.mxu0 %v16477_v33  ;;  %5938 = vmatpush1.bf16.msra.mxu0 %v11014_v25  ;;  %v16478_v18 = vld [vmem:[#allocation81_spill] sm:$0xff] }
 0x432   : > { %5939 = vmatprep.subr.bf16.mxu0 %v11021_v53  ;;  %v11025_v25 = vld [vmem:[#allocation8 + $0x6a8] ss:$28 sps:$4 sm:$0xff]  }
 0x433   : > { %9743 = vmatpush3.bf16.msra.mxu1 %v11005_v11  ;;  %v16479_v53 = vld [vmem:[#allocation64_spill] sm:$0xff] }
 0x434   : > { %9744 = vmatprep.subr.bf16.mxu1 %v11009_v15  ;;  %v11032_v11 = vld [vmem:[#allocation8 + $0xbe4] ss:$28 sps:$4 sm:$0xff]  }
 0x435   : > { %5940 = vmatpush1.bf16.msra.mxu0 %v11019_v48  ;;  %v11026_v48 = vld [vmem:[#allocation8 + $0x4e8] ss:$28 sps:$4 sm:$0xff]  }
 0x436   : > { %6095 = vmatmul.mubr.bf16.gmra.mrb[152].mxu1 %v16452_v49  ;;  %5941 = vmatprep.subr.bf16.mxu0 %v11024_v40  ;;  %v16480_v49 = vld [vmem:[#allocation90_spill] sm:$0xff] }
 0x437   : > { %6102 = vmatprep.mubr.bf16.mxu1 %v16454_v42  ;;  %9745 = vmatpush3.bf16.msra.mxu1 %v11010_v31  ;;  %v11033_v42 = vld [vmem:[#allocation8 + $0x6e0] ss:$28 sps:$4 sm:$0xff]  }
 0x438   : > { %5873 = vmatmul.mubr.bf16.gmra.mrb[72].mxu0 %v16478_v18  ;;  %9746 = vmatprep.subr.bf16.mxu1 %v11017_v34  ;;  %v11030_v18 = vld [vmem:[#allocation8 + $0xbe0] ss:$28 sps:$4 sm:$0xff]  }
 0x439   : > { %5882 = vmatprep.mubr.bf16.mxu0 %v16479_v53  ;;  %5942 = vmatpush1.bf16.msra.mxu0 %v11022_v5  ;;  %v16481_v53 = vld [vmem:[#allocation53_spill] sm:$0xff] }
 0x43a   : > { %5943 = vmatprep.subr.bf16.mxu0 %v11029_v23 }
 0x43b   : > { %v5063_v15 = vpop.f32.mrb[32].mxu0  ;;  %9747 = vmatpush3.bf16.msra.mxu1 %v11018_v51  ;;  %v11037_v51 = vld [vmem:[#allocation8 + $0xc1c] ss:$28 sps:$4 sm:$0xff]  }
 0x43c   : > { %v13972_v40 = vadd.f32 %v5063_v15, %v16480_v49  ;;  %v5065_v33 = vpop.f32.mrb[33].mxu0  ;;  %9748 = vmatprep.subr.bf16.mxu1 %v11025_v25  ;;  %v11034_v25 = vld [vmem:[#allocation8 + $0x520] ss:$28 sps:$4 sm:$0xff]  }
 0x43d   : > { %v13975_v31 = vadd.f32 %v5065_v33, %v13845_v16  ;;  %v5067_v34 = vpop.f32.mrb[34].mxu0  ;;  %5944 = vmatpush1.bf16.msra.mxu0 %v11027_v8  ;;  %v16482_v33 = vld [vmem:[#allocation82_spill] sm:$0xff] }
 0x43e   : > { %v13978_v5 = vadd.f32 %v5067_v34, %v13847_v3  ;;  %v5069_v23 = vpop.f32.mrb[35].mxu0  ;;  %6103 = vmatmul.mubr.bf16.gmra.mrb[156].mxu1 %v13398_v52  ;;  %5945 = vmatprep.subr.bf16.mxu0 %v11032_v11  ;;  %v11038_v3 = vld [vmem:[#allocation8 + $0x8d8] ss:$28 sps:$4 sm:$0xff]  }
 0x43f   : > { %v13982_v15 = vadd.f32 %v5069_v23, %v16481_v53  ;;  %6110 = vmatprep.mubr.bf16.mxu1 %v13419_v24  ;;  %9749 = vmatpush3.bf16.msra.mxu1 %v11026_v48  ;;  %v11035_v52 = vld [vmem:[#allocation8 + $0xc18] ss:$28 sps:$4 sm:$0xff]  }
 0x440   : > { %v6436_v16 = vadd.f32 %v13978_v5, %v13972_v40  ;;  %5883 = vmatmul.mubr.bf16.gmra.mrb[76].mxu0 %v16482_v33  ;;  %9750 = vmatprep.subr.bf16.mxu1 %v11033_v42 }
 0x441   : > { %v6457_v8 = vadd.f32 %v13982_v15, %v13975_v31  ;;  %5892 = vmatprep.mubr.bf16.mxu0 %v13750_v36  ;;  %5946 = vmatpush1.bf16.msra.mxu0 %v11030_v18  ;;  %v16500_v36 = vld [vmem:[#allocation29_spill] sm:$0xff] }
 0x442   : > { %5947 = vmatprep.subr.bf16.mxu0 %v11037_v51  ;;  %v16483_v51 = vld [vmem:[#allocation59_spill] sm:$0xff] }
 0x443   : > { %v5073_v53 = vpop.f32.mrb[36].mxu0  ;;  %9751 = vmatpush3.bf16.msra.mxu1 %v11034_v25 }
 0x444   : > { %v13992_v24 = vadd.f32 %v5073_v53, %v13854_v35  ;;  %v5075_v11 = vpop.f32.mrb[37].mxu0  ;;  %9800 = vmatprep.subr.bf16.mxu1 %v11038_v3 }
 0x445   : > { %v13995_v48 = vadd.f32 %v5075_v11, %v13857_v59  ;;  %v5077_v49 = vpop.f32.mrb[38].mxu0  ;;  %5948 = vmatpush1.bf16.msra.mxu0 %v11035_v52  ;;  %v16485_v52 = vld [vmem:[#allocation70_spill] sm:$0xff] }
 0x446   : > { %v6437_v42 = vadd.f32 %v13992_v24, %v6436_v16  ;;  %v13999_v34 = vadd.f32 %v5077_v49, %v13859_v60  ;;  %v5079_v18 = vpop.f32.mrb[39].mxu0  ;;  %6111 = vmatmul.mubr.bf16.gmra.mrb[160].mxu1 %v13446_v43  ;;  %v16484_v16 = vld [vmem:[#allocation68_spill] sm:$0xff] }
 0x447   : > { %v6458_v23 = vadd.f32 %v13995_v48, %v6457_v8  ;;  %v14004_v35 = vadd.f32 %v5079_v18, %v16483_v51  ;;  %6118 = vmatprep.mubr.bf16.mxu1 %v13455_v9  ;;  %v16486_v9 = vld [vmem:[#allocation71_spill] sm:$0xff] }
 0x448   : > { %v6438_v59 = vadd.f32 %v13999_v34, %v6437_v42  ;;  %5893 = vmatmul.mubr.bf16.gmra.mrb[80].mxu0 %v13641_v1 }
 0x449   : > { %v6459_v25 = vadd.f32 %v14004_v35, %v6458_v23  ;;  %5902 = vmatprep.mubr.bf16.mxu0 %v16484_v16  ;;  %v16487_v23 = vld [vmem:[#allocation112_spill] sm:$0xff]  ;;  %v16495_v16 = vld [vmem:[#allocation95_spill] sm:$0xff] }
 0x44b   : > { %v5083_v60 = vpop.f32.mrb[40].mxu0 }
 0x44c   : > { %v14012_v3 = vadd.f32 %v5083_v60, %v13866_v54  ;;  %v5085_v43 = vpop.f32.mrb[41].mxu0 }
 0x44d   : > { %v14015_v8 = vadd.f32 %v5085_v43, %v16485_v52  ;;  %v5087_v53 = vpop.f32.mrb[42].mxu0 }
 0x44e   : > { %v6439_v11 = vadd.f32 %v14012_v3, %v6438_v59  ;;  %v14019_v49 = vadd.f32 %v5087_v53, %v16486_v9  ;;  %v5089_v42 = vpop.f32.mrb[43].mxu0  ;;  %6119 = vmatmul.mubr.bf16.gmra.mrb[164].mxu1 %v13497_v7  ;;  %v16488_v59 = vld [vmem:[#allocation69_spill] sm:$0xff] }
 0x44f   : > { %v6460_v18 = vadd.f32 %v14015_v8, %v6459_v25  ;;  %v14024_v51 = vadd.f32 %v5089_v42, %v16487_v23  ;;  %6126 = vmatprep.mubr.bf16.mxu1 %v13503_v14  ;;  %v16489_v53 = vld [vmem:[#allocation113_spill] sm:$0xff]  ;;  %v16490_v14 = vld [vmem:[#allocation26_spill] sm:$0xff] }
 0x450   : > { %v6440_v54 = vadd.f32 %v14019_v49, %v6439_v11  ;;  %5903 = vmatmul.mubr.bf16.gmra.mrb[84].mxu0 %v13650_v44 }
 0x451   : > { %v6461_v60 = vadd.f32 %v14024_v51, %v6460_v18  ;;  %5912 = vmatprep.mubr.bf16.mxu0 %v16488_v59  ;;  %v16491_v59 = vld [vmem:[#allocation27_spill] sm:$0xff] }
 0x453   : > { %v5093_v43 = vpop.f32.mrb[44].mxu0 }
 0x454   : > { %v14032_v52 = vadd.f32 %v5093_v43, %v13878_v57  ;;  %v5095_v7 = vpop.f32.mrb[45].mxu0  ;;  %v16492_v43 = vld [vmem:[#allocation65_spill] sm:$0xff] }
 0x455   : > { %v14035_v25 = vadd.f32 %v5095_v7, %v16489_v53  ;;  %v5097_v9 = vpop.f32.mrb[46].mxu0 }
 0x456   : > { %v6441_v42 = vadd.f32 %v14032_v52, %v6440_v54  ;;  %v14039_v23 = vadd.f32 %v5097_v9, %v16490_v14  ;;  %v5099_v11 = vpop.f32.mrb[47].mxu0  ;;  %6127 = vmatmul.mubr.bf16.gmra.mrb[168].mxu1 %v13543_v22  ;;  %v16493_v54 = vld [vmem:[#allocation89_spill] sm:$0xff]  ;;  %v16494_v9 = vld [vmem:[#allocation94_spill] sm:$0xff] }
 0x457   : > { %v6462_v18 = vadd.f32 %v14035_v25, %v6461_v60  ;;  %v14044_v44 = vadd.f32 %v5099_v11, %v16491_v59  ;;  %6134 = vmatprep.mubr.bf16.mxu1 %v13547_v27  ;;  %v16496_v27 = vld [vmem:[#allocation96_spill] sm:$0xff] }
 0x458   : > { %v6442_v57 = vadd.f32 %v14039_v23, %v6441_v42  ;;  %5913 = vmatmul.mubr.bf16.gmra.mrb[88].mxu0 %v16492_v43 }
 0x459   : > { %v6463_v7 = vadd.f32 %v14044_v44, %v6462_v18  ;;  %5922 = vmatprep.mubr.bf16.mxu0 %v16493_v54  ;;  %v16497_v54 = vld [vmem:[#allocation97_spill] sm:$0xff] }
 0x45b   : > { %v5103_v53 = vpop.f32.mrb[48].mxu0 }
 0x45c   : > { %v14052_v14 = vadd.f32 %v5103_v53, %v16494_v9  ;;  %v5105_v22 = vpop.f32.mrb[49].mxu0 }
 0x45d   : > { %v14055_v60 = vadd.f32 %v5105_v22, %v16495_v16  ;;  %v5107_v59 = vpop.f32.mrb[50].mxu0  ;;  %v16498_v16 = vld [vmem:[#allocation85_spill] sm:$0xff]  ;;  %v11039_v22 = vld [vmem:[#allocation8 + $0x718] ss:$28 sps:$4 sm:$0xff]  }
 0x45e   : > { %v6443_v11 = vadd.f32 %v14052_v14, %v6442_v57  ;;  %v14059_v1 = vadd.f32 %v5107_v59, %v16496_v27  ;;  %v5109_v42 = vpop.f32.mrb[51].mxu0  ;;  %6135 = vmatmul.mubr.bf16.gmra.mrb[172].mxu1 %v13574_v10  ;;  %v16499_v59 = vld [vmem:[#allocation28_spill] sm:$0xff] }
 0x45f   : > { %v6464_v18 = vadd.f32 %v14055_v60, %v6463_v7  ;;  %v14064_v43 = vadd.f32 %v5109_v42, %v16497_v54  ;;  %6175 = vmatprep.mubr.bf16.mxu1 %v16438_v30  ;;  %v11040_v7 = vld [vmem:[#allocation8 + $0x910] ss:$28 sps:$4 sm:$0xff]  }
 0x460   : > { %v6444_v53 = vadd.f32 %v14059_v1, %v6443_v11  ;;  %5923 = vmatmul.mubr.bf16.gmra.mrb[92].mxu0 %v16498_v16  ;;  %v16501_v11 = vld [vmem:[#allocation98_spill] sm:$0xff] }
 0x461   : > { %v6465_v9 = vadd.f32 %v14064_v43, %v6464_v18  ;;  %5965 = vmatprep.mubr.bf16.mxu0 %v16467_v56  ;;  %v16502_v18 = vld [vmem:[#allocation55_spill] sm:$0xff] }
 0x463   : > { %v5113_v57 = vpop.f32.mrb[52].mxu0 }
 0x464   : > { %v14072_v27 = vadd.f32 %v5113_v57, %v16499_v59  ;;  %v5115_v10 = vpop.f32.mrb[53].mxu0  ;;  %v11041_v57 = vld [vmem:[#allocation8 + $0x750] ss:$28 sps:$4 sm:$0xff]  }
 0x465   : > { %v14075_v54 = vadd.f32 %v5115_v10, %v16500_v36  ;;  %v5117_v42 = vpop.f32.mrb[54].mxu0  ;;  %v16504_v59 = vld [vmem:[#allocation86_spill] sm:$0xff] }
 0x466   : > { %v6445_v30 = vadd.f32 %v14072_v27, %v6444_v53  ;;  %v14079_v33 = vadd.f32 %v5117_v42, %v16501_v11  ;;  %v5119_v16 = vpop.f32.mrb[55].mxu0  ;;  %6176 = vmatmul.mubr.bf16.vlgmr.msra.gmra.mrb[176].mxu1 %v16502_v18  ;;  %v11042_v53 = vld [vmem:[#allocation8 + $0x948] ss:$28 sps:$4 sm:$0xff]  }
 0x467   : > { %v6466_v61 = vadd.f32 %v14075_v54, %v6465_v9  ;;  %v14084_v6 = vadd.f32 %v5119_v16, %v16503_v29  ;;  %6183 = vmatprep.mubr.bf16.mxu1 %v16440_v13  ;;  %9801 = vmatpush3.bf16.msra.mxu1 %v11039_v22  ;;  %v11043_v9 = vld [vmem:[#allocation8 + $0x788] ss:$28 sps:$4 sm:$0xff]   ;;  %v11044_v13 = vld [vmem:[#allocation8 + $0x980] ss:$28 sps:$4 sm:$0xff]  }
 0x468   : > { %v6446_v36 = vadd.f32 %v14079_v33, %v6445_v30  ;;  %5966 = vmatmul.mubr.bf16.vlgmr.msra.gmra.mrb[64].mxu0 %v16504_v59  ;;  %9802 = vmatprep.subr.bf16.mxu1 %v11040_v7  ;;  %v16505_v11 = vld [vmem:[#allocation100_spill] sm:$0xff] }
 0x469   : > { %v6467_v10 = vadd.f32 %v14084_v6, %v6466_v61  ;;  %5975 = vmatprep.mubr.bf16.mxu0 %v16467_v56  ;;  %v16506_v59 = vld [vmem:[#allocation76_spill] sm:$0xff] }
 0x46b   : > { %v5123_v42 = vpop.f32.mrb[56].mxu0  ;;  %9803 = vmatpush3.bf16.msra.mxu1 %v11041_v57 }
 0x46c   : > { %v14092_v29 = vadd.f32 %v5123_v42, %v16505_v11  ;;  %v5125_v16 = vpop.f32.mrb[57].mxu0  ;;  %9804 = vmatprep.subr.bf16.mxu1 %v11042_v53  ;;  %v11045_v53 = vld [vmem:[#allocation8 + $0x7c0] ss:$28 sps:$4 sm:$0xff]   ;;  %v16508_v11 = vld [vmem:[#allocation66_spill] sm:$0xff] }
 0x46d   : > { %v14095_v22 = vadd.f32 %v5125_v16, %v13917_v2  ;;  %v5127_v30 = vpop.f32.mrb[58].mxu0  ;;  %v16509_v16 = vld [vmem:[#allocation30_spill] sm:$0xff] }
 0x46e   : > { %v6447_v7 = vadd.f32 %v14092_v29, %v6446_v36  ;;  %v14099_v18 = vadd.f32 %v5127_v30, %v13919_v19  ;;  %v5129_v61 = vpop.f32.mrb[59].mxu0  ;;  %6184 = vmatmul.mubr.bf16.gmra.mrb[180].mxu1 %v16506_v59  ;;  %v11046_v36 = vld [vmem:[#allocation8 + $0x9b8] ss:$28 sps:$4 sm:$0xff]  }
 0x46f   : > { %v6468_v57 = vadd.f32 %v14095_v22, %v6467_v10  ;;  %v14104_v42 = vadd.f32 %v5129_v61, %v16507_v50  ;;  %6191 = vmatprep.mubr.bf16.mxu1 %v13357_v28  ;;  %9805 = vmatpush3.bf16.msra.mxu1 %v11043_v9  ;;  %v11047_v10 = vld [vmem:[#allocation8 + $0x7f8] ss:$28 sps:$4 sm:$0xff]   ;;  %v11048_v28 = vld [vmem:[#allocation8 + $0x9f0] ss:$28 sps:$4 sm:$0xff]  }
 0x470   : > { %v6448_v2 = vadd.f32 %v14099_v18, %v6447_v7  ;;  %5976 = vmatmul.mubr.bf16.gmra.mrb[68].mxu0 %v16508_v11  ;;  %9806 = vmatprep.subr.bf16.mxu1 %v11044_v13 }
 0x471   : > { %v6469_v19 = vadd.f32 %v14104_v42, %v6468_v57  ;;  %5985 = vmatprep.mubr.bf16.mxu0 %v16467_v56 }
 0x473   : > { %v5133_v59 = vpop.f32.mrb[60].mxu0  ;;  %9807 = vmatpush3.bf16.msra.mxu1 %v11045_v53 }
 0x474   : > { %v14112_v50 = vadd.f32 %v5133_v59, %v16509_v16  ;;  %v5135_v30 = vpop.f32.mrb[61].mxu0  ;;  %9808 = vmatprep.subr.bf16.mxu1 %v11046_v36  ;;  %v11049_v36 = vld [vmem:[#allocation8 + $0x830] ss:$28 sps:$4 sm:$0xff]   ;;  %v11050_v16 = vld [vmem:[#allocation8 + $0xa28] ss:$28 sps:$4 sm:$0xff]  }
 0x475   : > { %v14115_v9 = vadd.f32 %v5135_v30, %v13929_v45  ;;  %v5137_v7 = vpop.f32.mrb[62].mxu0  ;;  %v16510_v45 = vld [vmem:[#allocation67_spill] sm:$0xff] }
 0x476   : > { %v6449_v13 = vadd.f32 %v14112_v50, %v6448_v2  ;;  %v9984_v61 = vadd.f32 %v5137_v7, %v13931_v21  ;;  %v5139_v57 = vpop.f32.mrb[63].mxu0  ;;  %6192 = vmatmul.mubr.bf16.gmra.mrb[184].mxu1 %v13373_v26 }
 0x477   : > { %v6470_v53 = vadd.f32 %v14115_v9, %v6469_v19  ;;  %v14122_v11 = vadd.f32 %v5139_v57, %v13933_v62  ;;  %6199 = vmatprep.mubr.bf16.mxu1 %v13393_v63  ;;  %9809 = vmatpush3.bf16.msra.mxu1 %v11047_v10  ;;  %v11051_v19 = vld [vmem:[#allocation8 + $0x868] ss:$28 sps:$4 sm:$0xff]   ;;  %v11052_v62 = vld [vmem:[#allocation8 + $0xa60] ss:$28 sps:$4 sm:$0xff]   ;;  %v11054_v57 = vld [vmem:[#allocation8 + $0xa98] ss:$28 sps:$4 sm:$0xff]  }
 0x478   : > { %v6450_v59 = vadd.f32 %v9984_v61, %v6449_v13  ;;  %5986 = vmatmul.mubr.bf16.gmra.mrb[72].mxu0 %v16510_v45  ;;  %9810 = vmatprep.subr.bf16.mxu1 %v11048_v28  ;;  %v11053_v28 = vld [vmem:[#allocation8 + $0x8a0] ss:$28 sps:$4 sm:$0xff]  }
 0x479   : > { %v6471_v2 = vadd.f32 %v14122_v11, %v6470_v53  ;;  %5995 = vmatprep.mubr.bf16.mxu0 %v16467_v56 }
 0x47a   : > { %v6451_v21 = vrot.slane %v6450_v59, 4 }
 0x47b   : > { %v6472_v26 = vrot.slane %v6471_v2, 4  ;;  %9811 = vmatpush3.bf16.msra.mxu1 %v11049_v36 }
 0x47c   : > { %v6452_v30 = vadd.f32 %v6451_v21, %v6450_v59  ;;  %9812 = vmatprep.subr.bf16.mxu1 %v11050_v16 }
 0x47d   : > { %v6473_v7 = vadd.f32 %v6472_v26, %v6471_v2 }
 0x47e   : > { %v6453_v63 = vrot.slane %v6452_v30, 2  ;;  %6200 = vmatmul.mubr.bf16.gmra.mrb[188].mxu1 %v13409_v46 }
 0x47f   : > { %v6474_v10 = vrot.slane %v6473_v7, 2  ;;  %6207 = vmatprep.mubr.bf16.mxu1 %v16441_v20  ;;  %9813 = vmatpush3.bf16.msra.mxu1 %v11051_v19 }
 0x480   : > { %v6454_v13 = vadd.f32 %v6453_v63, %v6452_v30  ;;  %5996 = vmatmul.mubr.bf16.gmra.mrb[76].mxu0 %v13739_v38  ;;  %9814 = vmatprep.subr.bf16.mxu1 %v11052_v62 }
 0x481   : > { %v6475_v53 = vadd.f32 %v6474_v10, %v6473_v7  ;;  %6005 = vmatprep.mubr.bf16.mxu0 %v16467_v56 }
 0x482   : > { %v6455_v36 = vrot.slane %v6454_v13, 1 }
 0x483   : > { %v6476_v59 = vrot.slane %v6475_v53, 1  ;;  %9815 = vmatpush3.bf16.msra.mxu1 %v11053_v28 }
 0x484   : > { %v6456_v16 = vadd.f32 %v6455_v36, %v6454_v13  ;;  %9906 = vmatprep.subr.bf16.mxu1 %v11054_v57  ;;  %v16550_v36 = vld [vmem:[#allocation82_spill] sm:$0xff] }
 0x485   : > { %v6477_v46 = vadd.f32 %v6476_v59, %v6475_v53  ;;  %v16551_v59 = vld [vmem:[#allocation87_spill] sm:$0xff] }
 0x486   : > { %v6583_v2 = vmul.f32 0.0078125, %v6456_v16  ;;  %6208 = vmatmul.mubr.bf16.gmra.mrb[192].mxu1 %v16442_v0 }
 0x487   : > { %6215 = vmatprep.mubr.bf16.mxu1 %v16443_v32  ;;  %v6584_v62 = vmul.f32 0.0078125, %v6477_v46 }
 0x488   : > { %v14135_v20 = vsub.f32 %v13972_v40, %v6583_v2  ;;  %v14138_v21 = vsub.f32 %v13978_v5, %v6583_v2  ;;  %v14141_v26 = vsub.f32 %v13992_v24, %v6583_v2  ;;  %v14144_v19 = vsub.f32 %v13999_v34, %v6583_v2  ;;  %6006 = vmatmul.mubr.bf16.gmra.mrb[80].mxu0 %v13743_v12 }
 0x489   : > { %v14148_v30 = vsub.f32 %v14012_v3, %v6583_v2  ;;  %v14151_v0 = vsub.f32 %v14019_v49, %v6583_v2  ;;  %v14154_v32 = vsub.f32 %v14032_v52, %v6583_v2  ;;  %v14157_v40 = vsub.f32 %v14039_v23, %v6583_v2  ;;  %6015 = vmatprep.mubr.bf16.mxu0 %v16467_v56 }
 0x48a   : > { %16511 = vst [vmem:[#allocation31_spill] sm:$0xff] %v14135_v20  ;;  %16512 = vst [vmem:[#allocation32_spill] sm:$0xff] %v14138_v21  ;;  %v14161_v5 = vsub.f32 %v14052_v14, %v6583_v2  ;;  %v14164_v24 = vsub.f32 %v14059_v1, %v6583_v2  ;;  %v14167_v34 = vsub.f32 %v14072_v27, %v6583_v2 }
 0x48b   : > { %16513 = vst [vmem:[#allocation33_spill] sm:$0xff] %v14141_v26  ;;  %16514 = vst [vmem:[#allocation102_spill] sm:$0xff] %v14144_v19  ;;  %v14170_v3 = vsub.f32 %v14079_v33, %v6583_v2  ;;  %v14173_v49 = vsub.f32 %v14092_v29, %v6583_v2  ;;  %v14176_v52 = vsub.f32 %v14099_v18, %v6583_v2 }
 0x48c   : > { %16515 = vst [vmem:[#allocation103_spill] sm:$0xff] %v14148_v30  ;;  %16516 = vst [vmem:[#allocation36_spill] sm:$0xff] %v14151_v0  ;;  %v14179_v23 = vsub.f32 %v14112_v50, %v6583_v2  ;;  %v14181_v14 = vsub.f32 %v9984_v61, %v6583_v2  ;;  %v14186_v1 = vsub.f32 %v13975_v31, %v6584_v62  ;;  %v16548_v50 = vld [vmem:[#allocation81_spill] sm:$0xff] }
 0x48d   : > { %16517 = vst [vmem:[#allocation38_spill] sm:$0xff] %v14154_v32  ;;  %16518 = vst [vmem:[#allocation34_spill] sm:$0xff] %v14157_v40  ;;  %v14189_v33 = vsub.f32 %v13982_v15, %v6584_v62  ;;  %v14192_v27 = vsub.f32 %v13995_v48, %v6584_v62  ;;  %v14196_v29 = vsub.f32 %v14004_v35, %v6584_v62  ;;  %v11060_v61 = vld [vmem:[#allocation8 + $0xbe8] ss:$28 sps:$4 sm:$0xff]  }
 0x48e   : > { %16519 = vst [vmem:[#allocation40_spill] sm:$0xff] %v14161_v5  ;;  %16520 = vst [vmem:[#allocation35_spill] sm:$0xff] %v14164_v24  ;;  %6216 = vmatmul.mubr.bf16.gmra.mrb[196].mxu1 %v13501_v55  ;;  %v14199_v18 = vsub.f32 %v14015_v8, %v6584_v62  ;;  %v14202_v55 = vsub.f32 %v14024_v51, %v6584_v62  ;;  %v14209_v31 = vsub.f32 %v14044_v44, %v6584_v62 }
 0x48f   : > { %16521 = vst [vmem:[#allocation42_spill] sm:$0xff] %v14167_v34  ;;  %16522 = vst [vmem:[#allocation44_spill] sm:$0xff] %v14170_v3  ;;  %6223 = vmatprep.mubr.bf16.mxu1 %v13517_v37  ;;  %v14205_v37 = vsub.f32 %v14035_v25, %v6584_v62  ;;  %v14212_v15 = vsub.f32 %v14055_v60, %v6584_v62  ;;  %v14215_v48 = vsub.f32 %v14064_v43, %v6584_v62  ;;  %v11055_v43 = vld [vmem:[#allocation8 + $0xad0] ss:$28 sps:$4 sm:$0xff]  }
 0x490   : > { %16523 = vst [vmem:[#allocation47_spill] sm:$0xff] %v14173_v49  ;;  %16524 = vst [vmem:[#allocation37_spill] sm:$0xff] %v14176_v52  ;;  %6016 = vmatmul.mubr.bf16.gmra.mrb[84].mxu0 %v13755_v58  ;;  %v14218_v35 = vsub.f32 %v14075_v54, %v6584_v62  ;;  %v14221_v8 = vsub.f32 %v14084_v6, %v6584_v62  ;;  %v14224_v51 = vsub.f32 %v14095_v22, %v6584_v62  ;;  %v16543_v6 = vld [vmem:[#allocation88_spill] sm:$0xff]  ;;  %v16545_v22 = vld [vmem:[#allocation62_spill] sm:$0xff] }
 0x491   : > { %16525 = vst [vmem:[#allocation73_spill] sm:$0xff] %v14179_v23  ;;  %16526 = vst [vmem:[#allocation77_spill] sm:$0xff] %v14181_v14  ;;  %6025 = vmatprep.mubr.bf16.mxu0 %v16467_v56  ;;  %v14227_v25 = vsub.f32 %v14104_v42, %v6584_v62  ;;  %v14230_v44 = vsub.f32 %v14115_v9, %v6584_v62  ;;  %v14233_v60 = vsub.f32 %v14122_v11, %v6584_v62  ;;  %v16544_v54 = vld [vmem:[#allocation60_spill] sm:$0xff]  ;;  %v16560_v49 = vld [vmem:[#allocation66_spill] sm:$0xff] }
 0x492   : > { %16527 = vst [vmem:[#allocation39_spill] sm:$0xff] %v14186_v1  ;;  %16528 = vst [vmem:[#allocation91_spill] sm:$0xff] %v14189_v33  ;;  %v16546_v42 = vld [vmem:[#allocation72_spill] sm:$0xff] }
 0x493   : > { %16529 = vst [vmem:[#allocation92_spill] sm:$0xff] %v14192_v27  ;;  %16530 = vst [vmem:[#allocation93_spill] sm:$0xff] %v14196_v29  ;;  %v16547_v11 = vld [vmem:[#allocation84_spill] sm:$0xff] }
 0x494   : > { %16531 = vst [vmem:[#allocation104_spill] sm:$0xff] %v14199_v18  ;;  %16532 = vst [vmem:[#allocation105_spill] sm:$0xff] %v14202_v55  ;;  %v16549_v9 = vld [vmem:[#allocation64_spill] sm:$0xff] }
 0x495   : > { %16533 = vst [vmem:[#allocation106_spill] sm:$0xff] %v14205_v37  ;;  %16534 = vst [vmem:[#allocation108_spill] sm:$0xff] %v14209_v31 }
 0x496   : > { %16535 = vst [vmem:[#allocation107_spill] sm:$0xff] %v14212_v15  ;;  %16536 = vst [vmem:[#allocation110_spill] sm:$0xff] %v14215_v48  ;;  %6224 = vmatmul.mubr.bf16.gmra.mrb[200].mxu1 %v13553_v41  ;;  %v11056_v41 = vld [vmem:[#allocation8 + $0xb08] ss:$28 sps:$4 sm:$0xff]  }
 0x497   : > { %16537 = vst [vmem:[#allocation41_spill] sm:$0xff] %v14218_v35  ;;  %16538 = vst [vmem:[#allocation43_spill] sm:$0xff] %v14221_v8  ;;  %6231 = vmatprep.mubr.bf16.mxu1 %v13561_v4  ;;  %v11057_v4 = vld [vmem:[#allocation8 + $0xb40] ss:$28 sps:$4 sm:$0xff]  }
 0x498   : > { %16539 = vst [vmem:[#allocation45_spill] sm:$0xff] %v14224_v51  ;;  %16540 = vst [vmem:[#allocation49_spill] sm:$0xff] %v14227_v25  ;;  %6026 = vmatmul.mubr.bf16.gmra.mrb[88].mxu0 %v13758_v39  ;;  %v16558_v25 = vld [vmem:[#allocation85_spill] sm:$0xff] }
 0x499   : > { %16541 = vst [vmem:[#allocation48_spill] sm:$0xff] %v14230_v44  ;;  %16542 = vst [vmem:[#allocation46_spill] sm:$0xff] %v14233_v60  ;;  %6035 = vmatprep.mubr.bf16.mxu0 %v16467_v56 }
 0x49e   : > { %6232 = vmatmul.mubr.bf16.gmra.mrb[204].mxu1 %v16444_v47  ;;  %v11058_v47 = vld [vmem:[#allocation8 + $0xb78] ss:$28 sps:$4 sm:$0xff]  }
 0x49f   : > { %6272 = vmatprep.mubr.bf16.mxu1 %v16445_v17  ;;  %v11059_v17 = vld [vmem:[#allocation8 + $0xbb0] ss:$28 sps:$4 sm:$0xff]  }
 0x4a0   : > { %6036 = vmatmul.mubr.bf16.gmra.mrb[92].mxu0 %v16543_v6 }
 0x4a6   : > { %6273 = vmatmul.mubr.bf16.vlgmr.msra.gmra.mrb[208].mxu1 %v16544_v54 }
 0x4a7   : > { %6280 = vmatprep.mubr.bf16.mxu1 %v16545_v22  ;;  %9907 = vmatpush3.bf16.msra.mxu1 %v11054_v57  ;;  %v11061_v57 = vld [vmem:[#allocation8 + $0xc20] ss:$28 sps:$4 sm:$0xff]  }
 0x4a8   : > { %9908 = vmatprep.subr.bf16.mxu1 %v11055_v43 }
 0x4ab   : > { %9909 = vmatpush3.bf16.msra.mxu1 %v11055_v43 }
 0x4ac   : > { %9910 = vmatprep.subr.bf16.mxu1 %v11056_v41 }
 0x4ae   : > { %6281 = vmatmul.mubr.bf16.gmra.mrb[212].mxu1 %v16546_v42  ;;  %v16553_v42 = vld [vmem:[#allocation68_spill] sm:$0xff] }
 0x4af   : > { %6288 = vmatprep.mubr.bf16.mxu1 %v16547_v11  ;;  %9911 = vmatpush3.bf16.msra.mxu1 %v11056_v41 }
 0x4b0   : > { %9912 = vmatprep.subr.bf16.mxu1 %v11057_v4 }
 0x4b3   : > { %9913 = vmatpush3.bf16.msra.mxu1 %v11057_v4  ;;  %v16552_v4 = vld [vmem:[#allocation63_spill] sm:$0xff] }
 0x4b4   : > { %9914 = vmatprep.subr.bf16.mxu1 %v11058_v47 }
 0x4b6   : > { %6289 = vmatmul.mubr.bf16.gmra.mrb[216].mxu1 %v16548_v50 }
 0x4b7   : > { %6296 = vmatprep.mubr.bf16.mxu1 %v16549_v9  ;;  %9915 = vmatpush3.bf16.msra.mxu1 %v11058_v47 }
 0x4b8   : > { %9916 = vmatprep.subr.bf16.mxu1 %v11059_v17 }
 0x4b9   : > { %v14248_v7 = vpop.f32.mrb[112].mxu1 }
 0x4ba   : > { %v14250_v63 = vpop.f32.mrb[113].mxu1 }
 0x4bb   : > { %v14252_v10 = vpop.f32.mrb[114].mxu1  ;;  %9917 = vmatpush3.bf16.msra.mxu1 %v11059_v17 }
 0x4bc   : > { %v6478_v28 = vadd.f32 %v14252_v10, %v14248_v7  ;;  %v14256_v13 = vpop.f32.mrb[115].mxu1  ;;  %9918 = vmatprep.subr.bf16.mxu1 %v11060_v61 }
 0x4bd   : > { %v6499_v53 = vadd.f32 %v14256_v13, %v14250_v63 }
 0x4be   : > { %6297 = vmatmul.mubr.bf16.gmra.mrb[220].mxu1 %v16550_v36  ;;  %v16555_v36 = vld [vmem:[#allocation69_spill] sm:$0xff] }
 0x4bf   : > { %6304 = vmatprep.mubr.bf16.mxu1 %v16551_v59  ;;  %9919 = vmatpush3.bf16.msra.mxu1 %v11060_v61 }
 0x4c0   : > { %9920 = vmatprep.subr.bf16.mxu1 %v11061_v57 }
 0x4c1   : > { %v14262_v16 = vpop.f32.mrb[116].mxu1 }
 0x4c2   : > { %v6479_v2 = vadd.f32 %v6478_v28, %v14262_v16  ;;  %v14265_v46 = vpop.f32.mrb[117].mxu1 }
 0x4c3   : > { %v6500_v62 = vadd.f32 %v6499_v53, %v14265_v46  ;;  %v14268_v43 = vpop.f32.mrb[118].mxu1  ;;  %9921 = vmatpush3.bf16.msra.mxu1 %v11061_v57  ;;  %v16554_v53 = vld [vmem:[#allocation83_spill] sm:$0xff] }
 0x4c4   : > { %v6480_v54 = vadd.f32 %v6479_v2, %v14268_v43  ;;  %v14271_v22 = vpop.f32.mrb[119].mxu1 }
 0x4c5   : > { %v6501_v41 = vadd.f32 %v6500_v62, %v14271_v22 }
 0x4c6   : > { %6305 = vmatmul.mubr.bf16.gmra.mrb[224].mxu1 %v16552_v4 }
 0x4c7   : > { %6312 = vmatprep.mubr.bf16.mxu1 %v16553_v42 }
 0x4c9   : > { %v14276_v11 = vpop.f32.mrb[120].mxu1 }
 0x4ca   : > { %v6481_v47 = vadd.f32 %v6480_v54, %v14276_v11  ;;  %v14279_v17 = vpop.f32.mrb[121].mxu1 }
 0x4cb   : > { %v6502_v50 = vadd.f32 %v6501_v41, %v14279_v17  ;;  %v14282_v9 = vpop.f32.mrb[122].mxu1 }
 0x4cc   : > { %v6482_v61 = vadd.f32 %v6481_v47, %v14282_v9  ;;  %v14285_v28 = vpop.f32.mrb[123].mxu1 }
 0x4cd   : > { %v6503_v57 = vadd.f32 %v6502_v50, %v14285_v28  ;;  %v16556_v50 = vld [vmem:[#allocation65_spill] sm:$0xff] }
 0x4ce   : > { %6313 = vmatmul.mubr.bf16.gmra.mrb[228].mxu1 %v16554_v53  ;;  %v16557_v53 = vld [vmem:[#allocation89_spill] sm:$0xff] }
 0x4cf   : > { %6320 = vmatprep.mubr.bf16.mxu1 %v16555_v36 }
 0x4d1   : > { %v14290_v59 = vpop.f32.mrb[124].mxu1 }
 0x4d2   : > { %v6483_v2 = vadd.f32 %v6482_v61, %v14290_v59  ;;  %v14293_v62 = vpop.f32.mrb[125].mxu1 }
 0x4d3   : > { %v6504_v54 = vadd.f32 %v6503_v57, %v14293_v62  ;;  %v14296_v41 = vpop.f32.mrb[126].mxu1 }
 0x4d4   : > { %v6484_v4 = vadd.f32 %v6483_v2, %v14296_v41  ;;  %v14299_v42 = vpop.f32.mrb[127].mxu1 }
 0x4d5   : > { %v6505_v47 = vadd.f32 %v6504_v54, %v14299_v42 }
 0x4d6   : > { %6321 = vmatmul.mubr.bf16.gmra.mrb[232].mxu1 %v16556_v50  ;;  %v16559_v50 = vld [vmem:[#allocation86_spill] sm:$0xff] }
 0x4d7   : > { %6328 = vmatprep.mubr.bf16.mxu1 %v16557_v53 }
 0x4d9   : > { %v14304_v36 = vpop.f32.mrb[128].mxu1 }
 0x4da   : > { %v6485_v61 = vadd.f32 %v6484_v4, %v14304_v36  ;;  %v14307_v60 = vpop.f32.mrb[129].mxu1 }
 0x4db   : > { %v6506_v57 = vadd.f32 %v6505_v47, %v14307_v60  ;;  %v14310_v14 = vpop.f32.mrb[130].mxu1 }
 0x4dc   : > { %v6486_v2 = vadd.f32 %v6485_v61, %v14310_v14  ;;  %v14313_v44 = vpop.f32.mrb[131].mxu1 }
 0x4dd   : > { %v6507_v54 = vadd.f32 %v6506_v57, %v14313_v44 }
 0x4de   : > { %6329 = vmatmul.mubr.bf16.gmra.mrb[236].mxu1 %v16558_v25 }
 0x4df   : > { %9922 = vmatprep.mubr.bf16.mxu1 %v16559_v50 }
 0x4e1   : > { %v14318_v53 = vpop.f32.mrb[132].mxu1 }
 0x4e2   : > { %v6487_v4 = vadd.f32 %v6486_v2, %v14318_v53  ;;  %v14321_v23 = vpop.f32.mrb[133].mxu1 }
 0x4e3   : > { %v6508_v47 = vadd.f32 %v6507_v54, %v14321_v23  ;;  %v14324_v52 = vpop.f32.mrb[134].mxu1 }
 0x4e4   : > { %v6488_v61 = vadd.f32 %v6487_v4, %v14324_v52  ;;  %v14327_v51 = vpop.f32.mrb[135].mxu1 }
 0x4e5   : > { %v6509_v57 = vadd.f32 %v6508_v47, %v14327_v51 }
 0x4e6   : > { %9923 = vmatmul.mubr.bf16.vlgmr.msra.gmra.mrb[240].mxu1 %v16560_v49 }
 0x4e7   : > { %9926 = vmatprep.mubr.bf16.mxu1 %v16510_v45 }
 0x4e9   : > { %v5575_v25 = vpop.f32.mrb[136].mxu1 }
 0x4ea   : > { %v6489_v50 = vadd.f32 %v6488_v61, %v5575_v25  ;;  %v14332_v8 = vpop.f32.mrb[137].mxu1 }
 0x4eb   : > { %v6510_v2 = vadd.f32 %v6509_v57, %v14332_v8  ;;  %v5579_v3 = vpop.f32.mrb[138].mxu1 }
 0x4ec   : > { %v6490_v54 = vadd.f32 %v6489_v50, %v5579_v3  ;;  %v14335_v35 = vpop.f32.mrb[139].mxu1 }
 0x4ed   : > { %v6511_v4 = vadd.f32 %v6510_v2, %v14335_v35 }
 0x4ee   : > { %9927 = vmatmul.mubr.bf16.gmra.mrb[244].mxu1 %v13739_v38 }
 0x4ef   : > { %9930 = vmatprep.mubr.bf16.mxu1 %v13743_v12 }
 0x4f1   : > { %v5585_v47 = vpop.f32.mrb[140].mxu1 }
 0x4f2   : > { %v6491_v49 = vadd.f32 %v6490_v54, %v5585_v47  ;;  %v14340_v34 = vpop.f32.mrb[141].mxu1 }
 0x4f3   : > { %v6512_v45 = vadd.f32 %v6511_v4, %v14340_v34  ;;  %v5589_v61 = vpop.f32.mrb[142].mxu1 }
 0x4f4   : > { %v6492_v48 = vadd.f32 %v6491_v49, %v5589_v61  ;;  %v14343_v15 = vpop.f32.mrb[143].mxu1 }
 0x4f5   : > { %v6513_v57 = vadd.f32 %v6512_v45, %v14343_v15 }
 0x4f6   : > { %v6493_v50 = vrot.slane %v6492_v48, 4  ;;  %9931 = vmatmul.mubr.bf16.gmra.mrb[248].mxu1 %v13755_v58 }
 0x4f7   : > { %v6514_v2 = vrot.slane %v6513_v57, 4  ;;  %9934 = vmatprep.mubr.bf16.mxu1 %v13758_v39 }
 0x4f8   : > { %v6494_v38 = vadd.f32 %v6493_v50, %v6492_v48 }
 0x4f9   : > { %v6515_v12 = vadd.f32 %v6514_v2, %v6513_v57  ;;  %v9688_v24 = vpop.f32.mrb[144].mxu1 }
 0x4fa   : > { %v6495_v54 = vrot.slane %v6494_v38, 2  ;;  %v9689_v31 = vpop.f32.mrb[145].mxu1 }
 0x4fb   : > { %v6516_v37 = vrot.slane %v6515_v12, 2  ;;  %v14348_v5 = vadd.f32 %v9689_v31, %v9688_v24  ;;  %v9691_v4 = vpop.f32.mrb[146].mxu1 }
 0x4fc   : > { %v6496_v49 = vadd.f32 %v6495_v54, %v6494_v38  ;;  %v9692_v55 = vpop.f32.mrb[147].mxu1 }
 0x4fd   : > { %v6517_v40 = vadd.f32 %v6516_v37, %v6515_v12  ;;  %v14350_v18 = vadd.f32 %v9692_v55, %v9691_v4 }
 0x4fe   : > { %v6497_v45 = vrot.slane %v6496_v49, 1  ;;  %9935 = vmatmul.mubr.bf16.gmra.mrb[252].mxu1 %v16543_v6 }
 0x4ff   : > { %v6518_v58 = vrot.slane %v6517_v40, 1  ;;  %8618 = vmatprep.mubr.bf16.mxu1 %v16467_v56 }
 0x500   : > { %v6498_v39 = vadd.f32 %v6497_v45, %v6496_v49 }
 0x501   : > { %v9694_v48 = vpop.f32.mrb[148].mxu1  ;;  %v6519_v2 = vadd.f32 %v6518_v58, %v6517_v40 }
 0x502   : > { %v6585_v57 = vmul.f32 0.0078125, %v6498_v39  ;;  %v9695_v50 = vpop.f32.mrb[149].mxu1 }
 0x503   : > { %v14354_v32 = vadd.f32 %v9695_v50, %v9694_v48  ;;  %v9697_v24 = vpop.f32.mrb[150].mxu1  ;;  %v6586_v49 = vmul.f32 0.0078125, %v6519_v2 }
 0x504   : > { %v14357_v31 = vsub.f32 %v14248_v7, %v6585_v57  ;;  %v14360_v55 = vsub.f32 %v14252_v10, %v6585_v57  ;;  %v14363_v37 = vsub.f32 %v14262_v16, %v6585_v57  ;;  %v14366_v6 = vsub.f32 %v14268_v43, %v6585_v57  ;;  %v9698_v38 = vpop.f32.mrb[151].mxu1 }
 0x505   : > { %v14369_v12 = vsub.f32 %v14276_v11, %v6585_v57  ;;  %v14372_v40 = vsub.f32 %v14282_v9, %v6585_v57  ;;  %v14375_v54 = vsub.f32 %v14290_v59, %v6585_v57  ;;  %v14378_v7 = vsub.f32 %v14296_v41, %v6585_v57 }
 0x506   : > { %16561 = vst [vmem:[#allocation54_spill] sm:$0xff] %v14357_v31  ;;  %16562 = vst [vmem:[#allocation79_spill] sm:$0xff] %v14360_v55  ;;  %v14381_v10 = vsub.f32 %v14304_v36, %v6585_v57  ;;  %v14384_v16 = vsub.f32 %v14310_v14, %v6585_v57  ;;  %v14387_v43 = vsub.f32 %v14318_v53, %v6585_v57 }
 0x507   : > { %16563 = vst [vmem:[#allocation80_spill] sm:$0xff] %v14363_v37  ;;  %16564 = vst [vmem:[#allocation61_spill] sm:$0xff] %v14366_v6  ;;  %v14390_v11 = vsub.f32 %v14324_v52, %v6585_v57  ;;  %v14392_v9 = vsub.f32 %v5575_v25, %v6585_v57  ;;  %v14394_v4 = vsub.f32 %v5579_v3, %v6585_v57 }
 0x508   : > { %16565 = vst [vmem:[#allocation111_spill] sm:$0xff] %v14369_v12  ;;  %16566 = vst [vmem:[#allocation75_spill] sm:$0xff] %v14372_v40  ;;  %v14396_v59 = vsub.f32 %v5585_v47, %v6585_v57  ;;  %v14398_v41 = vsub.f32 %v5589_v61, %v6585_v57  ;;  %v14401_v14 = vsub.f32 %v14250_v63, %v6586_v49 }
 0x509   : > { %16567 = vst [vmem:[#allocation51_spill] sm:$0xff] %v14375_v54  ;;  %16568 = vst [vmem:[#allocation56_spill] sm:$0xff] %v14378_v7  ;;  %v9700_v36 = vpop.f32.mrb[152].mxu1  ;;  %v14404_v53 = vsub.f32 %v14256_v13, %v6586_v49  ;;  %v14407_v52 = vsub.f32 %v14265_v46, %v6586_v49  ;;  %v14410_v3 = vsub.f32 %v14271_v22, %v6586_v49 }
 0x50a   : > { %16569 = vst [vmem:[#allocation50_spill] sm:$0xff] %v14381_v10  ;;  %16570 = vst [vmem:[#allocation57_spill] sm:$0xff] %v14384_v16  ;;  %v9701_v45 = vpop.f32.mrb[153].mxu1  ;;  %v14413_v47 = vsub.f32 %v14279_v17, %v6586_v49  ;;  %v14416_v61 = vsub.f32 %v14285_v28, %v6586_v49  ;;  %v14419_v39 = vsub.f32 %v14293_v62, %v6586_v49 }
 0x50b   : > { %16571 = vst [vmem:[#allocation58_spill] sm:$0xff] %v14387_v43  ;;  %16572 = vst [vmem:[#allocation78_spill] sm:$0xff] %v14390_v11  ;;  %v9703_v58 = vpop.f32.mrb[154].mxu1  ;;  %v14422_v63 = vsub.f32 %v14299_v42, %v6586_v49  ;;  %v14425_v13 = vsub.f32 %v14307_v60, %v6586_v49  ;;  %v14428_v46 = vsub.f32 %v14313_v44, %v6586_v49 }
 0x50c   : > { %16573 = vst [vmem:[#allocation90_spill] sm:$0xff] %v14392_v9  ;;  %16574 = vst [vmem:[#allocation53_spill] sm:$0xff] %v14394_v4  ;;  %v9704_v25 = vpop.f32.mrb[155].mxu1  ;;  %v14431_v22 = vsub.f32 %v14321_v23, %v6586_v49  ;;  %v14434_v17 = vsub.f32 %v14327_v51, %v6586_v49  ;;  %v14437_v28 = vsub.f32 %v14332_v8, %v6586_v49 }
 0x50d   : > { %16575 = vst [vmem:[#allocation59_spill] sm:$0xff] %v14396_v59  ;;  %16576 = vst [vmem:[#allocation70_spill] sm:$0xff] %v14398_v41  ;;  %v14440_v62 = vsub.f32 %v14335_v35, %v6586_v49  ;;  %v14443_v42 = vsub.f32 %v14340_v34, %v6586_v49  ;;  %v14446_v60 = vsub.f32 %v14343_v15, %v6586_v49 }
 0x50e   : > { %16577 = vst [vmem:[#allocation71_spill] sm:$0xff] %v14401_v14  ;;  %16578 = vst [vmem:[#allocation112_spill] sm:$0xff] %v14404_v53  ;;  %v9699_v50 = vadd.f32 %v9698_v38, %v9697_v24  ;;  %v14448_v2 = vadd.f32 %v9701_v45, %v9700_v36  ;;  %v14450_v51 = vadd.f32 %v9704_v25, %v9703_v58 }
 0x50f   : > { %16579 = vst [vmem:[#allocation113_spill] sm:$0xff] %v14407_v52  ;;  %16580 = vst [vmem:[#allocation26_spill] sm:$0xff] %v14410_v3 }
 0x510   : > { %16581 = vst [vmem:[#allocation27_spill] sm:$0xff] %v14413_v47  ;;  %16582 = vst [vmem:[#allocation94_spill] sm:$0xff] %v14416_v61 }
 0x511   : > { %16583 = vst [vmem:[#allocation95_spill] sm:$0xff] %v14419_v39  ;;  %16584 = vst [vmem:[#allocation96_spill] sm:$0xff] %v14422_v63  ;;  %v9706_v44 = vpop.f32.mrb[156].mxu1 }
 0x512   : > { %16585 = vst [vmem:[#allocation97_spill] sm:$0xff] %v14425_v13  ;;  %16586 = vst [vmem:[#allocation28_spill] sm:$0xff] %v14428_v46  ;;  %v9707_v48 = vpop.f32.mrb[157].mxu1 }
 0x513   : > { %16587 = vst [vmem:[#allocation29_spill] sm:$0xff] %v14431_v22  ;;  %16588 = vst [vmem:[#allocation98_spill] sm:$0xff] %v14434_v17  ;;  %v9709_v57 = vpop.f32.mrb[158].mxu1  ;;  %v14452_v8 = vadd.f32 %v9707_v48, %v9706_v44 }
 0x514   : > { %16589 = vst [vmem:[#allocation55_spill] sm:$0xff] %v14437_v28  ;;  %16590 = vst [vmem:[#allocation99_spill] sm:$0xff] %v14440_v62  ;;  %v9710_v23 = vpop.f32.mrb[159].mxu1 }
 0x515   : > { %16591 = vst [vmem:[#allocation100_spill] sm:$0xff] %v14443_v42  ;;  %16592 = vst [vmem:[#allocation76_spill] sm:$0xff] %v14446_v60  ;;  %v14454_v56 = vadd.f32 %v9710_v23, %v9709_v57 }
 0x519   : > { %v9712_v35 = vpop.f32.mrb[160].mxu1 }
 0x51a   : > { %v9713_v41 = vpop.f32.mrb[161].mxu1 }
 0x51b   : > { %v14456_v34 = vadd.f32 %v9713_v41, %v9712_v35  ;;  %v9715_v42 = vpop.f32.mrb[162].mxu1 }
 0x51c   : > { %v9716_v15 = vpop.f32.mrb[163].mxu1 }
 0x51d   : > { %v14458_v49 = vadd.f32 %v9716_v15, %v9715_v42 }
 0x521   : > { %v9718_v60 = vpop.f32.mrb[164].mxu1 }
 0x522   : > { %v9719_v62 = vpop.f32.mrb[165].mxu1 }
 0x523   : > { %v14460_v59 = vadd.f32 %v9719_v62, %v9718_v60  ;;  %v9721_v24 = vpop.f32.mrb[166].mxu1 }
 0x524   : > { %v9722_v38 = vpop.f32.mrb[167].mxu1 }
 0x525   : > { %v14462_v36 = vadd.f32 %v9722_v38, %v9721_v24 }
 0x529   : > { %v9724_v45 = vpop.f32.mrb[168].mxu1 }
 0x52a   : > { %v9725_v58 = vpop.f32.mrb[169].mxu1 }
 0x52b   : > { %v14464_v25 = vadd.f32 %v9725_v58, %v9724_v45  ;;  %v9727_v44 = vpop.f32.mrb[170].mxu1 }
 0x52c   : > { %v9728_v48 = vpop.f32.mrb[171].mxu1 }
 0x52d   : > { %v14466_v41 = vadd.f32 %v9728_v48, %v9727_v44 }
 0x531   : > { %v9730_v57 = vpop.f32.mrb[172].mxu1 }
 0x532   : > { %v9731_v23 = vpop.f32.mrb[173].mxu1 }
 0x533   : > { %v14468_v42 = vadd.f32 %v9731_v23, %v9730_v57  ;;  %v9733_v35 = vpop.f32.mrb[174].mxu1 }
 0x534   : > { %v9734_v15 = vpop.f32.mrb[175].mxu1 }
 0x535   : > { %v14470_v62 = vadd.f32 %v9734_v15, %v9733_v35 }
 0x539   : > { %v9752_v60 = vpop.f32.mrb[176].mxu1 }
 0x53a   : > { %v9753_v28 = vpop.f32.mrb[177].mxu1 }
 0x53b   : > { %v14472_v24 = vpop.f32.mrb[64].mxu0  ;;  %v9754_v38 = vadd.f32 %v9753_v28, %v9752_v60  ;;  %v9755_v4 = vpop.f32.mrb[178].mxu1 }
 0x53c   : > { %v14474_v45 = vpop.f32.mrb[65].mxu0  ;;  %v9756_v58 = vpop.f32.mrb[179].mxu1 }
 0x53d   : > { %v14477_v44 = vadd.f32 %v9754_v38, %v14348_v5  ;;  %v14479_v48 = vpop.f32.mrb[66].mxu0  ;;  %v9757_v57 = vadd.f32 %v9756_v58, %v9755_v4 }
 0x53e   : > { %v6520_v23 = vadd.f32 %v14479_v48, %v14472_v24  ;;  %v14483_v35 = vpop.f32.mrb[67].mxu0 }
 0x53f   : > { %v6541_v15 = vadd.f32 %v14483_v35, %v14474_v45  ;;  %v14488_v28 = vadd.f32 %v9757_v57, %v14350_v18 }
 0x541   : > { %v9758_v60 = vpop.f32.mrb[180].mxu1 }
 0x542   : > { %v9759_v17 = vpop.f32.mrb[181].mxu1 }
 0x543   : > { %v14490_v9 = vpop.f32.mrb[68].mxu0  ;;  %v9760_v5 = vadd.f32 %v9759_v17, %v9758_v60  ;;  %v9761_v38 = vpop.f32.mrb[182].mxu1 }
 0x544   : > { %v6521_v22 = vadd.f32 %v6520_v23, %v14490_v9  ;;  %v14493_v4 = vpop.f32.mrb[69].mxu0  ;;  %v9762_v58 = vpop.f32.mrb[183].mxu1 }
 0x545   : > { %v6542_v11 = vadd.f32 %v6541_v15, %v14493_v4  ;;  %v14497_v46 = vadd.f32 %v9760_v5, %v14354_v32  ;;  %v14499_v43 = vpop.f32.mrb[70].mxu0  ;;  %v9763_v18 = vadd.f32 %v9762_v58, %v9761_v38 }
 0x546   : > { %v6522_v57 = vadd.f32 %v6521_v22, %v14499_v43  ;;  %v14502_v13 = vpop.f32.mrb[71].mxu0 }
 0x547   : > { %v6543_v17 = vadd.f32 %v6542_v11, %v14502_v13  ;;  %v14505_v60 = vadd.f32 %v9763_v18, %v9699_v50 }
 0x549   : > { %v9764_v23 = vpop.f32.mrb[184].mxu1 }
 0x54a   : > { %v9765_v16 = vpop.f32.mrb[185].mxu1 }
 0x54b   : > { %v14507_v63 = vpop.f32.mrb[72].mxu0  ;;  %v9766_v10 = vadd.f32 %v9765_v16, %v9764_v23  ;;  %v9767_v15 = vpop.f32.mrb[186].mxu1 }
 0x54c   : > { %v6523_v32 = vadd.f32 %v6522_v57, %v14507_v63  ;;  %v14510_v5 = vpop.f32.mrb[73].mxu0  ;;  %v9768_v39 = vpop.f32.mrb[187].mxu1 }
 0x54d   : > { %v6544_v38 = vadd.f32 %v6543_v17, %v14510_v5  ;;  %v14514_v22 = vadd.f32 %v9766_v10, %v14448_v2  ;;  %v14516_v58 = vpop.f32.mrb[74].mxu0  ;;  %v9769_v11 = vadd.f32 %v9768_v39, %v9767_v15 }
 0x54e   : > { %v6524_v50 = vadd.f32 %v6523_v32, %v14516_v58  ;;  %v14519_v18 = vpop.f32.mrb[75].mxu0 }
 0x54f   : > { %v6545_v16 = vadd.f32 %v6544_v38, %v14519_v18  ;;  %v14523_v23 = vadd.f32 %v9769_v11, %v14450_v51 }
 0x551   : > { %v9770_v57 = vpop.f32.mrb[188].mxu1 }
 0x552   : > { %v9771_v7 = vpop.f32.mrb[189].mxu1 }
 0x553   : > { %v14525_v61 = vpop.f32.mrb[76].mxu0  ;;  %v9772_v17 = vadd.f32 %v9771_v7, %v9770_v57  ;;  %v9773_v54 = vpop.f32.mrb[190].mxu1 }
 0x554   : > { %v6525_v10 = vadd.f32 %v6524_v50, %v14525_v61  ;;  %v14528_v2 = vpop.f32.mrb[77].mxu0  ;;  %v9774_v39 = vpop.f32.mrb[191].mxu1 }
 0x555   : > { %v6546_v15 = vadd.f32 %v6545_v16, %v14528_v2  ;;  %v14532_v32 = vadd.f32 %v9772_v17, %v14452_v8  ;;  %v14534_v38 = vpop.f32.mrb[78].mxu0  ;;  %v9775_v51 = vadd.f32 %v9774_v39, %v9773_v54 }
 0x556   : > { %v6526_v11 = vadd.f32 %v6525_v10, %v14534_v38  ;;  %v14537_v47 = vpop.f32.mrb[79].mxu0 }
 0x557   : > { %v6547_v7 = vadd.f32 %v6546_v15, %v14537_v47  ;;  %v14541_v57 = vadd.f32 %v9775_v51, %v14454_v56 }
 0x559   : > { %v9776_v50 = vpop.f32.mrb[192].mxu1 }
 0x55a   : > { %v9777_v40 = vpop.f32.mrb[193].mxu1 }
 0x55b   : > { %v14543_v3 = vpop.f32.mrb[80].mxu0  ;;  %v9778_v16 = vadd.f32 %v9777_v40, %v9776_v50  ;;  %v9779_v12 = vpop.f32.mrb[194].mxu1 }
 0x55c   : > { %v6527_v8 = vadd.f32 %v6526_v11, %v14543_v3  ;;  %v14546_v17 = vpop.f32.mrb[81].mxu0  ;;  %v9780_v54 = vpop.f32.mrb[195].mxu1 }
 0x55d   : > { %v6548_v10 = vadd.f32 %v6547_v7, %v14546_v17  ;;  %v14550_v39 = vadd.f32 %v9778_v16, %v14456_v34  ;;  %v14552_v15 = vpop.f32.mrb[82].mxu0  ;;  %v9781_v56 = vadd.f32 %v9780_v54, %v9779_v12 }
 0x55e   : > { %v6528_v51 = vadd.f32 %v6527_v8, %v14552_v15  ;;  %v14555_v0 = vpop.f32.mrb[83].mxu0 }
 0x55f   : > { %v6549_v40 = vadd.f32 %v6548_v10, %v14555_v0  ;;  %v14559_v50 = vadd.f32 %v9781_v56, %v14458_v49 }
 0x561   : > { %16593 = vst [vmem:[#allocation101_spill] sm:$0xff] %v14559_v50  ;;  %v9782_v11 = vpop.f32.mrb[196].mxu1 }
 0x562   : > { %v9783_v29 = vpop.f32.mrb[197].mxu1 }
 0x563   : > { %v14561_v30 = vpop.f32.mrb[84].mxu0  ;;  %v9784_v7 = vadd.f32 %v9783_v29, %v9782_v11  ;;  %v9785_v52 = vpop.f32.mrb[198].mxu1 }
 0x564   : > { %v6529_v34 = vadd.f32 %v6528_v51, %v14561_v30  ;;  %v14564_v16 = vpop.f32.mrb[85].mxu0  ;;  %v9786_v12 = vpop.f32.mrb[199].mxu1 }
 0x565   : > { %v6550_v8 = vadd.f32 %v6549_v40, %v14564_v16  ;;  %v14568_v54 = vadd.f32 %v9784_v7, %v14460_v59  ;;  %v14570_v10 = vpop.f32.mrb[86].mxu0  ;;  %v9787_v49 = vadd.f32 %v9786_v12, %v9785_v52 }
 0x566   : > { %v6530_v56 = vadd.f32 %v6529_v34, %v14570_v10  ;;  %v14573_v6 = vpop.f32.mrb[87].mxu0 }
 0x567   : > { %16594 = vst [vmem:[#allocation30_spill] sm:$0xff] %v14568_v54  ;;  %v6551_v29 = vadd.f32 %v6550_v8, %v14573_v6  ;;  %v14577_v11 = vadd.f32 %v9787_v49, %v14462_v36 }
 0x569   : > { %16595 = vst [vmem:[#allocation67_spill] sm:$0xff] %v14577_v11  ;;  %v9788_v51 = vpop.f32.mrb[200].mxu1 }
 0x56a   : > { %v9789_v27 = vpop.f32.mrb[201].mxu1 }
 0x56b   : > { %v14579_v37 = vpop.f32.mrb[88].mxu0  ;;  %v9790_v40 = vadd.f32 %v9789_v27, %v9788_v51  ;;  %v9791_v19 = vpop.f32.mrb[202].mxu1 }
 0x56c   : > { %v6531_v59 = vadd.f32 %v6530_v56, %v14579_v37  ;;  %v14582_v7 = vpop.f32.mrb[89].mxu0  ;;  %v9792_v52 = vpop.f32.mrb[203].mxu1 }
 0x56d   : > { %v6552_v34 = vadd.f32 %v6551_v29, %v14582_v7  ;;  %v14586_v12 = vadd.f32 %v9790_v40, %v14464_v25  ;;  %v14588_v8 = vpop.f32.mrb[90].mxu0  ;;  %v9793_v36 = vadd.f32 %v9792_v52, %v9791_v19 }
 0x56e   : > { %v6532_v49 = vadd.f32 %v6531_v59, %v14588_v8  ;;  %v14591_v53 = vpop.f32.mrb[91].mxu0 }
 0x56f   : > { %16596 = vst [vmem:[#allocation88_spill] sm:$0xff] %v14586_v12  ;;  %v6553_v27 = vadd.f32 %v6552_v34, %v14591_v53  ;;  %v14595_v51 = vadd.f32 %v9793_v36, %v14466_v41 }
 0x571   : > { %16597 = vst [vmem:[#allocation60_spill] sm:$0xff] %v14595_v51  ;;  %v9794_v56 = vpop.f32.mrb[204].mxu1 }
 0x572   : > { %v9795_v14 = vpop.f32.mrb[205].mxu1 }
 0x573   : > { %v6037_v33 = vpop.f32.mrb[92].mxu0  ;;  %v9796_v1 = vadd.f32 %v9795_v14, %v9794_v56  ;;  %v9797_v29 = vpop.f32.mrb[206].mxu1 }
 0x574   : > { %v6533_v26 = vadd.f32 %v6532_v49, %v6037_v33  ;;  %v14597_v25 = vpop.f32.mrb[93].mxu0  ;;  %v9798_v40 = vpop.f32.mrb[207].mxu1 }
 0x575   : > { %v6554_v19 = vadd.f32 %v6553_v27, %v14597_v25  ;;  %v14601_v59 = vadd.f32 %v9796_v1, %v14468_v42  ;;  %v6041_v52 = vpop.f32.mrb[94].mxu0  ;;  %v9799_v55 = vadd.f32 %v9798_v40, %v9797_v29 }
 0x576   : > { %v6534_v34 = vadd.f32 %v6533_v26, %v6041_v52  ;;  %v14603_v31 = vpop.f32.mrb[95].mxu0 }
 0x577   : > { %16598 = vst [vmem:[#allocation62_spill] sm:$0xff] %v14601_v59  ;;  %v6555_v41 = vadd.f32 %v6554_v19, %v14603_v31  ;;  %v14607_v36 = vadd.f32 %v9799_v55, %v14470_v62 }
 0x578   : > { %v6535_v14 = vrot.slane %v6534_v34, 4 }
 0x579   : > { %16599 = vst [vmem:[#allocation72_spill] sm:$0xff] %v14607_v36  ;;  %v6556_v49 = vrot.slane %v6555_v41, 4  ;;  %v9816_v56 = vpop.f32.mrb[208].mxu1 }
 0x57a   : > { %v6536_v51 = vadd.f32 %v6535_v14, %v6534_v34  ;;  %v9817_v12 = vpop.f32.mrb[209].mxu1 }
 0x57b   : > { %v6557_v21 = vadd.f32 %v6556_v49, %v6555_v41  ;;  %v9818_v27 = vadd.f32 %v9817_v12, %v9816_v56  ;;  %v9819_v20 = vpop.f32.mrb[210].mxu1 }
 0x57c   : > { %v6537_v1 = vrot.slane %v6536_v51, 2  ;;  %v9820_v42 = vpop.f32.mrb[211].mxu1 }
 0x57d   : > { %v6558_v59 = vrot.slane %v6557_v21, 2  ;;  %v9821_v29 = vadd.f32 %v9820_v42, %v9819_v20  ;;  %v14610_v26 = vadd.f32 %v9818_v27, %v14477_v44 }
 0x57e   : > { %v6538_v40 = vadd.f32 %v6537_v1, %v6536_v51 }
 0x57f   : > { %v6559_v19 = vadd.f32 %v6558_v59, %v6557_v21  ;;  %v14613_v55 = vadd.f32 %v9821_v29, %v14488_v28 }
 0x580   : > { %v6539_v62 = vrot.slane %v6538_v40, 1 }
 0x581   : > { %v6560_v36 = vrot.slane %v6559_v19, 1  ;;  %v9822_v11 = vpop.f32.mrb[212].mxu1 }
 0x582   : > { %v6540_v34 = vadd.f32 %v6539_v62, %v6538_v40  ;;  %v9823_v14 = vpop.f32.mrb[213].mxu1 }
 0x583   : > { %v9824_v41 = vadd.f32 %v9823_v14, %v9822_v11  ;;  %v9825_v12 = vpop.f32.mrb[214].mxu1  ;;  %v6561_v54 = vadd.f32 %v6560_v36, %v6559_v19 }
 0x584   : > { %v6587_v49 = vmul.f32 0.0078125, %v6540_v34  ;;  %v9826_v56 = vpop.f32.mrb[215].mxu1 }
 0x585   : > { %v9827_v50 = vadd.f32 %v9826_v56, %v9825_v12  ;;  %v14616_v20 = vadd.f32 %v9824_v41, %v14497_v46  ;;  %v6588_v27 = vmul.f32 0.0078125, %v6561_v54 }
 0x586   : > { %v14619_v44 = vsub.f32 %v14472_v24, %v6587_v49  ;;  %v14622_v21 = vsub.f32 %v14479_v48, %v6587_v49  ;;  %v14625_v28 = vsub.f32 %v14490_v9, %v6587_v49  ;;  %v14628_v51 = vsub.f32 %v14499_v43, %v6587_v49 }
 0x587   : > { %v14631_v11 = vsub.f32 %v14507_v63, %v6587_v49  ;;  %v14634_v59 = vsub.f32 %v14516_v58, %v6587_v49  ;;  %v14637_v46 = vsub.f32 %v14525_v61, %v6587_v49  ;;  %v14640_v24 = vsub.f32 %v14534_v38, %v6587_v49 }
 0x588   : > { %16600 = vst [vmem:[#allocation84_spill] sm:$0xff] %v14619_v44  ;;  %16601 = vst [vmem:[#allocation81_spill] sm:$0xff] %v14622_v21  ;;  %v14643_v48 = vsub.f32 %v14543_v3, %v6587_v49  ;;  %v14646_v9 = vsub.f32 %v14552_v15, %v6587_v49  ;;  %v14649_v43 = vsub.f32 %v14561_v30, %v6587_v49 }
 0x589   : > { %16602 = vst [vmem:[#allocation64_spill] sm:$0xff] %v14625_v28  ;;  %16603 = vst [vmem:[#allocation82_spill] sm:$0xff] %v14628_v51  ;;  %v14652_v63 = vsub.f32 %v14570_v10, %v6587_v49  ;;  %v14655_v58 = vsub.f32 %v14579_v37, %v6587_v49  ;;  %v14658_v61 = vsub.f32 %v14588_v8, %v6587_v49  ;;  %v9828_v3 = vpop.f32.mrb[216].mxu1 }
 0x58a   : > { %16604 = vst [vmem:[#allocation87_spill] sm:$0xff] %v14631_v11  ;;  %16605 = vst [vmem:[#allocation63_spill] sm:$0xff] %v14634_v59  ;;  %v14660_v38 = vsub.f32 %v6037_v33, %v6587_v49  ;;  %v14662_v36 = vsub.f32 %v6041_v52, %v6587_v49  ;;  %v9829_v15 = vpop.f32.mrb[217].mxu1  ;;  %v14665_v30 = vsub.f32 %v14474_v45, %v6588_v27 }
 0x58b   : > { %16606 = vst [vmem:[#allocation68_spill] sm:$0xff] %v14637_v46  ;;  %16607 = vst [vmem:[#allocation83_spill] sm:$0xff] %v14640_v24  ;;  %v9831_v1 = vpop.f32.mrb[218].mxu1  ;;  %v14668_v10 = vsub.f32 %v14483_v35, %v6588_v27  ;;  %v14671_v37 = vsub.f32 %v14493_v4, %v6588_v27  ;;  %v14674_v8 = vsub.f32 %v14502_v13, %v6588_v27 }
 0x58c   : > { %16608 = vst [vmem:[#allocation69_spill] sm:$0xff] %v14643_v48  ;;  %16609 = vst [vmem:[#allocation65_spill] sm:$0xff] %v14646_v9  ;;  %v9832_v42 = vpop.f32.mrb[219].mxu1  ;;  %v14677_v33 = vsub.f32 %v14510_v5, %v6588_v27  ;;  %v14680_v54 = vsub.f32 %v14519_v18, %v6588_v27  ;;  %v14683_v52 = vsub.f32 %v14528_v2, %v6588_v27 }
 0x58d   : > { %16610 = vst [vmem:[#allocation89_spill] sm:$0xff] %v14649_v43  ;;  %16611 = vst [vmem:[#allocation85_spill] sm:$0xff] %v14652_v63  ;;  %v14686_v45 = vsub.f32 %v14537_v47, %v6588_v27  ;;  %v14689_v35 = vsub.f32 %v14546_v17, %v6588_v27  ;;  %v14692_v4 = vsub.f32 %v14555_v0, %v6588_v27 }
 0x58e   : > { %16612 = vst [vmem:[#allocation86_spill] sm:$0xff] %v14655_v58  ;;  %16613 = vst [vmem:[#allocation66_spill] sm:$0xff] %v14658_v61  ;;  %v14695_v13 = vsub.f32 %v14564_v16, %v6588_v27  ;;  %v14698_v5 = vsub.f32 %v14573_v6, %v6588_v27  ;;  %v14701_v18 = vsub.f32 %v14582_v7, %v6588_v27 }
 0x58f   : > { %16614 = vst [vmem:[#allocation119_spill] sm:$0xff] %v14660_v38  ;;  %16615 = vst [vmem:[#allocation120_spill] sm:$0xff] %v14662_v36  ;;  %v14704_v2 = vsub.f32 %v14591_v53, %v6588_v27  ;;  %v14707_v29 = vsub.f32 %v14597_v25, %v6588_v27  ;;  %v14710_v17 = vsub.f32 %v14603_v31, %v6588_v27 }
 0x590   : > { %16616 = vst [vmem:[#allocation121_spill] sm:$0xff] %v14665_v30  ;;  %16617 = vst [vmem:[#allocation122_spill] sm:$0xff] %v14668_v10  ;;  %v9830_v19 = vadd.f32 %v9829_v15, %v9828_v3  ;;  %v9833_v62 = vadd.f32 %v9832_v42, %v9831_v1  ;;  %v14713_v7 = vadd.f32 %v9827_v50, %v14505_v60  ;;  %v16632_v50 = vld [vmem:[#allocation101_spill] sm:$0xff] }
 0x591   : > { %16618 = vst [vmem:[#allocation123_spill] sm:$0xff] %v14671_v37  ;;  %16619 = vst [vmem:[#allocation124_spill] sm:$0xff] %v14674_v8  ;;  %v9834_v47 = vpop.f32.mrb[220].mxu1 }
 0x592   : > { %16620 = vst [vmem:[#allocation125_spill] sm:$0xff] %v14677_v33  ;;  %16621 = vst [vmem:[#allocation126_spill] sm:$0xff] %v14680_v54  ;;  %v9835_v0 = vpop.f32.mrb[221].mxu1  ;;  %v14716_v53 = vadd.f32 %v9830_v19, %v14514_v22  ;;  %v14719_v25 = vadd.f32 %v9833_v62, %v14523_v23 }
 0x593   : > { %16622 = vst [vmem:[#allocation127_spill] sm:$0xff] %v14683_v52  ;;  %16623 = vst [vmem:[#allocation128_spill] sm:$0xff] %v14686_v45  ;;  %v9837_v40 = vpop.f32.mrb[222].mxu1  ;;  %v9836_v6 = vadd.f32 %v9835_v0, %v9834_v47  ;;  %v16633_v0 = vld [vmem:[#allocation30_spill] sm:$0xff] }
 0x594   : > { %16624 = vst [vmem:[#allocation129_spill] sm:$0xff] %v14689_v35  ;;  %16625 = vst [vmem:[#allocation130_spill] sm:$0xff] %v14692_v4  ;;  %v9838_v16 = vpop.f32.mrb[223].mxu1 }
 0x595   : > { %16626 = vst [vmem:[#allocation131_spill] sm:$0xff] %v14695_v13  ;;  %16627 = vst [vmem:[#allocation132_spill] sm:$0xff] %v14698_v5  ;;  %v9839_v34 = vadd.f32 %v9838_v16, %v9837_v40  ;;  %v14722_v31 = vadd.f32 %v9836_v6, %v14532_v32 }
 0x596   : > { %16628 = vst [vmem:[#allocation133_spill] sm:$0xff] %v14701_v18  ;;  %16629 = vst [vmem:[#allocation134_spill] sm:$0xff] %v14704_v2  ;;  %v16663_v18 = vld [vmem:[#allocation27_spill] sm:$0xff] }
 0x597   : > { %16630 = vst [vmem:[#allocation135_spill] sm:$0xff] %v14707_v29  ;;  %16631 = vst [vmem:[#allocation136_spill] sm:$0xff] %v14710_v17  ;;  %v14725_v12 = vadd.f32 %v9839_v34, %v14541_v57  ;;  %v16634_v57 = vld [vmem:[#allocation67_spill] sm:$0xff] }
 0x598   : > { %v16635_v34 = vld [vmem:[#allocation31_spill] sm:$0xff] }
 0x599   : > { %v9840_v14 = vpop.f32.mrb[224].mxu1 }
 0x59a   : > { %v9841_v41 = vpop.f32.mrb[225].mxu1 }
 0x59b   : > { %v9842_v49 = vadd.f32 %v9841_v41, %v9840_v14  ;;  %v9843_v56 = vpop.f32.mrb[226].mxu1  ;;  %v6702_v14 = vmul.f32 %v16635_v34, %v16635_v34  ;;  %v16636_v41 = vld [vmem:[#allocation32_spill] sm:$0xff] }
 0x59c   : > { %v9844_v3 = vpop.f32.mrb[227].mxu1 }
 0x59d   : > { %v9845_v27 = vadd.f32 %v9844_v3, %v9843_v56  ;;  %v14728_v60 = vadd.f32 %v9842_v49, %v14550_v39  ;;  %v6709_v49 = vmul.f32 %v16636_v41, %v16636_v41 }
 0x59f   : > { %v14731_v22 = vadd.f32 %v9845_v27, %v16632_v50  ;;  %v16637_v27 = vld [vmem:[#allocation88_spill] sm:$0xff] }
 0x5a1   : > { %v9846_v15 = vpop.f32.mrb[228].mxu1 }
 0x5a2   : > { %v9847_v23 = vpop.f32.mrb[229].mxu1 }
 0x5a3   : > { %v9848_v1 = vadd.f32 %v9847_v23, %v9846_v15  ;;  %v9849_v42 = vpop.f32.mrb[230].mxu1  ;;  %v16638_v15 = vld [vmem:[#allocation60_spill] sm:$0xff] }
 0x5a4   : > { %v9850_v47 = vpop.f32.mrb[231].mxu1 }
 0x5a5   : > { %v9851_v32 = vadd.f32 %v9850_v47, %v9849_v42  ;;  %v14734_v40 = vadd.f32 %v9848_v1, %v16633_v0  ;;  %v6814_v1 = vadd.f32 %v6709_v49, %v6702_v14  ;;  %v16639_v42 = vld [vmem:[#allocation54_spill] sm:$0xff] }
 0x5a6   : > { %v6704_v47 = vmul.f32 %v16639_v42, %v16639_v42  ;;  %v16644_v42 = vld [vmem:[#allocation71_spill] sm:$0xff] }
 0x5a7   : > { %v14737_v16 = vadd.f32 %v9851_v32, %v16634_v57  ;;  %v16640_v32 = vld [vmem:[#allocation79_spill] sm:$0xff]  ;;  %v6705_v17 = vmul.f32 %v16644_v42, %v16644_v42  ;;  %v16649_v42 = vld [vmem:[#allocation72_spill] sm:$0xff] }
 0x5a8   : > { %v6711_v0 = vmul.f32 %v16640_v32, %v16640_v32  ;;  %v16645_v32 = vld [vmem:[#allocation112_spill] sm:$0xff] }
 0x5a9   : > { %v9852_v19 = vpop.f32.mrb[232].mxu1  ;;  %v6712_v36 = vmul.f32 %v16645_v32, %v16645_v32 }
 0x5aa   : > { %v9853_v62 = vpop.f32.mrb[233].mxu1  ;;  %v6856_v49 = vadd.f32 %v6711_v0, %v6704_v47  ;;  %v16648_v0 = vld [vmem:[#allocation80_spill] sm:$0xff] }
 0x5ab   : > { %v9854_v6 = vadd.f32 %v9853_v62, %v9852_v19  ;;  %v9855_v39 = vpop.f32.mrb[234].mxu1  ;;  %v16641_v19 = vld [vmem:[#allocation33_spill] sm:$0xff] }
 0x5ac   : > { %v9856_v56 = vpop.f32.mrb[235].mxu1  ;;  %v6716_v62 = vmul.f32 %v16641_v19, %v16641_v19  ;;  %v16646_v19 = vld [vmem:[#allocation62_spill] sm:$0xff] }
 0x5ad   : > { %v9857_v3 = vadd.f32 %v9856_v56, %v9855_v39  ;;  %v14744_v50 = vadd.f32 %v9854_v6, %v16637_v27  ;;  %v16642_v6 = vld [vmem:[#allocation39_spill] sm:$0xff] }
 0x5ae   : > { %v6815_v56 = vadd.f32 %v6814_v1, %v6716_v62  ;;  %v6703_v27 = vmul.f32 %v16642_v6, %v16642_v6  ;;  %v6713_v1 = vmul.f32 %v14622_v21, %v14622_v21  ;;  %v6718_v62 = vmul.f32 %v16648_v0, %v16648_v0 }
 0x5af   : > { %v14747_v23 = vadd.f32 %v9857_v3, %v16638_v15  ;;  %v16643_v3 = vld [vmem:[#allocation91_spill] sm:$0xff]  ;;  %v6877_v6 = vadd.f32 %v6712_v36, %v6705_v17  ;;  %v6707_v21 = vmul.f32 %v14665_v30, %v14665_v30 }
 0x5b0   : > { %v6710_v14 = vmul.f32 %v16643_v3, %v16643_v3 }
 0x5b1   : > { %v9858_v57 = vpop.f32.mrb[236].mxu1 }
 0x5b2   : > { %v9859_v41 = vpop.f32.mrb[237].mxu1  ;;  %v6835_v32 = vadd.f32 %v6710_v14, %v6703_v27  ;;  %v16652_v27 = vld [vmem:[#allocation113_spill] sm:$0xff] }
 0x5b3   : > { %v9860_v34 = vadd.f32 %v9859_v41, %v9858_v57  ;;  %v9861_v39 = vpop.f32.mrb[238].mxu1  ;;  %v6706_v41 = vmul.f32 %v14619_v44, %v14619_v44  ;;  %v16647_v57 = vld [vmem:[#allocation102_spill] sm:$0xff]  ;;  %v6719_v14 = vmul.f32 %v16652_v27, %v16652_v27 }
 0x5b4   : > { %v9862_v15 = vpop.f32.mrb[239].mxu1  ;;  %v6723_v47 = vmul.f32 %v16647_v57, %v16647_v57  ;;  %v6714_v57 = vmul.f32 %v14668_v10, %v14668_v10 }
 0x5b5   : > { %v9863_v29 = vadd.f32 %v9862_v15, %v9861_v39  ;;  %v14764_v38 = vadd.f32 %v9860_v34, %v16646_v19  ;;  %v16650_v15 = vld [vmem:[#allocation92_spill] sm:$0xff]  ;;  %v6857_v19 = vadd.f32 %v6856_v49, %v6718_v62  ;;  %v6898_v2 = vadd.f32 %v6713_v1, %v6706_v41  ;;  %v16654_v49 = vld [vmem:[#allocation103_spill] sm:$0xff] }
 0x5b6   : > { %v6816_v39 = vadd.f32 %v6815_v56, %v6723_v47  ;;  %v6717_v34 = vmul.f32 %v16650_v15, %v16650_v15  ;;  %v6730_v41 = vmul.f32 %v16654_v49, %v16654_v49  ;;  %v6720_v47 = vmul.f32 %v14625_v28, %v14625_v28  ;;  %v16657_v49 = vld [vmem:[#allocation36_spill] sm:$0xff] }
 0x5b7   : > { %v14775_v3 = vadd.f32 %v9863_v29, %v16649_v42  ;;  %v16651_v42 = vld [vmem:[#allocation61_spill] sm:$0xff]  ;;  %v6878_v10 = vadd.f32 %v6877_v6, %v6719_v14  ;;  %v6919_v15 = vadd.f32 %v6714_v57, %v6707_v21  ;;  %v6727_v21 = vmul.f32 %v14628_v51, %v14628_v51 }
 0x5b8   : > { %v6725_v56 = vmul.f32 %v16651_v42, %v16651_v42  ;;  %v6836_v1 = vadd.f32 %v6835_v32, %v6717_v34  ;;  %v6817_v27 = vadd.f32 %v6816_v39, %v6730_v41  ;;  %v6899_v42 = vadd.f32 %v6898_v2, %v6720_v47  ;;  %v16658_v34 = vld [vmem:[#allocation111_spill] sm:$0xff]  ;;  %v16660_v39 = vld [vmem:[#allocation38_spill] sm:$0xff]  ;;  %v11067_v57 = vld [vmem:[#allocation13 + $0x14] ss:$8 sps:$4 sm:$0xff]  }
 0x5b9   : > { %v9924_v44 = vpop.f32.mrb[240].mxu1  ;;  %v6737_v32 = vmul.f32 %v16657_v49, %v16657_v49  ;;  %v6732_v28 = vmul.f32 %v16658_v34, %v16658_v34  ;;  %v6721_v2 = vmul.f32 %v14671_v37, %v14671_v37  ;;  %v16661_v41 = vld [vmem:[#allocation104_spill] sm:$0xff]  ;;  %v16662_v37 = vld [vmem:[#allocation75_spill] sm:$0xff] }
 0x5ba   : > { %v14784_v0 = vadd.f32 %v9924_v44, %v14616_v20  ;;  %v6371_v29 = vpop.f32.mrb[241].mxu1  ;;  %v6858_v62 = vadd.f32 %v6857_v19, %v6725_v56  ;;  %v11064_v19 = vld [vmem:[#allocation13 + $0x4] ss:$8 sps:$4 sm:$0xff]   ;;  %v6744_v56 = vmul.f32 %v16660_v39, %v16660_v39  ;;  %v6731_v47 = vmul.f32 %v16661_v41, %v16661_v41  ;;  %v11065_v51 = vld [vmem:[#allocation13 + $0x10] ss:$8 sps:$4 sm:$0xff]  }
 0x5bb   : > { %v14791_v36 = vadd.f32 %v6371_v29, %v14610_v26  ;;  %v9925_v17 = vpop.f32.mrb[242].mxu1  ;;  %v16656_v26 = vld [vmem:[#allocation93_spill] sm:$0xff]  ;;  %8187 = vmatprep.subr.bf16.mxu0 %v11064_v19  ;;  %v6920_v39 = vadd.f32 %v6919_v15, %v6721_v2  ;;  %v11070_v15 = vld [vmem:[#allocation13 + $0x24] ss:$8 sps:$4 sm:$0xff]  }
 0x5bc   : > { %v14798_v20 = vadd.f32 %v9925_v17, %v14713_v7  ;;  %v6374_v44 = vpop.f32.mrb[243].mxu1  ;;  %v6724_v29 = vmul.f32 %v16656_v26, %v16656_v26  ;;  %v16659_v7 = vld [vmem:[#allocation26_spill] sm:$0xff]  ;;  %v6818_v26 = vadd.f32 %v6817_v27, %v6737_v32 }
 0x5bd   : > { %16653 = vst [vmem:[#allocation101_spill] sm:$0xff] %v14791_v36  ;;  %v14801_v30 = vadd.f32 %v6374_v44, %v14613_v55  ;;  %v6726_v17 = vmul.f32 %v16659_v7, %v16659_v7  ;;  %v11062_v55 = vld [vmem:[#allocation13] ss:$8 sps:$4 sm:$0xff]   ;;  %v6859_v44 = vadd.f32 %v6858_v62, %v6732_v28  ;;  %v6733_v28 = vmul.f32 %v16663_v18, %v16663_v18 }
 0x5be   : > { %v6837_v14 = vadd.f32 %v6836_v1, %v6724_v29  ;;  %8188 = vmatpush1.bf16.msra.mxu0 %v11062_v55  ;;  %v16664_v19 = vld [vmem:[#allocation34_spill] sm:$0xff]  ;;  %v6819_v18 = vadd.f32 %v6818_v26, %v6744_v56  ;;  %v16671_v56 = vld [vmem:[#allocation95_spill] sm:$0xff] }
 0x5bf   : > { %16655 = vst [vmem:[#allocation30_spill] sm:$0xff] %v14801_v30  ;;  %v6562_v6 = vadd.f32 %v14801_v30, %v14791_v36  ;;  %v6879_v7 = vadd.f32 %v6878_v10, %v6726_v17  ;;  %v6900_v30 = vadd.f32 %v6899_v42, %v6727_v21  ;;  %v6739_v36 = vmul.f32 %v16662_v37, %v16662_v37  ;;  %v16665_v21 = vld [vmem:[#allocation105_spill] sm:$0xff] }
 0x5c0   : > { %8189 = vmatprep.subr.bf16.mxu0 %v11067_v57  ;;  %v6838_v42 = vadd.f32 %v6837_v14, %v6731_v47  ;;  %v6751_v14 = vmul.f32 %v16664_v19, %v16664_v19  ;;  %v6738_v2 = vmul.f32 %v16665_v21, %v16665_v21 }
 0x5c1   : > { %v6563_v34 = vadd.f32 %v6562_v6, %v14784_v0  ;;  %v9928_v49 = vpop.f32.mrb[244].mxu1  ;;  %v6860_v6 = vadd.f32 %v6859_v44, %v6739_v36  ;;  %v6880_v55 = vadd.f32 %v6879_v7, %v6733_v28  ;;  %v16667_v7 = vld [vmem:[#allocation51_spill] sm:$0xff]  ;;  %v16668_v44 = vld [vmem:[#allocation94_spill] sm:$0xff] }
 0x5c2   : > { %v14823_v1 = vadd.f32 %v9928_v49, %v14722_v31  ;;  %v6387_v29 = vpop.f32.mrb[245].mxu1  ;;  %v6734_v31 = vmul.f32 %v14631_v11, %v14631_v11  ;;  %v6728_v49 = vmul.f32 %v14674_v8, %v14674_v8  ;;  %8190 = vmatpush1.bf16.msra.mxu0 %v11065_v51  ;;  %v16666_v11 = vld [vmem:[#allocation40_spill] sm:$0xff]  ;;  %v6740_v28 = vmul.f32 %v16668_v44, %v16668_v44 }
 0x5c3   : > { %v14830_v10 = vadd.f32 %v6387_v29, %v14716_v53  ;;  %v6564_v62 = vadd.f32 %v6563_v34, %v14798_v20  ;;  %v9929_v27 = vpop.f32.mrb[246].mxu1  ;;  %v11068_v29 = vld [vmem:[#allocation13 + $0x20] ss:$8 sps:$4 sm:$0xff]   ;;  %v14850_v36 = vmul.f32 %v16666_v11, %v16666_v11  ;;  %8191 = vmatprep.subr.bf16.mxu0 %v11070_v15  ;;  %v6735_v8 = vmul.f32 %v14677_v33, %v14677_v33  ;;  %v11092_v15 = vld [vmem:[#allocation13 + $0x310] ss:$8 sps:$4 sm:$0xff]  }
 0x5c4   : > { %v14838_v32 = vadd.f32 %v9929_v27, %v14725_v12  ;;  %v6390_v17 = vpop.f32.mrb[247].mxu1  ;;  %v6901_v57 = vadd.f32 %v6900_v30, %v6734_v31  ;;  %v6921_v47 = vadd.f32 %v6920_v39, %v6728_v49  ;;  %v11086_v12 = vld [vmem:[#allocation13 + $0x300] ss:$8 sps:$4 sm:$0xff]   ;;  %v11088_v27 = vld [vmem:[#allocation13 + $0x304] ss:$8 sps:$4 sm:$0xff]   ;;  %v6839_v31 = vadd.f32 %v6838_v42, %v6738_v2  ;;  %v16670_v33 = vld [vmem:[#allocation56_spill] sm:$0xff] }
 0x5c5   : > { %v6565_v53 = vadd.f32 %v6564_v62, %v14830_v10  ;;  %v14842_v34 = vadd.f32 %v6390_v17, %v14719_v25  ;;  %v6746_v25 = vmul.f32 %v16667_v7, %v16667_v7  ;;  %v11073_v17 = vld [vmem:[#allocation13 + $0x34] ss:$8 sps:$4 sm:$0xff]   ;;  %v16669_v39 = vld [vmem:[#allocation106_spill] sm:$0xff]  ;;  %v6741_v49 = vmul.f32 %v14634_v59, %v14634_v59  ;;  %9938 = vmatprep.subr.bf16.mxu1 %v11088_v27  ;;  %v11071_v2 = vld [vmem:[#allocation13 + $0x30] ss:$8 sps:$4 sm:$0xff]  }
 0x5c6   : > { %v11094_v30 = vld [vmem:[#allocation13 + $0x314] ss:$8 sps:$4 sm:$0xff]   ;;  %v6745_v51 = vmul.f32 %v16669_v39, %v16669_v39  ;;  %v6881_v37 = vadd.f32 %v6880_v55, %v6740_v28  ;;  %9946 = vmatpush1.bf16.msra.mxu1 %v11086_v12  ;;  %v6922_v19 = vadd.f32 %v6921_v47, %v6735_v8  ;;  %8192 = vmatpush1.bf16.msra.mxu0 %v11068_v29  ;;  %v11100_v59 = vld [vmem:[#allocation13 + $0x324] ss:$8 sps:$4 sm:$0xff]  }
 0x5c7   : > { %v6566_v62 = vadd.f32 %v6565_v53, %v14842_v34  ;;  %v6861_v7 = vadd.f32 %v6860_v6, %v6746_v25  ;;  %v6902_v11 = vadd.f32 %v6901_v57, %v6741_v49  ;;  %9939 = vmatprep.subr.bf16.mxu1 %v11094_v30  ;;  %v6753_v26 = vmul.f32 %v16670_v33, %v16670_v33  ;;  %v16672_v30 = vld [vmem:[#allocation108_spill] sm:$0xff] }
 0x5c8   : > { %v6747_v6 = vmul.f32 %v16671_v56, %v16671_v56  ;;  %8193 = vmatprep.subr.bf16.mxu0 %v11073_v17  ;;  %v6840_v47 = vadd.f32 %v6839_v31, %v6745_v51  ;;  %v6748_v29 = vmul.f32 %v14637_v46, %v14637_v46  ;;  %v6742_v12 = vmul.f32 %v14680_v54, %v14680_v54  ;;  %v11098_v17 = vld [vmem:[#allocation13 + $0x320] ss:$8 sps:$4 sm:$0xff]   ;;  %v11077_v56 = vld [vmem:[#allocation13 + $0x50] ss:$8 sps:$4 sm:$0xff]  }
 0x5c9   : > { %v6567_v44 = vadd.f32 %v6566_v62, %v14823_v1  ;;  %v9932_v53 = vpop.f32.mrb[248].mxu1  ;;  %v6862_v28 = vadd.f32 %v6861_v7, %v6753_v26  ;;  %v6752_v51 = vmul.f32 %v16672_v30, %v16672_v30  ;;  %v16674_v7 = vld [vmem:[#allocation96_spill] sm:$0xff] }
 0x5ca   : > { %v14865_v39 = vadd.f32 %v9932_v53, %v14734_v40  ;;  %v6403_v42 = vpop.f32.mrb[249].mxu1  ;;  %v11076_v40 = vld [vmem:[#allocation13 + $0x44] ss:$8 sps:$4 sm:$0xff]   ;;  %v6882_v62 = vadd.f32 %v6881_v37, %v6747_v6  ;;  %9947 = vmatpush1.bf16.msra.mxu1 %v11092_v15  ;;  %v6903_v31 = vadd.f32 %v6902_v11, %v6748_v29  ;;  %v6923_v49 = vadd.f32 %v6922_v19, %v6742_v12  ;;  %v11074_v53 = vld [vmem:[#allocation13 + $0x40] ss:$8 sps:$4 sm:$0xff]  }
 0x5cb   : > { %v14872_v55 = vadd.f32 %v6403_v42, %v14728_v60  ;;  %v6568_v57 = vadd.f32 %v6567_v44, %v14838_v32  ;;  %v9933_v8 = vpop.f32.mrb[250].mxu1  ;;  %8194 = vmatpush1.bf16.msra.mxu0 %v11071_v2  ;;  %9940 = vmatprep.subr.bf16.mxu1 %v11100_v59  ;;  %v6820_v42 = vadd.f32 %v6819_v18, %v6751_v14  ;;  %v11079_v15 = vld [vmem:[#allocation13 + $0x54] ss:$8 sps:$4 sm:$0xff]   ;;  %v16675_v6 = vld [vmem:[#allocation35_spill] sm:$0xff] }
 0x5cc   : > { %v14880_v27 = vadd.f32 %v9933_v8, %v14737_v16  ;;  %v6406_v25 = vpop.f32.mrb[251].mxu1  ;;  %v11106_v16 = vld [vmem:[#allocation13 + $0x334] ss:$8 sps:$4 sm:$0xff]   ;;  %v16673_v8 = vld [vmem:[#allocation50_spill] sm:$0xff]  ;;  %v6754_v26 = vmul.f32 %v16674_v7, %v16674_v7  ;;  %8195 = vmatprep.subr.bf16.mxu0 %v11076_v40  ;;  %v16676_v11 = vld [vmem:[#allocation107_spill] sm:$0xff]  ;;  %v6755_v59 = vmul.f32 %v14640_v24, %v14640_v24  ;;  %v6749_v18 = vmul.f32 %v14683_v52, %v14683_v52 }
 0x5cd   : > { %v6569_v60 = vadd.f32 %v6568_v57, %v14872_v55  ;;  %v14884_v44 = vadd.f32 %v6406_v25, %v14731_v22  ;;  %v6760_v37 = vmul.f32 %v16673_v8, %v16673_v8  ;;  %v6765_v57 = vmul.f32 %v16675_v6, %v16675_v6  ;;  %v11104_v40 = vld [vmem:[#allocation13 + $0x330] ss:$8 sps:$4 sm:$0xff]   ;;  %v11112_v24 = vld [vmem:[#allocation13 + $0x344] ss:$8 sps:$4 sm:$0xff]  }
 0x5ce   : > { %v6759_v19 = vmul.f32 %v16676_v11, %v16676_v11  ;;  %v6841_v14 = vadd.f32 %v6840_v47, %v6752_v51  ;;  %v6883_v29 = vadd.f32 %v6882_v62, %v6754_v26  ;;  %9948 = vmatpush1.bf16.msra.mxu1 %v11098_v17  ;;  %v6924_v46 = vadd.f32 %v6923_v49, %v6749_v18  ;;  %v16677_v47 = vld [vmem:[#allocation57_spill] sm:$0xff] }
 0x5cf   : > { %v6570_v22 = vadd.f32 %v6569_v60, %v14884_v44  ;;  %v6863_v2 = vadd.f32 %v6862_v28, %v6760_v37  ;;  %v6904_v60 = vadd.f32 %v6903_v31, %v6755_v59  ;;  %8196 = vmatpush1.bf16.msra.mxu0 %v11074_v53  ;;  %9941 = vmatprep.subr.bf16.mxu1 %v11106_v16  ;;  %v11082_v31 = vld [vmem:[#allocation13 + $0x64] ss:$8 sps:$4 sm:$0xff]  }
 0x5d0   : > { %v6821_v52 = vadd.f32 %v6820_v42, %v14850_v36  ;;  %v6767_v28 = vmul.f32 %v16677_v47, %v16677_v47  ;;  %8197 = vmatprep.subr.bf16.mxu0 %v11079_v15  ;;  %v6762_v53 = vmul.f32 %v14643_v48, %v14643_v48  ;;  %v6756_v36 = vmul.f32 %v14686_v45, %v14686_v45  ;;  %v16679_v48 = vld [vmem:[#allocation110_spill] sm:$0xff] }
 0x5d1   : > { %v6571_v12 = vadd.f32 %v6570_v22, %v14865_v39  ;;  %v9936_v25 = vpop.f32.mrb[252].mxu1  ;;  %v11110_v22 = vld [vmem:[#allocation13 + $0x340] ss:$8 sps:$4 sm:$0xff]  }
 0x5d2   : > { %v14903_v54 = vadd.f32 %v9936_v25, %v14764_v38  ;;  %v6419_v7 = vpop.f32.mrb[253].mxu1  ;;  %v16678_v38 = vld [vmem:[#allocation97_spill] sm:$0xff]  ;;  %v6864_v37 = vadd.f32 %v6863_v2, %v6767_v28  ;;  %9949 = vmatpush1.bf16.msra.mxu1 %v11104_v40  ;;  %v6905_v59 = vadd.f32 %v6904_v60, %v6762_v53  ;;  %v6925_v18 = vadd.f32 %v6924_v46, %v6756_v36  ;;  %v16681_v40 = vld [vmem:[#allocation28_spill] sm:$0xff] }
 0x5d3   : > { %v14909_v62 = vadd.f32 %v6419_v7, %v14744_v50  ;;  %v6572_v17 = vadd.f32 %v6571_v12, %v14880_v27  ;;  %v9937_v51 = vpop.f32.mrb[254].mxu1  ;;  %v6761_v49 = vmul.f32 %v16678_v38, %v16678_v38  ;;  %v6842_v50 = vadd.f32 %v6841_v14, %v6759_v19  ;;  %8198 = vmatpush1.bf16.msra.mxu0 %v11077_v56  ;;  %v11080_v12 = vld [vmem:[#allocation13 + $0x60] ss:$8 sps:$4 sm:$0xff]   ;;  %v11118_v25 = vld [vmem:[#allocation13 + $0x354] ss:$8 sps:$4 sm:$0xff]  }
 0x5d4   : > { %v14919_v16 = vadd.f32 %v9937_v51, %v14775_v3  ;;  %v6422_v42 = vpop.f32.mrb[255].mxu1  ;;  %9942 = vmatprep.subr.bf16.mxu1 %v11112_v24  ;;  %v6766_v3 = vmul.f32 %v16679_v48, %v16679_v48  ;;  %v16680_v51 = vld [vmem:[#allocation58_spill] sm:$0xff]  ;;  %8199 = vmatprep.subr.bf16.mxu0 %v11082_v31  ;;  %v6822_v2 = vadd.f32 %v6821_v52, %v6765_v57  ;;  %v11116_v31 = vld [vmem:[#allocation13 + $0x350] ss:$8 sps:$4 sm:$0xff]  }
 0x5d5   : > { %v6573_v7 = vadd.f32 %v6572_v17, %v14909_v62  ;;  %v14923_v26 = vadd.f32 %v6422_v42, %v14747_v23  ;;  %v6884_v15 = vadd.f32 %v6883_v29, %v6761_v49  ;;  %v6774_v19 = vmul.f32 %v16680_v51, %v16680_v51  ;;  %v11085_v23 = vld [vmem:[#allocation13 + $0x74] ss:$8 sps:$4 sm:$0xff]   ;;  %v16682_v56 = vld [vmem:[#allocation42_spill] sm:$0xff]  ;;  %v11083_v36 = vld [vmem:[#allocation13 + $0x70] ss:$8 sps:$4 sm:$0xff]  }
 0x5d6   : > { %v6768_v29 = vmul.f32 %v16681_v40, %v16681_v40  ;;  %v6769_v46 = vmul.f32 %v14646_v9, %v14646_v9  ;;  %v6763_v24 = vmul.f32 %v14689_v35, %v14689_v35  ;;  %v6772_v60 = vmul.f32 %v16682_v56, %v16682_v56  ;;  %9950 = vmatpush1.bf16.msra.mxu1 %v11110_v22  ;;  %v11124_v42 = vld [vmem:[#allocation13 + $0x364] ss:$8 sps:$4 sm:$0xff]   ;;  %v16685_v22 = vld [vmem:[#allocation29_spill] sm:$0xff] }
 0x5d7   : > { %v6574_v14 = vadd.f32 %v6573_v7, %v14923_v26  ;;  %v6843_v28 = vadd.f32 %v6842_v50, %v6766_v3  ;;  %v6865_v17 = vadd.f32 %v6864_v37, %v6774_v19  ;;  %8200 = vmatpush1.bf16.msra.mxu0 %v11080_v12  ;;  %9943 = vmatprep.subr.bf16.mxu1 %v11118_v25  ;;  %v16683_v7 = vld [vmem:[#allocation41_spill] sm:$0xff]  ;;  %v16684_v35 = vld [vmem:[#allocation78_spill] sm:$0xff]  ;;  %v16686_v12 = vld [vmem:[#allocation44_spill] sm:$0xff] }
 0x5d8   : > { %v6885_v53 = vadd.f32 %v6884_v15, %v6768_v29  ;;  %v6906_v52 = vadd.f32 %v6905_v59, %v6769_v46  ;;  %v6926_v57 = vadd.f32 %v6925_v18, %v6763_v24  ;;  %v6773_v9 = vmul.f32 %v16683_v7, %v16683_v7  ;;  %8201 = vmatprep.subr.bf16.mxu0 %v11085_v23  ;;  %v11091_v37 = vld [vmem:[#allocation13 + $0x84] ss:$8 sps:$4 sm:$0xff]   ;;  %v11122_v46 = vld [vmem:[#allocation13 + $0x360] ss:$8 sps:$4 sm:$0xff]  }
 0x5d9   : > { %v6575_v49 = vadd.f32 %v6574_v14, %v14903_v54  ;;  %v6781_v45 = vmul.f32 %v16684_v35, %v16684_v35  ;;  %v6823_v3 = vadd.f32 %v6822_v2, %v6772_v60  ;;  %v6775_v15 = vmul.f32 %v16685_v22, %v16685_v22  ;;  %v11089_v60 = vld [vmem:[#allocation13 + $0x80] ss:$8 sps:$4 sm:$0xff]  }
 0x5da   : > { %v6776_v59 = vmul.f32 %v14649_v43, %v14649_v43  ;;  %v6770_v18 = vmul.f32 %v14692_v4, %v14692_v4  ;;  %v6779_v25 = vmul.f32 %v16686_v12, %v16686_v12  ;;  %v6844_v19 = vadd.f32 %v6843_v28, %v6773_v9  ;;  %9951 = vmatpush1.bf16.msra.mxu1 %v11116_v31  ;;  %v16687_v22 = vld [vmem:[#allocation43_spill] sm:$0xff]  ;;  %v16688_v40 = vld [vmem:[#allocation90_spill] sm:$0xff]  ;;  %v11097_v9 = vld [vmem:[#allocation13 + $0x94] ss:$8 sps:$4 sm:$0xff]  }
 0x5db   : > { %v6576_v50 = vadd.f32 %v6575_v49, %v14919_v16  ;;  %v6866_v14 = vadd.f32 %v6865_v17, %v6781_v45  ;;  %v6886_v23 = vadd.f32 %v6885_v53, %v6775_v15  ;;  %8202 = vmatpush1.bf16.msra.mxu0 %v11083_v36  ;;  %9944 = vmatprep.subr.bf16.mxu1 %v11124_v42  ;;  %v11130_v49 = vld [vmem:[#allocation13 + $0x374] ss:$8 sps:$4 sm:$0xff]   ;;  %v16689_v28 = vld [vmem:[#allocation98_spill] sm:$0xff] }
 0x5dc   : > { %v6907_v24 = vadd.f32 %v6906_v52, %v6776_v59  ;;  %v6927_v2 = vadd.f32 %v6926_v57, %v6770_v18  ;;  %v6780_v43 = vmul.f32 %v16687_v22, %v16687_v22  ;;  %v6788_v4 = vmul.f32 %v16688_v40, %v16688_v40  ;;  %8203 = vmatprep.subr.bf16.mxu0 %v11091_v37  ;;  %v16690_v52 = vld [vmem:[#allocation47_spill] sm:$0xff] }
 0x5dd   : > { %v6577_v29 = vrot.slane %v6576_v50, 4  ;;  %v6824_v45 = vadd.f32 %v6823_v3, %v6779_v25  ;;  %v6782_v17 = vmul.f32 %v16689_v28, %v16689_v28  ;;  %v6783_v31 = vmul.f32 %v14652_v63, %v14652_v63  ;;  %v11095_v18 = vld [vmem:[#allocation13 + $0x90] ss:$8 sps:$4 sm:$0xff]   ;;  %v11103_v40 = vld [vmem:[#allocation13 + $0xa4] ss:$8 sps:$4 sm:$0xff]  }
 0x5de   : > { %v6777_v53 = vmul.f32 %v14695_v13, %v14695_v13  ;;  %v6786_v57 = vmul.f32 %v16690_v52, %v16690_v52  ;;  %v6845_v36 = vadd.f32 %v6844_v19, %v6780_v43  ;;  %v6867_v42 = vadd.f32 %v6866_v14, %v6788_v4  ;;  %9952 = vmatpush1.bf16.msra.mxu1 %v11122_v46  ;;  %v16691_v25 = vld [vmem:[#allocation45_spill] sm:$0xff]  ;;  %v16693_v4 = vld [vmem:[#allocation55_spill] sm:$0xff] }
 0x5df   : > { %v6578_v38 = vadd.f32 %v6577_v29, %v6576_v50  ;;  %v11128_v50 = vld [vmem:[#allocation13 + $0x370] ss:$8 sps:$4 sm:$0xff]   ;;  %v6887_v37 = vadd.f32 %v6886_v23, %v6782_v17  ;;  %v6908_v59 = vadd.f32 %v6907_v24, %v6783_v31  ;;  %8204 = vmatpush1.bf16.msra.mxu0 %v11089_v60  ;;  %9945 = vmatprep.subr.bf16.mxu1 %v11130_v49 }
 0x5e0   : > { %v6928_v3 = vadd.f32 %v6927_v2, %v6777_v53  ;;  %v6787_v29 = vmul.f32 %v16691_v25, %v16691_v25  ;;  %v16692_v28 = vld [vmem:[#allocation53_spill] sm:$0xff]  ;;  %8205 = vmatprep.subr.bf16.mxu0 %v11097_v9  ;;  %v6825_v43 = vadd.f32 %v6824_v45, %v6786_v57  ;;  %v6789_v19 = vmul.f32 %v16693_v4, %v16693_v4  ;;  %v16697_v4 = vld [vmem:[#allocation48_spill] sm:$0xff] }
 0x5e1   : > { %v6579_v15 = vrot.slane %v6578_v38, 2  ;;  %v6795_v63 = vmul.f32 %v16692_v28, %v16692_v28  ;;  %v6790_v14 = vmul.f32 %v14655_v58, %v14655_v58  ;;  %v6784_v46 = vmul.f32 %v14698_v5, %v14698_v5  ;;  %v16694_v23 = vld [vmem:[#allocation37_spill] sm:$0xff]  ;;  %v16698_v5 = vld [vmem:[#allocation59_spill] sm:$0xff] }
 0x5e2   : > { %v6793_v24 = vmul.f32 %v16694_v23, %v16694_v23  ;;  %v6846_v2 = vadd.f32 %v6845_v36, %v6787_v29  ;;  %9953 = vmatpush1.bf16.msra.mxu1 %v11128_v50  ;;  %v6888_v45 = vadd.f32 %v6887_v37, %v6789_v19  ;;  %v11101_v53 = vld [vmem:[#allocation13 + $0xa0] ss:$8 sps:$4 sm:$0xff]   ;;  %v6801_v58 = vmul.f32 %v16697_v4, %v16697_v4 }
 0x5e3   : > { %v6580_v13 = vadd.f32 %v6579_v15, %v6578_v38  ;;  %v6868_v60 = vadd.f32 %v6867_v42, %v6795_v63  ;;  %v16695_v38 = vld [vmem:[#allocation73_spill] sm:$0xff]  ;;  %v6909_v17 = vadd.f32 %v6908_v59, %v6790_v14  ;;  %v6929_v31 = vadd.f32 %v6928_v3, %v6784_v46  ;;  %8206 = vmatpush1.bf16.msra.mxu0 %v11095_v18  ;;  %v16699_v29 = vld [vmem:[#allocation99_spill] sm:$0xff]  ;;  %v16701_v46 = vld [vmem:[#allocation100_spill] sm:$0xff] }
 0x5e4   : > { %v6800_v9 = vmul.f32 %v16695_v38, %v16695_v38  ;;  %v16696_v57 = vld [vmem:[#allocation49_spill] sm:$0xff]  ;;  %v6802_v36 = vmul.f32 %v16698_v5, %v16698_v5  ;;  %8207 = vmatprep.subr.bf16.mxu0 %v11103_v40  ;;  %v6826_v50 = vadd.f32 %v6825_v43, %v6793_v24  ;;  %v6796_v37 = vmul.f32 %v16699_v29, %v16699_v29  ;;  %v16702_v40 = vld [vmem:[#allocation134_spill] sm:$0xff] }
 0x5e5   : > { %v6581_v49 = vrot.slane %v6580_v13, 1  ;;  %v6794_v15 = vmul.f32 %v16696_v57, %v16696_v57  ;;  %v11109_v42 = vld [vmem:[#allocation13 + $0xb4] ss:$8 sps:$4 sm:$0xff]   ;;  %v6797_v59 = vmul.f32 %v14658_v61, %v14658_v61  ;;  %v6803_v28 = vmul.f32 %v16701_v46, %v16701_v46  ;;  %v16705_v61 = vld [vmem:[#allocation30_spill] sm:$0xff] }
 0x5e6   : > { %v16700_v3 = vld [vmem:[#allocation133_spill] sm:$0xff]  ;;  %v6869_v14 = vadd.f32 %v6868_v60, %v6802_v36  ;;  %v6889_v5 = vadd.f32 %v6888_v45, %v6796_v37  ;;  %v6798_v43 = vmul.f32 %v16702_v40, %v16702_v40  ;;  %v11115_v45 = vld [vmem:[#allocation13 + $0xc4] ss:$8 sps:$4 sm:$0xff]   ;;  %v16712_v37 = vld [vmem:[#allocation76_spill] sm:$0xff] }
 0x5e7   : > { %v6582_v63 = vadd.f32 %v6581_v49, %v6580_v13  ;;  %v6791_v18 = vmul.f32 %v16700_v3, %v16700_v3  ;;  %v6847_v19 = vadd.f32 %v6846_v2, %v6794_v15  ;;  %v6910_v13 = vadd.f32 %v6909_v17, %v6797_v59  ;;  %8208 = vmatpush1.bf16.msra.mxu0 %v11101_v53  ;;  %v11107_v49 = vld [vmem:[#allocation13 + $0xb0] ss:$8 sps:$4 sm:$0xff]  }
 0x5e8   : > { %v16703_v29 = vld [vmem:[#allocation101_spill] sm:$0xff]  ;;  %8209 = vmatprep.subr.bf16.mxu0 %v11109_v42  ;;  %v6890_v36 = vadd.f32 %v6889_v5, %v6803_v28  ;;  %v16710_v42 = vld [vmem:[#allocation70_spill] sm:$0xff]  ;;  %v6810_v5 = vmul.f32 %v16712_v37, %v16712_v37  ;;  %v16713_v28 = vld [vmem:[#allocation135_spill] sm:$0xff] }
 0x5e9   : > { %v6589_v35 = vmul.f32 0.0078125, %v6582_v63  ;;  %v6930_v24 = vadd.f32 %v6929_v31, %v6791_v18  ;;  %v11121_v63 = vld [vmem:[#allocation13 + $0xd4] ss:$8 sps:$4 sm:$0xff]   ;;  %v6805_v59 = vmul.f32 %v16713_v28, %v16713_v28  ;;  %v11127_v37 = vld [vmem:[#allocation13 + $0xe4] ss:$8 sps:$4 sm:$0xff]  }
 0x5ea   : > { %v16714_v18 = vld [vmem:[#allocation77_spill] sm:$0xff]  ;;  %v16717_v3 = vld [vmem:[#allocation136_spill] sm:$0xff] }
 0x5eb   : > { %v14995_v51 = vsub.f32 %v16703_v29, %v6589_v35  ;;  %v14998_v47 = vsub.f32 %v16705_v61, %v6589_v35  ;;  %v15001_v2 = vsub.f32 %v14784_v0, %v6589_v35  ;;  %v15004_v60 = vsub.f32 %v14798_v20, %v6589_v35  ;;  %8210 = vmatpush1.bf16.msra.mxu0 %v11107_v49  ;;  %v16711_v29 = vld [vmem:[#allocation119_spill] sm:$0xff] }
 0x5ec   : > { %v15007_v17 = vsub.f32 %v14830_v10, %v6589_v35  ;;  %v15010_v31 = vsub.f32 %v14842_v34, %v6589_v35  ;;  %v15013_v53 = vsub.f32 %v14823_v1, %v6589_v35  ;;  %v15016_v61 = vsub.f32 %v14838_v32, %v6589_v35  ;;  %8211 = vmatprep.subr.bf16.mxu0 %v11115_v45  ;;  %v11119_v45 = vld [vmem:[#allocation13 + $0xd0] ss:$8 sps:$4 sm:$0xff]  }
 0x5ed   : > { %16704 = vst [vmem:[#allocation67_spill] sm:$0xff] %v14995_v51  ;;  %16706 = vst [vmem:[#allocation88_spill] sm:$0xff] %v14998_v47  ;;  %v15019_v0 = vsub.f32 %v14872_v55, %v6589_v35  ;;  %v15022_v20 = vsub.f32 %v14884_v44, %v6589_v35  ;;  %v15025_v15 = vsub.f32 %v14865_v39, %v6589_v35  ;;  %v11113_v44 = vld [vmem:[#allocation13 + $0xc0] ss:$8 sps:$4 sm:$0xff]  }
 0x5ee   : > { %16707 = vst [vmem:[#allocation60_spill] sm:$0xff] %v15010_v31  ;;  %v15028_v10 = vsub.f32 %v14880_v27, %v6589_v35  ;;  %v15031_v34 = vsub.f32 %v14909_v62, %v6589_v35  ;;  %v15034_v1 = vsub.f32 %v14923_v26, %v6589_v35  ;;  %v15037_v32 = vsub.f32 %v14903_v54, %v6589_v35 }
 0x5ef   : > { %16708 = vst [vmem:[#allocation62_spill] sm:$0xff] %v15025_v15  ;;  %v15040_v55 = vsub.f32 %v14919_v16, %v6589_v35  ;;  %v6931_v39 = vadd.f32 %v6930_v24, %v6798_v43  ;;  %v6708_v27 = vmul.f32 %v14995_v51, %v14995_v51  ;;  %v6715_v62 = vmul.f32 %v14998_v47, %v14998_v47  ;;  %v16715_v24 = vld [vmem:[#allocation46_spill] sm:$0xff] }
 0x5f0   : > { %16709 = vst [vmem:[#allocation72_spill] sm:$0xff] %v15028_v10  ;;  %v6827_v26 = vadd.f32 %v6826_v50, %v6800_v9  ;;  %v6809_v54 = vmul.f32 %v16710_v42, %v16710_v42  ;;  %v6804_v35 = vmul.f32 %v16711_v29, %v16711_v29  ;;  %v6848_v16 = vadd.f32 %v6847_v19, %v6801_v58  ;;  %v16716_v29 = vld [vmem:[#allocation120_spill] sm:$0xff] }
 0x5f1   : > { %v6807_v43 = vmul.f32 %v16714_v18, %v16714_v18  ;;  %v6808_v49 = vmul.f32 %v16715_v24, %v16715_v24  ;;  %8212 = vmatpush1.bf16.msra.mxu0 %v11113_v44  ;;  %v6891_v47 = vadd.f32 %v6890_v36, %v6810_v5  ;;  %v6932_v51 = vadd.f32 %v6931_v39, %v6805_v59  ;;  %v11125_v39 = vld [vmem:[#allocation13 + $0xe0] ss:$8 sps:$4 sm:$0xff]  }
 0x5f2   : > { %v6870_v9 = vadd.f32 %v6869_v14, %v6809_v54  ;;  %v6911_v50 = vadd.f32 %v6910_v13, %v6804_v35  ;;  %v6722_v58 = vmul.f32 %v15001_v2, %v15001_v2  ;;  %v6940_v19 = vadd.f32 %v6715_v62, %v6708_v27  ;;  %8213 = vmatprep.subr.bf16.mxu0 %v11121_v63 }
 0x5f3   : > { %v6828_v46 = vadd.f32 %v6827_v26, %v6807_v43  ;;  %v6811_v28 = vmul.f32 %v16716_v29, %v16716_v29  ;;  %v6849_v40 = vadd.f32 %v6848_v16, %v6808_v49  ;;  %v6812_v42 = vmul.f32 %v16717_v3, %v16717_v3  ;;  %v11133_v26 = vld [vmem:[#allocation13 + $0xf4] ss:$8 sps:$4 sm:$0xff]  }
 0x5f4   : > { %v6729_v14 = vmul.f32 %v15004_v60, %v15004_v60  ;;  %v6941_v13 = vadd.f32 %v6940_v19, %v6722_v58  ;;  %v6871_v44 = vrot.slane %v6870_v9, 4  ;;  %v6892_v54 = vrot.slane %v6891_v47, 4  ;;  %v11136_v58 = vld [vmem:[#allocation13 + $0x104] ss:$8 sps:$4 sm:$0xff]  }
 0x5f5   : > { %v6912_v36 = vadd.f32 %v6911_v50, %v6811_v28  ;;  %8214 = vmatpush1.bf16.msra.mxu0 %v11119_v45  ;;  %v6933_v27 = vadd.f32 %v6932_v51, %v6812_v42  ;;  %v6736_v62 = vmul.f32 %v15007_v17, %v15007_v17  ;;  %v6829_v35 = vrot.slane %v6828_v46, 4  ;;  %v11131_v28 = vld [vmem:[#allocation13 + $0xf0] ss:$8 sps:$4 sm:$0xff]  }
 0x5f6   : > { %v6942_v63 = vadd.f32 %v6941_v13, %v6729_v14  ;;  %8215 = vmatprep.subr.bf16.mxu0 %v11127_v37  ;;  %v6850_v16 = vrot.slane %v6849_v40, 4  ;;  %v6743_v5 = vmul.f32 %v15010_v31, %v15010_v31  ;;  %v6872_v43 = vadd.f32 %v6871_v44, %v6870_v9 }
 0x5f7   : > { %v6913_v49 = vrot.slane %v6912_v36, 4  ;;  %v6893_v50 = vadd.f32 %v6892_v54, %v6891_v47  ;;  %v6934_v45 = vrot.slane %v6933_v27, 4  ;;  %v6750_v51 = vmul.f32 %v15013_v53, %v15013_v53 }
 0x5f8   : > { %v6943_v59 = vadd.f32 %v6942_v63, %v6736_v62  ;;  %v6830_v37 = vadd.f32 %v6829_v35, %v6828_v46  ;;  %v6851_v19 = vadd.f32 %v6850_v16, %v6849_v40  ;;  %v6757_v14 = vmul.f32 %v15016_v61, %v15016_v61 }
 0x5f9   : > { %8216 = vmatpush1.bf16.msra.mxu0 %v11125_v39  ;;  %v6873_v31 = vrot.slane %v6872_v43, 2  ;;  %v6914_v62 = vadd.f32 %v6913_v49, %v6912_v36  ;;  %v6894_v9 = vrot.slane %v6893_v50, 2  ;;  %v6935_v44 = vadd.f32 %v6934_v45, %v6933_v27 }
 0x5fa   : > { %v6944_v42 = vadd.f32 %v6943_v59, %v6743_v5  ;;  %8217 = vmatprep.subr.bf16.mxu0 %v11133_v26  ;;  %v6764_v47 = vmul.f32 %v15019_v0, %v15019_v0  ;;  %v6831_v54 = vrot.slane %v6830_v37, 2  ;;  %v6852_v63 = vrot.slane %v6851_v19, 2 }
 0x5fb   : > { %v6771_v46 = vmul.f32 %v15022_v20, %v15022_v20  ;;  %v6874_v26 = vadd.f32 %v6873_v31, %v6872_v43  ;;  %v6915_v35 = vrot.slane %v6914_v62, 2  ;;  %v6895_v16 = vadd.f32 %v6894_v9, %v6893_v50 }
 0x5fc   : > { %v6945_v13 = vadd.f32 %v6944_v42, %v6750_v51  ;;  %v6936_v5 = vrot.slane %v6935_v44, 2  ;;  %v6778_v36 = vmul.f32 %v15025_v15, %v15025_v15  ;;  %v6832_v27 = vadd.f32 %v6831_v54, %v6830_v37 }
 0x5fd   : > { %8218 = vmatpush1.bf16.msra.mxu0 %v11131_v28  ;;  %v6853_v49 = vadd.f32 %v6852_v63, %v6851_v19  ;;  %v6785_v28 = vmul.f32 %v15028_v10, %v15028_v10  ;;  %v6875_v51 = vrot.slane %v6874_v26, 1  ;;  %v6916_v42 = vadd.f32 %v6915_v35, %v6914_v62 }
 0x5fe   : > { %v6946_v39 = vadd.f32 %v6945_v13, %v6757_v14  ;;  %8300 = vmatprep.subr.bf16.mxu0 %v11136_v58  ;;  %v6896_v58 = vrot.slane %v6895_v16, 1  ;;  %v6937_v14 = vadd.f32 %v6936_v5, %v6935_v44  ;;  %v6792_v31 = vmul.f32 %v15031_v34, %v15031_v34 }
 0x5ff   : > { %v6833_v50 = vrot.slane %v6832_v27, 1  ;;  %v6854_v13 = vrot.slane %v6853_v49, 1  ;;  %v6799_v9 = vmul.f32 %v15034_v1, %v15034_v1  ;;  %v6876_v37 = vadd.f32 %v6875_v51, %v6874_v26 }
 0x600   : > { %v6947_v40 = vadd.f32 %v6946_v39, %v6764_v47  ;;  %v6917_v19 = vrot.slane %v6916_v42, 1  ;;  %v6897_v39 = vadd.f32 %v6896_v58, %v6895_v16  ;;  %v6938_v54 = vrot.slane %v6937_v14, 1 }
 0x601   : > { %v6806_v63 = vmul.f32 %v15037_v32, %v15037_v32  ;;  %v6855_v44 = vadd.f32 %v6854_v13, %v6853_v49  ;;  %v6963_v5 = vmul.f32 0.0078125, %v6876_v37 }
 0x602   : > { %v6948_v59 = vadd.f32 %v6947_v40, %v6771_v46  ;;  %v6834_v46 = vadd.f32 %v6833_v50, %v6832_v27  ;;  %v6813_v40 = vmul.f32 %v15040_v55, %v15040_v55 }
 0x603   : > { %v6962_v26 = vmul.f32 0.0078125, %v6855_v44  ;;  %v6970_v16 = vadd.f32 1e-05, %v6963_v5  ;;  %v16718_v5 = vld [vmem:[#allocation109_spill] sm:$0xff] }
 0x604   : > { %v6949_v45 = vadd.f32 %v6948_v59, %v6778_v36  ;;  %v6918_v36 = vadd.f32 %v6917_v19, %v6916_v42  ;;  %v6964_v59 = vmul.f32 0.0078125, %v6897_v39 }
 0x605   : > { %v6969_v27 = vadd.f32 1e-05, %v6962_v26  ;;  %11244 = vrsqrt.f32 %v6970_v16 }
 0x606   : > { %v6950_v43 = vadd.f32 %v6949_v45, %v6785_v28  ;;  %v6939_v28 = vadd.f32 %v6938_v54, %v6937_v14  ;;  %v6965_v58 = vmul.f32 0.0078125, %v6918_v36 }
 0x608   : > { %v6951_v47 = vadd.f32 %v6950_v43, %v6792_v31  ;;  %v6961_v31 = vmul.f32 0.0078125, %v6834_v46  ;;  %v6971_v43 = vadd.f32 1e-05, %v6964_v59  ;;  %v6966_v10 = vmul.f32 0.0078125, %v6939_v28 }
 0x609   : > { %v6972_v50 = vadd.f32 1e-05, %v6965_v58  ;;  %v6434_v58 = vld [vmem:[#allocation10] sm:$0xff] }
 0x60a   : > { %v6952_v62 = vadd.f32 %v6951_v47, %v6799_v9  ;;  %v6968_v9 = vadd.f32 1e-05, %v6961_v31  ;;  %11246 = vrsqrt.f32 %v6971_v43  ;;  %v6973_v13 = vadd.f32 1e-05, %v6966_v10 }
 0x60c   : > { %v6953_v35 = vadd.f32 %v6952_v62, %v6806_v63  ;;  %11248 = vrsqrt.f32 %v6968_v9  ;;  %v15096_v9 = vld [vmem:[#allocation11] sm:$0xff] }
 0x60d   : > { %11250 = vrsqrt.f32 %v6969_v27 }
 0x60e   : > { %v6954_v45 = vadd.f32 %v6953_v35, %v6813_v40  ;;  %11252 = vrsqrt.f32 %v6972_v50 }
 0x60f   : > { %11254 = vrsqrt.f32 %v6973_v13  ;;  %v11245_v39 = vpop.eup %11244  ;;  %v16720_v13 = vld [vmem:[#allocation115_spill] sm:$0xff] }
 0x610   : > { %v6955_v51 = vrot.slane %v6954_v45, 4 }
 0x612   : > { %v6956_v15 = vadd.f32 %v6955_v51, %v6954_v45 }
 0x614   : > { %v6957_v49 = vrot.slane %v6956_v15, 2  ;;  %v11247_v54 = vpop.eup %11246 }
 0x615   : > { %v6990_v44 = vcombine.low %v11245_v39, %v11247_v54  ;;  %v16722_v54 = vld [vmem:[#allocation39_spill] sm:$0xff] }
 0x616   : > { %v6958_v47 = vadd.f32 %v6957_v49, %v6956_v15  ;;  %v11249_v63 = vpop.eup %11248  ;;  %v16719_v49 = vld [vmem:[#allocation114_spill] sm:$0xff] }
 0x617   : > { %v11251_v62 = vpop.eup %11250  ;;  %v7005_v10 = vrot.slane %v6990_v44, %v16718_v5  ;;  %v15102_v50 = vrot.slane %v15096_v9, %v16719_v49  ;;  %v16724_v44 = vld [vmem:[#allocation31_spill] sm:$0xff] }
 0x618   : > { %v6959_v42 = vrot.slane %v6958_v47, 1  ;;  %v11253_v46 = vpop.eup %11252  ;;  %v6989_v35 = vcombine.low %v11249_v63, %v11251_v62  ;;  %v16723_v62 = vld [vmem:[#allocation91_spill] sm:$0xff] }
 0x619   : > { %v11255_v40 = vpop.eup %11254 }
 0x61a   : > { %v6960_v14 = vadd.f32 %v6959_v42, %v6958_v47  ;;  %v6991_v15 = vcombine.low %v11253_v46, %v11255_v40  ;;  %v6998_v36 = vrot.slane %v6989_v35, %v16718_v5  ;;  %v15106_v47 = vrot.slane %v15096_v9, %v16720_v13  ;;  %v16725_v35 = vld [vmem:[#allocation32_spill] sm:$0xff] }
 0x61c   : > { %v6967_v37 = vmul.f32 0.0078125, %v6960_v14  ;;  %v7020_v28 = vcombine.low %v6998_v36, %v7005_v10  ;;  %v7012_v45 = vrot.slane %v6991_v15, %v16718_v5 }
 0x61e   : > { %v6974_v19 = vadd.f32 1e-05, %v6967_v37  ;;  %v7028_v51 = vrot.slane %v7020_v28, %v16718_v5  ;;  %v16721_v37 = vld [vmem:[#allocation118_spill] sm:$0xff] }
 0x620   : > { %11256 = vrsqrt.f32 %v6974_v19  ;;  %v15118_v19 = vrot.slane %v15096_v9, %v16721_v37 }
 0x62a   : > { %v11257_v59 = vpop.eup %11256 }
 0x62b   : > { %v7019_v31 = vrot.slane %v11257_v59, %v16718_v5 }
 0x62d   : > { %v7021_v26 = vcombine.low %v7012_v45, %v7019_v31 }
 0x62f   : > { %v7035_v16 = vrot.slane %v7021_v26, %v16718_v5 }
 0x631   : > { %v7036_v43 = vcombine.low %v7028_v51, %v7035_v16 }
 0x633   : > { %v15098_v27 = vmul.f32 %v7036_v43, %v6434_v58 }
 0x635   : > { %v15110_v42 = vrot.slane %v15098_v27, %v16719_v49  ;;  %v15114_v14 = vrot.slane %v15098_v27, %v16720_v13  ;;  %v15122_v39 = vrot.slane %v15098_v27, %v16721_v37 }
 0x637   : > { %v7076_v63 = vmul.f32 %v15114_v14, %v16722_v54  ;;  %v7083_v46 = vmul.f32 %v15114_v14, %v16723_v62  ;;  %v7075_v40 = vmul.f32 %v15110_v42, %v16724_v44  ;;  %v7082_v5 = vmul.f32 %v15110_v42, %v16725_v35  ;;  %v16726_v35 = vld [vmem:[#allocation92_spill] sm:$0xff] }
 0x638   : > { %v7165_v10 = vmul.f32 %v15122_v39, %v15031_v34  ;;  %v7172_v15 = vmul.f32 %v15122_v39, %v15034_v1  ;;  %v7179_v36 = vmul.f32 %v15122_v39, %v15037_v32  ;;  %v7186_v59 = vmul.f32 %v15122_v39, %v15040_v55 }
 0x639   : > { %v7224_v28 = vadd.f32 %v15106_v47, %v7076_v63  ;;  %v7231_v45 = vadd.f32 %v15106_v47, %v7083_v46  ;;  %v7223_v31 = vadd.f32 %v15102_v50, %v7075_v40  ;;  %v7230_v26 = vadd.f32 %v15102_v50, %v7082_v5  ;;  %v11134_v40 = vld [vmem:[#allocation13 + $0x100] ss:$8 sps:$4 sm:$0xff]  }
 0x63a   : > { %v7313_v51 = vadd.f32 %v15118_v19, %v7165_v10  ;;  %v7320_v34 = vadd.f32 %v15118_v19, %v7172_v15  ;;  %v7327_v1 = vadd.f32 %v15118_v19, %v7179_v36  ;;  %v7334_v16 = vadd.f32 %v15118_v19, %v7186_v59  ;;  %v16727_v10 = vld [vmem:[#allocation93_spill] sm:$0xff] }
 0x63b   : > { %v7336_v32 = vmax.f32 %v7224_v28, 0.0  ;;  %v7343_v58 = vmax.f32 %v7231_v45, 0.0  ;;  %v7335_v43 = vmax.f32 %v7223_v31, 0.0  ;;  %v7342_v55 = vmax.f32 %v7230_v26, 0.0  ;;  %v11139_v59 = vld [vmem:[#allocation13 + $0x114] ss:$8 sps:$4 sm:$0xff]  }
 0x63c   : > { %v7425_v37 = vmax.f32 %v7313_v51, 0.0  ;;  %v7432_v54 = vmax.f32 %v7320_v34, 0.0  ;;  %v7439_v63 = vmax.f32 %v7327_v1, 0.0  ;;  %v7446_v62 = vmax.f32 %v7334_v16, 0.0  ;;  %v16728_v28 = vld [vmem:[#allocation33_spill] sm:$0xff]  ;;  %v16729_v31 = vld [vmem:[#allocation102_spill] sm:$0xff] }
 0x63d   : > { %v7448_v46 = vpack.c.bf16 %v7343_v58, %v7336_v32  ;;  %v7447_v44 = vpack.c.bf16 %v7342_v55, %v7335_v43  ;;  %v7090_v5 = vmul.f32 %v15114_v14, %v16726_v35  ;;  %v7097_v15 = vmul.f32 %v15114_v14, %v16727_v10  ;;  %v16730_v43 = vld [vmem:[#allocation103_spill] sm:$0xff] }
 0x63e   : > { %v7495_v36 = vpack.c.bf16 %v7432_v54, %v7425_v37  ;;  %v7502_v13 = vpack.c.bf16 %v7446_v62, %v7439_v63  ;;  %v7089_v45 = vmul.f32 %v15110_v42, %v16728_v28  ;;  %v7096_v26 = vmul.f32 %v15110_v42, %v16729_v31  ;;  %v11137_v63 = vld [vmem:[#allocation13 + $0x110] ss:$8 sps:$4 sm:$0xff]   ;;  %v11142_v35 = vld [vmem:[#allocation13 + $0x124] ss:$8 sps:$4 sm:$0xff]  }
 0x63f   : > { %8219 = vmatprep.mubr.bf16.mxu0 %v7448_v46  ;;  %v7238_v51 = vadd.f32 %v15106_v47, %v7090_v5  ;;  %v7245_v34 = vadd.f32 %v15106_v47, %v7097_v15  ;;  %v7104_v1 = vmul.f32 %v15114_v14, %v16661_v41  ;;  %v7111_v16 = vmul.f32 %v15114_v14, %v16665_v21  ;;  %v16732_v5 = vld [vmem:[#allocation36_spill] sm:$0xff] }
 0x640   : > { %8619 = vmatmul.mubr.bf16.vlgmr.msra.gmra.mrb[0].mxu1 %v7495_v36  ;;  %8220 = vmatmul.mubr.bf16.vlgmr.msra.gmra.mrb[96].mxu0 %v7447_v44  ;;  %v7237_v32 = vadd.f32 %v15102_v50, %v7089_v45  ;;  %v7244_v58 = vadd.f32 %v15102_v50, %v7096_v26  ;;  %v7103_v55 = vmul.f32 %v15110_v42, %v16730_v43  ;;  %v16731_v62 = vmov 0   ;;  %v16733_v45 = vld [vmem:[#allocation106_spill] sm:$0xff] }
 0x641   : > { %v7350_v37 = vmax.f32 %v7238_v51, 0.0  ;;  %v7357_v54 = vmax.f32 %v7245_v34, 0.0  ;;  %8301 = vmatpush1.bf16.msra.mxu0 %v11134_v40  ;;  %8628 = vmatprep.mubr.bf16.mxu1 %v16731_v62  ;;  %v7252_v41 = vadd.f32 %v15106_v47, %v7104_v1  ;;  %v7259_v46 = vadd.f32 %v15106_v47, %v7111_v16  ;;  %v11140_v26 = vld [vmem:[#allocation13 + $0x120] ss:$8 sps:$4 sm:$0xff]   ;;  %v11145_v34 = vld [vmem:[#allocation13 + $0x134] ss:$8 sps:$4 sm:$0xff]  }
 0x642   : > { %8302 = vmatprep.subr.bf16.mxu0 %v11139_v59  ;;  %v7349_v21 = vmax.f32 %v7237_v32, 0.0  ;;  %v7356_v44 = vmax.f32 %v7244_v58, 0.0  ;;  %v7110_v10 = vmul.f32 %v15110_v42, %v16732_v5  ;;  %v7118_v40 = vmul.f32 %v15114_v14, %v16733_v45  ;;  %v16736_v5 = vld [vmem:[#allocation40_spill] sm:$0xff] }
 0x643   : > { %v7455_v15 = vpack.c.bf16 %v7357_v54, %v7350_v37  ;;  %v7364_v36 = vmax.f32 %v7252_v41, 0.0  ;;  %v7371_v28 = vmax.f32 %v7259_v46, 0.0  ;;  %v7125_v31 = vmul.f32 %v15114_v14, %v16672_v30  ;;  %v11143_v30 = vld [vmem:[#allocation13 + $0x130] ss:$8 sps:$4 sm:$0xff]   ;;  %v16734_v37 = vld [vmem:[#allocation38_spill] sm:$0xff] }
 0x644   : > { %v7251_v59 = vadd.f32 %v15102_v50, %v7103_v55  ;;  %v7454_v51 = vpack.c.bf16 %v7356_v44, %v7349_v21  ;;  %v7258_v1 = vadd.f32 %v15102_v50, %v7110_v10  ;;  %v7266_v32 = vadd.f32 %v15106_v47, %v7118_v40  ;;  %v16735_v41 = vld [vmem:[#allocation34_spill] sm:$0xff]  ;;  %v16737_v45 = vld [vmem:[#allocation116_spill] sm:$0xff]  ;;  %v16738_v40 = vld [vmem:[#allocation117_spill] sm:$0xff] }
 0x645   : > { %8229 = vmatprep.mubr.bf16.mxu0 %v7455_v15  ;;  %8303 = vmatpush1.bf16.msra.mxu0 %v11137_v63  ;;  %v7462_v16 = vpack.c.bf16 %v7371_v28, %v7364_v36  ;;  %v7273_v58 = vadd.f32 %v15106_v47, %v7125_v31  ;;  %v7117_v54 = vmul.f32 %v15110_v42, %v16734_v37  ;;  %v11148_v63 = vld [vmem:[#allocation13 + $0x144] ss:$8 sps:$4 sm:$0xff]   ;;  %v11146_v31 = vld [vmem:[#allocation13 + $0x140] ss:$8 sps:$4 sm:$0xff]  }
 0x646   : > { %8304 = vmatprep.subr.bf16.mxu0 %v11142_v35  ;;  %v7363_v43 = vmax.f32 %v7251_v59, 0.0  ;;  %v7370_v55 = vmax.f32 %v7258_v1, 0.0  ;;  %v7124_v46 = vmul.f32 %v15110_v42, %v16735_v41  ;;  %v7132_v21 = vmul.f32 %v15114_v14, %v16676_v11 }
 0x647   : > { %v7378_v44 = vmax.f32 %v7266_v32, 0.0  ;;  %v7385_v35 = vmax.f32 %v7273_v58, 0.0  ;;  %v7131_v10 = vmul.f32 %v15110_v42, %v16736_v5  ;;  %v7138_v15 = vmul.f32 %v15110_v42, %v16675_v6  ;;  %v11151_v6 = vld [vmem:[#allocation13 + $0x154] ss:$8 sps:$4 sm:$0xff]  }
 0x648   : > { %8629 = vmatmul.mubr.bf16.gmra.mrb[4].mxu1 %v7502_v13  ;;  %8230 = vmatmul.mubr.bf16.gmra.mrb[100].mxu0 %v7454_v51  ;;  %v7139_v13 = vmul.f32 %v15114_v14, %v16679_v48  ;;  %v7146_v36 = vmul.f32 %v15114_v14, %v16683_v7  ;;  %v7153_v28 = vmul.f32 %v15114_v14, %v16687_v22 }
 0x649   : > { %8239 = vmatprep.mubr.bf16.mxu0 %v7462_v16  ;;  %8305 = vmatpush1.bf16.msra.mxu0 %v11140_v26  ;;  %v15197_v11 = vrot.slane %v15096_v9, %v16737_v45  ;;  %v15201_v48 = vrot.slane %v15096_v9, %v16738_v40  ;;  %v7265_v26 = vadd.f32 %v15102_v50, %v7117_v54 }
 0x64a   : > { %8306 = vmatprep.subr.bf16.mxu0 %v11145_v34  ;;  %v7461_v59 = vpack.c.bf16 %v7370_v55, %v7363_v43  ;;  %v7272_v7 = vadd.f32 %v15102_v50, %v7124_v46  ;;  %v7280_v51 = vadd.f32 %v15106_v47, %v7132_v21  ;;  %v7287_v22 = vadd.f32 %v15106_v47, %v7139_v13  ;;  %v16739_v34 = vld [vmem:[#allocation74_spill] sm:$0xff] }
 0x64b   : > { %v15209_v1 = vrot.slane %v15096_v9, %v16739_v34  ;;  %v7469_v16 = vpack.c.bf16 %v7385_v35, %v7378_v44  ;;  %v7145_v32 = vmul.f32 %v15110_v42, %v16682_v56  ;;  %v7152_v58 = vmul.f32 %v15110_v42, %v16686_v12  ;;  %v11154_v21 = vld [vmem:[#allocation13 + $0x164] ss:$8 sps:$4 sm:$0xff]   ;;  %v16740_v35 = vld [vmem:[#allocation52_spill] sm:$0xff] }
 0x64c   : > { %v7286_v43 = vadd.f32 %v15102_v50, %v7138_v15  ;;  %v7294_v37 = vadd.f32 %v15106_v47, %v7146_v36  ;;  %v7301_v54 = vadd.f32 %v15106_v47, %v7153_v28  ;;  %v15221_v55 = vrot.slane %v15098_v27, %v16737_v45 }
 0x64d   : > { %8307 = vmatpush1.bf16.msra.mxu0 %v11143_v30  ;;  %v7279_v30 = vadd.f32 %v15102_v50, %v7131_v10  ;;  %v7160_v56 = vmul.f32 %v15114_v14, %v16691_v25  ;;  %v7167_v12 = vmul.f32 %v15114_v14, %v16696_v57  ;;  %v7377_v41 = vmax.f32 %v7265_v26, 0.0  ;;  %v11152_v26 = vld [vmem:[#allocation13 + $0x160] ss:$8 sps:$4 sm:$0xff]  }
 0x64e   : > { %8308 = vmatprep.subr.bf16.mxu0 %v11148_v63  ;;  %v11149_v63 = vld [vmem:[#allocation13 + $0x150] ss:$8 sps:$4 sm:$0xff]   ;;  %v7384_v46 = vmax.f32 %v7272_v7, 0.0  ;;  %v7392_v13 = vmax.f32 %v7280_v51, 0.0  ;;  %v7399_v44 = vmax.f32 %v7287_v22, 0.0  ;;  %v15229_v5 = vrot.slane %v15096_v9, %v16740_v35 }
 0x64f   : > { %v15233_v10 = vrot.slane %v15098_v27, %v16738_v40  ;;  %v7293_v15 = vadd.f32 %v15102_v50, %v7145_v32  ;;  %v7300_v25 = vadd.f32 %v15102_v50, %v7152_v58  ;;  %v7391_v36 = vmax.f32 %v7279_v30, 0.0  ;;  %v11157_v51 = vld [vmem:[#allocation13 + $0x174] ss:$8 sps:$4 sm:$0xff]  }
 0x650   : > { %8240 = vmatmul.mubr.bf16.gmra.mrb[104].mxu0 %v7461_v59  ;;  %v7398_v57 = vmax.f32 %v7286_v43, 0.0  ;;  %v7406_v28 = vmax.f32 %v7294_v37, 0.0  ;;  %v7413_v45 = vmax.f32 %v7301_v54, 0.0  ;;  %v7308_v9 = vadd.f32 %v15106_v47, %v7160_v56  ;;  %v16742_v43 = vld [vmem:[#allocation79_spill] sm:$0xff] }
 0x651   : > { %8249 = vmatprep.mubr.bf16.mxu0 %v7469_v16  ;;  %8309 = vmatpush1.bf16.msra.mxu0 %v11146_v31  ;;  %v15239_v31 = vrot.slane %v15098_v27, %v16739_v34  ;;  %v7315_v59 = vadd.f32 %v15106_v47, %v7167_v12  ;;  %v7159_v40 = vmul.f32 %v15110_v42, %v16690_v52  ;;  %v16741_v16 = vld [vmem:[#allocation54_spill] sm:$0xff]  ;;  %v7405_v32 = vmax.f32 %v7293_v15, 0.0  ;;  %v11155_v56 = vld [vmem:[#allocation13 + $0x170] ss:$8 sps:$4 sm:$0xff]  }
 0x652   : > { %8310 = vmatprep.subr.bf16.mxu0 %v11151_v6  ;;  %v7468_v6 = vpack.c.bf16 %v7384_v46, %v7377_v41  ;;  %v7476_v7 = vpack.c.bf16 %v7399_v44, %v7392_v13  ;;  %v7166_v22 = vmul.f32 %v15110_v42, %v16694_v23  ;;  %v7077_v34 = vmul.f32 %v15221_v55, %v16741_v16  ;;  %v16743_v44 = vld [vmem:[#allocation80_spill] sm:$0xff]  ;;  %v16744_v15 = vld [vmem:[#allocation61_spill] sm:$0xff] }
 0x653   : > { %v7412_v58 = vmax.f32 %v7300_v25, 0.0  ;;  %v7174_v30 = vmul.f32 %v15114_v14, %v16697_v4  ;;  %v7084_v37 = vmul.f32 %v15221_v55, %v16742_v43  ;;  %v15255_v52 = vrot.slane %v15098_v27, %v16740_v35  ;;  %v11163_v16 = vld [vmem:[#allocation13 + $0x194] ss:$8 sps:$4 sm:$0xff]   ;;  %v16747_v43 = vld [vmem:[#allocation71_spill] sm:$0xff] }
 0x654   : > { %v7475_v54 = vpack.c.bf16 %v7398_v57, %v7391_v36  ;;  %v7225_v23 = vadd.f32 %v15197_v11, %v7077_v34  ;;  %v7420_v12 = vmax.f32 %v7308_v9, 0.0  ;;  %v7427_v41 = vmax.f32 %v7315_v59, 0.0 }
 0x655   : > { %8311 = vmatpush1.bf16.msra.mxu0 %v11149_v63  ;;  %v7483_v63 = vpack.c.bf16 %v7413_v45, %v7406_v28  ;;  %v7307_v46 = vadd.f32 %v15102_v50, %v7159_v40  ;;  %v7232_v4 = vadd.f32 %v15197_v11, %v7084_v37  ;;  %v7314_v13 = vadd.f32 %v15102_v50, %v7166_v22 }
 0x656   : > { %8312 = vmatprep.subr.bf16.mxu0 %v11154_v21  ;;  %v11160_v21 = vld [vmem:[#allocation13 + $0x184] ss:$8 sps:$4 sm:$0xff]   ;;  %v7337_v27 = vmax.f32 %v7225_v23, 0.0  ;;  %v7091_v35 = vmul.f32 %v15221_v55, %v16743_v44  ;;  %v7098_v25 = vmul.f32 %v15221_v55, %v16744_v15  ;;  %v15265_v36 = vpack.c.bf16 %v7412_v58, %v7405_v32  ;;  %v16750_v15 = vld [vmem:[#allocation113_spill] sm:$0xff] }
 0x657   : > { %v7181_v57 = vmul.f32 %v15114_v14, %v16715_v24  ;;  %v15270_v28 = vadd.f32 %v15106_v47, %v7174_v30  ;;  %v7344_v45 = vmax.f32 %v7232_v4, 0.0  ;;  %v7180_v9 = vmul.f32 %v15110_v42, %v16714_v18  ;;  %v16745_v24 = vld [vmem:[#allocation111_spill] sm:$0xff]  ;;  %v16748_v4 = vld [vmem:[#allocation112_spill] sm:$0xff] }
 0x658   : > { %8250 = vmatmul.mubr.bf16.gmra.mrb[108].mxu0 %v7468_v6  ;;  %v7239_v59 = vadd.f32 %v15197_v11, %v7091_v35  ;;  %v7246_v40 = vadd.f32 %v15197_v11, %v7098_v25  ;;  %v11158_v6 = vld [vmem:[#allocation13 + $0x180] ss:$8 sps:$4 sm:$0xff]   ;;  %v7105_v14 = vmul.f32 %v15221_v55, %v16745_v24  ;;  %v7426_v34 = vmax.f32 %v7314_v13, 0.0 }
 0x659   : > { %8259 = vmatprep.mubr.bf16.mxu0 %v7476_v7  ;;  %8313 = vmatpush1.bf16.msra.mxu0 %v11152_v26  ;;  %v7173_v26 = vmul.f32 %v15110_v42, %v16695_v38  ;;  %v7490_v7 = vpack.c.bf16 %v7427_v41, %v7420_v12  ;;  %v15278_v22 = vpack.c.bf16 %v7344_v45, %v7337_v27  ;;  %v16746_v58 = vld [vmem:[#allocation75_spill] sm:$0xff]  ;;  %v7434_v30 = vmax.f32 %v15270_v28, 0.0 }
 0x65a   : > { %8314 = vmatprep.subr.bf16.mxu0 %v11157_v51  ;;  %v7419_v51 = vmax.f32 %v7307_v46, 0.0  ;;  %v7351_v38 = vmax.f32 %v7239_v59, 0.0  ;;  %v7358_v32 = vmax.f32 %v7246_v40, 0.0  ;;  %v7112_v18 = vmul.f32 %v15221_v55, %v16746_v58  ;;  %v16749_v27 = vld [vmem:[#allocation51_spill] sm:$0xff]  ;;  %v16753_v59 = vld [vmem:[#allocation94_spill] sm:$0xff] }
 0x65b   : > { %v15285_v42 = vadd.f32 %v15106_v47, %v7181_v57  ;;  %v7078_v37 = vmul.f32 %v15233_v10, %v16747_v43  ;;  %v7253_v23 = vadd.f32 %v15197_v11, %v7105_v14  ;;  %v15295_v12 = vadd.f32 %v15102_v50, %v7180_v9  ;;  %v11161_v47 = vld [vmem:[#allocation13 + $0x190] ss:$8 sps:$4 sm:$0xff]  }
 0x65c   : > { %v15297_v41 = vpack.c.bf16 %v7358_v32, %v7351_v38  ;;  %v7260_v46 = vadd.f32 %v15197_v11, %v7112_v18  ;;  %v7126_v44 = vmul.f32 %v15221_v55, %v16670_v33  ;;  %v15306_v35 = vpack.c.bf16 %v7426_v34, %v7419_v51  ;;  %v11164_v34 = vld [vmem:[#allocation13 + $0x1a0] ss:$8 sps:$4 sm:$0xff]  }
 0x65d   : > { %8315 = vmatpush1.bf16.msra.mxu0 %v11155_v56  ;;  %v15292_v56 = vadd.f32 %v15102_v50, %v7173_v26  ;;  %v7365_v13 = vmax.f32 %v7253_v23, 0.0  ;;  %v11166_v50 = vld [vmem:[#allocation13 + $0x1a4] ss:$8 sps:$4 sm:$0xff]   ;;  %v7092_v25 = vmul.f32 %v15233_v10, %v16750_v15  ;;  %v7113_v40 = vmul.f32 %v15233_v10, %v16753_v59  ;;  %v16754_v18 = vld [vmem:[#allocation57_spill] sm:$0xff] }
 0x65e   : > { %8316 = vmatprep.subr.bf16.mxu0 %v11160_v21  ;;  %v7085_v21 = vmul.f32 %v15233_v10, %v16748_v4  ;;  %v7372_v45 = vmax.f32 %v7260_v46, 0.0  ;;  %v16752_v26 = vld [vmem:[#allocation27_spill] sm:$0xff]  ;;  %v7274_v33 = vadd.f32 %v15197_v11, %v7126_v44  ;;  %v7441_v51 = vmax.f32 %v15285_v42, 0.0  ;;  %v11169_v23 = vld [vmem:[#allocation13 + $0x1b4] ss:$8 sps:$4 sm:$0xff]  }
 0x65f   : > { %v7106_v9 = vmul.f32 %v15233_v10, %v16752_v26  ;;  %v7226_v24 = vadd.f32 %v15201_v48, %v7078_v37  ;;  %v7140_v43 = vmul.f32 %v15221_v55, %v16754_v18  ;;  %v7433_v42 = vmax.f32 %v15292_v56, 0.0  ;;  %v16755_v56 = vld [vmem:[#allocation58_spill] sm:$0xff]  ;;  %v16761_v28 = vld [vmem:[#allocation59_spill] sm:$0xff] }
 0x660   : > { %8260 = vmatmul.mubr.bf16.gmra.mrb[112].mxu0 %v7475_v54  ;;  %v7119_v54 = vmul.f32 %v15221_v55, %v16749_v27  ;;  %v15320_v14 = vpack.c.bf16 %v7372_v45, %v7365_v13  ;;  %v7233_v38 = vadd.f32 %v15201_v48, %v7085_v21  ;;  %v7386_v58 = vmax.f32 %v7274_v33, 0.0  ;;  %v16757_v45 = vld [vmem:[#allocation95_spill] sm:$0xff] }
 0x661   : > { %8269 = vmatprep.mubr.bf16.mxu0 %v7483_v63  ;;  %8317 = vmatpush1.bf16.msra.mxu0 %v11158_v6  ;;  %v16751_v63 = vld [vmem:[#allocation26_spill] sm:$0xff]  ;;  %v7240_v37 = vadd.f32 %v15201_v48, %v7092_v25  ;;  %v7288_v13 = vadd.f32 %v15197_v11, %v7140_v43  ;;  %v7440_v27 = vmax.f32 %v15295_v12, 0.0  ;;  %v7147_v44 = vmul.f32 %v15221_v55, %v16755_v56  ;;  %v11167_v25 = vld [vmem:[#allocation13 + $0x1b0] ss:$8 sps:$4 sm:$0xff]  }
 0x662   : > { %8318 = vmatprep.subr.bf16.mxu0 %v11163_v16  ;;  %v7099_v57 = vmul.f32 %v15233_v10, %v16751_v63  ;;  %v7267_v6 = vadd.f32 %v15197_v11, %v7119_v54  ;;  %v7133_v16 = vmul.f32 %v15221_v55, %v16673_v8  ;;  %v7254_v8 = vadd.f32 %v15201_v48, %v7106_v9  ;;  %v16760_v43 = vld [vmem:[#allocation53_spill] sm:$0xff] }
 0x663   : > { %v7338_v63 = vmax.f32 %v7226_v24, 0.0  ;;  %v7120_v26 = vmul.f32 %v15233_v10, %v16757_v45  ;;  %v7400_v9 = vmax.f32 %v7288_v13, 0.0  ;;  %v7352_v59 = vmax.f32 %v7240_v37, 0.0  ;;  %v11170_v37 = vld [vmem:[#allocation13 + $0x1c0] ss:$8 sps:$4 sm:$0xff]  }
 0x664   : > { %v7379_v32 = vmax.f32 %v7267_v6, 0.0  ;;  %v7247_v46 = vadd.f32 %v15201_v48, %v7099_v57  ;;  %v7281_v4 = vadd.f32 %v15197_v11, %v7133_v16  ;;  %v7345_v57 = vmax.f32 %v7233_v38, 0.0  ;;  %v11175_v13 = vld [vmem:[#allocation13 + $0x1d4] ss:$8 sps:$4 sm:$0xff]  }
 0x665   : > { %8319 = vmatpush1.bf16.msra.mxu0 %v11161_v47  ;;  %v7261_v47 = vadd.f32 %v15201_v48, %v7113_v40  ;;  %v7295_v40 = vadd.f32 %v15197_v11, %v7147_v44  ;;  %v7366_v33 = vmax.f32 %v7254_v8, 0.0  ;;  %v15357_v8 = vadd.f32 %v15201_v48, %v7120_v26  ;;  %v16764_v26 = vld [vmem:[#allocation121_spill] sm:$0xff] }
 0x666   : > { %8320 = vmatprep.subr.bf16.mxu0 %v11166_v50  ;;  %v15333_v21 = vpack.c.bf16 %v7386_v58, %v7379_v32  ;;  %v7393_v54 = vmax.f32 %v7281_v4, 0.0  ;;  %v16756_v50 = vld [vmem:[#allocation78_spill] sm:$0xff]  ;;  %v7359_v12 = vmax.f32 %v7247_v46, 0.0  ;;  %v7497_v46 = vpack.c.bf16 %v7441_v51, %v7434_v30 }
 0x667   : > { %v7154_v15 = vmul.f32 %v15221_v55, %v16756_v50  ;;  %v7373_v16 = vmax.f32 %v7261_v47, 0.0  ;;  %v7407_v58 = vmax.f32 %v7295_v40, 0.0  ;;  %v7496_v4 = vpack.c.bf16 %v7440_v27, %v7433_v42  ;;  %v16762_v51 = vld [vmem:[#allocation70_spill] sm:$0xff] }
 0x668   : > { %8270 = vmatmul.mubr.bf16.gmra.mrb[116].mxu0 %v15265_v36  ;;  %v11172_v36 = vld [vmem:[#allocation13 + $0x1c4] ss:$8 sps:$4 sm:$0xff]   ;;  %v15346_v32 = vpack.c.bf16 %v7400_v9, %v7393_v54  ;;  %v7450_v54 = vpack.c.bf16 %v7345_v57, %v7338_v63  ;;  %v15360_v56 = vpack.c.bf16 %v7359_v12, %v7352_v59  ;;  %v7175_v30 = vmul.f32 %v15221_v55, %v16761_v28  ;;  %v16763_v63 = vld [vmem:[#allocation97_spill] sm:$0xff] }
 0x669   : > { %8279 = vmatprep.mubr.bf16.mxu0 %v7490_v7  ;;  %8321 = vmatpush1.bf16.msra.mxu0 %v11164_v34  ;;  %v7302_v6 = vadd.f32 %v15197_v11, %v7154_v15  ;;  %v16758_v7 = vld [vmem:[#allocation90_spill] sm:$0xff]  ;;  %v16759_v34 = vld [vmem:[#allocation96_spill] sm:$0xff]  ;;  %v15365_v15 = vpack.c.bf16 %v7373_v16, %v7366_v33  ;;  %v7182_v42 = vmul.f32 %v15221_v55, %v16762_v51  ;;  %v7380_v59 = vmax.f32 %v15357_v8, 0.0 }
 0x66a   : > { %8322 = vmatprep.subr.bf16.mxu0 %v11169_v23  ;;  %v7161_v24 = vmul.f32 %v15221_v55, %v16758_v7  ;;  %v7127_v38 = vmul.f32 %v15233_v10, %v16759_v34  ;;  %v7168_v23 = vmul.f32 %v15221_v55, %v16760_v43  ;;  %v15377_v57 = vmul.f32 %v15233_v10, %v16763_v63  ;;  %v16765_v12 = vld [vmem:[#allocation122_spill] sm:$0xff]  ;;  %v16766_v33 = vld [vmem:[#allocation28_spill] sm:$0xff]  ;;  %v16768_v43 = vld [vmem:[#allocation81_spill] sm:$0xff] }
 0x66b   : > { %v7414_v18 = vmax.f32 %v7302_v6, 0.0  ;;  %v7080_v9 = vmul.f32 %v15255_v52, %v16764_v26  ;;  %v7323_v55 = vadd.f32 %v15197_v11, %v7175_v30  ;;  %v7087_v40 = vmul.f32 %v15255_v52, %v16765_v12  ;;  %v11178_v6 = vld [vmem:[#allocation13 + $0x1e4] ss:$8 sps:$4 sm:$0xff]   ;;  %v16767_v34 = vld [vmem:[#allocation84_spill] sm:$0xff] }
 0x66c   : > { %v7309_v47 = vadd.f32 %v15197_v11, %v7161_v24  ;;  %v7316_v50 = vadd.f32 %v15197_v11, %v7168_v23  ;;  %v15373_v27 = vadd.f32 %v15201_v48, %v7127_v38  ;;  %v15388_v16 = vmul.f32 %v15233_v10, %v16766_v33  ;;  %v16772_v12 = vld [vmem:[#allocation82_spill] sm:$0xff] }
 0x66d   : > { %8323 = vmatpush1.bf16.msra.mxu0 %v11167_v25  ;;  %v15362_v44 = vpack.c.bf16 %v7414_v18, %v7407_v58  ;;  %v7228_v24 = vadd.f32 %v15229_v5, %v7080_v9  ;;  %v7079_v38 = vmul.f32 %v15239_v31, %v16767_v34  ;;  %v7435_v58 = vmax.f32 %v7323_v55, 0.0  ;;  %v16771_v55 = vld [vmem:[#allocation64_spill] sm:$0xff]  ;;  %v16773_v34 = vld [vmem:[#allocation125_spill] sm:$0xff] }
 0x66e   : > { %8324 = vmatprep.subr.bf16.mxu0 %v11172_v36  ;;  %v7421_v25 = vmax.f32 %v7309_v47, 0.0  ;;  %v7428_v45 = vmax.f32 %v7316_v50, 0.0  ;;  %v11173_v36 = vld [vmem:[#allocation13 + $0x1d0] ss:$8 sps:$4 sm:$0xff]   ;;  %v7086_v23 = vmul.f32 %v15239_v31, %v16768_v43 }
 0x66f   : > { %v7227_v47 = vadd.f32 %v15209_v1, %v7079_v38  ;;  %v7108_v38 = vmul.f32 %v15255_v52, %v16773_v34 }
 0x670   : > { %8280 = vmatmul.mubr.bf16.gmra.mrb[120].mxu0 %v15306_v35  ;;  %v7330_v35 = vadd.f32 %v15197_v11, %v7182_v42  ;;  %v15390_v7 = vpack.c.bf16 %v7428_v45, %v7421_v25  ;;  %v7235_v11 = vadd.f32 %v15229_v5, %v7087_v40  ;;  %v11176_v25 = vld [vmem:[#allocation13 + $0x1e0] ss:$8 sps:$4 sm:$0xff]   ;;  %v7234_v51 = vadd.f32 %v15209_v1, %v7086_v23  ;;  %v16770_v42 = vld [vmem:[#allocation124_spill] sm:$0xff] }
 0x671   : > { %8289 = vmatprep.mubr.bf16.mxu0 %v7497_v46  ;;  %8325 = vmatpush1.bf16.msra.mxu0 %v11170_v37  ;;  %v7387_v37 = vmax.f32 %v15373_v27, 0.0  ;;  %v7340_v46 = vmax.f32 %v7228_v24, 0.0  ;;  %v7101_v63 = vmul.f32 %v15255_v52, %v16770_v42  ;;  %v11181_v45 = vld [vmem:[#allocation13 + $0x1f4] ss:$8 sps:$4 sm:$0xff]   ;;  %v7339_v26 = vmax.f32 %v7227_v47, 0.0 }
 0x672   : > { %8326 = vmatprep.subr.bf16.mxu0 %v11175_v13  ;;  %v7442_v18 = vmax.f32 %v7330_v35, 0.0  ;;  %v16769_v13 = vld [vmem:[#allocation123_spill] sm:$0xff]  ;;  %v7347_v30 = vmax.f32 %v7235_v11, 0.0  ;;  %v7093_v35 = vmul.f32 %v15239_v31, %v16771_v55  ;;  %v7346_v33 = vmax.f32 %v7234_v51, 0.0  ;;  %v16774_v11 = vld [vmem:[#allocation126_spill] sm:$0xff]  ;;  %v16795_v27 = vld [vmem:[#allocation29_spill] sm:$0xff] }
 0x673   : > { %v7094_v50 = vmul.f32 %v15255_v52, %v16769_v13  ;;  %v7249_v24 = vadd.f32 %v15229_v5, %v7101_v63  ;;  %v7115_v43 = vmul.f32 %v15255_v52, %v16774_v11  ;;  %v11179_v23 = vld [vmem:[#allocation13 + $0x1f0] ss:$8 sps:$4 sm:$0xff]   ;;  %v7256_v13 = vadd.f32 %v15229_v5, %v7108_v38  ;;  %v11182_v38 = vld [vmem:[#allocation13 + $0x200] ss:$8 sps:$4 sm:$0xff]  }
 0x674   : > { %v15402_v28 = vpack.c.bf16 %v7442_v18, %v7435_v58  ;;  %v15412_v40 = vpack.c.bf16 %v7347_v30, %v7340_v46  ;;  %v7241_v58 = vadd.f32 %v15209_v1, %v7093_v35  ;;  %v15421_v46 = vpack.c.bf16 %v7346_v33, %v7339_v26  ;;  %v16777_v35 = vld [vmem:[#allocation127_spill] sm:$0xff] }
 0x675   : > { %8327 = vmatpush1.bf16.msra.mxu0 %v11173_v36  ;;  %v7242_v9 = vadd.f32 %v15229_v5, %v7094_v50  ;;  %v7100_v36 = vmul.f32 %v15239_v31, %v16772_v12  ;;  %v7361_v47 = vmax.f32 %v7249_v24, 0.0  ;;  %v16775_v50 = vld [vmem:[#allocation87_spill] sm:$0xff]  ;;  %v7263_v63 = vadd.f32 %v15229_v5, %v7115_v43  ;;  %v16778_v24 = vld [vmem:[#allocation128_spill] sm:$0xff] }
 0x676   : > { %8328 = vmatprep.subr.bf16.mxu0 %v11178_v6  ;;  %v7107_v30 = vmul.f32 %v15239_v31, %v16775_v50  ;;  %v7353_v51 = vmax.f32 %v7241_v58, 0.0  ;;  %v7122_v12 = vmul.f32 %v15255_v52, %v16777_v35  ;;  %v7129_v34 = vmul.f32 %v15255_v52, %v16778_v24  ;;  %v16780_v43 = vld [vmem:[#allocation83_spill] sm:$0xff] }
 0x677   : > { %v7354_v6 = vmax.f32 %v7242_v9, 0.0  ;;  %v7248_v18 = vadd.f32 %v15209_v1, %v7100_v36  ;;  %v16776_v9 = vld [vmem:[#allocation63_spill] sm:$0xff]  ;;  %v7375_v33 = vmax.f32 %v7263_v63, 0.0 }
 0x678   : > { %8290 = vmatmul.mubr.bf16.gmra.mrb[124].mxu0 %v7496_v4  ;;  %v11184_v4 = vld [vmem:[#allocation13 + $0x204] ss:$8 sps:$4 sm:$0xff]   ;;  %v7114_v55 = vmul.f32 %v15239_v31, %v16776_v9  ;;  %v7255_v26 = vadd.f32 %v15209_v1, %v7107_v30  ;;  %v11185_v24 = vld [vmem:[#allocation13 + $0x210] ss:$8 sps:$4 sm:$0xff]  }
 0x679   : > { %8329 = vmatpush1.bf16.msra.mxu0 %v11176_v25  ;;  %8332 = vmatprep.mubr.bf16.mxu0 %v7450_v54  ;;  %v7360_v42 = vmax.f32 %v7248_v18, 0.0  ;;  %v15429_v25 = vpack.c.bf16 %v7361_v47, %v7354_v6  ;;  %v7368_v54 = vmax.f32 %v7256_v13, 0.0  ;;  %v7270_v6 = vadd.f32 %v15229_v5, %v7122_v12  ;;  %v16779_v18 = vld [vmem:[#allocation68_spill] sm:$0xff] }
 0x67a   : > { %8330 = vmatprep.subr.bf16.mxu0 %v11181_v45  ;;  %v7262_v45 = vadd.f32 %v15209_v1, %v7114_v55  ;;  %v7367_v58 = vmax.f32 %v7255_v26, 0.0  ;;  %v7121_v11 = vmul.f32 %v15239_v31, %v16779_v18  ;;  %v7128_v47 = vmul.f32 %v15239_v31, %v16780_v43  ;;  %v11187_v13 = vld [vmem:[#allocation13 + $0x214] ss:$8 sps:$4 sm:$0xff]   ;;  %v16782_v26 = vld [vmem:[#allocation130_spill] sm:$0xff] }
 0x67b   : > { %v15434_v36 = vpack.c.bf16 %v7360_v42, %v7353_v51  ;;  %v15444_v50 = vpack.c.bf16 %v7375_v33, %v7368_v54  ;;  %v7277_v51 = vadd.f32 %v15229_v5, %v7129_v34  ;;  %v16781_v42 = vld [vmem:[#allocation129_spill] sm:$0xff]  ;;  %v7382_v63 = vmax.f32 %v7270_v6, 0.0 }
 0x67c   : > { %v7374_v30 = vmax.f32 %v7262_v45, 0.0  ;;  %v7269_v9 = vadd.f32 %v15209_v1, %v7121_v11  ;;  %v7276_v55 = vadd.f32 %v15209_v1, %v7128_v47  ;;  %v7143_v35 = vmul.f32 %v15255_v52, %v16782_v26  ;;  %v16783_v33 = vld [vmem:[#allocation69_spill] sm:$0xff] }
 0x67d   : > { %8331 = vmatpush1.bf16.msra.mxu0 %v11179_v23  ;;  %v7136_v23 = vmul.f32 %v15255_v52, %v16781_v42  ;;  %v7389_v54 = vmax.f32 %v7277_v51, 0.0  ;;  %v7135_v45 = vmul.f32 %v15239_v31, %v16783_v33  ;;  %v16784_v11 = vld [vmem:[#allocation65_spill] sm:$0xff]  ;;  %v16785_v51 = vld [vmem:[#allocation131_spill] sm:$0xff] }
 0x67e   : > { %8413 = vmatprep.subr.bf16.mxu0 %v11184_v4  ;;  %v15454_v4 = vpack.c.bf16 %v7374_v30, %v7367_v58  ;;  %v7381_v34 = vmax.f32 %v7269_v9, 0.0  ;;  %v7388_v6 = vmax.f32 %v7276_v55, 0.0  ;;  %v7291_v18 = vadd.f32 %v15229_v5, %v7143_v35  ;;  %v16786_v9 = vld [vmem:[#allocation132_spill] sm:$0xff]  ;;  %v16787_v35 = vld [vmem:[#allocation89_spill] sm:$0xff] }
 0x67f   : > { %v7284_v12 = vadd.f32 %v15229_v5, %v7136_v23  ;;  %v7142_v43 = vmul.f32 %v15239_v31, %v16784_v11  ;;  %v15463_v58 = vpack.c.bf16 %v7389_v54, %v7382_v63  ;;  %v7283_v30 = vadd.f32 %v15209_v1, %v7135_v45  ;;  %v16788_v54 = vld [vmem:[#allocation85_spill] sm:$0xff] }
 0x680   : > { %8333 = vmatmul.mubr.bf16.vlgmr.msra.gmra.mrb[96].mxu0 %v15278_v22  ;;  %v11190_v22 = vld [vmem:[#allocation13 + $0x224] ss:$8 sps:$4 sm:$0xff]   ;;  %v7150_v42 = vmul.f32 %v15255_v52, %v16785_v51  ;;  %v7157_v55 = vmul.f32 %v15255_v52, %v16786_v9  ;;  %v7149_v63 = vmul.f32 %v15239_v31, %v16787_v35  ;;  %v11188_v33 = vld [vmem:[#allocation13 + $0x220] ss:$8 sps:$4 sm:$0xff]  }
 0x681   : > { %8342 = vmatprep.mubr.bf16.mxu0 %v15360_v56  ;;  %8414 = vmatpush1.bf16.msra.mxu0 %v11182_v38  ;;  %v7396_v47 = vmax.f32 %v7284_v12, 0.0  ;;  %v15468_v56 = vpack.c.bf16 %v7388_v6, %v7381_v34  ;;  %v7403_v38 = vmax.f32 %v7291_v18, 0.0  ;;  %v7290_v23 = vadd.f32 %v15209_v1, %v7142_v43  ;;  %v16789_v18 = vld [vmem:[#allocation133_spill] sm:$0xff]  ;;  %v16790_v9 = vld [vmem:[#allocation134_spill] sm:$0xff] }
 0x682   : > { %8415 = vmatprep.subr.bf16.mxu0 %v11187_v13  ;;  %v7395_v26 = vmax.f32 %v7283_v30, 0.0  ;;  %v7298_v13 = vadd.f32 %v15229_v5, %v7150_v42  ;;  %v7156_v12 = vmul.f32 %v15239_v31, %v16788_v54  ;;  %v7305_v6 = vadd.f32 %v15229_v5, %v7157_v55  ;;  %v11193_v43 = vld [vmem:[#allocation13 + $0x234] ss:$8 sps:$4 sm:$0xff]  }
 0x683   : > { %v15478_v45 = vpack.c.bf16 %v7403_v38, %v7396_v47  ;;  %v7402_v34 = vmax.f32 %v7290_v23, 0.0  ;;  %v7164_v11 = vmul.f32 %v15255_v52, %v16789_v18  ;;  %v7297_v51 = vadd.f32 %v15209_v1, %v7149_v63  ;;  %v16791_v23 = vld [vmem:[#allocation86_spill] sm:$0xff] }
 0x684   : > { %v7410_v30 = vmax.f32 %v7298_v13, 0.0  ;;  %v7304_v42 = vadd.f32 %v15209_v1, %v7156_v12  ;;  %v7171_v35 = vmul.f32 %v15255_v52, %v16790_v9  ;;  %v7417_v47 = vmax.f32 %v7305_v6, 0.0  ;;  %v16792_v63 = vld [vmem:[#allocation66_spill] sm:$0xff] }
 0x685   : > { %8416 = vmatpush1.bf16.msra.mxu0 %v11185_v24  ;;  %v15487_v24 = vpack.c.bf16 %v7402_v34, %v7395_v26  ;;  %v7312_v38 = vadd.f32 %v15229_v5, %v7164_v11  ;;  %v7163_v55 = vmul.f32 %v15239_v31, %v16791_v23  ;;  %v7170_v12 = vmul.f32 %v15239_v31, %v16792_v63  ;;  %v11191_v26 = vld [vmem:[#allocation13 + $0x230] ss:$8 sps:$4 sm:$0xff]  }
 0x686   : > { %8417 = vmatprep.subr.bf16.mxu0 %v11190_v22  ;;  %v7409_v22 = vmax.f32 %v7297_v51, 0.0  ;;  %v7416_v54 = vmax.f32 %v7304_v42, 0.0  ;;  %v7319_v13 = vadd.f32 %v15229_v5, %v7171_v35  ;;  %v15497_v34 = vpack.c.bf16 %v7417_v47, %v7410_v30  ;;  %v16793_v11 = vld [vmem:[#allocation135_spill] sm:$0xff] }
 0x687   : > { %v7424_v6 = vmax.f32 %v7312_v38, 0.0  ;;  %v7311_v18 = vadd.f32 %v15209_v1, %v7163_v55  ;;  %v7178_v9 = vmul.f32 %v15255_v52, %v16793_v11  ;;  %v7318_v35 = vadd.f32 %v15209_v1, %v7170_v12  ;;  %v16794_v47 = vld [vmem:[#allocation119_spill] sm:$0xff] }
 0x688   : > { %8343 = vmatmul.mubr.bf16.gmra.mrb[100].mxu0 %v15297_v41  ;;  %v11196_v41 = vld [vmem:[#allocation13 + $0x244] ss:$8 sps:$4 sm:$0xff]   ;;  %v15502_v51 = vpack.c.bf16 %v7416_v54, %v7409_v22  ;;  %v7431_v42 = vmax.f32 %v7319_v13, 0.0  ;;  %v7177_v38 = vmul.f32 %v15239_v31, %v16794_v47  ;;  %v7184_v23 = vmul.f32 %v15239_v31, %v16716_v29  ;;  %v11194_v54 = vld [vmem:[#allocation13 + $0x240] ss:$8 sps:$4 sm:$0xff]  }
 0x689   : > { %8352 = vmatprep.mubr.bf16.mxu0 %v15365_v15  ;;  %8418 = vmatpush1.bf16.msra.mxu0 %v11188_v33  ;;  %v7185_v15 = vmul.f32 %v15255_v52, %v16717_v3  ;;  %v7423_v33 = vmax.f32 %v7311_v18, 0.0  ;;  %v7326_v30 = vadd.f32 %v15229_v5, %v7178_v9  ;;  %v11199_v52 = vld [vmem:[#allocation13 + $0x254] ss:$8 sps:$4 sm:$0xff]   ;;  %v7282_v12 = vadd.f32 %v15201_v48, %v15377_v57  ;;  %v11197_v57 = vld [vmem:[#allocation13 + $0x250] ss:$8 sps:$4 sm:$0xff]  }
 0x68a   : > { %8419 = vmatprep.subr.bf16.mxu0 %v11193_v43  ;;  %v15512_v55 = vpack.c.bf16 %v7431_v42, %v7424_v6  ;;  %v7430_v43 = vmax.f32 %v7318_v35, 0.0  ;;  %v7325_v63 = vadd.f32 %v15209_v1, %v7177_v38  ;;  %v7332_v3 = vadd.f32 %v15209_v1, %v7184_v23  ;;  %v11202_v9 = vld [vmem:[#allocation13 + $0x264] ss:$8 sps:$4 sm:$0xff]   ;;  %v11200_v42 = vld [vmem:[#allocation13 + $0x260] ss:$8 sps:$4 sm:$0xff]  }
 0x68b   : > { %v7333_v22 = vadd.f32 %v15229_v5, %v7185_v15  ;;  %v7438_v13 = vmax.f32 %v7326_v30, 0.0  ;;  %v7471_v5 = vpack.c.bf16 %v7387_v37, %v7380_v59  ;;  %v7289_v31 = vadd.f32 %v15201_v48, %v15388_v16  ;;  %v16796_v37 = vld [vmem:[#allocation98_spill] sm:$0xff]  ;;  %v11203_v30 = vld [vmem:[#allocation13 + $0x270] ss:$8 sps:$4 sm:$0xff]  }
 0x68c   : > { %v15519_v18 = vpack.c.bf16 %v7430_v43, %v7423_v33  ;;  %v7444_v6 = vmax.f32 %v7332_v3, 0.0  ;;  %v7394_v8 = vmax.f32 %v7282_v12, 0.0  ;;  %v7148_v59 = vmul.f32 %v15233_v10, %v16795_v27  ;;  %v11208_v47 = vld [vmem:[#allocation13 + $0x284] ss:$8 sps:$4 sm:$0xff]   ;;  %v11211_v3 = vld [vmem:[#allocation13 + $0x294] ss:$8 sps:$4 sm:$0xff]  }
 0x68d   : > { %8420 = vmatpush1.bf16.msra.mxu0 %v11191_v26  ;;  %v7445_v29 = vmax.f32 %v7333_v22, 0.0  ;;  %v7437_v26 = vmax.f32 %v7325_v63, 0.0  ;;  %v7155_v16 = vmul.f32 %v15233_v10, %v16796_v37  ;;  %v16797_v43 = vld [vmem:[#allocation55_spill] sm:$0xff]  ;;  %v11217_v27 = vld [vmem:[#allocation13 + $0x2b4] ss:$8 sps:$4 sm:$0xff]  }
 0x68e   : > { %8421 = vmatprep.subr.bf16.mxu0 %v11196_v41  ;;  %v7401_v41 = vmax.f32 %v7289_v31, 0.0  ;;  %v7296_v15 = vadd.f32 %v15201_v48, %v7148_v59  ;;  %v7162_v22 = vmul.f32 %v15233_v10, %v16797_v43  ;;  %v11206_v63 = vld [vmem:[#allocation13 + $0x280] ss:$8 sps:$4 sm:$0xff]   ;;  %v11388_v43 = vld [vmem:[#allocation13 + $0x314] ss:$8 sps:$4 sm:$0xff]  }
 0x68f   : > { %v15528_v1 = vpack.c.bf16 %v7445_v29, %v7438_v13  ;;  %v15530_v11 = vpack.c.bf16 %v7444_v6, %v7437_v26  ;;  %v7303_v33 = vadd.f32 %v15201_v48, %v7155_v16  ;;  %v11209_v29 = vld [vmem:[#allocation13 + $0x290] ss:$8 sps:$4 sm:$0xff]  }
 0x690   : > { %8353 = vmatmul.mubr.bf16.gmra.mrb[104].mxu0 %v15320_v14  ;;  %v11205_v14 = vld [vmem:[#allocation13 + $0x274] ss:$8 sps:$4 sm:$0xff]   ;;  %v7478_v35 = vpack.c.bf16 %v7401_v41, %v7394_v8  ;;  %v7408_v38 = vmax.f32 %v7296_v15, 0.0  ;;  %v11212_v41 = vld [vmem:[#allocation13 + $0x2a0] ss:$8 sps:$4 sm:$0xff]  }
 0x691   : > { %8362 = vmatprep.mubr.bf16.mxu0 %v7471_v5  ;;  %8422 = vmatpush1.bf16.msra.mxu0 %v11194_v54  ;;  %v7415_v23 = vmax.f32 %v7303_v33, 0.0  ;;  %v16798_v54 = vld [vmem:[#allocation99_spill] sm:$0xff]  ;;  %v16799_v6 = vld [vmem:[#allocation100_spill] sm:$0xff] }
 0x692   : > { %8423 = vmatprep.subr.bf16.mxu0 %v11199_v52  ;;  %v7169_v13 = vmul.f32 %v15233_v10, %v16798_v54  ;;  %v11214_v5 = vld [vmem:[#allocation13 + $0x2a4] ss:$8 sps:$4 sm:$0xff]   ;;  %v11215_v16 = vld [vmem:[#allocation13 + $0x2b0] ss:$8 sps:$4 sm:$0xff]   ;;  %v11223_v15 = vld [vmem:[#allocation13 + $0x2d4] ss:$8 sps:$4 sm:$0xff]  }
 0x693   : > { %v7485_v52 = vpack.c.bf16 %v7415_v23, %v7408_v38  ;;  %v11227_v38 = vld [vmem:[#allocation13 + $0x2f0] ss:$8 sps:$4 sm:$0xff]   ;;  %v11386_v23 = vld [vmem:[#allocation13 + $0x304] ss:$8 sps:$4 sm:$0xff]  }
 0x694   : > { %v7317_v12 = vadd.f32 %v15201_v48, %v7169_v13  ;;  %v11390_v54 = vld [vmem:[#allocation13 + $0x324] ss:$8 sps:$4 sm:$0xff]   ;;  %v11393_v13 = vld [vmem:[#allocation13 + $0x330] ss:$8 sps:$4 sm:$0xff]  }
 0x695   : > { %8424 = vmatpush1.bf16.msra.mxu0 %v11197_v57  ;;  %v7176_v57 = vmul.f32 %v15233_v10, %v16799_v6  ;;  %v16803_v6 = vld [vmem:[#allocation60_spill] sm:$0xff] }
 0x696   : > { %8425 = vmatprep.subr.bf16.mxu0 %v11202_v9  ;;  %v7429_v26 = vmax.f32 %v7317_v12, 0.0  ;;  %v16800_v9 = vld [vmem:[#allocation76_spill] sm:$0xff] }
 0x697   : > { %v7183_v8 = vmul.f32 %v15233_v10, %v16800_v9  ;;  %v11218_v10 = vld [vmem:[#allocation13 + $0x2c0] ss:$8 sps:$4 sm:$0xff]  }
 0x698   : > { %8363 = vmatmul.mubr.bf16.gmra.mrb[108].mxu0 %v15333_v21  ;;  %v7310_v21 = vadd.f32 %v15201_v48, %v7162_v22  ;;  %v11389_v22 = vld [vmem:[#allocation13 + $0x310] ss:$8 sps:$4 sm:$0xff]  }
 0x699   : > { %8372 = vmatprep.mubr.bf16.mxu0 %v7478_v35  ;;  %8426 = vmatpush1.bf16.msra.mxu0 %v11200_v42  ;;  %v7331_v37 = vadd.f32 %v15201_v48, %v7183_v8  ;;  %v11220_v42 = vld [vmem:[#allocation13 + $0x2c4] ss:$8 sps:$4 sm:$0xff]  }
 0x69a   : > { %8427 = vmatprep.subr.bf16.mxu0 %v11205_v14  ;;  %v7422_v31 = vmax.f32 %v7310_v21, 0.0  ;;  %v11401_v21 = vld [vmem:[#allocation13 + $0x370] ss:$8 sps:$4 sm:$0xff]  }
 0x69b   : > { %v7443_v35 = vmax.f32 %v7331_v37, 0.0 }
 0x69c   : > { %v7492_v59 = vpack.c.bf16 %v7429_v26, %v7422_v31  ;;  %v7109_v26 = vmul.f32 %v15122_v39, %v15007_v17 }
 0x69d   : > { %8428 = vmatpush1.bf16.msra.mxu0 %v11203_v30  ;;  %v11221_v30 = vld [vmem:[#allocation13 + $0x2d0] ss:$8 sps:$4 sm:$0xff]  }
 0x69e   : > { %8429 = vmatprep.subr.bf16.mxu0 %v11208_v47  ;;  %v11229_v47 = vld [vmem:[#allocation13 + $0x2f4] ss:$8 sps:$4 sm:$0xff]   ;;  %v7257_v9 = vadd.f32 %v15118_v19, %v7109_v26 }
 0x6a0   : > { %8373 = vmatmul.mubr.bf16.gmra.mrb[112].mxu0 %v15346_v32  ;;  %v7324_v32 = vadd.f32 %v15201_v48, %v7176_v57  ;;  %v11226_v48 = vld [vmem:[#allocation13 + $0x2e4] ss:$8 sps:$4 sm:$0xff]   ;;  %v7116_v57 = vmul.f32 %v15122_v39, %v16803_v6  ;;  %v7369_v8 = vmax.f32 %v7257_v9, 0.0 }
 0x6a1   : > { %8382 = vmatprep.mubr.bf16.mxu0 %v7485_v52  ;;  %8430 = vmatpush1.bf16.msra.mxu0 %v11206_v63  ;;  %v11396_v63 = vld [vmem:[#allocation13 + $0x354] ss:$8 sps:$4 sm:$0xff]  }
 0x6a2   : > { %8431 = vmatprep.subr.bf16.mxu0 %v11211_v3  ;;  %v7436_v14 = vmax.f32 %v7324_v32, 0.0  ;;  %v11397_v3 = vld [vmem:[#allocation13 + $0x350] ss:$8 sps:$4 sm:$0xff]   ;;  %v11400_v52 = vld [vmem:[#allocation13 + $0x374] ss:$8 sps:$4 sm:$0xff]  }
 0x6a4   : > { %v7499_v33 = vpack.c.bf16 %v7443_v35, %v7436_v14  ;;  %v7137_v14 = vmul.f32 %v15122_v39, %v15019_v0  ;;  %v7144_v35 = vmul.f32 %v15122_v39, %v15022_v20 }
 0x6a5   : > { %8432 = vmatpush1.bf16.msra.mxu0 %v11209_v29 }
 0x6a6   : > { %8433 = vmatprep.subr.bf16.mxu0 %v11214_v5 }
 0x6a8   : > { %8383 = vmatmul.mubr.bf16.gmra.mrb[116].mxu0 %v15362_v44  ;;  %v11224_v44 = vld [vmem:[#allocation13 + $0x2e0] ss:$8 sps:$4 sm:$0xff]  }
 0x6a9   : > { %8392 = vmatprep.mubr.bf16.mxu0 %v7492_v59  ;;  %8434 = vmatpush1.bf16.msra.mxu0 %v11212_v41  ;;  %v7130_v59 = vmul.f32 %v15122_v39, %v15016_v61 }
 0x6aa   : > { %8435 = vmatprep.subr.bf16.mxu0 %v11217_v27  ;;  %v7123_v27 = vmul.f32 %v15122_v39, %v15013_v53 }
 0x6ab   : > { %v7278_v37 = vadd.f32 %v15118_v19, %v7130_v59 }
 0x6ac   : > { %v7271_v32 = vadd.f32 %v15118_v19, %v7123_v27 }
 0x6ad   : > { %8436 = vmatpush1.bf16.msra.mxu0 %v11215_v16 }
 0x6ae   : > { %8437 = vmatprep.subr.bf16.mxu0 %v11220_v42  ;;  %v7383_v16 = vmax.f32 %v7271_v32, 0.0  ;;  %v7390_v42 = vmax.f32 %v7278_v37, 0.0 }
 0x6b0   : > { %8393 = vmatmul.mubr.bf16.gmra.mrb[120].mxu0 %v15390_v7  ;;  %v11387_v7 = vld [vmem:[#allocation13 + $0x300] ss:$8 sps:$4 sm:$0xff]  }
 0x6b1   : > { %8402 = vmatprep.mubr.bf16.mxu0 %v7499_v33  ;;  %8438 = vmatpush1.bf16.msra.mxu0 %v11218_v10  ;;  %v7474_v33 = vpack.c.bf16 %v7390_v42, %v7383_v16 }
 0x6b2   : > { %8439 = vmatprep.subr.bf16.mxu0 %v11223_v15 }
 0x6b5   : > { %8440 = vmatpush1.bf16.msra.mxu0 %v11221_v30  ;;  %v7285_v30 = vadd.f32 %v15118_v19, %v7137_v14 }
 0x6b6   : > { %8441 = vmatprep.subr.bf16.mxu0 %v11226_v48  ;;  %v7292_v48 = vadd.f32 %v15118_v19, %v7144_v35 }
 0x6b8   : > { %8403 = vmatmul.mubr.bf16.gmra.mrb[124].mxu0 %v15402_v28  ;;  %v11391_v28 = vld [vmem:[#allocation13 + $0x320] ss:$8 sps:$4 sm:$0xff]  }
 0x6b9   : > { %8442 = vmatpush1.bf16.msra.mxu0 %v11224_v44  ;;  %8445 = vmatprep.mubr.bf16.mxu0 %v15412_v40  ;;  %v11392_v40 = vld [vmem:[#allocation13 + $0x334] ss:$8 sps:$4 sm:$0xff]   ;;  %v7397_v44 = vmax.f32 %v7285_v30, 0.0 }
 0x6ba   : > { %8443 = vmatprep.subr.bf16.mxu0 %v11229_v47  ;;  %v7404_v47 = vmax.f32 %v7292_v48, 0.0 }
 0x6bd   : > { %8444 = vmatpush1.bf16.msra.mxu0 %v11227_v38  ;;  %v16804_v38 = vld [vmem:[#allocation62_spill] sm:$0xff] }
 0x6be   : > { %8526 = vmatprep.subr.bf16.mxu0 %v11386_v23  ;;  %v7151_v0 = vmul.f32 %v15122_v39, %v16804_v38  ;;  %v16805_v23 = vld [vmem:[#allocation72_spill] sm:$0xff] }
 0x6bf   : > { %v7158_v20 = vmul.f32 %v15122_v39, %v16805_v23 }
 0x6c0   : > { %8446 = vmatmul.mubr.bf16.vlgmr.msra.gmra.mrb[96].mxu0 %v15421_v46  ;;  %v11394_v46 = vld [vmem:[#allocation13 + $0x344] ss:$8 sps:$4 sm:$0xff]  }
 0x6c1   : > { %8455 = vmatprep.mubr.bf16.mxu0 %v15429_v25  ;;  %8527 = vmatpush1.bf16.msra.mxu0 %v11387_v7  ;;  %v11395_v25 = vld [vmem:[#allocation13 + $0x340] ss:$8 sps:$4 sm:$0xff]  }
 0x6c2   : > { %8528 = vmatprep.subr.bf16.mxu0 %v11388_v43 }
 0x6c5   : > { %8529 = vmatpush1.bf16.msra.mxu0 %v11389_v22 }
 0x6c6   : > { %8530 = vmatprep.subr.bf16.mxu0 %v11390_v54 }
 0x6c8   : > { %8456 = vmatmul.mubr.bf16.gmra.mrb[100].mxu0 %v15434_v36  ;;  %v11398_v36 = vld [vmem:[#allocation13 + $0x364] ss:$8 sps:$4 sm:$0xff]  }
 0x6c9   : > { %8465 = vmatprep.mubr.bf16.mxu0 %v15444_v50  ;;  %8531 = vmatpush1.bf16.msra.mxu0 %v11391_v28  ;;  %v11399_v50 = vld [vmem:[#allocation13 + $0x360] ss:$8 sps:$4 sm:$0xff]   ;;  %v7481_v28 = vpack.c.bf16 %v7404_v47, %v7397_v44 }
 0x6ca   : > { %8532 = vmatprep.subr.bf16.mxu0 %v11392_v40  ;;  %v7299_v40 = vadd.f32 %v15118_v19, %v7151_v0 }
 0x6cd   : > { %8533 = vmatpush1.bf16.msra.mxu0 %v11393_v13  ;;  %v7306_v13 = vadd.f32 %v15118_v19, %v7158_v20 }
 0x6ce   : > { %8534 = vmatprep.subr.bf16.mxu0 %v11394_v46  ;;  %v7411_v46 = vmax.f32 %v7299_v40, 0.0 }
 0x6d0   : > { %8466 = vmatmul.mubr.bf16.gmra.mrb[104].mxu0 %v15454_v4  ;;  %v16801_v4 = vld [vmem:[#allocation67_spill] sm:$0xff] }
 0x6d1   : > { %8475 = vmatprep.mubr.bf16.mxu0 %v15463_v58  ;;  %8535 = vmatpush1.bf16.msra.mxu0 %v11395_v25  ;;  %v7081_v58 = vmul.f32 %v15122_v39, %v16801_v4  ;;  %v7418_v25 = vmax.f32 %v7306_v13, 0.0 }
 0x6d2   : > { %8536 = vmatprep.subr.bf16.mxu0 %v11396_v63 }
 0x6d3   : > { %v7229_v12 = vadd.f32 %v15118_v19, %v7081_v58  ;;  %v7488_v63 = vpack.c.bf16 %v7418_v25, %v7411_v46 }
 0x6d5   : > { %8537 = vmatpush1.bf16.msra.mxu0 %v11397_v3  ;;  %v7615_v3 = vld [vmem:[#allocation14] sm:$0x3] }
 0x6d6   : > { %8538 = vmatprep.subr.bf16.mxu0 %v11398_v36  ;;  %v15614_v36 = vrot.slane %v7615_v3, %v16719_v49 }
 0x6d8   : > { %8476 = vmatmul.mubr.bf16.gmra.mrb[108].mxu0 %v15468_v56  ;;  %v16802_v56 = vld [vmem:[#allocation88_spill] sm:$0xff] }
 0x6d9   : > { %8485 = vmatprep.mubr.bf16.mxu0 %v15478_v45  ;;  %8539 = vmatpush1.bf16.msra.mxu0 %v11399_v50  ;;  %v7088_v45 = vmul.f32 %v15122_v39, %v16802_v56 }
 0x6da   : > { %8540 = vmatprep.subr.bf16.mxu0 %v11400_v52 }
 0x6dd   : > { %8541 = vmatpush1.bf16.msra.mxu0 %v11401_v21 }
 0x6e0   : > { %8486 = vmatmul.mubr.bf16.gmra.mrb[112].mxu0 %v15487_v24  ;;  %v7236_v24 = vadd.f32 %v15118_v19, %v7088_v45 }
 0x6e1   : > { %8495 = vmatprep.mubr.bf16.mxu0 %v15497_v34  ;;  %v7341_v34 = vmax.f32 %v7229_v12, 0.0 }
 0x6e8   : > { %8496 = vmatmul.mubr.bf16.gmra.mrb[116].mxu0 %v15502_v51  ;;  %v7348_v51 = vmax.f32 %v7236_v24, 0.0 }
 0x6e9   : > { %8505 = vmatprep.mubr.bf16.mxu0 %v15512_v55  ;;  %v7095_v55 = vmul.f32 %v15122_v39, %v15001_v2 }
 0x6eb   : > { %v7243_v29 = vadd.f32 %v15118_v19, %v7095_v55 }
 0x6ed   : > { %v7355_v31 = vmax.f32 %v7243_v29, 0.0 }
 0x6f0   : > { %8506 = vmatmul.mubr.bf16.gmra.mrb[120].mxu0 %v15519_v18  ;;  %v7102_v18 = vmul.f32 %v15122_v39, %v15004_v60  ;;  %v7264_v60 = vadd.f32 %v15118_v19, %v7116_v57  ;;  %v16806_v39 = vld [vmem:[#allocation115_spill] sm:$0xff] }
 0x6f1   : > { %8515 = vmatprep.mubr.bf16.mxu0 %v15528_v1  ;;  %v7453_v1 = vpack.c.bf16 %v7348_v51, %v7341_v34  ;;  %v15617_v50 = vrot.slane %v7615_v3, %v16806_v39 }
 0x6f2   : > { %v7250_v5 = vadd.f32 %v15118_v19, %v7102_v18  ;;  %v7376_v41 = vmax.f32 %v7264_v60, 0.0 }
 0x6f4   : > { %v7467_v17 = vpack.c.bf16 %v7376_v41, %v7369_v8 }
 0x6f8   : > { %8516 = vmatmul.mubr.bf16.gmra.mrb[124].mxu0 %v15530_v11  ;;  %v7362_v11 = vmax.f32 %v7250_v5, 0.0 }
 0x6f9   : > { %8558 = vmatprep.mubr.bf16.mxu0 %v16731_v62 }
 0x6fa   : > { %v7460_v2 = vpack.c.bf16 %v7362_v11, %v7355_v31 }
 0x700   : > { %8559 = vmatmul.mubr.bf16.vlgmr.msra.gmra.mrb[96].mxu0 %v7453_v1 }
 0x701   : > { %8568 = vmatprep.mubr.bf16.mxu0 %v16731_v62 }
 0x708   : > { %8569 = vmatmul.mubr.bf16.gmra.mrb[100].mxu0 %v7460_v2 }
 0x709   : > { %8578 = vmatprep.mubr.bf16.mxu0 %v16731_v62 }
 0x710   : > { %8579 = vmatmul.mubr.bf16.gmra.mrb[104].mxu0 %v7467_v17 }
 0x711   : > { %8588 = vmatprep.mubr.bf16.mxu0 %v16731_v62 }
 0x713   : > { %v8620_v53 = vpop.f32.mrb[0].mxu1 }
 0x714   : > { %v8622_v10 = vpop.f32.mrb[1].mxu1 }
 0x715   : > { %v8624_v15 = vpop.f32.mrb[2].mxu1 }
 0x716   : > { %v8626_v61 = vpop.f32.mrb[3].mxu1 }
 0x718   : > { %8589 = vmatmul.mubr.bf16.gmra.mrb[108].mxu0 %v7474_v33 }
 0x719   : > { %8598 = vmatprep.mubr.bf16.mxu0 %v16731_v62 }
 0x71b   : > { %v8630_v7 = vpop.f32.mrb[4].mxu1 }
 0x71c   : > { %v8632_v43 = vpop.f32.mrb[5].mxu1 }
 0x71d   : > { %v8634_v22 = vpop.f32.mrb[6].mxu1 }
 0x71e   : > { %v8636_v54 = vpop.f32.mrb[7].mxu1 }
 0x720   : > { %8599 = vmatmul.mubr.bf16.gmra.mrb[112].mxu0 %v7481_v28 }
 0x721   : > { %8608 = vmatprep.mubr.bf16.mxu0 %v16731_v62 }
 0x728   : > { %8609 = vmatmul.mubr.bf16.gmra.mrb[116].mxu0 %v7488_v63 }
 0x7c3   : > { %v8507_v52 = vpop.f32.mrb[120].mxu0 }
 0x7c4   : > { %v10010_v21 = vadd.f32 %v8507_v52, %v15614_v36  ;;  %v8509_v4 = vpop.f32.mrb[121].mxu0 }
 0x7c5   : > { %v10012_v19 = vadd.f32 %v8509_v4, %v15617_v50  ;;  %v8511_v58 = vpop.f32.mrb[122].mxu0 }
 0x7c6   : > { %v10011_v56 = vadd.f32 %v10010_v21, %v8620_v53  ;;  %v10014_v62 = vadd.f32 %v8511_v58, %v15614_v36  ;;  %v8513_v45 = vpop.f32.mrb[123].mxu0 }
 0x7c7   : > { %v10013_v12 = vadd.f32 %v10012_v19, %v8622_v10  ;;  %v10016_v24 = vadd.f32 %v8513_v45, %v15617_v50 }
 0x7c8   : > { %v9640_v34 = vmul.f32 -1.442695, %v10011_v56  ;;  %v10015_v49 = vadd.f32 %v10014_v62, %v8624_v15 }
 0x7c9   : > { %v9641_v51 = vmul.f32 -1.442695, %v10013_v12  ;;  %v10017_v55 = vadd.f32 %v10016_v24, %v8626_v61 }
 0x7ca   : > { %11258 = vpow2.f32 %v9640_v34  ;;  %v9642_v18 = vmul.f32 -1.442695, %v10015_v49 }
 0x7cb   : > { %11260 = vpow2.f32 %v9641_v51  ;;  %v9643_v1 = vmul.f32 -1.442695, %v10017_v55  ;;  %v8517_v29 = vpop.f32.mrb[124].mxu0 }
 0x7cc   : > { %11262 = vpow2.f32 %v9642_v18  ;;  %v10018_v5 = vadd.f32 %v8517_v29, %v15614_v36  ;;  %v8519_v31 = vpop.f32.mrb[125].mxu0 }
 0x7cd   : > { %11264 = vpow2.f32 %v9643_v1  ;;  %v10020_v11 = vadd.f32 %v8519_v31, %v15617_v50  ;;  %v8521_v26 = vpop.f32.mrb[126].mxu0 }
 0x7ce   : > { %v10019_v6 = vadd.f32 %v10018_v5, %v8630_v7  ;;  %v10022_v57 = vadd.f32 %v8521_v26, %v15614_v36  ;;  %v8523_v2 = vpop.f32.mrb[127].mxu0 }
 0x7cf   : > { %v10021_v9 = vadd.f32 %v10020_v11, %v8632_v43  ;;  %v10024_v60 = vadd.f32 %v8523_v2, %v15617_v50 }
 0x7d0   : > { %v9644_v8 = vmul.f32 -1.442695, %v10019_v6  ;;  %v10023_v41 = vadd.f32 %v10022_v57, %v8634_v22 }
 0x7d1   : > { %v9645_v27 = vmul.f32 -1.442695, %v10021_v9  ;;  %v10025_v59 = vadd.f32 %v10024_v60, %v8636_v54 }
 0x7d2   : > { %11266 = vpow2.f32 %v9644_v8  ;;  %v9646_v17 = vmul.f32 -1.442695, %v10023_v41 }
 0x7d3   : > { %11268 = vpow2.f32 %v9645_v27  ;;  %v9647_v32 = vmul.f32 -1.442695, %v10025_v59  ;;  %v8560_v37 = vpop.f32.mrb[96].mxu0 }
 0x7d4   : > { %v11259_v16 = vpop.eup %11258  ;;  %11270 = vpow2.f32 %v9646_v17  ;;  %v9986_v42 = vadd.f32 %v8560_v37, %v15614_v36  ;;  %v8562_v14 = vpop.f32.mrb[97].mxu0 }
 0x7d5   : > { %v11261_v35 = vpop.eup %11260  ;;  %v8759_v53 = vadd.f32 1.0, %v11259_v16  ;;  %11272 = vpow2.f32 %v9647_v32  ;;  %v9987_v10 = vadd.f32 %v8562_v14, %v15617_v50  ;;  %v8564_v15 = vpop.f32.mrb[98].mxu0 }
 0x7d6   : > { %v11263_v61 = vpop.eup %11262  ;;  %v8760_v33 = vadd.f32 1.0, %v11261_v35  ;;  %v9988_v30 = vadd.f32 %v8564_v15, %v15614_v36  ;;  %v8566_v48 = vpop.f32.mrb[99].mxu0  ;;  %v9616_v38 = vmul.f32 -1.442695, %v9986_v42 }
 0x7d7   : > { %v11265_v44 = vpop.eup %11264  ;;  %11274 = vrcp.f32 %v8759_v53  ;;  %v8761_v47 = vadd.f32 1.0, %v11263_v61  ;;  %v9989_v0 = vadd.f32 %v8566_v48, %v15617_v50  ;;  %v9617_v20 = vmul.f32 -1.442695, %v9987_v10 }
 0x7d8   : > { %11276 = vrcp.f32 %v8760_v33  ;;  %v8762_v23 = vadd.f32 1.0, %v11265_v44  ;;  %v9618_v7 = vmul.f32 -1.442695, %v9988_v30 }
 0x7d9   : > { %11278 = vrcp.f32 %v8761_v47  ;;  %v9619_v43 = vmul.f32 -1.442695, %v9989_v0 }
 0x7da   : > { %11280 = vrcp.f32 %v8762_v23 }
 0x7db   : > { %11282 = vpow2.f32 %v9616_v38  ;;  %v8570_v22 = vpop.f32.mrb[100].mxu0 }
 0x7dc   : > { %v11267_v54 = vpop.eup %11266  ;;  %11284 = vpow2.f32 %v9617_v20  ;;  %v9990_v28 = vadd.f32 %v8570_v22, %v15614_v36  ;;  %v8572_v40 = vpop.f32.mrb[101].mxu0 }
 0x7dd   : > { %v11269_v13 = vpop.eup %11268  ;;  %v8763_v46 = vadd.f32 1.0, %v11267_v54  ;;  %11286 = vpow2.f32 %v9618_v7  ;;  %v9991_v25 = vadd.f32 %v8572_v40, %v15617_v50  ;;  %v8574_v63 = vpop.f32.mrb[102].mxu0 }
 0x7de   : > { %v11271_v3 = vpop.eup %11270  ;;  %v8764_v39 = vadd.f32 1.0, %v11269_v13  ;;  %11288 = vpow2.f32 %v9619_v43  ;;  %v9992_v52 = vadd.f32 %v8574_v63, %v15614_v36  ;;  %v8576_v21 = vpop.f32.mrb[103].mxu0  ;;  %v9620_v58 = vmul.f32 -1.442695, %v9990_v28 }
 0x7df   : > { %v11273_v4 = vpop.eup %11272  ;;  %11290 = vrcp.f32 %v8763_v46  ;;  %v8765_v19 = vadd.f32 1.0, %v11271_v3  ;;  %v9993_v56 = vadd.f32 %v8576_v21, %v15617_v50  ;;  %v9621_v45 = vmul.f32 -1.442695, %v9991_v25 }
 0x7e0   : > { %11292 = vrcp.f32 %v8764_v39  ;;  %v8766_v62 = vadd.f32 1.0, %v11273_v4  ;;  %v9622_v24 = vmul.f32 -1.442695, %v9992_v52 }
 0x7e1   : > { %v11275_v12 = vpop.eup %11274  ;;  %11294 = vrcp.f32 %v8765_v19  ;;  %v9623_v49 = vmul.f32 -1.442695, %v9993_v56 }
 0x7e2   : > { %v11277_v34 = vpop.eup %11276  ;;  %8855 = vst [vmem:[%s15638_s23 + $0xc0] sm:$0xff] %v11275_v12  ;;  %11296 = vrcp.f32 %v8766_v62 }
 0x7e3   : > { %v11279_v51 = vpop.eup %11278  ;;  %8856 = vst [vmem:[%s15638_s23 + $0xc8] sm:$0xff] %v11277_v34  ;;  %11298 = vpow2.f32 %v9620_v58  ;;  %v8580_v55 = vpop.f32.mrb[104].mxu0 }
 0x7e4   : > { %v11281_v18 = vpop.eup %11280  ;;  %8857 = vst [vmem:[%s15638_s23 + $0xd0] sm:$0xff] %v11279_v51  ;;  %11300 = vpow2.f32 %v9621_v45  ;;  %v9994_v1 = vadd.f32 %v8580_v55, %v15614_v36  ;;  %v8582_v29 = vpop.f32.mrb[105].mxu0 }
 0x7e5   : > { %v11283_v5 = vpop.eup %11282  ;;  %8858 = vst [vmem:[%s15638_s23 + $0xd8] sm:$0xff] %v11281_v18  ;;  %11302 = vpow2.f32 %v9622_v24  ;;  %v9995_v31 = vadd.f32 %v8582_v29, %v15617_v50  ;;  %v8584_v11 = vpop.f32.mrb[106].mxu0 }
 0x7e6   : > { %v11285_v26 = vpop.eup %11284  ;;  %v8735_v6 = vadd.f32 1.0, %v11283_v5  ;;  %11304 = vpow2.f32 %v9623_v49  ;;  %v9996_v57 = vadd.f32 %v8584_v11, %v15614_v36  ;;  %v8586_v2 = vpop.f32.mrb[107].mxu0  ;;  %v9624_v59 = vmul.f32 -1.442695, %v9994_v1 }
 0x7e7   : > { %v11287_v9 = vpop.eup %11286  ;;  %v8736_v60 = vadd.f32 1.0, %v11285_v26  ;;  %v9997_v8 = vadd.f32 %v8586_v2, %v15617_v50  ;;  %v9625_v37 = vmul.f32 -1.442695, %v9995_v31 }
 0x7e8   : > { %v11289_v41 = vpop.eup %11288  ;;  %11306 = vrcp.f32 %v8735_v6  ;;  %v8737_v27 = vadd.f32 1.0, %v11287_v9  ;;  %v9626_v42 = vmul.f32 -1.442695, %v9996_v57 }
 0x7e9   : > { %v11291_v17 = vpop.eup %11290  ;;  %11308 = vrcp.f32 %v8736_v60  ;;  %v8738_v32 = vadd.f32 1.0, %v11289_v41  ;;  %v9627_v35 = vmul.f32 -1.442695, %v9997_v8 }
 0x7ea   : > { %v11293_v16 = vpop.eup %11292  ;;  %8859 = vst [vmem:[%s15638_s23 + $0xe0] sm:$0xff] %v11291_v17  ;;  %11310 = vrcp.f32 %v8737_v27 }
 0x7eb   : > { %v11295_v14 = vpop.eup %11294  ;;  %8860 = vst [vmem:[%s15638_s23 + $0xe8] sm:$0xff] %v11293_v16  ;;  %11312 = vrcp.f32 %v8738_v32  ;;  %v8590_v53 = vpop.f32.mrb[108].mxu0 }
 0x7ec   : > { %v11297_v10 = vpop.eup %11296  ;;  %8861 = vst [vmem:[%s15638_s23 + $0xf0] sm:$0xff] %v11295_v14  ;;  %11314 = vpow2.f32 %v9624_v59  ;;  %v9998_v15 = vadd.f32 %v8590_v53, %v15614_v36  ;;  %v8592_v61 = vpop.f32.mrb[109].mxu0 }
 0x7ed   : > { %v11299_v33 = vpop.eup %11298  ;;  %8862 = vst [vmem:[%s15638_s23 + $0xf8] sm:$0xff] %v11297_v10  ;;  %11316 = vpow2.f32 %v9625_v37  ;;  %v9999_v30 = vadd.f32 %v8592_v61, %v15617_v50  ;;  %v8594_v48 = vpop.f32.mrb[110].mxu0 }
 0x7ee   : > { %v11301_v44 = vpop.eup %11300  ;;  %v8739_v47 = vadd.f32 1.0, %v11299_v33  ;;  %11318 = vpow2.f32 %v9626_v42  ;;  %v10000_v38 = vadd.f32 %v8594_v48, %v15614_v36  ;;  %v8596_v0 = vpop.f32.mrb[111].mxu0  ;;  %v9628_v54 = vmul.f32 -1.442695, %v9998_v15 }
 0x7ef   : > { %v11303_v23 = vpop.eup %11302  ;;  %v8740_v20 = vadd.f32 1.0, %v11301_v44  ;;  %11320 = vpow2.f32 %v9627_v35  ;;  %v10001_v7 = vadd.f32 %v8596_v0, %v15617_v50  ;;  %v9629_v40 = vmul.f32 -1.442695, %v9999_v30 }
 0x7f0   : > { %v11305_v43 = vpop.eup %11304  ;;  %11322 = vrcp.f32 %v8739_v47  ;;  %v8741_v22 = vadd.f32 1.0, %v11303_v23  ;;  %v9630_v46 = vmul.f32 -1.442695, %v10000_v38 }
 0x7f1   : > { %11324 = vrcp.f32 %v8740_v20  ;;  %v8742_v28 = vadd.f32 1.0, %v11305_v43  ;;  %v9631_v63 = vmul.f32 -1.442695, %v10001_v7 }
 0x7f2   : > { %v11307_v13 = vpop.eup %11306  ;;  %11326 = vrcp.f32 %v8741_v22 }
 0x7f3   : > { %v11309_v25 = vpop.eup %11308  ;;  %8831 = vst [vmem:[%s15638_s23] sm:$0xff] %v11307_v13  ;;  %11328 = vrcp.f32 %v8742_v28  ;;  %v8600_v3 = vpop.f32.mrb[112].mxu0 }
 0x7f4   : > { %v11311_v39 = vpop.eup %11310  ;;  %8832 = vst [vmem:[%s15638_s23 + $0x8] sm:$0xff] %v11309_v25  ;;  %11330 = vpow2.f32 %v9628_v54  ;;  %v10002_v52 = vadd.f32 %v8600_v3, %v15614_v36  ;;  %v8602_v21 = vpop.f32.mrb[113].mxu0 }
 0x7f5   : > { %v11313_v4 = vpop.eup %11312  ;;  %8833 = vst [vmem:[%s15638_s23 + $0x10] sm:$0xff] %v11311_v39  ;;  %11332 = vpow2.f32 %v9629_v40  ;;  %v10003_v19 = vadd.f32 %v8602_v21, %v15617_v50  ;;  %v8604_v58 = vpop.f32.mrb[114].mxu0 }
 0x7f6   : > { %v11315_v56 = vpop.eup %11314  ;;  %8834 = vst [vmem:[%s15638_s23 + $0x18] sm:$0xff] %v11313_v4  ;;  %11334 = vpow2.f32 %v9630_v46  ;;  %v9632_v62 = vmul.f32 -1.442695, %v10002_v52  ;;  %v10004_v45 = vadd.f32 %v8604_v58, %v15614_v36  ;;  %v8606_v12 = vpop.f32.mrb[115].mxu0 }
 0x7f7   : > { %v11317_v24 = vpop.eup %11316  ;;  %v8743_v34 = vadd.f32 1.0, %v11315_v56  ;;  %11336 = vpow2.f32 %v9631_v63  ;;  %v10005_v49 = vadd.f32 %v8606_v12, %v15617_v50  ;;  %v9633_v29 = vmul.f32 -1.442695, %v10003_v19 }
 0x7f8   : > { %v11319_v51 = vpop.eup %11318  ;;  %v8744_v55 = vadd.f32 1.0, %v11317_v24  ;;  %11338 = vpow2.f32 %v9632_v62  ;;  %v9634_v11 = vmul.f32 -1.442695, %v10004_v45 }
 0x7f9   : > { %v11321_v18 = vpop.eup %11320  ;;  %11340 = vrcp.f32 %v8743_v34  ;;  %v8745_v1 = vadd.f32 1.0, %v11319_v51  ;;  %v9635_v6 = vmul.f32 -1.442695, %v10005_v49 }
 0x7fa   : > { %v11323_v5 = vpop.eup %11322  ;;  %11342 = vrcp.f32 %v8744_v55  ;;  %v8746_v31 = vadd.f32 1.0, %v11321_v18 }
 0x7fb   : > { %v11325_v26 = vpop.eup %11324  ;;  %8835 = vst [vmem:[%s15638_s23 + $0x20] sm:$0xff] %v11323_v5  ;;  %11344 = vrcp.f32 %v8745_v1  ;;  %v8610_v57 = vpop.f32.mrb[116].mxu0 }
 0x7fc   : > { %v11327_v2 = vpop.eup %11326  ;;  %8836 = vst [vmem:[%s15638_s23 + $0x28] sm:$0xff] %v11325_v26  ;;  %11346 = vrcp.f32 %v8746_v31  ;;  %v10006_v9 = vadd.f32 %v8610_v57, %v15614_v36  ;;  %v8612_v60 = vpop.f32.mrb[117].mxu0 }
 0x7fd   : > { %v11329_v8 = vpop.eup %11328  ;;  %8837 = vst [vmem:[%s15638_s23 + $0x30] sm:$0xff] %v11327_v2  ;;  %11348 = vpow2.f32 %v9633_v29  ;;  %v8614_v41 = vpop.f32.mrb[118].mxu0  ;;  %v10007_v17 = vadd.f32 %v8612_v60, %v15617_v50 }
 0x7fe   : > { %v11331_v27 = vpop.eup %11330  ;;  %8838 = vst [vmem:[%s15638_s23 + $0x38] sm:$0xff] %v11329_v8  ;;  %11350 = vpow2.f32 %v9634_v11  ;;  %v9636_v59 = vmul.f32 -1.442695, %v10006_v9  ;;  %v10008_v32 = vadd.f32 %v8614_v41, %v15614_v36  ;;  %v8616_v37 = vpop.f32.mrb[119].mxu0 }
 0x7ff   : > { %v11333_v16 = vpop.eup %11332  ;;  %v8747_v42 = vadd.f32 1.0, %v11331_v27  ;;  %11352 = vpow2.f32 %v9635_v6  ;;  %v10009_v14 = vadd.f32 %v8616_v37, %v15617_v50  ;;  %v9637_v30 = vmul.f32 -1.442695, %v10007_v17 }
 0x800   : > { %v11335_v35 = vpop.eup %11334  ;;  %v8748_v53 = vadd.f32 1.0, %v11333_v16  ;;  %11354 = vpow2.f32 %v9636_v59  ;;  %v9638_v44 = vmul.f32 -1.442695, %v10008_v32 }
 0x801   : > { %v11337_v10 = vpop.eup %11336  ;;  %11356 = vrcp.f32 %v8747_v42  ;;  %v8749_v15 = vadd.f32 1.0, %v11335_v35  ;;  %v9639_v50 = vmul.f32 -1.442695, %v10009_v14 }
 0x802   : > { %v11339_v61 = vpop.eup %11338  ;;  %11358 = vrcp.f32 %v8748_v53  ;;  %v8750_v33 = vadd.f32 1.0, %v11337_v10 }
 0x803   : > { %v11341_v36 = vpop.eup %11340  ;;  %11360 = vrcp.f32 %v8749_v15  ;;  %v8751_v48 = vadd.f32 1.0, %v11339_v61 }
 0x804   : > { %v11343_v47 = vpop.eup %11342  ;;  %8839 = vst [vmem:[%s15638_s23 + $0x40] sm:$0xff] %v11341_v36  ;;  %11362 = vrcp.f32 %v8750_v33 }
 0x805   : > { %v11345_v38 = vpop.eup %11344  ;;  %8840 = vst [vmem:[%s15638_s23 + $0x48] sm:$0xff] %v11343_v47  ;;  %11364 = vrcp.f32 %v8751_v48 }
 0x806   : > { %v11347_v0 = vpop.eup %11346  ;;  %8841 = vst [vmem:[%s15638_s23 + $0x50] sm:$0xff] %v11345_v38  ;;  %11366 = vpow2.f32 %v9637_v30 }
 0x807   : > { %v11349_v23 = vpop.eup %11348  ;;  %8842 = vst [vmem:[%s15638_s23 + $0x58] sm:$0xff] %v11347_v0  ;;  %11368 = vpow2.f32 %v9638_v44 }
 0x808   : > { %v11351_v20 = vpop.eup %11350  ;;  %v8752_v7 = vadd.f32 1.0, %v11349_v23  ;;  %11370 = vpow2.f32 %v9639_v50 }
 0x809   : > { %v11353_v43 = vpop.eup %11352  ;;  %v8753_v22 = vadd.f32 1.0, %v11351_v20 }
 0x80a   : > { %v11355_v54 = vpop.eup %11354  ;;  %11372 = vrcp.f32 %v8752_v7  ;;  %v8754_v28 = vadd.f32 1.0, %v11353_v43 }
 0x80b   : > { %v11357_v40 = vpop.eup %11356  ;;  %11374 = vrcp.f32 %v8753_v22  ;;  %v8755_v13 = vadd.f32 1.0, %v11355_v54 }
 0x80c   : > { %v11359_v46 = vpop.eup %11358  ;;  %8843 = vst [vmem:[%s15638_s23 + $0x60] sm:$0xff] %v11357_v40  ;;  %11376 = vrcp.f32 %v8754_v28 }
 0x80d   : > { %v11361_v25 = vpop.eup %11360  ;;  %8844 = vst [vmem:[%s15638_s23 + $0x68] sm:$0xff] %v11359_v46  ;;  %11378 = vrcp.f32 %v8755_v13 }
 0x80e   : > { %v11363_v63 = vpop.eup %11362  ;;  %8845 = vst [vmem:[%s15638_s23 + $0x70] sm:$0xff] %v11361_v25 }
 0x80f   : > { %v11365_v3 = vpop.eup %11364  ;;  %8846 = vst [vmem:[%s15638_s23 + $0x78] sm:$0xff] %v11363_v63 }
 0x810   : > { %v11367_v39 = vpop.eup %11366  ;;  %8847 = vst [vmem:[%s15638_s23 + $0x80] sm:$0xff] %v11365_v3 }
 0x811   : > { %v11369_v52 = vpop.eup %11368  ;;  %v8756_v21 = vadd.f32 1.0, %v11367_v39 }
 0x812   : > { %v11371_v4 = vpop.eup %11370  ;;  %v8757_v19 = vadd.f32 1.0, %v11369_v52 }
 0x813   : > { %11380 = vrcp.f32 %v8756_v21  ;;  %v8758_v58 = vadd.f32 1.0, %v11371_v4 }
 0x814   : > { %v11373_v56 = vpop.eup %11372  ;;  %11382 = vrcp.f32 %v8757_v19 }
 0x815   : > { %v11375_v62 = vpop.eup %11374  ;;  %8848 = vst [vmem:[%s15638_s23 + $0x88] sm:$0xff] %v11373_v56  ;;  %11384 = vrcp.f32 %v8758_v58 }
 0x816   : > { %v11377_v45 = vpop.eup %11376  ;;  %8849 = vst [vmem:[%s15638_s23 + $0x90] sm:$0xff] %v11375_v62 }
 0x817   : > { %v11379_v12 = vpop.eup %11378  ;;  %8850 = vst [vmem:[%s15638_s23 + $0x98] sm:$0xff] %v11377_v45 }
 0x818   : > { %8851 = vst [vmem:[%s15638_s23 + $0xa0] sm:$0xff] %v11379_v12 }
 0x81d   : > { %v11381_v24 = vpop.eup %11380 }
 0x81e   : > { %v11383_v34 = vpop.eup %11382  ;;  %8852 = vst [vmem:[%s15638_s23 + $0xa8] sm:$0xff] %v11381_v24 }
 0x81f   : > { %v11385_v49 = vpop.eup %11384  ;;  %8853 = vst [vmem:[%s15638_s23 + $0xb0] sm:$0xff] %v11383_v34 }
 0x820   : > { %8854 = vst [vmem:[%s15638_s23 + $0xb8] sm:$0xff] %v11385_v49 }
 0x821   : > { %11639 = shalt.err (!%p11636_p9)
}
 0x822   : > { %s11640_s1 = scalar_lea.hbm %s15690_s28, 4096  ;;  %s11644_s24 = scalar_lea.hbm %s15749_s9, 16384 }
 0x823   : > { %p11641_p12 = scmp.ne.s32.totalorder %s15690_s28, %s11640_s1  ;;  %p11645_p3 = scmp.lt.u32.totalorder %s15690_s28, %s15749_s9 }
 0x824   : > { %p11646_p4 = scmp.lt.u32.totalorder %s11644_s24, %s11640_s1  ;;  %p11648_p8 = scmp.lt.u32.totalorder %s11640_s1, %s15690_s28 }
 0x825   : > { %p11642_p10 = pnand %p11641_p12, %p16807_p11 }
 0x826   : > { %p11647_p7 = por %p11646_p4, %p11645_p3 }
 0x827   : > { %p11643_p2 = pneg %p11642_p10 }
 0x828   : > { %p11649_p13 = por %p11648_p8, %p11647_p7 }
 0x82a   : > { %p11650_p1 = pnand %p11649_p13, %p11643_p2 }
 0x82c   : > { %11653 = shalt.err (!%p11650_p1)
}
 0x82d   : > { %s11726_s14 = smov 256   ;;  %s11727_s23 = smov 16  }
 0x82e   : > { %10402 = dma.vmem_to_hbm [thread:$0]  (%p16807_p11), %s15692_s25, 4096, %s15690_s28, %s15699_s16, %s11726_s14, %s11726_s14, %s11727_s23  }
 0x82f PF: > { %p10449_p0 = scmp.ge.s32.totalorder %s11708_s12, 2  ;;  %s8892_s17 = sand.u32 1, %s11696_s30  }
 0x830   : > { %p16808_p6 = scmp.ne.s32.totalorder %s16080_s20, 0  ;;  %s8893_s11 = scalar_lea.sflag [#allocation4], %s8892_s17 }
 0x832   : > { %p10430_p5 = pnand %p10449_p0, %p16808_p6 }
 0x834   : > { %11691 = dma.done.wait (!%p10430_p5), %s8893_s11, 4096  }
 0x835   : > { %11693 = vsyncadd (!%p10430_p5), %s8893_s11, 4294963200  ;;  %s16809_s12 = sld [smem:[#allocation24_spill]]  ;;  %s16810_s22 = sld [smem:[#allocation23_spill]] }
 0x836   : > { %s16811_s11 = sld [smem:[#allocation25_spill]]  ;;  %s16812_s30 = smov %s11700_s10 }
 0x83b   : > { %p24_p9 = scmp.ge.s32.totalorder %s16809_s12, 6   ;;  %s16813_s10 = smov %s16810_s22 }
 0x83d   :  { %26 = sbr.rel (!%p24_p9) target bundleno = 11 (0xb), region = 124 }
 0x844   :  { %8898 = vsyncpa [#allocation3], 1 }
 0x845   :  { %8900 = vsyncpa [#allocation3 + $0x1], 1 }
 0x846   :  { %8901 = vsyncpa [#allocation6], 1 }
 0x847   :  { %8902 = vsyncpa [#allocation9], 1 }
 0x848   :  { %8903 = vsyncpa [#allocation12], 1 }
 0x849   :  { %8904 = vsyncpa [#allocation15], 1 }
 0x84a   :  { %8905 = vsyncpa [#allocation4], 1 }
 0x84b   :  { %8907 = vsyncpa [#allocation4 + $0x1], 1 }

</bundles_post_ra>
